<compile_context>
chip_gen: v7x
topology: tpu7x:2x2x1
jax: 0.10.0
libtpu: 0.0.40
codegen_flags: <defaults>
</compile_context>

<pallas_src>
import functools

import jax
import jax.numpy as jnp
from jax.experimental import pallas as pl
from jax.experimental.pallas import tpu as pltpu


_MIB = 1024 * 1024


def _compiler_params(**kw):
    cls = getattr(pltpu, "CompilerParams", None) or getattr(pltpu, "TPUCompilerParams", None)
    return cls(**kw) if cls is not None else None


def _vmem_limit_bytes():
    """Generation-aware VMEM limit: leave ~24 MiB headroom for Mosaic scratch.

    v5e/v6e (128 MiB physical) -> 104 MiB, v7x (64 MiB physical) -> 40 MiB."""
    cap = 64 * _MIB
    try:
        cap = int(pltpu.get_tpu_info().vmem_capacity_bytes)
    except Exception:
        pass
    return max(32 * _MIB, min(cap - 24 * _MIB, 112 * _MIB))


# ----------------------------- Pallas kernel --------------------------------

def _basic_block_kernel(*refs, stride, ho, wo, wo_c, relu, has_proj):
    """Fully fused BasicBlock for one image.

    refs (in order):
      xph_ref : (s*s, 1, ho+2, wo_c+2, Cin)  polyphase-split, zero-padded input (bf16)
      w1_ref  : (9, Cin, P)    bn1-scale-folded conv1 weights (bf16)
      b1_ref  : (1, P)         bn1 bias (f32)
      w2_ref  : (9, P, P)      bn2-scale-folded conv2 weights (bf16)
      b2_ref  : (1, P)         bn2 bias (f32)
      [proj]    ws_ref (Cin, P), bs_ref (1, P)
      o_ref   : (1, ho, wo, P) output block
      s1_ref  : (ho+2, wo_c+2, P) VMEM scratch for the padded conv1 output
    """
    if has_proj:
        (xph_ref, w1_ref, b1_ref, w2_ref, b2_ref, ws_ref, bs_ref,
         o_ref, s1_ref) = refs
    else:
        xph_ref, w1_ref, b1_ref, w2_ref, b2_ref, o_ref, s1_ref = refs

    s = stride
    planes = o_ref.shape[-1]
    m = ho * wo_c

    # ---- conv1 (3x3, stride s) + bn1 + relu: implicit GEMM, 9 MXU dots -------
    acc = jnp.zeros((m, planes), jnp.float32)
    for kh in range(3):
        for kw in range(3):
            phase = (kh % s) * s + (kw % s)
            patch = xph_ref[phase, 0,
                            pl.ds(kh // s, ho),
                            pl.ds(kw // s, wo_c), :]
            acc += jnp.dot(patch.reshape(m, patch.shape[-1]),
                           w1_ref[kh * 3 + kw],
                           preferred_element_type=jnp.float32)
    y1 = jnp.maximum(acc + b1_ref[...], 0.0).reshape(ho, wo_c, planes)
    if wo_c > wo:
        # zero the compute-only columns so conv2's right halo stays a true zero pad
        col = jax.lax.broadcasted_iota(jnp.int32, (1, wo_c, 1), 1)
        y1 = jnp.where(col < wo, y1, 0.0)

    # conv1 result lives in a zero-padded VMEM scratch; it never touches HBM.
    s1_ref[...] = jnp.zeros_like(s1_ref)
    s1_ref[pl.ds(1, ho), pl.ds(1, wo_c), :] = y1.astype(s1_ref.dtype)

    # ---- conv2 (3x3, stride 1) + bn2 ----------------------------------------
    acc = jnp.zeros((m, planes), jnp.float32)
    for kh in range(3):
        for kw in range(3):
            patch = s1_ref[pl.ds(kh, ho), pl.ds(kw, wo_c), :]
            acc += jnp.dot(patch.reshape(m, planes),
                           w2_ref[kh * 3 + kw],
                           preferred_element_type=jnp.float32)
    y = acc + b2_ref[...]

    # ---- drop_path(p=0) == identity; residual shortcut -----------------------
    # The shortcut source is sliced straight out of the padded/phase-split input
    # already resident in VMEM: element x[r*s, c*s] sits at phase (1%s, 1%s),
    # quotient (r + 1//s, c + 1//s).  No extra HBM read.
    off = 1 // s
    sphase = (1 % s) * s + (1 % s)
    xs = xph_ref[sphase, 0, pl.ds(off, ho), pl.ds(off, wo_c), :]
    xs = xs.reshape(m, xs.shape[-1])
    if has_proj:
        y += jnp.dot(xs, ws_ref[...],
                     preferred_element_type=jnp.float32) + bs_ref[...]
    else:
        y += xs.astype(jnp.float32)

    if relu:
        y = jnp.maximum(y, 0.0)

    o_ref[0] = y.reshape(ho, wo_c, planes)[:, :wo, :].astype(o_ref.dtype)


# --------------------------- host-side helpers --------------------------------

def _pad_and_split_phases(x, stride, ho, wo_c):
    """Zero-pad (pad 1 + alignment slack) and polyphase-split the NHWC input so
    every in-kernel access is a contiguous pl.ds slice.

    Returns (stride*stride, N, ho+2, wo_c+2, C): padded row p of the image lives
    at phase p % stride, quotient p // stride (same for columns)."""
    n, h, w, c = x.shape
    hq, wq = ho + 2, wo_c + 2
    xp = jnp.pad(x, ((0, 0),
                     (1, stride * hq - h - 1),
                     (1, stride * wq - w - 1),
                     (0, 0)))
    if stride == 1:
        return xp.reshape(1, n, hq, wq, c)       # free reshape, single phase
    xp = xp.reshape(n, hq, stride, wq, stride, c)
    xp = jnp.transpose(xp, (2, 4, 0, 1, 3, 5))
    return xp.reshape(stride * stride, n, hq, wq, c)


# ------------------------------ parameters ------------------------------------

def init_basic_block_params(key, in_planes, planes, stride=1, expansion=1):
    """Raw parameters in PyTorch layout: conv weights (O, I, kh, kw), BN per-channel."""
    assert expansion == 1, "BasicBlock residual add requires expansion == 1"
    ks = jax.random.split(key, 6)

    def bn_params(k, c):
        k1, k2, k3, k4 = jax.random.split(k, 4)
        gamma = 1.0 + 0.1 * jax.random.normal(k1, (c,), jnp.float32)
        beta = 0.1 * jax.random.normal(k2, (c,), jnp.float32)
        mean = 0.05 * jax.random.normal(k3, (c,), jnp.float32)
        var = jax.random.uniform(k4, (c,), jnp.float32, 0.5, 1.5)
        return gamma, beta, mean, var

    p = {
        "w1": 0.1 * jax.random.normal(ks[0], (planes, in_planes, 3, 3), jnp.float32),
        "bn1": bn_params(ks[1], planes),
        "w2": 0.1 * jax.random.normal(ks[2], (planes, planes, 3, 3), jnp.float32),
        "bn2": bn_params(ks[3], planes),
    }
    if stride != 1 or in_planes != expansion * planes:
        p["ws"] = 0.1 * jax.random.normal(ks[4], (expansion * planes, in_planes, 1, 1),
                                          jnp.float32)
        p["bns"] = bn_params(ks[5], expansion * planes)
    return p


def prepare_basic_block_params(raw, *, eps=1e-5, compute_dtype=jnp.bfloat16):
    """One-time prep: fold BN scale into weights, cast to bf16, reshape for the kernel."""
    def fold(bn):
        gamma, beta, mean, var = bn
        s = gamma / jnp.sqrt(var + eps)
        return s, (beta - mean * s).astype(jnp.float32)

    planes, cin = raw["w1"].shape[0], raw["w1"].shape[1]
    s1, b1 = fold(raw["bn1"])
    s2, b2 = fold(raw["bn2"])
    prep = {
        "w1": (jnp.transpose(raw["w1"], (2, 3, 1, 0)) * s1).astype(compute_dtype)
              .reshape(9, cin, planes),
        "b1": b1.reshape(1, -1),
        "w2": (jnp.transpose(raw["w2"], (2, 3, 1, 0)) * s2).astype(compute_dtype)
              .reshape(9, planes, planes),
        "b2": b2.reshape(1, -1),
    }
    if "ws" in raw:
        ss, bs = fold(raw["bns"])
        prep["ws"] = (raw["ws"][:, :, 0, 0].T * ss).astype(compute_dtype)
        prep["bs"] = bs.reshape(1, -1)
    return prep


# ------------------------------- forward --------------------------------------

def basic_block_forward_nhwc(x_nhwc, prep, *, stride=1, final_relu=True,
                             compute_dtype=jnp.bfloat16, out_dtype=None):
    """x_nhwc: (N, H, W, Cin) -> (N, Ho, Wo, planes).  NHWC end-to-end, one kernel."""
    n, h, w, cin = x_nhwc.shape
    planes = prep["b1"].shape[-1]
    out_dtype = out_dtype or x_nhwc.dtype
    ho = (h - 1) // stride + 1
    wo = (w - 1) // stride + 1
    wo_c = -(-wo // 8) * 8               # compute width rounded to a sublane multiple
    hq, wq = ho + 2, wo_c + 2

    has_proj = "ws" in prep
    if not has_proj:
        assert stride == 1 and cin == planes, "identity shortcut needs matching shapes"

    xph = _pad_and_split_phases(x_nhwc.astype(compute_dtype), stride, ho, wo_c)

    # VMEM working-set estimate (double-buffered in/out, single scratch, f32 temps)
    act = jnp.dtype(compute_dtype).itemsize
    outb = jnp.dtype(out_dtype).itemsize
    vmem_limit = _vmem_limit_bytes()
    est = (2 * stride * stride * hq * wq * cin * act
           + 2 * 9 * (cin + planes) * planes * act
           + 2 * ho * wo * planes * outb
           + hq * wq * planes * act
           + 8 * ho * wo_c * max(cin, planes) * 4)
    assert est <= vmem_limit - 8 * _MIB, (
        f"working set ~{est / _MIB:.1f} MiB exceeds the VMEM budget; "
        "TODO(synk): add output-row tiling with halo recompute for very large images")

    in_specs = [
        pl.BlockSpec((stride * stride, 1, hq, wq, cin), lambda b: (0, b, 0, 0, 0)),
        pl.BlockSpec((9, cin, planes), lambda b: (0, 0, 0)),
        pl.BlockSpec((1, planes), lambda b: (0, 0)),
        pl.BlockSpec((9, planes, planes), lambda b: (0, 0, 0)),
        pl.BlockSpec((1, planes), lambda b: (0, 0)),
    ]
    args = [xph, prep["w1"], prep["b1"], prep["w2"], prep["b2"]]
    if has_proj:
        in_specs += [pl.BlockSpec((cin, planes), lambda b: (0, 0)),
                     pl.BlockSpec((1, planes), lambda b: (0, 0))]
        args += [prep["ws"], prep["bs"]]

    kernel = functools.partial(_basic_block_kernel, stride=stride, ho=ho, wo=wo,
                               wo_c=wo_c, relu=final_relu, has_proj=has_proj)

    return pl.pallas_call(
        kernel,
        out_shape=jax.ShapeDtypeStruct((n, ho, wo, planes), out_dtype),
        grid=(n,),
        in_specs=in_specs,
        out_specs=pl.BlockSpec((1, ho, wo, planes), lambda b: (b, 0, 0, 0)),
        scratch_shapes=[pltpu.VMEM((hq, wq, planes), compute_dtype)],
        compiler_params=_compiler_params(
            dimension_semantics=("parallel",),
            vmem_limit_bytes=vmem_limit),
    )(*args)


def basic_block_forward(x_nchw, prep, *, stride=1, final_relu=True,
                        compute_dtype=jnp.bfloat16):
    """PyTorch-compat wrapper (NCHW in/out).  In a full network the NCHW<->NHWC
    transposes are done once at model entry/exit, not per block."""
    x = jnp.transpose(x_nchw, (0, 2, 3, 1))
    out = basic_block_forward_nhwc(x, prep, stride=stride, final_relu=final_relu,
                                   compute_dtype=compute_dtype,
                                   out_dtype=x_nchw.dtype)
    return jnp.transpose(out, (0, 3, 1, 2))


# ------------------------------ references ------------------------------------

def _reference_prepared(x_nchw, prep, *, stride, final_relu,
                        compute_dtype=jnp.bfloat16):
    """Mirrors the kernel's precision policy exactly (bf16 operands, f32 accum)."""
    cd = compute_dtype
    x = jnp.transpose(x_nchw, (0, 2, 3, 1)).astype(cd)

    def conv3(inp, w9, b, s):
        w = w9.reshape(3, 3, w9.shape[1], w9.shape[2])   # HWIO
        y = jax.lax.conv_general_dilated(
            inp, w, (s, s), [(1, 1), (1, 1)],
            dimension_numbers=("NHWC", "HWIO", "NHWC"),
            preferred_element_type=jnp.float32)
        return y + b.reshape(1, 1, 1, -1)

    out = jax.nn.relu(conv3(x, prep["w1"], prep["b1"], stride)).astype(cd)
    y = conv3(out, prep["w2"], prep["b2"], 1)
    if "ws" in prep:
        xs = x if stride == 1 else x[:, ::stride, ::stride, :]
        sc = jax.lax.dot_general(xs, prep["ws"], (((3,), (0,)), ((), ())),
                                 preferred_element_type=jnp.float32)
        sc = sc + prep["bs"].reshape(1, 1, 1, -1)
    else:
        sc = x.astype(jnp.float32)
    y = y + sc
    if final_relu:
        y = jax.nn.relu(y)
    return jnp.transpose(y, (0, 3, 1, 2)).astype(x_nchw.dtype)


def _reference_f32(x_nchw, raw, *, stride, final_relu, eps=1e-5):
    """Pure-f32 reference with PyTorch BasicBlock (eval-mode BN) semantics."""
    def conv(x, w, s, pad):
        return jax.lax.conv_general_dilated(
            x, w, (s, s), pad, dimension_numbers=("NCHW", "OIHW", "NCHW"))

    def bn(x, p):
        gamma, beta, mean, var = p
        sc = gamma / jnp.sqrt(var + eps)
        return x * sc[None, :, None, None] + (beta - mean * sc)[None, :, None, None]

    out = jax.nn.relu(bn(conv(x_nchw, raw["w1"], stride, [(1, 1), (1, 1)]), raw["bn1"]))
    out = bn(conv(out, raw["w2"], 1, [(1, 1), (1, 1)]), raw["bn2"])
    # drop_path(p=0.0) is the identity
    if "ws" in raw:
        sc = bn(conv(x_nchw, raw["ws"], stride, "VALID"), raw["bns"])
    else:
        sc = x_nchw
    out = out + sc
    if final_relu:
        out = jax.nn.relu(out)
    return out


# --------------------------------- main ----------------------------------------

if __name__ == "__main__":
    key = jax.random.PRNGKey(0)

    configs = [
        # identity shortcut path
        dict(batch=2, in_planes=32, planes=32, stride=1, hw=16),
        # projection (1x1 conv + BN) shortcut path, stride 2
        dict(batch=2, in_planes=16, planes=32, stride=2, hw=16),
        # odd output width (Wo=7): exercises the compute-column padding/masking
        dict(batch=2, in_planes=16, planes=32, stride=2, hw=14),
    ]

    for cfg in configs:
        key, kx, kp = jax.random.split(key, 3)
        x = jax.random.normal(kx, (cfg["batch"], cfg["in_planes"], cfg["hw"], cfg["hw"]),
                              jnp.float32)
        raw = init_basic_block_params(kp, cfg["in_planes"], cfg["planes"],
                                      stride=cfg["stride"])
        prep = prepare_basic_block_params(raw)

        fwd = jax.jit(functools.partial(basic_block_forward,
                                        stride=cfg["stride"], final_relu=True))
        out = jax.block_until_ready(fwd(x, prep))

        ho = (cfg["hw"] - 1) // cfg["stride"] + 1
        assert out.shape == (cfg["batch"], cfg["planes"], ho, ho)

        # Tight check: same bf16-operand / f32-accumulate math as the kernel.
        ref_tight = jax.block_until_ready(
            _reference_prepared(x, prep, stride=cfg["stride"], final_relu=True))
        assert jnp.allclose(out, ref_tight, atol=2e-3, rtol=2e-3), (
            float(jnp.max(jnp.abs(out - ref_tight))))

        # Loose check: pure-f32 PyTorch semantics (difference = bf16 quantization).
        ref_f32 = jax.block_until_ready(
            _reference_f32(x, raw, stride=cfg["stride"], final_relu=True))
        assert jnp.allclose(out, ref_f32, atol=2e-1, rtol=5e-2), (
            float(jnp.max(jnp.abs(out - ref_f32))))

    print("KERNEL_OK")
</pallas_src>

<mosaic_0001>
module attributes {stable_mosaic.version = 11 : i64} {
  func.func @_basic_block_kernel(%arg0: i32, %arg1: memref<1x1x18x18x32xbf16, #tpu.memory_space<vmem>>, %arg2: memref<9x32x32xbf16, #tpu.memory_space<vmem>>, %arg3: memref<1x32xf32, #tpu.memory_space<vmem>>, %arg4: memref<9x32x32xbf16, #tpu.memory_space<vmem>>, %arg5: memref<1x32xf32, #tpu.memory_space<vmem>>, %arg6: memref<1x16x16x32xf32, #tpu.memory_space<vmem>>, %arg7: memref<18x18x32xbf16, #tpu.memory_space<vmem>>) attributes {dimension_semantics = [#tpu.dimension_semantics<parallel>], iteration_bounds = array<i64: 2>, scalar_prefetch = 0 : i64, scratch_operands = 1 : i64, tpu.core_type = #tpu.core_type<tc>, window_params = [{transform_indices = @transform_0, window_bounds = array<i64: 1, 1, 18, 18, 32>}, {pipeline_mode = #tpu.pipeline_mode<synchronous>, transform_indices = @transform_1, window_bounds = array<i64: 9, 32, 32>}, {pipeline_mode = #tpu.pipeline_mode<synchronous>, transform_indices = @transform_2, window_bounds = array<i64: 1, 32>}, {pipeline_mode = #tpu.pipeline_mode<synchronous>, transform_indices = @transform_3, window_bounds = array<i64: 9, 32, 32>}, {pipeline_mode = #tpu.pipeline_mode<synchronous>, transform_indices = @transform_4, window_bounds = array<i64: 1, 32>}, {transform_indices = @transform_5, window_bounds = array<i64: 1, 16, 16, 32>}]} {
    %cst = arith.constant 0.000000e+00 : f32
    %0 = vector.broadcast %cst : f32 to vector<256x32xf32>
    %c0 = arith.constant 0 : index
    %c0_0 = arith.constant 0 : index
    %c0_1 = arith.constant 0 : index
    %c0_2 = arith.constant 0 : index
    %c0_3 = arith.constant 0 : index
    %1 = vector.load %arg1[%c0, %c0_0, %c0_1, %c0_2, %c0_3] : memref<1x1x18x18x32xbf16, #tpu.memory_space<vmem>>, vector<1x1x16x16x32xbf16>
    %2 = vector.shape_cast %1 : vector<1x1x16x16x32xbf16> to vector<16x16x32xbf16>
    %3 = vector.shape_cast %2 : vector<16x16x32xbf16> to vector<256x32xbf16>
    %c0_4 = arith.constant 0 : index
    %c0_5 = arith.constant 0 : index
    %c0_6 = arith.constant 0 : index
    %4 = vector.load %arg2[%c0_4, %c0_5, %c0_6] : memref<9x32x32xbf16, #tpu.memory_space<vmem>>, vector<1x32x32xbf16>
    %5 = vector.shape_cast %4 : vector<1x32x32xbf16> to vector<32x32xbf16>
    %cst_7 = arith.constant dense<0.000000e+00> : vector<256x32xf32>
    %6 = tpu.matmul %3, %5, %cst_7 {dimension_numbers = #tpu.dot_dimension_numbers<[1], [0], [0], [1], [0, 0, 1, 1], [], []>} : vector<256x32xbf16>, vector<32x32xbf16>, vector<256x32xf32> -> vector<256x32xf32>
    %7 = arith.addf %0, %6 : vector<256x32xf32>
    %c0_8 = arith.constant 0 : index
    %c0_9 = arith.constant 0 : index
    %c0_10 = arith.constant 0 : index
    %c1 = arith.constant 1 : index
    %c0_11 = arith.constant 0 : index
    %8 = vector.load %arg1[%c0_8, %c0_9, %c0_10, %c1, %c0_11] : memref<1x1x18x18x32xbf16, #tpu.memory_space<vmem>>, vector<1x1x16x16x32xbf16>
    %9 = vector.shape_cast %8 : vector<1x1x16x16x32xbf16> to vector<16x16x32xbf16>
    %10 = vector.shape_cast %9 : vector<16x16x32xbf16> to vector<256x32xbf16>
    %c1_12 = arith.constant 1 : index
    %c0_13 = arith.constant 0 : index
    %c0_14 = arith.constant 0 : index
    %11 = vector.load %arg2[%c1_12, %c0_13, %c0_14] : memref<9x32x32xbf16, #tpu.memory_space<vmem>>, vector<1x32x32xbf16>
    %12 = vector.shape_cast %11 : vector<1x32x32xbf16> to vector<32x32xbf16>
    %cst_15 = arith.constant dense<0.000000e+00> : vector<256x32xf32>
    %13 = tpu.matmul %10, %12, %cst_15 {dimension_numbers = #tpu.dot_dimension_numbers<[1], [0], [0], [1], [0, 0, 1, 1], [], []>} : vector<256x32xbf16>, vector<32x32xbf16>, vector<256x32xf32> -> vector<256x32xf32>
    %14 = arith.addf %7, %13 : vector<256x32xf32>
    %c0_16 = arith.constant 0 : index
    %c0_17 = arith.constant 0 : index
    %c0_18 = arith.constant 0 : index
    %c2 = arith.constant 2 : index
    %c0_19 = arith.constant 0 : index
    %15 = vector.load %arg1[%c0_16, %c0_17, %c0_18, %c2, %c0_19] : memref<1x1x18x18x32xbf16, #tpu.memory_space<vmem>>, vector<1x1x16x16x32xbf16>
    %16 = vector.shape_cast %15 : vector<1x1x16x16x32xbf16> to vector<16x16x32xbf16>
    %17 = vector.shape_cast %16 : vector<16x16x32xbf16> to vector<256x32xbf16>
    %c2_20 = arith.constant 2 : index
    %c0_21 = arith.constant 0 : index
    %c0_22 = arith.constant 0 : index
    %18 = vector.load %arg2[%c2_20, %c0_21, %c0_22] : memref<9x32x32xbf16, #tpu.memory_space<vmem>>, vector<1x32x32xbf16>
    %19 = vector.shape_cast %18 : vector<1x32x32xbf16> to vector<32x32xbf16>
    %cst_23 = arith.constant dense<0.000000e+00> : vector<256x32xf32>
    %20 = tpu.matmul %17, %19, %cst_23 {dimension_numbers = #tpu.dot_dimension_numbers<[1], [0], [0], [1], [0, 0, 1, 1], [], []>} : vector<256x32xbf16>, vector<32x32xbf16>, vector<256x32xf32> -> vector<256x32xf32>
    %21 = arith.addf %14, %20 : vector<256x32xf32>
    %c0_24 = arith.constant 0 : index
    %c0_25 = arith.constant 0 : index
    %c1_26 = arith.constant 1 : index
    %c0_27 = arith.constant 0 : index
    %c0_28 = arith.constant 0 : index
    %22 = vector.load %arg1[%c0_24, %c0_25, %c1_26, %c0_27, %c0_28] : memref<1x1x18x18x32xbf16, #tpu.memory_space<vmem>>, vector<1x1x16x16x32xbf16>
    %23 = vector.shape_cast %22 : vector<1x1x16x16x32xbf16> to vector<16x16x32xbf16>
    %24 = vector.shape_cast %23 : vector<16x16x32xbf16> to vector<256x32xbf16>
    %c3 = arith.constant 3 : index
    %c0_29 = arith.constant 0 : index
    %c0_30 = arith.constant 0 : index
    %25 = vector.load %arg2[%c3, %c0_29, %c0_30] : memref<9x32x32xbf16, #tpu.memory_space<vmem>>, vector<1x32x32xbf16>
    %26 = vector.shape_cast %25 : vector<1x32x32xbf16> to vector<32x32xbf16>
    %cst_31 = arith.constant dense<0.000000e+00> : vector<256x32xf32>
    %27 = tpu.matmul %24, %26, %cst_31 {dimension_numbers = #tpu.dot_dimension_numbers<[1], [0], [0], [1], [0, 0, 1, 1], [], []>} : vector<256x32xbf16>, vector<32x32xbf16>, vector<256x32xf32> -> vector<256x32xf32>
    %28 = arith.addf %21, %27 : vector<256x32xf32>
    %c0_32 = arith.constant 0 : index
    %c0_33 = arith.constant 0 : index
    %c1_34 = arith.constant 1 : index
    %c1_35 = arith.constant 1 : index
    %c0_36 = arith.constant 0 : index
    %29 = vector.load %arg1[%c0_32, %c0_33, %c1_34, %c1_35, %c0_36] : memref<1x1x18x18x32xbf16, #tpu.memory_space<vmem>>, vector<1x1x16x16x32xbf16>
    %30 = vector.shape_cast %29 : vector<1x1x16x16x32xbf16> to vector<16x16x32xbf16>
    %31 = vector.shape_cast %30 : vector<16x16x32xbf16> to vector<256x32xbf16>
    %c4 = arith.constant 4 : index
    %c0_37 = arith.constant 0 : index
    %c0_38 = arith.constant 0 : index
    %32 = vector.load %arg2[%c4, %c0_37, %c0_38] : memref<9x32x32xbf16, #tpu.memory_space<vmem>>, vector<1x32x32xbf16>
    %33 = vector.shape_cast %32 : vector<1x32x32xbf16> to vector<32x32xbf16>
    %cst_39 = arith.constant dense<0.000000e+00> : vector<256x32xf32>
    %34 = tpu.matmul %31, %33, %cst_39 {dimension_numbers = #tpu.dot_dimension_numbers<[1], [0], [0], [1], [0, 0, 1, 1], [], []>} : vector<256x32xbf16>, vector<32x32xbf16>, vector<256x32xf32> -> vector<256x32xf32>
    %35 = arith.addf %28, %34 : vector<256x32xf32>
    %c0_40 = arith.constant 0 : index
    %c0_41 = arith.constant 0 : index
    %c1_42 = arith.constant 1 : index
    %c2_43 = arith.constant 2 : index
    %c0_44 = arith.constant 0 : index
    %36 = vector.load %arg1[%c0_40, %c0_41, %c1_42, %c2_43, %c0_44] : memref<1x1x18x18x32xbf16, #tpu.memory_space<vmem>>, vector<1x1x16x16x32xbf16>
    %37 = vector.shape_cast %36 : vector<1x1x16x16x32xbf16> to vector<16x16x32xbf16>
    %38 = vector.shape_cast %37 : vector<16x16x32xbf16> to vector<256x32xbf16>
    %c5 = arith.constant 5 : index
    %c0_45 = arith.constant 0 : index
    %c0_46 = arith.constant 0 : index
    %39 = vector.load %arg2[%c5, %c0_45, %c0_46] : memref<9x32x32xbf16, #tpu.memory_space<vmem>>, vector<1x32x32xbf16>
    %40 = vector.shape_cast %39 : vector<1x32x32xbf16> to vector<32x32xbf16>
    %cst_47 = arith.constant dense<0.000000e+00> : vector<256x32xf32>
    %41 = tpu.matmul %38, %40, %cst_47 {dimension_numbers = #tpu.dot_dimension_numbers<[1], [0], [0], [1], [0, 0, 1, 1], [], []>} : vector<256x32xbf16>, vector<32x32xbf16>, vector<256x32xf32> -> vector<256x32xf32>
    %42 = arith.addf %35, %41 : vector<256x32xf32>
    %c0_48 = arith.constant 0 : index
    %c0_49 = arith.constant 0 : index
    %c2_50 = arith.constant 2 : index
    %c0_51 = arith.constant 0 : index
    %c0_52 = arith.constant 0 : index
    %43 = vector.load %arg1[%c0_48, %c0_49, %c2_50, %c0_51, %c0_52] : memref<1x1x18x18x32xbf16, #tpu.memory_space<vmem>>, vector<1x1x16x16x32xbf16>
    %44 = vector.shape_cast %43 : vector<1x1x16x16x32xbf16> to vector<16x16x32xbf16>
    %45 = vector.shape_cast %44 : vector<16x16x32xbf16> to vector<256x32xbf16>
    %c6 = arith.constant 6 : index
    %c0_53 = arith.constant 0 : index
    %c0_54 = arith.constant 0 : index
    %46 = vector.load %arg2[%c6, %c0_53, %c0_54] : memref<9x32x32xbf16, #tpu.memory_space<vmem>>, vector<1x32x32xbf16>
    %47 = vector.shape_cast %46 : vector<1x32x32xbf16> to vector<32x32xbf16>
    %cst_55 = arith.constant dense<0.000000e+00> : vector<256x32xf32>
    %48 = tpu.matmul %45, %47, %cst_55 {dimension_numbers = #tpu.dot_dimension_numbers<[1], [0], [0], [1], [0, 0, 1, 1], [], []>} : vector<256x32xbf16>, vector<32x32xbf16>, vector<256x32xf32> -> vector<256x32xf32>
    %49 = arith.addf %42, %48 : vector<256x32xf32>
    %c0_56 = arith.constant 0 : index
    %c0_57 = arith.constant 0 : index
    %c2_58 = arith.constant 2 : index
    %c1_59 = arith.constant 1 : index
    %c0_60 = arith.constant 0 : index
    %50 = vector.load %arg1[%c0_56, %c0_57, %c2_58, %c1_59, %c0_60] : memref<1x1x18x18x32xbf16, #tpu.memory_space<vmem>>, vector<1x1x16x16x32xbf16>
    %51 = vector.shape_cast %50 : vector<1x1x16x16x32xbf16> to vector<16x16x32xbf16>
    %52 = vector.shape_cast %51 : vector<16x16x32xbf16> to vector<256x32xbf16>
    %c7 = arith.constant 7 : index
    %c0_61 = arith.constant 0 : index
    %c0_62 = arith.constant 0 : index
    %53 = vector.load %arg2[%c7, %c0_61, %c0_62] : memref<9x32x32xbf16, #tpu.memory_space<vmem>>, vector<1x32x32xbf16>
    %54 = vector.shape_cast %53 : vector<1x32x32xbf16> to vector<32x32xbf16>
    %cst_63 = arith.constant dense<0.000000e+00> : vector<256x32xf32>
    %55 = tpu.matmul %52, %54, %cst_63 {dimension_numbers = #tpu.dot_dimension_numbers<[1], [0], [0], [1], [0, 0, 1, 1], [], []>} : vector<256x32xbf16>, vector<32x32xbf16>, vector<256x32xf32> -> vector<256x32xf32>
    %56 = arith.addf %49, %55 : vector<256x32xf32>
    %c0_64 = arith.constant 0 : index
    %c0_65 = arith.constant 0 : index
    %c2_66 = arith.constant 2 : index
    %c2_67 = arith.constant 2 : index
    %c0_68 = arith.constant 0 : index
    %57 = vector.load %arg1[%c0_64, %c0_65, %c2_66, %c2_67, %c0_68] : memref<1x1x18x18x32xbf16, #tpu.memory_space<vmem>>, vector<1x1x16x16x32xbf16>
    %58 = vector.shape_cast %57 : vector<1x1x16x16x32xbf16> to vector<16x16x32xbf16>
    %59 = vector.shape_cast %58 : vector<16x16x32xbf16> to vector<256x32xbf16>
    %c8 = arith.constant 8 : index
    %c0_69 = arith.constant 0 : index
    %c0_70 = arith.constant 0 : index
    %60 = vector.load %arg2[%c8, %c0_69, %c0_70] : memref<9x32x32xbf16, #tpu.memory_space<vmem>>, vector<1x32x32xbf16>
    %61 = vector.shape_cast %60 : vector<1x32x32xbf16> to vector<32x32xbf16>
    %cst_71 = arith.constant dense<0.000000e+00> : vector<256x32xf32>
    %62 = tpu.matmul %59, %61, %cst_71 {dimension_numbers = #tpu.dot_dimension_numbers<[1], [0], [0], [1], [0, 0, 1, 1], [], []>} : vector<256x32xbf16>, vector<32x32xbf16>, vector<256x32xf32> -> vector<256x32xf32>
    %63 = arith.addf %56, %62 : vector<256x32xf32>
    %c0_72 = arith.constant 0 : index
    %c0_73 = arith.constant 0 : index
    %64 = vector.load %arg3[%c0_72, %c0_73] : memref<1x32xf32, #tpu.memory_space<vmem>>, vector<1x32xf32>
    %65 = vector.broadcast %64 : vector<1x32xf32> to vector<256x32xf32>
    %66 = arith.addf %63, %65 : vector<256x32xf32>
    %cst_74 = arith.constant 0.000000e+00 : f32
    %67 = vector.broadcast %cst_74 : f32 to vector<256x32xf32>
    %68 = arith.maximumf %66, %67 : vector<256x32xf32>
    %69 = vector.shape_cast %68 : vector<256x32xf32> to vector<16x16x32xf32>
    %cst_75 = arith.constant 0.000000e+00 : bf16
    %70 = vector.broadcast %cst_75 : bf16 to vector<18x18x32xbf16>
    %c0_76 = arith.constant 0 : index
    %c0_77 = arith.constant 0 : index
    %c0_78 = arith.constant 0 : index
    %71 = vector.load %arg7[%c0_76, %c0_77, %c0_78] : memref<18x18x32xbf16, #tpu.memory_space<vmem>>, vector<18x18x32xbf16>
    tpu.vector_store %arg7[%c0_76, %c0_77, %c0_78], %70 {strides = array<i32>} : memref<18x18x32xbf16, #tpu.memory_space<vmem>>, vector<18x18x32xbf16>,
    %72 = arith.truncf %69 : vector<16x16x32xf32> to vector<16x16x32xbf16>
    %c1_79 = arith.constant 1 : index
    %c1_80 = arith.constant 1 : index
    %c0_81 = arith.constant 0 : index
    %73 = vector.load %arg7[%c1_79, %c1_80, %c0_81] : memref<18x18x32xbf16, #tpu.memory_space<vmem>>, vector<16x16x32xbf16>
    tpu.vector_store %arg7[%c1_79, %c1_80, %c0_81], %72 {strides = array<i32>} : memref<18x18x32xbf16, #tpu.memory_space<vmem>>, vector<16x16x32xbf16>,
    %cst_82 = arith.constant 0.000000e+00 : f32
    %74 = vector.broadcast %cst_82 : f32 to vector<256x32xf32>
    %c0_83 = arith.constant 0 : index
    %c0_84 = arith.constant 0 : index
    %c0_85 = arith.constant 0 : index
    %75 = vector.load %arg7[%c0_83, %c0_84, %c0_85] : memref<18x18x32xbf16, #tpu.memory_space<vmem>>, vector<16x16x32xbf16>
    %76 = vector.shape_cast %75 : vector<16x16x32xbf16> to vector<256x32xbf16>
    %c0_86 = arith.constant 0 : index
    %c0_87 = arith.constant 0 : index
    %c0_88 = arith.constant 0 : index
    %77 = vector.load %arg4[%c0_86, %c0_87, %c0_88] : memref<9x32x32xbf16, #tpu.memory_space<vmem>>, vector<1x32x32xbf16>
    %78 = vector.shape_cast %77 : vector<1x32x32xbf16> to vector<32x32xbf16>
    %cst_89 = arith.constant dense<0.000000e+00> : vector<256x32xf32>
    %79 = tpu.matmul %76, %78, %cst_89 {dimension_numbers = #tpu.dot_dimension_numbers<[1], [0], [0], [1], [0, 0, 1, 1], [], []>} : vector<256x32xbf16>, vector<32x32xbf16>, vector<256x32xf32> -> vector<256x32xf32>
    %80 = arith.addf %74, %79 : vector<256x32xf32>
    %c0_90 = arith.constant 0 : index
    %c1_91 = arith.constant 1 : index
    %c0_92 = arith.constant 0 : index
    %81 = vector.load %arg7[%c0_90, %c1_91, %c0_92] : memref<18x18x32xbf16, #tpu.memory_space<vmem>>, vector<16x16x32xbf16>
    %82 = vector.shape_cast %81 : vector<16x16x32xbf16> to vector<256x32xbf16>
    %c1_93 = arith.constant 1 : index
    %c0_94 = arith.constant 0 : index
    %c0_95 = arith.constant 0 : index
    %83 = vector.load %arg4[%c1_93, %c0_94, %c0_95] : memref<9x32x32xbf16, #tpu.memory_space<vmem>>, vector<1x32x32xbf16>
    %84 = vector.shape_cast %83 : vector<1x32x32xbf16> to vector<32x32xbf16>
    %cst_96 = arith.constant dense<0.000000e+00> : vector<256x32xf32>
    %85 = tpu.matmul %82, %84, %cst_96 {dimension_numbers = #tpu.dot_dimension_numbers<[1], [0], [0], [1], [0, 0, 1, 1], [], []>} : vector<256x32xbf16>, vector<32x32xbf16>, vector<256x32xf32> -> vector<256x32xf32>
    %86 = arith.addf %80, %85 : vector<256x32xf32>
    %c0_97 = arith.constant 0 : index
    %c2_98 = arith.constant 2 : index
    %c0_99 = arith.constant 0 : index
    %87 = vector.load %arg7[%c0_97, %c2_98, %c0_99] : memref<18x18x32xbf16, #tpu.memory_space<vmem>>, vector<16x16x32xbf16>
    %88 = vector.shape_cast %87 : vector<16x16x32xbf16> to vector<256x32xbf16>
    %c2_100 = arith.constant 2 : index
    %c0_101 = arith.constant 0 : index
    %c0_102 = arith.constant 0 : index
    %89 = vector.load %arg4[%c2_100, %c0_101, %c0_102] : memref<9x32x32xbf16, #tpu.memory_space<vmem>>, vector<1x32x32xbf16>
    %90 = vector.shape_cast %89 : vector<1x32x32xbf16> to vector<32x32xbf16>
    %cst_103 = arith.constant dense<0.000000e+00> : vector<256x32xf32>
    %91 = tpu.matmul %88, %90, %cst_103 {dimension_numbers = #tpu.dot_dimension_numbers<[1], [0], [0], [1], [0, 0, 1, 1], [], []>} : vector<256x32xbf16>, vector<32x32xbf16>, vector<256x32xf32> -> vector<256x32xf32>
    %92 = arith.addf %86, %91 : vector<256x32xf32>
    %c1_104 = arith.constant 1 : index
    %c0_105 = arith.constant 0 : index
    %c0_106 = arith.constant 0 : index
    %93 = vector.load %arg7[%c1_104, %c0_105, %c0_106] : memref<18x18x32xbf16, #tpu.memory_space<vmem>>, vector<16x16x32xbf16>
    %94 = vector.shape_cast %93 : vector<16x16x32xbf16> to vector<256x32xbf16>
    %c3_107 = arith.constant 3 : index
    %c0_108 = arith.constant 0 : index
    %c0_109 = arith.constant 0 : index
    %95 = vector.load %arg4[%c3_107, %c0_108, %c0_109] : memref<9x32x32xbf16, #tpu.memory_space<vmem>>, vector<1x32x32xbf16>
    %96 = vector.shape_cast %95 : vector<1x32x32xbf16> to vector<32x32xbf16>
    %cst_110 = arith.constant dense<0.000000e+00> : vector<256x32xf32>
    %97 = tpu.matmul %94, %96, %cst_110 {dimension_numbers = #tpu.dot_dimension_numbers<[1], [0], [0], [1], [0, 0, 1, 1], [], []>} : vector<256x32xbf16>, vector<32x32xbf16>, vector<256x32xf32> -> vector<256x32xf32>
    %98 = arith.addf %92, %97 : vector<256x32xf32>
    %c1_111 = arith.constant 1 : index
    %c1_112 = arith.constant 1 : index
    %c0_113 = arith.constant 0 : index
    %99 = vector.load %arg7[%c1_111, %c1_112, %c0_113] : memref<18x18x32xbf16, #tpu.memory_space<vmem>>, vector<16x16x32xbf16>
    %100 = vector.shape_cast %99 : vector<16x16x32xbf16> to vector<256x32xbf16>
    %c4_114 = arith.constant 4 : index
    %c0_115 = arith.constant 0 : index
    %c0_116 = arith.constant 0 : index
    %101 = vector.load %arg4[%c4_114, %c0_115, %c0_116] : memref<9x32x32xbf16, #tpu.memory_space<vmem>>, vector<1x32x32xbf16>
    %102 = vector.shape_cast %101 : vector<1x32x32xbf16> to vector<32x32xbf16>
    %cst_117 = arith.constant dense<0.000000e+00> : vector<256x32xf32>
    %103 = tpu.matmul %100, %102, %cst_117 {dimension_numbers = #tpu.dot_dimension_numbers<[1], [0], [0], [1], [0, 0, 1, 1], [], []>} : vector<256x32xbf16>, vector<32x32xbf16>, vector<256x32xf32> -> vector<256x32xf32>
    %104 = arith.addf %98, %103 : vector<256x32xf32>
    %c1_118 = arith.constant 1 : index
    %c2_119 = arith.constant 2 : index
    %c0_120 = arith.constant 0 : index
    %105 = vector.load %arg7[%c1_118, %c2_119, %c0_120] : memref<18x18x32xbf16, #tpu.memory_space<vmem>>, vector<16x16x32xbf16>
    %106 = vector.shape_cast %105 : vector<16x16x32xbf16> to vector<256x32xbf16>
    %c5_121 = arith.constant 5 : index
    %c0_122 = arith.constant 0 : index
    %c0_123 = arith.constant 0 : index
    %107 = vector.load %arg4[%c5_121, %c0_122, %c0_123] : memref<9x32x32xbf16, #tpu.memory_space<vmem>>, vector<1x32x32xbf16>
    %108 = vector.shape_cast %107 : vector<1x32x32xbf16> to vector<32x32xbf16>
    %cst_124 = arith.constant dense<0.000000e+00> : vector<256x32xf32>
    %109 = tpu.matmul %106, %108, %cst_124 {dimension_numbers = #tpu.dot_dimension_numbers<[1], [0], [0], [1], [0, 0, 1, 1], [], []>} : vector<256x32xbf16>, vector<32x32xbf16>, vector<256x32xf32> -> vector<256x32xf32>
    %110 = arith.addf %104, %109 : vector<256x32xf32>
    %c2_125 = arith.constant 2 : index
    %c0_126 = arith.constant 0 : index
    %c0_127 = arith.constant 0 : index
    %111 = vector.load %arg7[%c2_125, %c0_126, %c0_127] : memref<18x18x32xbf16, #tpu.memory_space<vmem>>, vector<16x16x32xbf16>
    %112 = vector.shape_cast %111 : vector<16x16x32xbf16> to vector<256x32xbf16>
    %c6_128 = arith.constant 6 : index
    %c0_129 = arith.constant 0 : index
    %c0_130 = arith.constant 0 : index
    %113 = vector.load %arg4[%c6_128, %c0_129, %c0_130] : memref<9x32x32xbf16, #tpu.memory_space<vmem>>, vector<1x32x32xbf16>
    %114 = vector.shape_cast %113 : vector<1x32x32xbf16> to vector<32x32xbf16>
    %cst_131 = arith.constant dense<0.000000e+00> : vector<256x32xf32>
    %115 = tpu.matmul %112, %114, %cst_131 {dimension_numbers = #tpu.dot_dimension_numbers<[1], [0], [0], [1], [0, 0, 1, 1], [], []>} : vector<256x32xbf16>, vector<32x32xbf16>, vector<256x32xf32> -> vector<256x32xf32>
    %116 = arith.addf %110, %115 : vector<256x32xf32>
    %c2_132 = arith.constant 2 : index
    %c1_133 = arith.constant 1 : index
    %c0_134 = arith.constant 0 : index
    %117 = vector.load %arg7[%c2_132, %c1_133, %c0_134] : memref<18x18x32xbf16, #tpu.memory_space<vmem>>, vector<16x16x32xbf16>
    %118 = vector.shape_cast %117 : vector<16x16x32xbf16> to vector<256x32xbf16>
    %c7_135 = arith.constant 7 : index
    %c0_136 = arith.constant 0 : index
    %c0_137 = arith.constant 0 : index
    %119 = vector.load %arg4[%c7_135, %c0_136, %c0_137] : memref<9x32x32xbf16, #tpu.memory_space<vmem>>, vector<1x32x32xbf16>
    %120 = vector.shape_cast %119 : vector<1x32x32xbf16> to vector<32x32xbf16>
    %cst_138 = arith.constant dense<0.000000e+00> : vector<256x32xf32>
    %121 = tpu.matmul %118, %120, %cst_138 {dimension_numbers = #tpu.dot_dimension_numbers<[1], [0], [0], [1], [0, 0, 1, 1], [], []>} : vector<256x32xbf16>, vector<32x32xbf16>, vector<256x32xf32> -> vector<256x32xf32>
    %122 = arith.addf %116, %121 : vector<256x32xf32>
    %c2_139 = arith.constant 2 : index
    %c2_140 = arith.constant 2 : index
    %c0_141 = arith.constant 0 : index
    %123 = vector.load %arg7[%c2_139, %c2_140, %c0_141] : memref<18x18x32xbf16, #tpu.memory_space<vmem>>, vector<16x16x32xbf16>
    %124 = vector.shape_cast %123 : vector<16x16x32xbf16> to vector<256x32xbf16>
    %c8_142 = arith.constant 8 : index
    %c0_143 = arith.constant 0 : index
    %c0_144 = arith.constant 0 : index
    %125 = vector.load %arg4[%c8_142, %c0_143, %c0_144] : memref<9x32x32xbf16, #tpu.memory_space<vmem>>, vector<1x32x32xbf16>
    %126 = vector.shape_cast %125 : vector<1x32x32xbf16> to vector<32x32xbf16>
    %cst_145 = arith.constant dense<0.000000e+00> : vector<256x32xf32>
    %127 = tpu.matmul %124, %126, %cst_145 {dimension_numbers = #tpu.dot_dimension_numbers<[1], [0], [0], [1], [0, 0, 1, 1], [], []>} : vector<256x32xbf16>, vector<32x32xbf16>, vector<256x32xf32> -> vector<256x32xf32>
    %128 = arith.addf %122, %127 : vector<256x32xf32>
    %c0_146 = arith.constant 0 : index
    %c0_147 = arith.constant 0 : index
    %129 = vector.load %arg5[%c0_146, %c0_147] : memref<1x32xf32, #tpu.memory_space<vmem>>, vector<1x32xf32>
    %130 = vector.broadcast %129 : vector<1x32xf32> to vector<256x32xf32>
    %131 = arith.addf %128, %130 : vector<256x32xf32>
    %c0_148 = arith.constant 0 : index
    %c0_149 = arith.constant 0 : index
    %c1_150 = arith.constant 1 : index
    %c1_151 = arith.constant 1 : index
    %c0_152 = arith.constant 0 : index
    %132 = vector.load %arg1[%c0_148, %c0_149, %c1_150, %c1_151, %c0_152] : memref<1x1x18x18x32xbf16, #tpu.memory_space<vmem>>, vector<1x1x16x16x32xbf16>
    %133 = vector.shape_cast %132 : vector<1x1x16x16x32xbf16> to vector<16x16x32xbf16>
    %134 = vector.shape_cast %133 : vector<16x16x32xbf16> to vector<256x32xbf16>
    %135 = arith.extf %134 : vector<256x32xbf16> to vector<256x32xf32>
    %136 = arith.addf %131, %135 : vector<256x32xf32>
    %cst_153 = arith.constant 0.000000e+00 : f32
    %137 = vector.broadcast %cst_153 : f32 to vector<256x32xf32>
    %138 = arith.maximumf %136, %137 : vector<256x32xf32>
    %139 = vector.shape_cast %138 : vector<256x32xf32> to vector<16x16x32xf32>
    %c0_154 = arith.constant 0 : index
    %c0_155 = arith.constant 0 : index
    %c0_156 = arith.constant 0 : index
    %c0_157 = arith.constant 0 : index
    %140 = vector.load %arg6[%c0_154, %c0_155, %c0_156, %c0_157] : memref<1x16x16x32xf32, #tpu.memory_space<vmem>>, vector<1x16x16x32xf32>
    %141 = vector.shape_cast %140 : vector<1x16x16x32xf32> to vector<16x16x32xf32>
    %142 = vector.shape_cast %139 : vector<16x16x32xf32> to vector<1x16x16x32xf32>
    tpu.vector_store %arg6[%c0_154, %c0_155, %c0_156, %c0_157], %142 {strides = array<i32>} : memref<1x16x16x32xf32, #tpu.memory_space<vmem>>, vector<1x16x16x32xf32>,
    return
  }
  func.func @transform_0(%arg0: i32) -> (i32, i32, i32, i32, i32) {
    %c0_i32 = arith.constant 0 : i32
    %c0_i32_0 = arith.constant 0 : i32
    %c0_i32_1 = arith.constant 0 : i32
    %c0_i32_2 = arith.constant 0 : i32
    %c0_i32_3 = arith.constant 0 : i32
    return %c0_i32, %arg0, %c0_i32_0, %c0_i32_1, %c0_i32_2 : i32, i32, i32, i32, i32
  }
  func.func @transform_1(%arg0: i32) -> (i32, i32, i32) {
    %c0_i32 = arith.constant 0 : i32
    %c0_i32_0 = arith.constant 0 : i32
    %c0_i32_1 = arith.constant 0 : i32
    %c0_i32_2 = arith.constant 0 : i32
    return %c0_i32, %c0_i32_0, %c0_i32_1 : i32, i32, i32
  }
  func.func @transform_2(%arg0: i32) -> (i32, i32) {
    %c0_i32 = arith.constant 0 : i32
    %c0_i32_0 = arith.constant 0 : i32
    %c0_i32_1 = arith.constant 0 : i32
    return %c0_i32, %c0_i32_0 : i32, i32
  }
  func.func @transform_3(%arg0: i32) -> (i32, i32, i32) {
    %c0_i32 = arith.constant 0 : i32
    %c0_i32_0 = arith.constant 0 : i32
    %c0_i32_1 = arith.constant 0 : i32
    %c0_i32_2 = arith.constant 0 : i32
    return %c0_i32, %c0_i32_0, %c0_i32_1 : i32, i32, i32
  }
  func.func @transform_4(%arg0: i32) -> (i32, i32) {
    %c0_i32 = arith.constant 0 : i32
    %c0_i32_0 = arith.constant 0 : i32
    %c0_i32_1 = arith.constant 0 : i32
    return %c0_i32, %c0_i32_0 : i32, i32
  }
  func.func @transform_5(%arg0: i32) -> (i32, i32, i32, i32) {
    %c0_i32 = arith.constant 0 : i32
    %c0_i32_0 = arith.constant 0 : i32
    %c0_i32_1 = arith.constant 0 : i32
    %c0_i32_2 = arith.constant 0 : i32
    return %arg0, %c0_i32, %c0_i32_0, %c0_i32_1 : i32, i32, i32, i32
  }
}

</mosaic_0001>

<bundles_post_ra>
// kernel: basic_block_forward.1
= control target key start
LH: loop header
LB: loop body
LE: loop exit
PB: predicated region body
PF: predicated region fallthrough
CT: control target
= control target key end

     0   :  { %10 = vsyncpa [#allocation4], 0  ;;  %s17878_s0 = inlined_call_operand.vmem [shape: bf16[1,2,18,18,32], index: 0, kind: input, shape index: {}]   ;;  %s17879_s1 = inlined_call_operand.vmem [shape: bf16[9,32,32], index: 1, kind: input, shape index: {}]   ;;  %s17880_s2 = inlined_call_operand.vmem [shape: f32[1,32], index: 2, kind: input, shape index: {}]   ;;  %s17881_s3 = inlined_call_operand.vmem [shape: bf16[9,32,32], index: 3, kind: input, shape index: {}]   ;;  %s17882_s4 = inlined_call_operand.vmem [shape: f32[1,32], index: 4, kind: input, shape index: {}]   ;;  %s17883_s5 = inlined_call_operand.hbm [shape: f32[2,16,16,32], index: 5, kind: output, shape index: {}]  }
   0x1   :  { %12 = vsyncpa [#allocation4 + $0x1], 0  ;;  %s13788_s18 = smov 0   ;;  %s13790_s19 = smov 0  }
   0x2   :  { %s13792_s20 = smov 0   ;;  %s13794_s21 = smov 0  }
   0x3 LB: > { %s13809_s22 = sadd.s32 4294967295, %s13752_s21   ;;  %s10919_s23 = sadd.s32 4294967294, %s13752_s21   ;;  %s13752_s21 = sphi %s13794_s21, %s18260_s21   ;;  %s13748_s20 = sphi %s13792_s20, %s18259_s20   ;;  %s13744_s19 = sphi %s13790_s19, %s18258_s19   ;;  %s13740_s18 = sphi %s13788_s18, %s18257_s18  }
   0x4   : > { %s13813_s24 = sadd.s32 1, %s13752_s21   ;;  %s135_s25 = sadd.s32 1, %s13748_s20 }
   0x5   : > { %s132_s26 = ssub.s32 %s13752_s21, %s13813_s24  ;;  %p145_p0 = scmp.ne.s32.totalorder %s13748_s20, %s13744_s19 }
   0x6   : > { %p133_p1 = scmp.eq.s32.totalorder %s132_s26, 0  ;;  %p146_p2 = scmp.eq.s32.totalorder %s13809_s22, 1 }
   0x7   : > { %p151_p3 = scmp.ne.s32.totalorder %s13744_s19, %s13740_s18  ;;  %p152_p4 = scmp.eq.s32.totalorder %s10919_s23, 1 }
   0x8   : > { %s13824_s27 = scalar_select %p133_p1, %s13748_s20, %s135_s25  }
   0x9   : > { %p13826_p5 = por %p146_p2, %p145_p0  ;;  %p13830_p6 = por %p152_p4, %p151_p3 }
   0xa   : > { %p10922_p7 = scmp.ge.s32.totalorder %s13752_s21, 1  ;;  %p190_p8 = scmp.lt.s32.totalorder %s13752_s21, 3 }
   0xc   : > { %p191_p9 = pnand %p10922_p7, %p190_p8 }
   0xe   : > { %194 = sbr.rel (%p191_p9) target bundleno = 1671 (0x687), region = 40 }
  0x15   : > { %v13536_v0 = vld [vmem:[%s17879_s1 + $0x10] sm:$0xff]   ;;  %p218_p10 = scmp.lt.s32.totalorder %s13809_s22, 1  ;;  %v13537_v1 = vld [vmem:[%s17879_s1 + $0x18] sm:$0xff]   ;;  %v13847_v2 = vld [vmem:[%s17879_s1] sm:$0xff]   ;;  %vm276_vm0 = vsmask.f32 3328 }
  0x16   : > { %12333 = vmatprep.subr.bf16.mxu0 %v13536_v0  ;;  %vm277_vm1 = vsmask.f32 7440  ;;  %vm728_vm3 = vcmask 261120   ;;  %vm1287_vm4 = vcmask 1042432   ;;  %vm1288_vm5 = vcmask 1046532   ;;  %s13755_s30 = smov [#allocation3]  }
  0x17   : > { %s219_s9 = scalar_select %p218_p10, %s13809_s22, 1  ;;  %12334 = vmatpush3.bf16.msra.mxu0 %v13536_v0  ;;  %vm13885_vm2 = vmor %vm276_vm0, %vm277_vm1  ;;  %vm4961_vm7 = vcmask 257024   ;;  %vm4964_vm8 = vcmask 253952   ;;  %vm5438_vm9 = vsmask.f32 7938 }
  0x18   : > { %12335 = vmatprep.subr.bf16.mxu0 %v13537_v1  ;;  %vm14196_vm6 = vmor %vm1287_vm4, %vm1288_vm5  ;;  %vm5113_vm10 = vsmask.f32 256  ;;  %vm5114_vm11 = vsmask.f32 4368  ;;  %s13694_s6 = sshll.u32 %s13755_s30, 4  ;;  %s13695_s6 = int_to_ptr.vmem [resolvable:$false] %s13694_s6 }
  0x19   : > { %s13493_s10 = smul.u32 216, %s219_s9  ;;  %vm15688_vm12 = vmand %vm4961_vm7, %vm5438_vm9  ;;  %s13696_s7 = scalar_lea.vmem %s13695_s6, 8192 }
  0x1a   : > { %vm15695_vm13 = vmor %vm5113_vm10, %vm5114_vm11 }
  0x1b   : > { %s13852_s15 = scalar_lea.vmem %s17878_s0, %s13493_s10  ;;  %12336 = vmatpush3.bf16.msra.mxu0 %v13537_v1  ;;  %vm15701_vm14 = vmand %vm4964_vm8, %vm5113_vm10  ;;  %s215_s10 = sand.u32 1, %s13744_s19  }
  0x1c   : > { %v13855_v3 = vld [vmem:[%s13852_s15] sm:$0xf]  ;;  %v13858_v4 = vld [vmem:[%s13852_s15 + $0x4] sm:$0xf]  ;;  %v260_v5 = vld [vmem:[%s13852_s15 + $0x8] sm:$0x1]  ;;  %12369 = vmatprep.subr.bf16.mxu0 %v13847_v2 }
  0x1d   : > { %v280_v6 = vshrl.u32 %v13855_v3, 16  ;;  %v283_v7 = vshll.u32 %v13855_v3, 16  ;;  %v289_v8 = vshll.u32 %v13858_v4, 16  ;;  %v293_v9 = vshrl.u32 %v13858_v4, 16  ;;  %v13867_v10 = vld [vmem:[%s13852_s15 + $0xc] sm:$0xf] }
  0x1e   : > { %v299_v11 = vshll.u32 %v260_v5, 16  ;;  %v13870_v12 = vld [vmem:[%s13852_s15 + $0x10] sm:$0xf]  ;;  %v13873_v13 = vld [vmem:[%s13852_s15 + $0x14] sm:$0x1]  ;;  %v304_v19 = vshrl.u32 %v13867_v10, 16 }
  0x1f   : > { %v282_v14 = vrot.slane %v280_v6, 4  ;;  %v285_v15 = vrot.slane %v283_v7, 5  ;;  %v291_v16 = vrot.slane %v289_v8, 5  ;;  %v295_v17 = vrot.slane %v293_v9, 4  ;;  %v13881_v26 = vld [vmem:[%s13852_s15 + $0x18] sm:$0xf] }
  0x20   : > { %v301_v18 = vrot.slane %v299_v11, 5  ;;  %v307_v20 = vshll.u32 %v13867_v10, 16  ;;  %v313_v21 = vshll.u32 %v13870_v12, 16  ;;  %v317_v24 = vshrl.u32 %v13870_v12, 16  ;;  %v13890_v31 = vld [vmem:[%s13852_s15 + $0x1c] sm:$0xf] }
  0x21   : > { %v286_v22 = vor.u32 %v285_v15, %v282_v14  ;;  %v296_v23 = vor.u32 %v295_v17, %v291_v16  ;;  %v323_v25 = vshll.u32 %v13873_v13, 16  ;;  %v306_v28 = vrot.slane %v304_v19, 4  ;;  %v262_v38 = vld [vmem:[%s13852_s15 + $0x20] sm:$0x1]  ;;  %v13903_v45 = vld [vmem:[%s13852_s15 + $0x24] sm:$0xf] }
  0x22   : > { %v309_v29 = vrot.slane %v307_v20, 5  ;;  %v315_v30 = vrot.slane %v313_v21, 5  ;;  %v319_v34 = vrot.slane %v317_v24, 4  ;;  %v328_v39 = vshrl.u32 %v13881_v26, 16  ;;  %v13906_v50 = vld [vmem:[%s13852_s15 + $0x28] sm:$0xf] }
  0x23   : > { %v287_v32 = vrot.slane %v286_v22, 4  ;;  %v297_v33 = vrot.slane %v296_v23, 4  ;;  %v325_v37 = vrot.slane %v323_v25, 5  ;;  %v331_v40 = vshll.u32 %v13881_v26, 16  ;;  %v263_v57 = vld [vmem:[%s13852_s15 + $0x2c] sm:$0x1] }
  0x24   : > { %v310_v36 = vor.u32 %v309_v29, %v306_v28  ;;  %v320_v43 = vor.u32 %v319_v34, %v315_v30  ;;  %v337_v44 = vshll.u32 %v13890_v31, 16  ;;  %v330_v48 = vrot.slane %v328_v39, 4  ;;  %v13919_v0 = vld [vmem:[%s13852_s15 + $0x30] sm:$0xf]  ;;  %v13922_v8 = vld [vmem:[%s13852_s15 + $0x34] sm:$0xf] }
  0x25   : > { %v292_v41 = vsel %vm13885_vm2, %v287_v32, %v291_v16  ;;  %v302_v42 = vsel %vm13885_vm2, %v297_v33, %v301_v18  ;;  %v333_v49 = vrot.slane %v331_v40, 5  ;;  %v341_v53 = vshrl.u32 %v13890_v31, 16  ;;  %v13539_v9 = vld [vmem:[%s17879_s1 + $0x8] sm:$0xff]   ;;  %v13932_v19 = vld [vmem:[%s13852_s15 + $0x38] sm:$0x1]  ;;  %v13941_v28 = vld [vmem:[%s17879_s1 + $0x20] sm:$0xff]  }
  0x26   : > { %v10929_v46 = vcombine.low %v292_v41, %v302_v42  ;;  %v311_v47 = vrot.slane %v310_v36, 4  ;;  %v321_v51 = vrot.slane %v320_v43, 4  ;;  %v339_v52 = vrot.slane %v337_v44, 5  ;;  %v13945_v34 = vld [vmem:[%s13852_s15 + $0x3c] sm:$0xf]  ;;  %s17604_s13 = sshll.u32 %s215_s10, 8 }
  0x27   : > { %v347_v54 = vshll.u32 %v262_v38, 16  ;;  %v334_v56 = vor.u32 %v333_v49, %v330_v48  ;;  %v352_v58 = vshrl.u32 %v13903_v45, 16  ;;  %v355_v59 = vshll.u32 %v13903_v45, 16  ;;  %v13951_v39 = vld [vmem:[%s13852_s15 + $0x40] sm:$0xf]  ;;  %s17626_s14 = scalar_lea.vmem [#allocation3], %s17604_s13 }
  0x28   : > { %12337 = vmatprep.mubr.msk.bf16.mxu0 %vm728_vm3, %v10929_v46  ;;  %v316_v55 = vsel %vm13885_vm2, %v311_v47, %v315_v30  ;;  %v326_v60 = vsel %vm13885_vm2, %v321_v51, %v325_v37  ;;  %v343_v61 = vrot.slane %v341_v53, 4  ;;  %v361_v63 = vshll.u32 %v13906_v50, 16  ;;  %v13956_v44 = vld [vmem:[%s13852_s15 + $0x44] sm:$0x1]  ;;  %s10857_s16 = sshll.u32 %s17626_s14, 4  ;;  %s17827_s16 = int_to_ptr.vmem [resolvable:$true] %s10857_s16 }
  0x29   : > { %v349_v62 = vrot.slane %v347_v54, 5  ;;  %v10930_v1 = vcombine.low %v316_v55, %v326_v60  ;;  %v335_v5 = vrot.slane %v334_v56, 4  ;;  %v354_v6 = vrot.slane %v352_v58, 4  ;;  %v13964_v55 = vld [vmem:[%s13852_s15 + $0x48] sm:$0xf]  ;;  %s13690_s26 = scalar_lea.vmem %s17827_s16, 4096  ;;  %p13697_p0 = scmp.lt.s32.totalorder %s17827_s16, %s13695_s6 }
  0x2a   : > { %v357_v7 = vrot.slane %v355_v59, 5  ;;  %v344_v11 = vor.u32 %v343_v61, %v339_v52  ;;  %v363_v14 = vrot.slane %v361_v63, 5  ;;  %v365_v15 = vshrl.u32 %v13906_v50, 16  ;;  %v13971_v60 = vld [vmem:[%s13852_s15 + $0x4c] sm:$0xf]  ;;  %p13691_p11 = scmp.ne.s32.totalorder %s17827_s16, %s13690_s26  ;;  %p13698_p1 = scmp.lt.s32.totalorder %s13696_s7, %s13690_s26 }
  0x2b   : > { %v371_v16 = vshll.u32 %v263_v57, 16  ;;  %12338 = vmatmul.mubr.msk.bf16.vlgmr.msra.gmra.mrb[0].mxu0 %vm728_vm3, %v10930_v1  ;;  %v340_v17 = vsel %vm13885_vm2, %v335_v5, %v339_v52  ;;  %v376_v20 = vshrl.u32 %v13919_v0, 16  ;;  %v379_v21 = vshll.u32 %v13919_v0, 16 }
  0x2c   : > { %v358_v18 = vor.u32 %v357_v7, %v354_v6  ;;  %12370 = vmatpush3.bf16.msra.mxu0 %v13847_v2  ;;  %v345_v22 = vrot.slane %v344_v11, 4  ;;  %v367_v23 = vrot.slane %v365_v15, 4  ;;  %v385_v25 = vshll.u32 %v13922_v8, 16  ;;  %p13692_p12 = pnand %p13691_p11, %p13826_p5  ;;  %p13699_p2 = por %p13698_p1, %p13697_p0 }
  0x2d   : > { %v373_v24 = vrot.slane %v371_v16, 5  ;;  %v378_v30 = vrot.slane %v376_v20, 4  ;;  %v381_v32 = vrot.slane %v379_v21, 5  ;;  %v389_v33 = vshrl.u32 %v13922_v8, 16  ;;  %12371 = vmatprep.subr.bf16.mxu0 %v13539_v9 }
  0x2e   : > { %v359_v29 = vrot.slane %v358_v18, 4  ;;  %v350_v2 = vsel %vm13885_vm2, %v345_v22, %v349_v62  ;;  %v368_v36 = vor.u32 %v367_v23, %v363_v14  ;;  %v387_v37 = vrot.slane %v385_v25, 5  ;;  %v13986_v18 = vld [vmem:[%s13852_s15 + $0x54] sm:$0xf]  ;;  %p13693_p13 = pneg %p13692_p12 }
  0x2f   : > { %v395_v38 = vshll.u32 %v13932_v19, 16  ;;  %v10931_v40 = vcombine.low %v340_v17, %v350_v2  ;;  %v382_v42 = vor.u32 %v381_v32, %v378_v30  ;;  %v391_v43 = vrot.slane %v389_v33, 4 }
  0x30   : > { %v364_v41 = vsel %vm13885_vm2, %v359_v29, %v363_v14  ;;  %v369_v46 = vrot.slane %v368_v36, 4  ;;  %v400_v48 = vshrl.u32 %v13945_v34, 16  ;;  %v403_v49 = vshll.u32 %v13945_v34, 16  ;;  %12372 = vmatpush3.bf16.msra.mxu0 %v13539_v9  ;;  %v13976_v9 = vld [vmem:[%s13852_s15 + $0x50] sm:$0x1]  ;;  %p13700_p3 = pnand %p13699_p2, %p13693_p13 }
  0x31   : > { %v397_v47 = vrot.slane %v395_v38, 5  ;;  %12341 = vmatprep.mubr.msk.bf16.mxu0 %vm728_vm3, %v10931_v40  ;;  %v383_v51 = vrot.slane %v382_v42, 4  ;;  %v392_v52 = vor.u32 %v391_v43, %v387_v37  ;;  %v409_v53 = vshll.u32 %v13951_v39, 16  ;;  %12405 = vmatprep.subr.bf16.mxu0 %v13941_v28  ;;  %v13998_v42 = vld [vmem:[%s13852_s15 + $0x5c] sm:$0x1] }
  0x32   : > { %v413_v54 = vshrl.u32 %v13951_v39, 16  ;;  %v374_v56 = vsel %vm13885_vm2, %v369_v46, %v373_v24  ;;  %v402_v57 = vrot.slane %v400_v48, 4  ;;  %v405_v58 = vrot.slane %v403_v49, 5  ;;  %v13989_v24 = vld [vmem:[%s13852_s15 + $0x58] sm:$0xf] }
  0x33   : > { %v419_v59 = vshll.u32 %v13956_v44, 16  ;;  %v10932_v61 = vcombine.low %v364_v41, %v374_v56  ;;  %v388_v62 = vsel %vm13885_vm2, %v383_v51, %v387_v37  ;;  %v393_v63 = vrot.slane %v392_v52, 4  ;;  %v14002_v46 = vld [vmem:[%s13852_s15 + $0x60] sm:$0xf]  ;;  %v14008_v52 = vld [vmem:[%s13852_s15 + $0x64] sm:$0xf] }
  0x34   : > { %v411_v1 = vrot.slane %v409_v53, 5  ;;  %v406_v5 = vor.u32 %v405_v58, %v402_v57  ;;  %v415_v6 = vrot.slane %v413_v54, 4  ;;  %v424_v11 = vshrl.u32 %v13964_v55, 16 }
  0x35   : > { %v421_v7 = vrot.slane %v419_v59, 5  ;;  %12342 = vmatmul.mubr.msk.bf16.gmra.mrb[4].mxu0 %vm728_vm3, %v10932_v61  ;;  %v398_v14 = vsel %vm13885_vm2, %v393_v63, %v397_v47  ;;  %v427_v15 = vshll.u32 %v13964_v55, 16  ;;  %v433_v16 = vshll.u32 %v13971_v60, 16 }
  0x36   : > { %v437_v17 = vshrl.u32 %v13971_v60, 16  ;;  %v10933_v20 = vcombine.low %v388_v62, %v398_v14  ;;  %v407_v21 = vrot.slane %v406_v5, 4  ;;  %v416_v22 = vor.u32 %v415_v6, %v411_v1  ;;  %v14018_v5 = vld [vmem:[%s13852_s15 + $0x68] sm:$0x1] }
  0x37   : > { %v426_v23 = vrot.slane %v424_v11, 4  ;;  %v429_v25 = vrot.slane %v427_v15, 5  ;;  %v435_v29 = vrot.slane %v433_v16, 5  ;;  %v443_v32 = vshll.u32 %v13976_v9, 16  ;;  %17988 = vst [vmem:[#allocation6_spill] sm:$0xff] %v14018_v5 }
  0x38   : > { %v439_v30 = vrot.slane %v437_v17, 4  ;;  %12345 = vmatprep.mubr.msk.bf16.mxu0 %vm728_vm3, %v10933_v20  ;;  %v412_v33 = vsel %vm13885_vm2, %v407_v21, %v411_v1  ;;  %v417_v2 = vrot.slane %v416_v22, 4  ;;  %v448_v36 = vshrl.u32 %v13986_v18, 16  ;;  %v14023_v11 = vld [vmem:[%s13852_s15 + $0x6c] sm:$0xf] }
  0x39   : > { %v451_v37 = vshll.u32 %v13986_v18, 16  ;;  %v430_v38 = vor.u32 %v429_v25, %v426_v23  ;;  %v445_v41 = vrot.slane %v443_v32, 5  ;;  %v457_v43 = vshll.u32 %v13989_v24, 16  ;;  %v14026_v20 = vld [vmem:[%s13852_s15 + $0x70] sm:$0xf] }
  0x3a   : > { %v440_v40 = vor.u32 %v439_v30, %v435_v29  ;;  %v422_v47 = vsel %vm13885_vm2, %v417_v2, %v421_v7  ;;  %v450_v48 = vrot.slane %v448_v36, 4  ;;  %v461_v51 = vshrl.u32 %v13989_v24, 16 }
  0x3b   : > { %v453_v49 = vrot.slane %v451_v37, 5  ;;  %v10934_v53 = vcombine.low %v412_v33, %v422_v47  ;;  %v431_v54 = vrot.slane %v430_v38, 4  ;;  %v459_v57 = vrot.slane %v457_v43, 5  ;;  %v14034_v33 = vld [vmem:[%s13852_s15 + $0x74] sm:$0x1] }
  0x3c   : > { %v441_v56 = vrot.slane %v440_v40, 4  ;;  %v463_v59 = vrot.slane %v461_v51, 4  ;;  %v467_v61 = vshll.u32 %v13998_v42, 16  ;;  %v472_v62 = vshrl.u32 %v14002_v46, 16  ;;  %17989 = vst [vmem:[#allocation7_spill] sm:$0xff] %v14034_v33 }
  0x3d   : > { %v454_v58 = vor.u32 %v453_v49, %v450_v48  ;;  %12346 = vmatmul.mubr.msk.bf16.gmra.mrb[8].mxu0 %vm728_vm3, %v10934_v53  ;;  %v436_v63 = vsel %vm13885_vm2, %v431_v54, %v435_v29  ;;  %v475_v6 = vshll.u32 %v14002_v46, 16  ;;  %v481_v7 = vshll.u32 %v14008_v52, 16 }
  0x3e   : > { %v446_v1 = vsel %vm13885_vm2, %v441_v56, %v445_v41  ;;  %v464_v16 = vor.u32 %v463_v59, %v459_v57  ;;  %v469_v17 = vrot.slane %v467_v61, 5  ;;  %v474_v21 = vrot.slane %v472_v62, 4  ;;  %v14040_v41 = vld [vmem:[%s13852_s15 + $0x78] sm:$0xf] }
  0x3f   : > { %v10935_v14 = vcombine.low %v436_v63, %v446_v1  ;;  %v455_v15 = vrot.slane %v454_v58, 4  ;;  %v477_v22 = vrot.slane %v475_v6, 5  ;;  %v483_v23 = vrot.slane %v481_v7, 5  ;;  %v14049_v58 = vld [vmem:[%s13852_s15 + $0x80] sm:$0x1] }
  0x40   : > { %v485_v25 = vshrl.u32 %v14008_v52, 16  ;;  %v465_v30 = vrot.slane %v464_v16, 4  ;;  %v491_v32 = vshll.u32 %v14018_v5, 16  ;;  %v496_v2 = vshrl.u32 %v14023_v11, 16  ;;  %17990 = vst [vmem:[#allocation8_spill] sm:$0xff] %v14049_v58 }
  0x41   : > { %12349 = vmatprep.mubr.msk.bf16.mxu0 %vm728_vm3, %v10935_v14  ;;  %v460_v29 = vsel %vm13885_vm2, %v455_v15, %v459_v57  ;;  %v478_v36 = vor.u32 %v477_v22, %v474_v21  ;;  %v499_v38 = vshll.u32 %v14023_v11, 16  ;;  %v505_v40 = vshll.u32 %v14026_v20, 16  ;;  %v14046_v57 = vld [vmem:[%s13852_s15 + $0x7c] sm:$0xf]  ;;  %v14054_v1 = vld [vmem:[%s13852_s15 + $0x84] sm:$0xf] }
  0x42   : > { %v487_v37 = vrot.slane %v485_v25, 4  ;;  %v470_v43 = vsel %vm13885_vm2, %v465_v30, %v469_v17  ;;  %v493_v47 = vrot.slane %v491_v32, 5  ;;  %v498_v48 = vrot.slane %v496_v2, 4  ;;  %v14061_v16 = vld [vmem:[%s13852_s15 + $0x88] sm:$0xf] }
  0x43   : > { %v509_v49 = vshrl.u32 %v14026_v20, 16  ;;  %v10936_v51 = vcombine.low %v460_v29, %v470_v43  ;;  %v479_v53 = vrot.slane %v478_v36, 4  ;;  %v501_v56 = vrot.slane %v499_v38, 5  ;;  %v14068_v2 = vld [vmem:[%s13852_s15 + $0x8c] sm:$0x1] }
  0x44   : > { %v488_v54 = vor.u32 %v487_v37, %v483_v23  ;;  %v507_v59 = vrot.slane %v505_v40, 5  ;;  %v515_v62 = vshll.u32 %v14034_v33, 16  ;;  %v520_v63 = vshrl.u32 %v14040_v41, 16  ;;  %17991 = vst [vmem:[#allocation9_spill] sm:$0xff] %v14068_v2  ;;  %v14072_v43 = vld [vmem:[%s13852_s15 + $0x90] sm:$0xf] }
  0x45   : > { %v511_v61 = vrot.slane %v509_v49, 4  ;;  %12350 = vmatmul.mubr.msk.bf16.gmra.mrb[12].mxu0 %vm728_vm3, %v10936_v51  ;;  %v484_v6 = vsel %vm13885_vm2, %v479_v53, %v483_v23  ;;  %v502_v14 = vor.u32 %v501_v56, %v498_v48  ;;  %v523_v15 = vshll.u32 %v14040_v41, 16  ;;  %v14078_v53 = vld [vmem:[%s13852_s15 + $0x94] sm:$0xf] }
  0x46   : > { %v489_v7 = vrot.slane %v488_v54, 4  ;;  %v517_v21 = vrot.slane %v515_v62, 5  ;;  %v522_v22 = vrot.slane %v520_v63, 4  ;;  %v529_v25 = vshll.u32 %v14046_v57, 16 }
  0x47   : > { %v512_v17 = vor.u32 %v511_v61, %v507_v59  ;;  %v503_v30 = vrot.slane %v502_v14, 4  ;;  %v525_v32 = vrot.slane %v523_v15, 5  ;;  %v533_v23 = vshrl.u32 %v14046_v57, 16 }
  0x48   : > { %v494_v29 = vsel %vm13885_vm2, %v489_v7, %v493_v47  ;;  %v531_v38 = vrot.slane %v529_v25, 5  ;;  %v539_v40 = vshll.u32 %v14049_v58, 16  ;;  %v544_v47 = vshrl.u32 %v14054_v1, 16  ;;  %v14088_v25 = vld [vmem:[%s13852_s15 + $0x98] sm:$0x1] }
  0x49   : > { %v10937_v36 = vcombine.low %v484_v6, %v494_v29  ;;  %v513_v37 = vrot.slane %v512_v17, 4  ;;  %v508_v48 = vsel %vm13885_vm2, %v503_v30, %v507_v59  ;;  %v526_v49 = vor.u32 %v525_v32, %v522_v22  ;;  %17992 = vst [vmem:[#allocation10_spill] sm:$0xff] %v14088_v25  ;;  %v14091_v29 = vld [vmem:[%s13852_s15 + $0x9c] sm:$0xf] }
  0x4a   : > { %v535_v51 = vrot.slane %v533_v23, 4  ;;  %v541_v56 = vrot.slane %v539_v40, 5  ;;  %v547_v61 = vshll.u32 %v14054_v1, 16  ;;  %v553_v62 = vshll.u32 %v14061_v16, 16  ;;  %v14145_v58 = vld [vmem:[%s13852_s15 + $0xbc] sm:$0x1] }
  0x4b   : > { %12353 = vmatprep.mubr.msk.bf16.mxu0 %vm728_vm3, %v10937_v36  ;;  %v518_v54 = vsel %vm13885_vm2, %v513_v37, %v517_v21  ;;  %v527_v59 = vrot.slane %v526_v49, 4  ;;  %v546_v7 = vrot.slane %v544_v47, 4  ;;  %v557_v17 = vshrl.u32 %v14061_v16, 16 }
  0x4c   : > { %v10938_v63 = vcombine.low %v508_v48, %v518_v54  ;;  %v536_v6 = vor.u32 %v535_v51, %v531_v38  ;;  %v549_v14 = vrot.slane %v547_v61, 5  ;;  %v555_v15 = vrot.slane %v553_v62, 5 }
  0x4d   : > { %v563_v22 = vshll.u32 %v14068_v2, 16  ;;  %v532_v21 = vsel %vm13885_vm2, %v527_v59, %v531_v38  ;;  %v568_v32 = vshrl.u32 %v14072_v43, 16  ;;  %v571_v23 = vshll.u32 %v14072_v43, 16  ;;  %v14103_v38 = vld [vmem:[%s13852_s15 + $0xa0] sm:$0xf] }
  0x4e   : > { %12354 = vmatmul.mubr.msk.bf16.gmra.mrb[16].mxu0 %vm728_vm3, %v10938_v63  ;;  %v537_v30 = vrot.slane %v536_v6, 4  ;;  %v550_v36 = vor.u32 %v549_v14, %v546_v7  ;;  %v559_v37 = vrot.slane %v557_v17, 4  ;;  %v577_v48 = vshll.u32 %v14078_v53, 16  ;;  %v14106_v6 = vld [vmem:[%s13852_s15 + $0xa4] sm:$0x1] }
  0x4f   : > { %v565_v40 = vrot.slane %v563_v22, 5  ;;  %v570_v51 = vrot.slane %v568_v32, 4  ;;  %v573_v47 = vrot.slane %v571_v23, 5  ;;  %v581_v54 = vshrl.u32 %v14078_v53, 16  ;;  %17993 = vst [vmem:[#allocation11_spill] sm:$0xff] %v14106_v6 }
  0x50   : > { %v542_v49 = vsel %vm13885_vm2, %v537_v30, %v541_v56  ;;  %v551_v62 = vrot.slane %v550_v36, 4  ;;  %v560_v63 = vor.u32 %v559_v37, %v555_v15  ;;  %v579_v59 = vrot.slane %v577_v48, 5  ;;  %v14111_v56 = vld [vmem:[%s13852_s15 + $0xa8] sm:$0xf]  ;;  %v14119_v36 = vld [vmem:[%s13852_s15 + $0xac] sm:$0xf] }
  0x51   : > { %v10939_v61 = vcombine.low %v532_v21, %v542_v49  ;;  %v574_v7 = vor.u32 %v573_v47, %v570_v51  ;;  %v583_v14 = vrot.slane %v581_v54, 4  ;;  %v587_v17 = vshll.u32 %v14088_v25, 16 }
  0x52   : > { %v592_v22 = vshrl.u32 %v14091_v29, 16  ;;  %v556_v30 = vsel %vm13885_vm2, %v551_v62, %v555_v15  ;;  %v561_v21 = vrot.slane %v560_v63, 4  ;;  %v595_v32 = vshll.u32 %v14091_v29, 16  ;;  %v14125_v15 = vld [vmem:[%s13852_s15 + $0xb0] sm:$0x1] }
  0x53   : > { %12357 = vmatprep.mubr.msk.bf16.mxu0 %vm728_vm3, %v10939_v61  ;;  %v601_v23 = vshll.u32 %v14103_v38, 16  ;;  %v575_v37 = vrot.slane %v574_v7, 4  ;;  %v584_v48 = vor.u32 %v583_v14, %v579_v59  ;;  %v589_v49 = vrot.slane %v587_v17, 5  ;;  %17994 = vst [vmem:[#allocation12_spill] sm:$0xff] %v14125_v15 }
  0x54   : > { %v594_v51 = vrot.slane %v592_v22, 4  ;;  %v566_v47 = vsel %vm13885_vm2, %v561_v21, %v565_v40  ;;  %v597_v54 = vrot.slane %v595_v32, 5  ;;  %v605_v61 = vshrl.u32 %v14103_v38, 16 }
  0x55   : > { %v603_v35 = vrot.slane %v601_v23, 5  ;;  %v10940_v62 = vcombine.low %v556_v30, %v566_v47  ;;  %v580_v63 = vsel %vm13885_vm2, %v575_v37, %v579_v59  ;;  %v585_v25 = vrot.slane %v584_v48, 4  ;;  %v14138_v23 = vld [vmem:[%s13852_s15 + $0xb4] sm:$0xf] }
  0x56   : > { %v611_v7 = vshll.u32 %v14106_v6, 16  ;;  %v598_v14 = vor.u32 %v597_v54, %v594_v51  ;;  %v607_v17 = vrot.slane %v605_v61, 4  ;;  %v616_v22 = vshrl.u32 %v14111_v56, 16  ;;  %v14141_v54 = vld [vmem:[%s13852_s15 + $0xb8] sm:$0xf] }
  0x57   : > { %v619_v40 = vshll.u32 %v14111_v56, 16  ;;  %12358 = vmatmul.mubr.msk.bf16.gmra.mrb[20].mxu0 %vm728_vm3, %v10940_v62  ;;  %v590_v21 = vsel %vm13885_vm2, %v585_v25, %v589_v49  ;;  %v625_v32 = vshll.u32 %v14119_v36, 16  ;;  %v629_v59 = vshrl.u32 %v14119_v36, 16 }
  0x58   : > { %v613_v30 = vrot.slane %v611_v7, 5  ;;  %v10941_v37 = vcombine.low %v580_v63, %v590_v21  ;;  %v599_v48 = vrot.slane %v598_v14, 4  ;;  %v608_v51 = vor.u32 %v607_v17, %v603_v35 }
  0x59   : > { %v618_v47 = vrot.slane %v616_v22, 4  ;;  %v621_v61 = vrot.slane %v619_v40, 5  ;;  %v627_v6 = vrot.slane %v625_v32, 5  ;;  %v631_v2 = vrot.slane %v629_v59, 4 }
  0x5a   : > { %v635_v62 = vshll.u32 %v14125_v15, 16  ;;  %12361 = vmatprep.mubr.msk.bf16.mxu0 %vm728_vm3, %v10941_v37  ;;  %v604_v25 = vsel %vm13885_vm2, %v599_v48, %v603_v35  ;;  %v609_v49 = vrot.slane %v608_v51, 4  ;;  %v640_v63 = vshrl.u32 %v14138_v23, 16 }
  0x5b   : > { %v643_v7 = vshll.u32 %v14138_v23, 16  ;;  %v622_v14 = vor.u32 %v621_v61, %v618_v47  ;;  %v632_v17 = vor.u32 %v631_v2, %v627_v6  ;;  %v649_v40 = vshll.u32 %v14141_v54, 16 }
  0x5c   : > { %v637_v22 = vrot.slane %v635_v62, 5  ;;  %v614_v21 = vsel %vm13885_vm2, %v609_v49, %v613_v30  ;;  %v642_v32 = vrot.slane %v640_v63, 4  ;;  %v653_v37 = vshrl.u32 %v14141_v54, 16 }
  0x5d   : > { %v645_v59 = vrot.slane %v643_v7, 5  ;;  %v10942_v15 = vcombine.low %v604_v25, %v614_v21  ;;  %v623_v33 = vrot.slane %v622_v14, 4  ;;  %v633_v35 = vrot.slane %v632_v17, 4 }
  0x5e   : > { %v651_v48 = vrot.slane %v649_v40, 5  ;;  %v655_v5 = vrot.slane %v653_v37, 4  ;;  %v659_v47 = vshll.u32 %v14145_v58, 16  ;;  %v10964_v2 = vcombine.low %v13867_v10, %v13870_v12 }
  0x5f   : > { %v646_v51 = vor.u32 %v645_v59, %v642_v32  ;;  %v1299_v61 = vrot.slane %v13870_v12, 5  ;;  %v1302_v30 = vrot.slane %v13873_v13, 5  ;;  %12362 = vmatmul.mubr.msk.bf16.gmra.mrb[24].mxu0 %vm728_vm3, %v10942_v15  ;;  %v628_v62 = vsel %vm13885_vm2, %v623_v33, %v627_v6  ;;  %v1240_v33 = vld [vmem:[%s13852_s15 + $0xc] sm:$0xe]  ;;  %v1250_v59 = vld [vmem:[%s13852_s15 + $0x84] sm:$0xe] }
  0x60   : > { %v638_v25 = vsel %vm13885_vm2, %v633_v35, %v637_v22  ;;  %v656_v7 = vor.u32 %v655_v5, %v651_v48  ;;  %v661_v14 = vrot.slane %v659_v47, 5  ;;  %v10967_v17 = vcombine.low %v13919_v0, %v13922_v8  ;;  %v1248_v35 = vld [vmem:[%s13852_s15 + $0x6c] sm:$0xe]  ;;  %v1251_v32 = vld [vmem:[%s13852_s15 + $0x90] sm:$0xe] }
  0x61   : > { %v10943_v49 = vcombine.low %v628_v62, %v638_v25  ;;  %v647_v63 = vrot.slane %v646_v51, 4  ;;  %v10968_v10 = vcombine.low %v13945_v34, %v13951_v39  ;;  %v10969_v12 = vcombine.low %v13964_v55, %v13971_v60 }
  0x62   : > { %v657_v5 = vrot.slane %v656_v7, 4  ;;  %v10998_v62 = vrot.slane %v1240_v33, 9  ;;  %v1301_v25 = vrot.slane %v1299_v61, 4  ;;  %v1247_v33 = vld [vmem:[%s13852_s15 + $0x60] sm:$0xe]  ;;  %v18005_v55 = vcombine.low %v13986_v18, %v13989_v24 }
  0x63   : > { %12365 = vmatprep.mubr.msk.bf16.mxu0 %vm728_vm3, %v10943_v49  ;;  %v652_v6 = vsel %vm13885_vm2, %v647_v63, %v651_v48  ;;  %v1243_v49 = vld [vmem:[%s13852_s15 + $0x30] sm:$0xe]  ;;  %v17997_v63 = vcombine.low %v13855_v3, %v13858_v4  ;;  %v10965_v3 = vcombine.low %v13881_v26, %v13890_v31  ;;  %v1323_v4 = vrot.slane %v13932_v19, 5 }
  0x64   : > { %v662_v37 = vsel %vm13885_vm2, %v657_v5, %v661_v14  ;;  %v14208_v7 = vsel %vm14196_vm6, %v10998_v62, %v1299_v61  ;;  %v14212_v14 = vsel %vm14196_vm6, %v1301_v25, %v1302_v30  ;;  %v1245_v5 = vld [vmem:[%s13852_s15 + $0x48] sm:$0xe]  ;;  %v1246_v61 = vld [vmem:[%s13852_s15 + $0x54] sm:$0xe]  ;;  %v1330_v48 = vrot.slane %v13956_v44, 5 }
  0x65   : > { %v10944_v51 = vcombine.low %v652_v6, %v662_v37  ;;  %v1244_v6 = vld [vmem:[%s13852_s15 + $0x3c] sm:$0xe]  ;;  %v11001_v37 = vrot.slane %v1243_v49, 9  ;;  %v13550_v49 = vld [vmem:[%s17879_s1 + $0x28] sm:$0xff]   ;;  %v11003_v26 = vrot.slane %v1245_v5, 9  ;;  %v1334_v31 = vrot.slane %v13971_v60, 5 }
  0x66   : > { %v11002_v25 = vrot.slane %v1244_v6, 9  ;;  %v10966_v19 = vcombine.low %v13903_v45, %v13906_v50  ;;  %v1337_v50 = vrot.slane %v13976_v9, 5  ;;  %v1249_v9 = vld [vmem:[%s13852_s15 + $0x78] sm:$0xe]  ;;  %v18006_v60 = vcombine.low %v14002_v46, %v14008_v52  ;;  %v13661_v46 = vld [vmem:[%s13852_s15 + $0x4] sm:$0xf] }
  0x67   : > { %12366 = vmatmul.mubr.msk.bf16.gmra.mrb[28].mxu0 %vm728_vm3, %v10944_v51  ;;  %v1320_v51 = vrot.slane %v13922_v8, 5  ;;  %v14250_v5 = vsel %vm14196_vm6, %v11003_v26, %v1334_v31  ;;  %v1336_v45 = vrot.slane %v1334_v31, 4  ;;  %v11005_v26 = vrot.slane %v1247_v33, 9  ;;  %v18002_v8 = vld [vmem:[#allocation10_spill] sm:$0xff] }
  0x68   : > { %12373 = vmatprep.mubr.msk.bf16.mxu0 %vm728_vm3, %v17997_v63  ;;  %v1327_v63 = vrot.slane %v13951_v39, 5  ;;  %v1348_v31 = vrot.slane %v14008_v52, 5  ;;  %v11006_v33 = vrot.slane %v1248_v35, 9  ;;  %v11007_v21 = vrot.slane %v1249_v9, 9 }
  0x69   : > { %v14225_v62 = vsel %vm14196_vm6, %v11001_v37, %v1320_v51  ;;  %v1322_v30 = vrot.slane %v1320_v51, 4  ;;  %v18009_v18 = vcombine.low %v14054_v1, %v14061_v16  ;;  %v1292_v52 = vrot.slane %v13661_v46, 5 }
  0x6a   : > { %v14242_v6 = vsel %vm14196_vm6, %v11002_v25, %v1327_v63  ;;  %v1329_v51 = vrot.slane %v1327_v63, 4  ;;  %v1341_v25 = vrot.slane %v13989_v24, 5  ;;  %v1344_v63 = vrot.slane %v13998_v42, 5 }
  0x6b   : > { %v14238_v37 = vsel %vm14196_vm6, %v1322_v30, %v1323_v4  ;;  %v14258_v4 = vld [vmem:[%s17879_s1 + $0x30] sm:$0xff]   ;;  %v11004_v30 = vrot.slane %v1246_v61, 9  ;;  %v18010_v24 = vcombine.low %v14072_v43, %v14078_v53  ;;  %v18011_v1 = vcombine.low %v14091_v29, %v14103_v38 }
  0x6c   : > { %v1343_v42 = vrot.slane %v1341_v25, 4 }
  0x6d   : > { %v14278_v61 = vsel %vm14196_vm6, %v11004_v30, %v1341_v25  ;;  %v17999_v30 = vld [vmem:[#allocation7_spill] sm:$0xff] }
  0x6e   : > { %v1358_v25 = vrot.slane %v17999_v30, 5 }
  0x6f   : > { %12374 = vmatmul.mubr.msk.bf16.vlgmr.msra.gmra.mrb[0].mxu0 %vm728_vm3, %v10964_v2  ;;  %v14262_v2 = vsel %vm14196_vm6, %v1329_v51, %v1330_v48  ;;  %v17998_v51 = vld [vmem:[#allocation6_spill] sm:$0xff]  ;;  %v14290_v48 = vsel %vm14196_vm6, %v1343_v42, %v1344_v63 }
  0x70   : > { %12406 = vmatpush3.bf16.msra.mxu0 %v13941_v28  ;;  %12377 = vmatprep.mubr.msk.bf16.mxu0 %vm728_vm3, %v10965_v3  ;;  %v14271_v3 = vsel %vm14196_vm6, %v1336_v45, %v1337_v50  ;;  %v1351_v44 = vrot.slane %v17998_v51, 5  ;;  %v14284_v28 = vsel %vm14196_vm6, %v11005_v26, %v1348_v31  ;;  %v1350_v45 = vrot.slane %v1348_v31, 4  ;;  %v1252_v31 = vld [vmem:[%s13852_s15 + $0x9c] sm:$0xe] }
  0x71   : > { %12407 = vmatprep.subr.bf16.mxu0 %v13550_v49  ;;  %v1355_v50 = vrot.slane %v14026_v20, 5  ;;  %v1362_v51 = vrot.slane %v14046_v57, 5  ;;  %v18000_v26 = vld [vmem:[#allocation8_spill] sm:$0xff] }
  0x72   : > { %v14299_v35 = vsel %vm14196_vm6, %v1350_v45, %v1351_v44  ;;  %v1365_v40 = vrot.slane %v18000_v26, 5  ;;  %v11008_v45 = vrot.slane %v1250_v59, 9  ;;  %v1253_v59 = vld [vmem:[%s13852_s15 + $0xa8] sm:$0xe]  ;;  %v18003_v26 = vld [vmem:[#allocation11_spill] sm:$0xff] }
  0x73   : > { %v1357_v63 = vrot.slane %v1355_v50, 4  ;;  %v14310_v42 = vsel %vm14196_vm6, %v11007_v21, %v1362_v51  ;;  %v1364_v30 = vrot.slane %v1362_v51, 4  ;;  %v11009_v51 = vrot.slane %v1251_v32, 9 }
  0x74   : > { %12408 = vmatpush3.bf16.msra.mxu0 %v13550_v49  ;;  %v14303_v49 = vsel %vm14196_vm6, %v11006_v33, %v1355_v50  ;;  %v1369_v33 = vrot.slane %v14061_v16, 5  ;;  %v18001_v50 = vld [vmem:[#allocation9_spill] sm:$0xff]  ;;  %v11010_v32 = vrot.slane %v1252_v31, 9  ;;  %v1386_v15 = vrot.slane %v18003_v26, 5 }
  0x75   : > { %12441 = vmatprep.subr.bf16.mxu0 %v14258_v4  ;;  %v14316_v44 = vsel %vm14196_vm6, %v1357_v63, %v1358_v25  ;;  %v1372_v22 = vrot.slane %v18001_v50, 5  ;;  %v1376_v25 = vrot.slane %v14078_v53, 5  ;;  %v1254_v50 = vld [vmem:[%s13852_s15 + $0xb4] sm:$0xe]  ;;  %v18012_v16 = vcombine.low %v14111_v56, %v14119_v36 }
  0x76   : > { %v14336_v63 = vsel %vm14196_vm6, %v11008_v45, %v1369_v33  ;;  %v1371_v0 = vrot.slane %v1369_v33, 4  ;;  %v11011_v45 = vrot.slane %v1253_v59, 9  ;;  %v1390_v33 = vrot.slane %v14119_v36, 5  ;;  %v13665_v36 = vld [vmem:[%s13852_s15 + $0x28] sm:$0xf] }
  0x77   : > { %12378 = vmatmul.mubr.msk.bf16.gmra.mrb[4].mxu0 %vm728_vm3, %v10966_v19  ;;  %v14328_v19 = vsel %vm14196_vm6, %v1364_v30, %v1365_v40  ;;  %v14342_v21 = vsel %vm14196_vm6, %v11009_v51, %v1376_v25  ;;  %v1378_v40 = vrot.slane %v1376_v25, 4  ;;  %v1383_v30 = vrot.slane %v14103_v38, 5 }
  0x78   : > { %12381 = vmatprep.mubr.msk.bf16.mxu0 %vm728_vm3, %v10967_v17  ;;  %v1379_v17 = vrot.slane %v18002_v8, 5  ;;  %v14347_v9 = vsel %vm14196_vm6, %v1371_v0, %v1372_v22  ;;  %v14365_v59 = vsel %vm14196_vm6, %v11011_v45, %v1390_v33  ;;  %v1392_v26 = vrot.slane %v1390_v33, 4  ;;  %v18004_v0 = vld [vmem:[#allocation12_spill] sm:$0xff] }
  0x79   : > { %v14359_v31 = vsel %vm14196_vm6, %v11010_v32, %v1383_v30  ;;  %v1385_v25 = vrot.slane %v1383_v30, 4  ;;  %v1393_v13 = vrot.slane %v18004_v0, 5  ;;  %v1400_v32 = vrot.slane %v14145_v58, 5  ;;  %v13663_v33 = vld [vmem:[%s13852_s15 + $0x1c] sm:$0xf] }
  0x7a   : > { %v14355_v51 = vsel %vm14196_vm6, %v1378_v40, %v1379_v17  ;;  %v11012_v17 = vrot.slane %v1254_v50, 9  ;;  %v1397_v40 = vrot.slane %v14141_v54, 5  ;;  %v18013_v56 = vcombine.low %v14138_v23, %v14141_v54  ;;  %v13559_v23 = vld [vmem:[%s17879_s1 + $0x38] sm:$0xff]  }
  0x7b   : > { %v11029_v22 = vcombine.low %v14342_v21, %v14355_v51  ;;  %v14370_v8 = vsel %vm14196_vm6, %v1385_v25, %v1386_v15  ;;  %v14382_v45 = vsel %vm14196_vm6, %v1392_v26, %v1393_v13  ;;  %v18008_v15 = vcombine.low %v14040_v41, %v14046_v57  ;;  %v1241_v26 = vld [vmem:[%s13852_s15 + $0x18] sm:$0xe]  ;;  %v13566_v51 = vld [vmem:[%s13852_s15 + $0x48] sm:$0xff]  }
  0x7c   : > { %v11030_v30 = vcombine.low %v14359_v31, %v14370_v8  ;;  %v11031_v34 = vcombine.low %v14365_v59, %v14382_v45  ;;  %v14392_v39 = vsel %vm14196_vm6, %v11012_v17, %v1397_v40  ;;  %v1399_v58 = vrot.slane %v1397_v40, 4  ;;  %v13664_v17 = vld [vmem:[%s13852_s15 + $0x20] sm:$0x1]  ;;  %v14558_v45 = vld [vmem:[%s13852_s15 + $0x64] sm:$0xf] }
  0x7d   : > { %v1294_v57 = vrot.slane %v1292_v52, 4  ;;  %v1306_v25 = vrot.slane %v13663_v33, 5  ;;  %v10999_v29 = vrot.slane %v1241_v26, 9  ;;  %v1309_v40 = vrot.slane %v13664_v17, 5  ;;  %v11124_v26 = vld [vmem:[%s13852_s15 + $0x18] sm:$0xf] }
  0x7e   : > { %v18014_v54 = vcombine.low %v14208_v7, %v14212_v14  ;;  %v18015_v7 = vcombine.low %v14225_v62, %v14238_v37  ;;  %v18016_v14 = vcombine.low %v14242_v6, %v14262_v2  ;;  %v18019_v62 = vcombine.low %v14284_v28, %v14299_v35  ;;  %v13560_v2 = vld [vmem:[%s13852_s15 + $0xc] sm:$0xff]   ;;  %v13562_v28 = vld [vmem:[%s13852_s15 + $0x18] sm:$0xff]  }
  0x7f   : > { %12382 = vmatmul.mubr.msk.bf16.gmra.mrb[8].mxu0 %vm728_vm3, %v10968_v10  ;;  %v14396_v10 = vsel %vm14196_vm6, %v1399_v58, %v1400_v32  ;;  %v1308_v38 = vrot.slane %v1306_v25, 4  ;;  %v1313_v32 = vrot.slane %v13665_v36, 5  ;;  %v18020_v37 = vcombine.low %v14303_v49, %v14316_v44  ;;  %v13564_v35 = vld [vmem:[%s13852_s15 + $0x30] sm:$0xff]   ;;  %v13565_v49 = vld [vmem:[%s13852_s15 + $0x3c] sm:$0xff]   ;;  %v11212_v44 = vld [vmem:[%s13852_s15 + $0x48] sm:$0xe] }
  0x80   : > { %12385 = vmatprep.mubr.msk.bf16.mxu0 %vm728_vm3, %v10969_v12  ;;  %v11032_v13 = vcombine.low %v14392_v39, %v14396_v10  ;;  %v18007_v12 = vcombine.low %v14023_v11, %v14026_v20  ;;  %v1239_v11 = vld [vmem:[%s13852_s15] sm:$0xe]  ;;  %v13662_v20 = vld [vmem:[%s13852_s15 + $0x8] sm:$0x1]  ;;  %v1307_v39 = vsel %vm14196_vm6, %v10999_v29, %v1306_v25  ;;  %v1242_v10 = vld [vmem:[%s13852_s15 + $0x24] sm:$0xe]  ;;  %v18021_v6 = vcombine.low %v14310_v42, %v14328_v19 }
  0x81   : > { %v1295_v50 = vrot.slane %v13662_v20, 5  ;;  %v10997_v41 = vrot.slane %v1239_v11, 9  ;;  %v1310_v58 = vsel %vm14196_vm6, %v1308_v38, %v1309_v40  ;;  %v18018_v20 = vcombine.low %v14278_v61, %v14290_v48  ;;  %v13570_v48 = vld [vmem:[%s17879_s1 + $0x48] sm:$0xff]   ;;  %v14528_v61 = vld [vmem:[%s17879_s1 + $0x50] sm:$0xff]   ;;  %v14726_v29 = vld [vmem:[%s13852_s15 + $0xc4] sm:$0xf] }
  0x82   : > { %v14538_v42 = vld [vmem:[%s13852_s15 + $0x50] sm:$0x1]  ;;  %v2152_v36 = vshrl.u32 %v11124_v26, 16 }
  0x83   : > { %v1293_v43 = vsel %vm14196_vm6, %v10997_v41, %v1292_v52  ;;  %v1296_v53 = vsel %vm14196_vm6, %v1294_v57, %v1295_v50  ;;  %v13561_v52 = vld [vmem:[%s17879_s1 + $0x40] sm:$0xff]   ;;  %v2921_v19 = vrot.slane %v14538_v42, 5  ;;  %v2932_v50 = vrot.slane %v14558_v45, 5  ;;  %v13569_v25 = vld [vmem:[%s13852_s15 + $0x6c] sm:$0xff]  }
  0x84   : > { %v11017_v0 = vcombine.low %v1293_v43, %v1296_v53  ;;  %v11121_v43 = vld [vmem:[%s13852_s15 + $0xc] sm:$0xf]  ;;  %v14570_v53 = vld [vmem:[%s13852_s15 + $0x10] sm:$0xf] }
  0x85   : > { %v2128_v38 = vshrl.u32 %v11121_v43, 16  ;;  %v2131_v17 = vshll.u32 %v11121_v43, 16  ;;  %v2137_v40 = vshll.u32 %v14570_v53, 16 }
  0x87   : > { %12386 = vmatmul.mubr.msk.bf16.gmra.mrb[12].mxu0 %vm728_vm3, %v18005_v55  ;;  %v11019_v55 = vcombine.low %v1307_v39, %v1310_v58  ;;  %v14588_v39 = vld [vmem:[%s13852_s15 + $0x7c] sm:$0xf]  ;;  %v14591_v58 = vld [vmem:[%s13852_s15 + $0x80] sm:$0x1] }
  0x88   : > { %12389 = vmatprep.mubr.msk.bf16.mxu0 %vm728_vm3, %v18006_v60  ;;  %v11000_v60 = vrot.slane %v1242_v10, 9  ;;  %v11216_v10 = vld [vmem:[%s13852_s15 + $0x78] sm:$0xe] }
  0x8f   : > { %12390 = vmatmul.mubr.msk.bf16.gmra.mrb[16].mxu0 %vm728_vm3, %v18007_v12  ;;  %v1315_v12 = vrot.slane %v1313_v32, 4 }
  0x90   : > { %12393 = vmatprep.mubr.msk.bf16.mxu0 %vm728_vm3, %v18008_v15  ;;  %v13666_v15 = vld [vmem:[%s13852_s15 + $0x2c] sm:$0x1] }
  0x97   : > { %12394 = vmatmul.mubr.msk.bf16.gmra.mrb[20].mxu0 %vm728_vm3, %v18009_v18  ;;  %v1316_v18 = vrot.slane %v13666_v15, 5  ;;  %v2130_v15 = vrot.slane %v2128_v38, 4 }
  0x98   : > { %12397 = vmatprep.mubr.msk.bf16.mxu0 %vm728_vm3, %v18010_v24  ;;  %v1314_v24 = vsel %vm14196_vm6, %v11000_v60, %v1313_v32  ;;  %v2155_v32 = vshll.u32 %v11124_v26, 16  ;;  %v2949_v60 = vrot.slane %v14591_v58, 5  ;;  %v14646_v26 = vld [vmem:[%s13852_s15 + $0x34] sm:$0xf] }
  0x99   : > { %v1317_v46 = vsel %vm14196_vm6, %v1315_v12, %v1316_v18  ;;  %v11232_v12 = vrot.slane %v11216_v10, 9  ;;  %v2133_v18 = vrot.slane %v2131_v17, 5  ;;  %v13573_v17 = vld [vmem:[%s13852_s15 + $0x90] sm:$0xff]   ;;  %v13574_v10 = vld [vmem:[%s13852_s15 + $0x9c] sm:$0xff]  }
  0x9a   : > { %v11020_v11 = vcombine.low %v1314_v24, %v1317_v46  ;;  %v13571_v46 = vld [vmem:[%s13852_s15 + $0x78] sm:$0xff]  }
  0x9f   : > { %12398 = vmatmul.mubr.msk.bf16.gmra.mrb[24].mxu0 %vm728_vm3, %v18011_v1  ;;  %v2934_v1 = vrot.slane %v2932_v50, 4 }
  0xa0   : > { %12401 = vmatprep.mubr.msk.bf16.mxu0 %vm728_vm3, %v18012_v16  ;;  %v13568_v16 = vld [vmem:[%s13852_s15 + $0x60] sm:$0xff]  }
  0xa7   : > { %12402 = vmatmul.mubr.msk.bf16.gmra.mrb[28].mxu0 %vm728_vm3, %v18013_v56  ;;  %v2141_v56 = vshrl.u32 %v14570_v53, 16 }
  0xa8   : > { %12409 = vmatprep.mubr.msk.bf16.mxu0 %vm728_vm3, %v11017_v0 }
  0xaf   : > { %12410 = vmatmul.mubr.msk.bf16.vlgmr.msra.gmra.mrb[0].mxu0 %vm728_vm3, %v18014_v54  ;;  %v14600_v54 = vld [vmem:[%s13852_s15 + $0x1c] sm:$0xf] }
  0xb0   : > { %12442 = vmatpush3.bf16.msra.mxu0 %v14258_v4  ;;  %12413 = vmatprep.mubr.msk.bf16.mxu0 %vm728_vm3, %v11019_v55  ;;  %v18017_v4 = vcombine.low %v14250_v5, %v14271_v3  ;;  %v18022_v5 = vcombine.low %v14336_v63, %v14347_v9  ;;  %v13563_v3 = vld [vmem:[%s13852_s15 + $0x24] sm:$0xff]   ;;  %v14535_v9 = vld [vmem:[%s13852_s15 + $0x4c] sm:$0xf]  ;;  %v11228_v63 = vrot.slane %v11212_v44, 9  ;;  %v2946_v55 = vrot.slane %v14588_v39, 5 }
  0xb1   : > { %12443 = vmatprep.subr.bf16.mxu0 %v13559_v23  ;;  %v2918_v21 = vrot.slane %v14535_v9, 5  ;;  %v14627_v44 = vld [vmem:[%s13852_s15 + $0x28] sm:$0xf] }
  0xb2   : > { %v2948_v24 = vrot.slane %v2946_v55, 4  ;;  %v2185_v43 = vshll.u32 %v14627_v44, 16 }
  0xb3   : > { %v2920_v8 = vrot.slane %v2918_v21, 4  ;;  %v14547_v31 = vsel %vm14196_vm6, %v11228_v63, %v2918_v21  ;;  %v14630_v21 = vld [vmem:[%s13852_s15 + $0x94] sm:$0xf] }
  0xb4   : > { %12444 = vmatpush3.bf16.msra.mxu0 %v13559_v23  ;;  %v14597_v23 = vrot.slane %v2137_v40, 5 }
  0xb5   : > { %12477 = vmatprep.subr.bf16.mxu0 %v13561_v52  ;;  %v14552_v59 = vsel %vm14196_vm6, %v2920_v8, %v2921_v19  ;;  %v14633_v19 = vld [vmem:[%s13852_s15 + $0x98] sm:$0x1] }
  0xb7   : > { %12414 = vmatmul.mubr.msk.bf16.gmra.mrb[4].mxu0 %vm728_vm3, %v11020_v11  ;;  %v2143_v11 = vrot.slane %v2141_v56, 4 }
  0xb8   : > { %12417 = vmatprep.mubr.msk.bf16.mxu0 %vm728_vm3, %v18015_v7  ;;  %v2154_v7 = vrot.slane %v2152_v36, 4 }
  0xbf   : > { %12418 = vmatmul.mubr.msk.bf16.gmra.mrb[8].mxu0 %vm728_vm3, %v18016_v14  ;;  %v2157_v14 = vrot.slane %v2155_v32, 5 }
  0xc0   : > { %12421 = vmatprep.mubr.msk.bf16.mxu0 %vm728_vm3, %v18017_v4  ;;  %v14608_v4 = vsel %vm14196_vm6, %v11232_v12, %v2946_v55 }
  0xc7   : > { %12422 = vmatmul.mubr.msk.bf16.gmra.mrb[12].mxu0 %vm728_vm3, %v18018_v20  ;;  %v13572_v20 = vld [vmem:[%s13852_s15 + $0x84] sm:$0xff]  }
  0xc8   : > { %12425 = vmatprep.mubr.msk.bf16.mxu0 %vm728_vm3, %v18019_v62  ;;  %v14613_v62 = vsel %vm14196_vm6, %v2948_v24, %v2949_v60 }
  0xc9   : > { %18023 = vst [vmem:[#allocation6_spill] sm:$0xff] %v14613_v62  ;;  %v14753_v62 = vld [vmem:[%s13852_s15 + $0x58] sm:$0xf] }
  0xcf   : > { %12426 = vmatmul.mubr.msk.bf16.gmra.mrb[16].mxu0 %vm728_vm3, %v18020_v37  ;;  %v2161_v37 = vshll.u32 %v14600_v54, 16 }
  0xd0   : > { %12429 = vmatprep.mubr.msk.bf16.mxu0 %vm728_vm3, %v18021_v6  ;;  %v2165_v6 = vshrl.u32 %v14600_v54, 16 }
  0xd7   : > { %12430 = vmatmul.mubr.msk.bf16.gmra.mrb[20].mxu0 %vm728_vm3, %v18022_v5  ;;  %v11127_v5 = vld [vmem:[%s13852_s15 + $0x24] sm:$0xf] }
  0xd8   : > { %12433 = vmatprep.mubr.msk.bf16.mxu0 %vm728_vm3, %v11029_v22  ;;  %v13567_v22 = vld [vmem:[%s13852_s15 + $0x54] sm:$0xff]   ;;  %v2176_v63 = vshrl.u32 %v11127_v5, 16  ;;  %v2179_v8 = vshll.u32 %v11127_v5, 16 }
  0xda   : > { %v2178_v60 = vrot.slane %v2176_v63, 4  ;;  %v2181_v12 = vrot.slane %v2179_v8, 5  ;;  %v11220_v8 = vld [vmem:[%s13852_s15 + $0xa8] sm:$0xe] }
  0xdf   : > { %12434 = vmatmul.mubr.msk.bf16.gmra.mrb[24].mxu0 %vm728_vm3, %v11030_v30  ;;  %v14729_v30 = vld [vmem:[%s13852_s15 + $0xc8] sm:$0x1] }
  0xe0   : > { %12437 = vmatprep.mubr.msk.bf16.mxu0 %vm728_vm3, %v11031_v34  ;;  %v14561_v34 = vld [vmem:[%s13852_s15 + $0x68] sm:$0x1] }
  0xe1   : > { %v2935_v41 = vrot.slane %v14561_v34, 5 }
  0xe3   : > { %v14580_v0 = vsel %vm14196_vm6, %v2934_v1, %v2935_v41  ;;  %v2167_v41 = vrot.slane %v2165_v6, 4  ;;  %v2213_v6 = vshrl.u32 %v14646_v26, 16 }
  0xe7   : > { %12438 = vmatmul.mubr.msk.bf16.gmra.mrb[28].mxu0 %vm728_vm3, %v11032_v13  ;;  %v11214_v13 = vld [vmem:[%s13852_s15 + $0x60] sm:$0xe] }
  0xe8   : > { %12445 = vmatprep.mubr.msk.bf16.mxu0 %vm728_vm3, %v13560_v2  ;;  %v11230_v57 = vrot.slane %v11214_v13, 9  ;;  %v2963_v13 = vrot.slane %v14633_v19, 5  ;;  %v11136_v2 = vld [vmem:[%s13852_s15 + $0x48] sm:$0xf] }
  0xea   : > { %v14574_v33 = vsel %vm14196_vm6, %v11230_v57, %v2932_v50  ;;  %v14639_v50 = vrot.slane %v2161_v37, 5  ;;  %v11130_v57 = vld [vmem:[%s13852_s15 + $0x30] sm:$0xf] }
  0xeb   : > { %v2200_v24 = vshrl.u32 %v11130_v57, 16 }
  0xec   : > { %v2168_v5 = vor.u32 %v2167_v41, %v14639_v50 }
  0xed   : > { %v2202_v41 = vrot.slane %v2200_v24, 4 }
  0xef   : > { %12446 = vmatmul.mubr.msk.bf16.vlgmr.msra.gmra.mrb[0].mxu0 %vm728_vm3, %v13562_v28 }
  0xf0   : > { %12478 = vmatpush3.bf16.msra.mxu0 %v13561_v52  ;;  %12449 = vmatprep.mubr.msk.bf16.mxu0 %vm728_vm3, %v13563_v3  ;;  %v14604_v52 = vld [vmem:[%s13852_s15 + $0x14] sm:$0x1]  ;;  %v14622_v3 = vld [vmem:[%s13852_s15 + $0x20] sm:$0x1] }
  0xf1   : > { %12479 = vmatprep.subr.bf16.mxu0 %v13570_v48  ;;  %v2147_v28 = vshll.u32 %v14604_v52, 16 }
  0xf3   : > { %v2149_v36 = vrot.slane %v2147_v28, 5  ;;  %v11133_v28 = vld [vmem:[%s13852_s15 + $0x3c] sm:$0xf] }
  0xf4   : > { %12480 = vmatpush3.bf16.msra.mxu0 %v13570_v48  ;;  %v2134_v48 = vor.u32 %v2133_v18, %v2130_v15  ;;  %v14661_v18 = vld [vmem:[%s13852_s15 + $0x2c] sm:$0x1] }
  0xf5   : > { %12513 = vmatprep.subr.bf16.mxu0 %v14528_v61  ;;  %v2195_v63 = vshll.u32 %v14661_v18, 16 }
  0xf6   : > { %v2135_v40 = vrot.slane %v2134_v48, 4  ;;  %v14675_v48 = vld [vmem:[%s13852_s15 + $0xac] sm:$0xf] }
  0xf7   : > { %12450 = vmatmul.mubr.msk.bf16.gmra.mrb[4].mxu0 %vm728_vm3, %v13564_v35  ;;  %v2144_v35 = vor.u32 %v2143_v11, %v14597_v23  ;;  %v2209_v11 = vshll.u32 %v14646_v26, 16 }
  0xf8   : > { %12453 = vmatprep.mubr.msk.bf16.mxu0 %vm728_vm3, %v13565_v49  ;;  %v2158_v49 = vor.u32 %v2157_v14, %v2154_v7  ;;  %v14709_v7 = vrot.slane %v2195_v63, 5 }
  0xf9   : > { %v2145_v56 = vrot.slane %v2144_v35, 4  ;;  %v14678_v35 = vld [vmem:[%s13852_s15 + $0xb0] sm:$0x1] }
  0xfa   : > { %v14654_v55 = vrot.slane %v2158_v49, 4  ;;  %v2182_v49 = vor.u32 %v2181_v12, %v2178_v60  ;;  %v13575_v60 = vld [vmem:[%s13852_s15 + $0xa8] sm:$0xff]   ;;  %v2140_v12 = vsel %vm13885_vm2, %v2135_v40, %v14597_v23 }
  0xfb   : > { %v2150_v24 = vsel %vm13885_vm2, %v2145_v56, %v2149_v36 }
  0xff   : > { %12454 = vmatmul.mubr.msk.bf16.gmra.mrb[8].mxu0 %vm728_vm3, %v13566_v51  ;;  %v11218_v51 = vld [vmem:[%s13852_s15 + $0x90] sm:$0xe] }
 0x100   : > { %12457 = vmatprep.mubr.msk.bf16.mxu0 %vm728_vm3, %v13567_v22  ;;  %v2960_v22 = vrot.slane %v14630_v21, 5  ;;  %v11234_v1 = vrot.slane %v11218_v51, 9  ;;  %v2974_v51 = vrot.slane %v14675_v48, 5 }
 0x102   : > { %v2962_v38 = vrot.slane %v2960_v22, 4  ;;  %v14651_v32 = vsel %vm14196_vm6, %v11234_v1, %v2960_v22  ;;  %v2977_v22 = vrot.slane %v14678_v35, 5  ;;  %v14688_v1 = vrot.slane %v2209_v11, 5 }
 0x103   : > { %18024 = vst [vmem:[#allocation7_spill] sm:$0xff] %v14651_v32  ;;  %v2257_v32 = vshll.u32 %v14535_v9, 16 }
 0x104   : > { %v14658_v15 = vsel %vm14196_vm6, %v2962_v38, %v2963_v13  ;;  %v14686_v13 = vld [vmem:[%s13852_s15 + $0x38] sm:$0x1]  ;;  %v14692_v38 = vld [vmem:[%s13852_s15 + $0x40] sm:$0xf] }
 0x105   : > { %18025 = vst [vmem:[#allocation8_spill] sm:$0xff] %v14658_v15  ;;  %v2219_v40 = vshll.u32 %v14686_v13, 16  ;;  %v2233_v56 = vshll.u32 %v14692_v38, 16  ;;  %v2237_v36 = vshrl.u32 %v14692_v38, 16  ;;  %v13577_v15 = vld [vmem:[%s13852_s15 + $0xc0] sm:$0xff]  }
 0x107   : > { %12458 = vmatmul.mubr.msk.bf16.gmra.mrb[12].mxu0 %vm728_vm3, %v13568_v16  ;;  %v2171_v16 = vshll.u32 %v14622_v3, 16 }
 0x108   : > { %12461 = vmatprep.mubr.msk.bf16.mxu0 %vm728_vm3, %v13569_v25  ;;  %v2189_v25 = vshrl.u32 %v14627_v44, 16 }
 0x109   : > { %v14666_v14 = vrot.slane %v2171_v16, 5  ;;  %v11236_v16 = vrot.slane %v11220_v8, 9  ;;  %v13576_v8 = vld [vmem:[%s13852_s15 + $0xb4] sm:$0xff]  }
 0x10a   : > { %v2191_v37 = vrot.slane %v2189_v25, 4  ;;  %v2215_v25 = vrot.slane %v2213_v6, 4  ;;  %v14707_v6 = vrot.slane %v2182_v49, 4 }
 0x10b   : > { %v14702_v11 = vsel %vm14196_vm6, %v11236_v16, %v2974_v51 }
 0x10c   : > { %18026 = vst [vmem:[#allocation9_spill] sm:$0xff] %v14702_v11  ;;  %v2216_v63 = vor.u32 %v2215_v25, %v14688_v1  ;;  %v11222_v25 = vld [vmem:[%s13852_s15 + $0xc0] sm:$0xe] }
 0x10f   : > { %12462 = vmatmul.mubr.msk.bf16.gmra.mrb[16].mxu0 %vm728_vm3, %v13571_v46  ;;  %v2203_v46 = vshll.u32 %v11130_v57, 16 }
 0x110   : > { %12465 = vmatprep.mubr.msk.bf16.mxu0 %vm728_vm3, %v13572_v20  ;;  %v14668_v20 = vrot.slane %v2185_v43, 5 }
 0x111   : > { %v2205_v57 = vrot.slane %v2203_v46, 5  ;;  %v2227_v46 = vshll.u32 %v11133_v28, 16 }
 0x112   : > { %v2192_v43 = vor.u32 %v2191_v37, %v14668_v20  ;;  %v14705_v37 = vrot.slane %v2168_v5, 4  ;;  %v11238_v5 = vrot.slane %v11222_v25, 9 }
 0x113   : > { %v2206_v49 = vor.u32 %v2205_v57, %v2202_v41  ;;  %v2229_v16 = vrot.slane %v2227_v46, 5  ;;  %v2164_v41 = vsel %vm13885_vm2, %v14654_v55, %v14639_v50  ;;  %v2251_v46 = vshll.u32 %v11136_v2, 16 }
 0x114   : > { %v2174_v57 = vsel %vm13885_vm2, %v14705_v37, %v14666_v14  ;;  %v2217_v55 = vrot.slane %v2216_v63, 4 }
 0x115   : > { %v2207_v50 = vrot.slane %v2206_v49, 4 }
 0x117   : > { %12466 = vmatmul.mubr.msk.bf16.gmra.mrb[20].mxu0 %vm728_vm3, %v13573_v17  ;;  %v2224_v17 = vshrl.u32 %v11133_v28, 16  ;;  %v14721_v28 = vrot.slane %v2192_v43, 4  ;;  %v14741_v43 = vld [vmem:[%s13852_s15 + $0x44] sm:$0x1] }
 0x118   : > { %12469 = vmatprep.mubr.msk.bf16.mxu0 %vm728_vm3, %v13574_v10  ;;  %v2976_v10 = vrot.slane %v2974_v51, 4  ;;  %v2243_v37 = vshll.u32 %v14741_v43, 16 }
 0x119   : > { %v2226_v51 = vrot.slane %v2224_v17, 4  ;;  %v2988_v17 = vrot.slane %v14726_v29, 5 }
 0x11a   : > { %v14714_v23 = vsel %vm14196_vm6, %v2976_v10, %v2977_v22  ;;  %v11173_v22 = vcombine.low %v2140_v12, %v2150_v24  ;;  %v2248_v10 = vshrl.u32 %v11136_v2, 16  ;;  %v14746_v12 = vrot.slane %v2233_v56, 5 }
 0x11b   : > { %18027 = vst [vmem:[#allocation10_spill] sm:$0xff] %v14714_v23  ;;  %v2239_v24 = vrot.slane %v2237_v36, 4  ;;  %v2221_v23 = vrot.slane %v2219_v40, 5  ;;  %v2990_v11 = vrot.slane %v2988_v17, 4  ;;  %v2230_v14 = vor.u32 %v2229_v16, %v2226_v51 }
 0x11c   : > { %v14757_v56 = vsel %vm14196_vm6, %v11238_v5, %v2988_v17  ;;  %v2261_v2 = vshrl.u32 %v14535_v9, 16  ;;  %v2250_v51 = vrot.slane %v2248_v10, 4  ;;  %v2253_v16 = vrot.slane %v2251_v46, 5  ;;  %v11142_v10 = vld [vmem:[%s13852_s15 + $0x60] sm:$0xf] }
 0x11d   : > { %18028 = vst [vmem:[#allocation11_spill] sm:$0xff] %v14757_v56  ;;  %v2240_v63 = vor.u32 %v2239_v24, %v14746_v12  ;;  %v2188_v5 = vsel %vm13885_vm2, %v14707_v6, %v14668_v20  ;;  %v2198_v9 = vsel %vm13885_vm2, %v14721_v28, %v14709_v7  ;;  %v2285_v17 = vshrl.u32 %v14753_v62, 16  ;;  %v14789_v56 = vld [vmem:[%s13852_s15 + $0x5c] sm:$0x1] }
 0x11e   : > { %v2222_v20 = vsel %vm13885_vm2, %v2217_v55, %v2221_v23  ;;  %v2231_v6 = vrot.slane %v2230_v14, 4  ;;  %v2245_v24 = vrot.slane %v2243_v37, 5  ;;  %v14785_v7 = vrot.slane %v2257_v32, 5 }
 0x11f   : > { %12470 = vmatmul.mubr.msk.bf16.gmra.mrb[24].mxu0 %vm728_vm3, %v13575_v60  ;;  %v2991_v60 = vrot.slane %v14729_v30, 5  ;;  %v2263_v28 = vrot.slane %v2261_v2, 4  ;;  %v2241_v25 = vrot.slane %v2240_v63, 4  ;;  %v2287_v55 = vrot.slane %v2285_v17, 4 }
 0x120   : > { %12473 = vmatprep.mubr.msk.bf16.mxu0 %vm728_vm3, %v13576_v8  ;;  %v11139_v8 = vld [vmem:[%s13852_s15 + $0x54] sm:$0xf]  ;;  %v2299_v14 = vshll.u32 %v11142_v10, 16  ;;  %v2305_v37 = vshll.u32 %v14558_v45, 16  ;;  %v2309_v2 = vshrl.u32 %v14558_v45, 16  ;;  %v13579_v45 = vld [vmem:[%s17879_s1 + $0x58] sm:$0xff]  }
 0x121   : > { %v2272_v36 = vshrl.u32 %v11139_v8, 16  ;;  %v2275_v49 = vshll.u32 %v11139_v8, 16  ;;  %v14762_v40 = vsel %vm14196_vm6, %v2990_v11, %v2991_v60  ;;  %v2281_v11 = vshll.u32 %v14753_v62, 16 }
 0x122   : > { %18029 = vst [vmem:[#allocation12_spill] sm:$0xff] %v14762_v40  ;;  %v2212_v60 = vsel %vm13885_vm2, %v2207_v50, %v14688_v1  ;;  %v2254_v40 = vor.u32 %v2253_v16, %v2250_v51  ;;  %v2296_v1 = vshrl.u32 %v11142_v10, 16  ;;  %v11174_v50 = vcombine.low %v2164_v41, %v2174_v57  ;;  %v14802_v57 = vld [vmem:[%s13852_s15 + $0x70] sm:$0xf] }
 0x123   : > { %v2274_v46 = vrot.slane %v2272_v36, 4  ;;  %v2277_v8 = vrot.slane %v2275_v49, 5  ;;  %v14791_v23 = vrot.slane %v2281_v11, 5  ;;  %v11176_v32 = vcombine.low %v2212_v60, %v2222_v20  ;;  %v11145_v36 = vld [vmem:[%s13852_s15 + $0x6c] sm:$0xf] }
 0x124   : > { %v2264_v49 = vor.u32 %v2263_v28, %v14785_v7  ;;  %v2291_v41 = vshll.u32 %v14789_v56, 16  ;;  %v2246_v51 = vsel %vm13885_vm2, %v2241_v25, %v2245_v24  ;;  %v2255_v16 = vrot.slane %v2254_v40, 4  ;;  %v11148_v60 = vld [vmem:[%s13852_s15 + $0x78] sm:$0xf] }
 0x125   : > { %v2278_v63 = vor.u32 %v2277_v8, %v2274_v46  ;;  %v2288_v11 = vor.u32 %v2287_v55, %v14791_v23  ;;  %v2320_v17 = vshrl.u32 %v11145_v36, 16  ;;  %v2323_v10 = vshll.u32 %v11145_v36, 16 }
 0x126   : > { %v14812_v20 = vrot.slane %v2305_v37, 5  ;;  %v2329_v25 = vshll.u32 %v14802_v57, 16  ;;  %v2333_v40 = vshrl.u32 %v14802_v57, 16  ;;  %v2265_v24 = vrot.slane %v2264_v49, 4  ;;  %v14828_v49 = vld [vmem:[%s13852_s15 + $0x74] sm:$0x1] }
 0x127   : > { %12474 = vmatmul.mubr.msk.bf16.gmra.mrb[28].mxu0 %vm728_vm3, %v13577_v15  ;;  %v2267_v15 = vshll.u32 %v14538_v42, 16  ;;  %v2236_v42 = vsel %vm13885_vm2, %v2231_v6, %v14746_v12  ;;  %v2301_v12 = vrot.slane %v2299_v14, 5  ;;  %v2311_v6 = vrot.slane %v2309_v2, 4 }
 0x128   : > { %12481 = vmatprep.mubr.msk.bf16.mxu0 %vm728_vm3, %v11173_v22  ;;  %v11175_v22 = vcombine.low %v2188_v5, %v2198_v9  ;;  %v2298_v9 = vrot.slane %v2296_v1, 4  ;;  %v2279_v28 = vrot.slane %v2278_v63, 4  ;;  %v2293_v46 = vrot.slane %v2291_v41, 5 }
 0x129   : > { %v2269_v5 = vrot.slane %v2267_v15, 5  ;;  %v2315_v8 = vshll.u32 %v14561_v34, 16  ;;  %v2344_v15 = vshrl.u32 %v11148_v60, 16  ;;  %v2347_v1 = vshll.u32 %v11148_v60, 16 }
 0x12a   : > { %v2357_v55 = vshrl.u32 %v14588_v39, 16  ;;  %v2289_v14 = vrot.slane %v2288_v11, 4  ;;  %v2322_v37 = vrot.slane %v2320_v17, 4  ;;  %v2325_v2 = vrot.slane %v2323_v10, 5 }
 0x12b   : > { %v11177_v36 = vcombine.low %v2236_v42, %v2246_v51  ;;  %v2312_v34 = vor.u32 %v2311_v6, %v14812_v20  ;;  %v14830_v63 = vrot.slane %v2329_v25, 5  ;;  %v2335_v41 = vrot.slane %v2333_v40, 4  ;;  %v11151_v42 = vld [vmem:[%s13852_s15 + $0x84] sm:$0xf]  ;;  %v14846_v6 = vld [vmem:[%s13852_s15 + $0x88] sm:$0xf] }
 0x12c   : > { %v2270_v60 = vsel %vm13885_vm2, %v2265_v24, %v2269_v5  ;;  %v14840_v11 = vrot.slane %v2315_v8, 5  ;;  %v2346_v51 = vrot.slane %v2344_v15, 4  ;;  %v2359_v10 = vrot.slane %v2357_v55, 4 }
 0x12d   : > { %v2326_v5 = vor.u32 %v2325_v2, %v2322_v37  ;;  %v2336_v25 = vor.u32 %v2335_v41, %v14830_v63  ;;  %v2368_v40 = vshrl.u32 %v11151_v42, 16  ;;  %v2371_v24 = vshll.u32 %v11151_v42, 16  ;;  %v14864_v2 = vld [vmem:[%s13852_s15 + $0x8c] sm:$0x1] }
 0x12f   : > { %12482 = vmatmul.mubr.msk.bf16.vlgmr.msra.gmra.mrb[0].mxu0 %vm728_vm3, %v11174_v50  ;;  %v2353_v50 = vshll.u32 %v14588_v39, 16  ;;  %v2260_v39 = vsel %vm13885_vm2, %v2255_v16, %v14785_v7  ;;  %v2294_v7 = vsel %vm13885_vm2, %v2289_v14, %v2293_v46  ;;  %v2381_v46 = vshrl.u32 %v14846_v6, 16 }
 0x130   : > { %12514 = vmatpush3.bf16.msra.mxu0 %v14528_v61  ;;  %12485 = vmatprep.mubr.msk.bf16.mxu0 %vm728_vm3, %v11175_v22  ;;  %v14824_v61 = vld [vmem:[%s17879_s1 + $0x60] sm:$0xff]   ;;  %v2302_v22 = vor.u32 %v2301_v12, %v2298_v9  ;;  %v2284_v9 = vsel %vm13885_vm2, %v2279_v28, %v14791_v23  ;;  %v2349_v12 = vrot.slane %v2347_v1, 5  ;;  %v2339_v23 = vshll.u32 %v14828_v49, 16 }
 0x131   : > { %12515 = vmatprep.subr.bf16.mxu0 %v13579_v45  ;;  %v14843_v17 = vrot.slane %v2353_v50, 5  ;;  %v2377_v28 = vshll.u32 %v14846_v6, 16  ;;  %v11178_v8 = vcombine.low %v2260_v39, %v2270_v60  ;;  %v2363_v50 = vshll.u32 %v14591_v58, 16  ;;  %v11157_v60 = vld [vmem:[%s13852_s15 + $0x9c] sm:$0xf] }
 0x132   : > { %v2303_v16 = vrot.slane %v2302_v22, 4  ;;  %v2350_v15 = vor.u32 %v2349_v12, %v2346_v51  ;;  %v11179_v55 = vcombine.low %v2284_v9, %v2294_v7  ;;  %v2327_v22 = vrot.slane %v2326_v5, 4  ;;  %v14873_v12 = vld [vmem:[%s13852_s15 + $0xa0] sm:$0xf] }
 0x133   : > { %v2360_v1 = vor.u32 %v2359_v10, %v14843_v17  ;;  %v2341_v37 = vrot.slane %v2339_v23, 5  ;;  %v2370_v41 = vrot.slane %v2368_v40, 4  ;;  %v2373_v39 = vrot.slane %v2371_v24, 5 }
 0x134   : > { %12516 = vmatpush3.bf16.msra.mxu0 %v13579_v45  ;;  %v2313_v45 = vrot.slane %v2312_v34, 4  ;;  %v2308_v14 = vsel %vm13885_vm2, %v2303_v16, %v14812_v20  ;;  %v2337_v34 = vrot.slane %v2336_v25, 4  ;;  %v14870_v58 = vrot.slane %v2377_v28, 5 }
 0x135   : > { %12549 = vmatprep.subr.bf16.mxu0 %v14824_v61  ;;  %v2383_v42 = vrot.slane %v2381_v46, 4  ;;  %v2351_v20 = vrot.slane %v2350_v15, 4  ;;  %v2361_v10 = vrot.slane %v2360_v1, 4  ;;  %v2365_v7 = vrot.slane %v2363_v50, 5 }
 0x136   : > { %v2387_v16 = vshll.u32 %v14864_v2, 16  ;;  %v2401_v5 = vshll.u32 %v14630_v21, 16  ;;  %v2416_v23 = vshrl.u32 %v11157_v60, 16  ;;  %v2332_v25 = vsel %vm13885_vm2, %v2327_v22, %v14830_v63 }
 0x137   : > { %12486 = vmatmul.mubr.msk.bf16.gmra.mrb[4].mxu0 %vm728_vm3, %v11176_v32  ;;  %v11154_v32 = vld [vmem:[%s13852_s15 + $0x90] sm:$0xf]  ;;  %v2342_v40 = vsel %vm13885_vm2, %v2337_v34, %v2341_v37  ;;  %v2425_v24 = vshll.u32 %v14873_v12, 16  ;;  %v2429_v28 = vshrl.u32 %v14873_v12, 16  ;;  %v2374_v46 = vor.u32 %v2373_v39, %v2370_v41  ;;  %v14896_v39 = vld [vmem:[%s13852_s15 + $0xa4] sm:$0x1] }
 0x138   : > { %12489 = vmatprep.mubr.msk.bf16.mxu0 %vm728_vm3, %v11177_v36  ;;  %v2318_v36 = vsel %vm13885_vm2, %v2313_v45, %v14840_v11  ;;  %v2392_v9 = vshrl.u32 %v11154_v32, 16  ;;  %v2395_v51 = vshll.u32 %v11154_v32, 16  ;;  %v2405_v11 = vshrl.u32 %v14630_v21, 16 }
 0x139   : > { %v2419_v45 = vshll.u32 %v11157_v60, 16  ;;  %v2384_v21 = vor.u32 %v2383_v42, %v14870_v58  ;;  %v2356_v63 = vsel %vm13885_vm2, %v2351_v20, %v14843_v17  ;;  %v2366_v1 = vsel %vm13885_vm2, %v2361_v10, %v2365_v7 }
 0x13a   : > { %v2394_v15 = vrot.slane %v2392_v9, 4  ;;  %v2389_v50 = vrot.slane %v2387_v16, 5  ;;  %v14893_v32 = vrot.slane %v2401_v5, 5  ;;  %v2407_v22 = vrot.slane %v2405_v11, 4  ;;  %v11160_v9 = vld [vmem:[%s13852_s15 + $0xa8] sm:$0xf] }
 0x13b   : > { %v2418_v37 = vrot.slane %v2416_v23, 4  ;;  %v2421_v34 = vrot.slane %v2419_v45, 5  ;;  %v11181_v41 = vcombine.low %v2332_v25, %v2342_v40  ;;  %v2427_v60 = vrot.slane %v2425_v24, 5 }
 0x13c   : > { %v2431_v42 = vrot.slane %v2429_v28, 4  ;;  %v2385_v17 = vrot.slane %v2384_v21, 4  ;;  %v2411_v10 = vshll.u32 %v14633_v19, 16  ;;  %v11182_v7 = vcombine.low %v2356_v63, %v2366_v1 }
 0x13d   : > { %v2408_v16 = vor.u32 %v2407_v22, %v14893_v32  ;;  %v2422_v5 = vor.u32 %v2421_v34, %v2418_v37  ;;  %v2435_v11 = vshll.u32 %v14896_v39, 16  ;;  %v2440_v23 = vshrl.u32 %v11160_v9, 16 }
 0x13e   : > { %v2432_v45 = vor.u32 %v2431_v42, %v2427_v60  ;;  %v2443_v25 = vshll.u32 %v11160_v9, 16  ;;  %v2449_v40 = vshll.u32 %v14675_v48, 16  ;;  %v2453_v24 = vshrl.u32 %v14675_v48, 16 }
 0x13f   : > { %12490 = vmatmul.mubr.msk.bf16.gmra.mrb[8].mxu0 %vm728_vm3, %v11178_v8  ;;  %v2397_v8 = vrot.slane %v2395_v51, 5  ;;  %v2375_v51 = vrot.slane %v2374_v46, 4  ;;  %v2390_v28 = vsel %vm13885_vm2, %v2385_v17, %v2389_v50  ;;  %v2413_v21 = vrot.slane %v2411_v10, 5  ;;  %v11166_v10 = vld [vmem:[%s13852_s15 + $0xc0] sm:$0xf] }
 0x140   : > { %12493 = vmatprep.mubr.msk.bf16.mxu0 %vm728_vm3, %v11179_v55  ;;  %v11180_v55 = vcombine.low %v2308_v14, %v2318_v36  ;;  %v11163_v14 = vld [vmem:[%s13852_s15 + $0xb4] sm:$0xf]  ;;  %v14904_v36 = vld [vmem:[%s13852_s15 + $0xb8] sm:$0xf]  ;;  %v2409_v22 = vrot.slane %v2408_v16, 4  ;;  %v2423_v48 = vrot.slane %v2422_v5, 4 }
 0x141   : > { %v2398_v20 = vor.u32 %v2397_v8, %v2394_v15  ;;  %v2380_v19 = vsel %vm13885_vm2, %v2375_v51, %v14870_v58  ;;  %v2464_v15 = vshrl.u32 %v11163_v14, 16  ;;  %v2467_v8 = vshll.u32 %v11163_v14, 16 }
 0x142   : > { %v2473_v63 = vshll.u32 %v14904_v36, 16  ;;  %v2477_v1 = vshrl.u32 %v14904_v36, 16  ;;  %v2437_v37 = vrot.slane %v2435_v11, 5  ;;  %v2442_v34 = vrot.slane %v2440_v23, 4  ;;  %v14925_v11 = vld [vmem:[%s13852_s15 + $0xbc] sm:$0x1] }
 0x143   : > { %v2399_v46 = vrot.slane %v2398_v20, 4  ;;  %v2451_v58 = vrot.slane %v2449_v40, 5  ;;  %v2455_v42 = vrot.slane %v2453_v24, 4  ;;  %v11183_v9 = vcombine.low %v2380_v19, %v2390_v28 }
 0x144   : > { %v2466_v50 = vrot.slane %v2464_v15, 4  ;;  %v2469_v51 = vrot.slane %v2467_v8, 5  ;;  %v2475_v17 = vrot.slane %v2473_v63, 5  ;;  %v2479_v20 = vrot.slane %v2477_v1, 4 }
 0x145   : > { %v2404_v14 = vsel %vm13885_vm2, %v2399_v46, %v14893_v32  ;;  %v2414_v16 = vsel %vm13885_vm2, %v2409_v22, %v2413_v21  ;;  %v2459_v5 = vshll.u32 %v14678_v35, 16  ;;  %v2428_v23 = vsel %vm13885_vm2, %v2423_v48, %v2427_v60 }
 0x146   : > { %v2456_v40 = vor.u32 %v2455_v42, %v2451_v58  ;;  %v2488_v32 = vshrl.u32 %v11166_v10, 16  ;;  %v2491_v24 = vshll.u32 %v11166_v10, 16  ;;  %v2497_v19 = vshll.u32 %v14726_v29, 16 }
 0x147   : > { %12494 = vmatmul.mubr.msk.bf16.gmra.mrb[12].mxu0 %vm728_vm3, %v11180_v55  ;;  %v2433_v55 = vrot.slane %v2432_v45, 4  ;;  %v2501_v35 = vshrl.u32 %v14726_v29, 16  ;;  %v2470_v28 = vor.u32 %v2469_v51, %v2466_v50  ;;  %v2480_v46 = vor.u32 %v2479_v20, %v2475_v17 }
 0x148   : > { %12497 = vmatprep.mubr.msk.bf16.mxu0 %vm728_vm3, %v11181_v41  ;;  %v2445_v41 = vrot.slane %v2443_v25, 5  ;;  %v11184_v21 = vcombine.low %v2404_v14, %v2414_v16  ;;  %v2457_v8 = vrot.slane %v2456_v40, 4  ;;  %v2461_v63 = vrot.slane %v2459_v5, 5  ;;  %v11207_v16 = vld [vmem:[%s13852_s15 + $0xc] sm:$0xe] }
 0x149   : > { %v2438_v45 = vsel %vm13885_vm2, %v2433_v55, %v2437_v37  ;;  %v2490_v1 = vrot.slane %v2488_v32, 4  ;;  %v2493_v22 = vrot.slane %v2491_v24, 5  ;;  %v2499_v48 = vrot.slane %v2497_v19, 5 }
 0x14a   : > { %v2446_v25 = vor.u32 %v2445_v41, %v2442_v34  ;;  %v11185_v15 = vcombine.low %v2428_v23, %v2438_v45  ;;  %v2503_v37 = vrot.slane %v2501_v35, 4  ;;  %v2471_v34 = vrot.slane %v2470_v28, 4  ;;  %v11208_v28 = vld [vmem:[%s13852_s15 + $0x18] sm:$0xe] }
 0x14b   : > { %v2481_v55 = vrot.slane %v2480_v46, 4  ;;  %v2462_v42 = vsel %vm13885_vm2, %v2457_v8, %v2461_v63  ;;  %v2507_v51 = vshll.u32 %v14729_v30, 16  ;;  %v2883_v14 = vrot.slane %v14570_v53, 5  ;;  %v11209_v46 = vld [vmem:[%s13852_s15 + $0x24] sm:$0xe] }
 0x14c   : > { %v2447_v60 = vrot.slane %v2446_v25, 4  ;;  %v2504_v50 = vor.u32 %v2503_v37, %v2499_v48  ;;  %v2476_v20 = vsel %vm13885_vm2, %v2471_v34, %v2475_v17  ;;  %v11223_v40 = vrot.slane %v11207_v16, 9  ;;  %v11210_v34 = vld [vmem:[%s13852_s15 + $0x30] sm:$0xe] }
 0x14d   : > { %v2509_v25 = vrot.slane %v2507_v51, 5  ;;  %v2885_v32 = vrot.slane %v2883_v14, 4  ;;  %v2886_v30 = vrot.slane %v14604_v52, 5  ;;  %v2890_v24 = vrot.slane %v14600_v54, 5 }
 0x14e   : > { %v2452_v29 = vsel %vm13885_vm2, %v2447_v60, %v2451_v58  ;;  %v2505_v45 = vrot.slane %v2504_v50, 4  ;;  %v2884_v19 = vsel %vm14196_vm6, %v11223_v40, %v2883_v14  ;;  %v2897_v52 = vrot.slane %v14627_v44, 5 }
 0x14f   : > { %12498 = vmatmul.mubr.msk.bf16.gmra.mrb[16].mxu0 %vm728_vm3, %v11182_v7  ;;  %v2483_v7 = vshll.u32 %v14925_v11, 16  ;;  %v11186_v58 = vcombine.low %v2452_v29, %v2462_v42  ;;  %v2887_v35 = vsel %vm14196_vm6, %v2885_v32, %v2886_v30  ;;  %v2892_v60 = vrot.slane %v2890_v24, 4 }
 0x150   : > { %12501 = vmatprep.mubr.msk.bf16.mxu0 %vm728_vm3, %v11183_v9  ;;  %v2494_v9 = vor.u32 %v2493_v22, %v2490_v1  ;;  %v2510_v53 = vsel %vm13885_vm2, %v2505_v45, %v2509_v25  ;;  %v2893_v8 = vrot.slane %v14622_v3, 5  ;;  %v11225_v63 = vrot.slane %v11209_v46, 9  ;;  %v11217_v46 = vld [vmem:[%s13852_s15 + $0x84] sm:$0xe] }
 0x151   : > { %v2485_v41 = vrot.slane %v2483_v7, 5  ;;  %v2899_v54 = vrot.slane %v2897_v52, 4  ;;  %v2900_v1 = vrot.slane %v14661_v18, 5  ;;  %v2911_v18 = vrot.slane %v14692_v38, 5 }
 0x152   : > { %v2495_v23 = vrot.slane %v2494_v9, 4  ;;  %v2894_v22 = vsel %vm14196_vm6, %v2892_v60, %v2893_v8  ;;  %v2898_v37 = vsel %vm14196_vm6, %v11225_v63, %v2897_v52  ;;  %v11226_v42 = vrot.slane %v11210_v34, 9  ;;  %v11219_v8 = vld [vmem:[%s13852_s15 + $0x9c] sm:$0xe]  ;;  %v18034_v34 = vld [vmem:[#allocation7_spill] sm:$0xff] }
 0x153   : > { %v2486_v10 = vsel %vm13885_vm2, %v2481_v55, %v2485_v41  ;;  %v2901_v3 = vsel %vm14196_vm6, %v2899_v54, %v2900_v1  ;;  %v11211_v55 = vld [vmem:[%s13852_s15 + $0x3c] sm:$0xe]  ;;  %v2907_v50 = vrot.slane %v14686_v13, 5  ;;  %v2925_v16 = vrot.slane %v14753_v62, 5 }
 0x154   : > { %v11187_v5 = vcombine.low %v2476_v20, %v2486_v10  ;;  %v2500_v17 = vsel %vm13885_vm2, %v2495_v23, %v2499_v48  ;;  %v2904_v48 = vrot.slane %v14646_v26, 5  ;;  %v11245_v29 = vcombine.low %v2898_v37, %v2901_v3  ;;  %v13581_v10 = vld [vmem:[%s17879_s1 + $0x68] sm:$0xff]  }
 0x155   : > { %v11188_v7 = vcombine.low %v2500_v17, %v2510_v53  ;;  %v11227_v51 = vrot.slane %v11211_v55, 9  ;;  %v2913_v20 = vrot.slane %v2911_v18, 4  ;;  %v2914_v26 = vrot.slane %v14741_v43, 5  ;;  %v11215_v17 = vld [vmem:[%s13852_s15 + $0x6c] sm:$0xe] }
 0x156   : > { %v2906_v9 = vrot.slane %v2904_v48, 4  ;;  %v2905_v38 = vsel %vm14196_vm6, %v11226_v42, %v2904_v48  ;;  %v2927_v25 = vrot.slane %v2925_v16, 4  ;;  %v2928_v40 = vrot.slane %v14789_v56, 5  ;;  %v11221_v48 = vld [vmem:[%s13852_s15 + $0xb4] sm:$0xe]  ;;  %v18037_v42 = vld [vmem:[#allocation9_spill] sm:$0xff] }
 0x157   : > { %12502 = vmatmul.mubr.msk.bf16.gmra.mrb[20].mxu0 %vm728_vm3, %v11184_v21  ;;  %v11243_v21 = vcombine.low %v2884_v19, %v2887_v35  ;;  %v2912_v14 = vsel %vm14196_vm6, %v11227_v51, %v2911_v18  ;;  %v2915_v43 = vsel %vm14196_vm6, %v2913_v20, %v2914_v26  ;;  %v2939_v30 = vrot.slane %v14802_v57, 5  ;;  %v18035_v18 = vld [vmem:[#allocation8_spill] sm:$0xff]  ;;  %v18040_v51 = vld [vmem:[#allocation11_spill] sm:$0xff] }
 0x158   : > { %12505 = vmatprep.mubr.msk.bf16.mxu0 %vm728_vm3, %v11185_v15  ;;  %v11224_v15 = vrot.slane %v11208_v28, 9  ;;  %v2908_v13 = vsel %vm14196_vm6, %v2906_v9, %v2907_v50  ;;  %v11247_v23 = vcombine.low %v2912_v14, %v2915_v43  ;;  %v2929_v32 = vsel %vm14196_vm6, %v2927_v25, %v2928_v40  ;;  %v18038_v9 = vld [vmem:[#allocation10_spill] sm:$0xff]  ;;  %v18041_v20 = vld [vmem:[#allocation12_spill] sm:$0xff]  ;;  %v15081_v14 = vld [vmem:[%s17879_s1 + $0x80] sm:$0xff]  }
 0x159   : > { %v2941_v19 = vrot.slane %v2939_v30, 4  ;;  %v2942_v56 = vrot.slane %v14828_v49, 5  ;;  %v18030_v35 = vcombine.low %v14547_v31, %v14552_v59  ;;  %v2953_v52 = vrot.slane %v14846_v6, 5  ;;  %v13586_v43 = vld [vmem:[%s13852_s15 + $0x3c] sm:$0xff]  }
 0x15a   : > { %v2891_v44 = vsel %vm14196_vm6, %v11224_v15, %v2890_v24  ;;  %v11231_v24 = vrot.slane %v11215_v17, 9  ;;  %v2956_v15 = vrot.slane %v14864_v2, 5  ;;  %v18031_v31 = vcombine.low %v14574_v33, %v14580_v0  ;;  %v18032_v33 = vld [vmem:[#allocation6_spill] sm:$0xff] }
 0x15b   : > { %v11244_v41 = vcombine.low %v2891_v44, %v2894_v22  ;;  %v2943_v57 = vsel %vm14196_vm6, %v2941_v19, %v2942_v56  ;;  %v2955_v49 = vrot.slane %v2953_v52, 4  ;;  %v2967_v60 = vrot.slane %v14873_v12, 5  ;;  %v15114_v19 = vld [vmem:[%s13852_s15 + $0x74] sm:$0x1]  ;;  %v11440_v56 = vld [vmem:[%s13852_s15 + $0x6c] sm:$0xe] }
 0x15c   : > { %v2940_v28 = vsel %vm14196_vm6, %v11231_v24, %v2939_v30  ;;  %v11235_v54 = vrot.slane %v11219_v8, 9  ;;  %v2970_v1 = vrot.slane %v14896_v39, 5  ;;  %v18033_v0 = vcombine.low %v14608_v4, %v18032_v33  ;;  %v13589_v30 = vld [vmem:[%s13852_s15 + $0x60] sm:$0xff]   ;;  %v15111_v24 = vld [vmem:[%s13852_s15 + $0x70] sm:$0xf] }
 0x15d   : > { %v2957_v6 = vsel %vm14196_vm6, %v2955_v49, %v2956_v15  ;;  %v2969_v2 = vrot.slane %v2967_v60, 4  ;;  %v2981_v22 = vrot.slane %v14904_v36, 5  ;;  %v11237_v37 = vrot.slane %v11221_v48, 9  ;;  %v13591_v15 = vld [vmem:[%s13852_s15 + $0x78] sm:$0xff]   ;;  %v15141_v33 = vld [vmem:[%s13852_s15 + $0x88] sm:$0xf] }
 0x15e   : > { %v2968_v44 = vsel %vm14196_vm6, %v11235_v54, %v2967_v60  ;;  %v2984_v4 = vrot.slane %v14925_v11, 5  ;;  %v18036_v55 = vcombine.low %v18034_v34, %v18035_v18  ;;  %v18039_v50 = vcombine.low %v18037_v42, %v18038_v9  ;;  %v13582_v11 = vld [vmem:[%s13852_s15 + $0x18] sm:$0xff]   ;;  %v13593_v18 = vld [vmem:[%s13852_s15 + $0x84] sm:$0xff]   ;;  %v13594_v9 = vld [vmem:[%s13852_s15 + $0x90] sm:$0xff]  }
 0x15f   : > { %12506 = vmatmul.mubr.msk.bf16.gmra.mrb[24].mxu0 %vm728_vm3, %v11186_v58  ;;  %v11213_v58 = vld [vmem:[%s13852_s15 + $0x54] sm:$0xe]  ;;  %v2971_v12 = vsel %vm14196_vm6, %v2969_v2, %v2970_v1  ;;  %v2983_v3 = vrot.slane %v2981_v22, 4  ;;  %v18042_v26 = vcombine.low %v18040_v51, %v18041_v20  ;;  %v11353_v20 = vld [vmem:[%s13852_s15 + $0x30] sm:$0xf] }
 0x160   : > { %12509 = vmatprep.mubr.msk.bf16.mxu0 %vm728_vm3, %v11187_v5  ;;  %v11246_v5 = vcombine.low %v2905_v38, %v2908_v13  ;;  %v11229_v45 = vrot.slane %v11213_v58, 9  ;;  %v11255_v39 = vcombine.low %v2968_v44, %v2971_v12  ;;  %v13585_v38 = vld [vmem:[%s13852_s15 + $0x30] sm:$0xff]   ;;  %v13592_v13 = vld [vmem:[%s17879_s1 + $0x78] sm:$0xff]   ;;  %v11442_v44 = vld [vmem:[%s13852_s15 + $0x84] sm:$0xe]  ;;  %v4537_v12 = vrot.slane %v15141_v33, 5 }
 0x161   : > { %v2985_v36 = vsel %vm14196_vm6, %v2983_v3, %v2984_v4  ;;  %v15091_v58 = vld [vmem:[%s13852_s15 + $0x5c] sm:$0x1]  ;;  %v11458_v48 = vrot.slane %v11442_v44, 9  ;;  %v15153_v4 = vld [vmem:[%s13852_s15 + $0x28] sm:$0xf] }
 0x162   : > { %v2926_v62 = vsel %vm14196_vm6, %v11229_v45, %v2925_v16  ;;  %v13587_v16 = vld [vmem:[%s13852_s15 + $0x48] sm:$0xff]   ;;  %v4512_v45 = vrot.slane %v15091_v58, 5  ;;  %v4539_v34 = vrot.slane %v4537_v12, 4  ;;  %v3756_v51 = vshrl.u32 %v15153_v4, 16 }
 0x163   : > { %v11249_v53 = vcombine.low %v2926_v62, %v2929_v32  ;;  %v13588_v62 = vld [vmem:[%s13852_s15 + $0x54] sm:$0xff]   ;;  %v15161_v42 = vsel %vm14196_vm6, %v11458_v48, %v4537_v12  ;;  %v13596_v44 = vld [vmem:[%s13852_s15 + $0xa8] sm:$0xff]  }
 0x167   : > { %12510 = vmatmul.mubr.msk.bf16.gmra.mrb[28].mxu0 %vm728_vm3, %v11188_v7  ;;  %v11251_v7 = vcombine.low %v2940_v28, %v2943_v57  ;;  %v4526_v28 = vrot.slane %v15114_v19, 5  ;;  %v11456_v57 = vrot.slane %v11440_v56, 9 }
 0x168   : > { %12517 = vmatprep.mubr.msk.bf16.mxu0 %vm728_vm3, %v11243_v21  ;;  %v11233_v21 = vrot.slane %v11217_v46, 9  ;;  %v13590_v46 = vld [vmem:[%s13852_s15 + $0x6c] sm:$0xff]  }
 0x16a   : > { %v2954_v59 = vsel %vm14196_vm6, %v11233_v21, %v2953_v52  ;;  %v15123_v21 = vld [vmem:[%s13852_s15 + $0x1c] sm:$0xf] }
 0x16b   : > { %v11253_v63 = vcombine.low %v2954_v59, %v2957_v6  ;;  %v3732_v54 = vshrl.u32 %v15123_v21, 16  ;;  %v15279_v6 = vld [vmem:[%s13852_s15 + $0xd0] sm:$0xf] }
 0x16f   : > { %12518 = vmatmul.mubr.msk.bf16.vlgmr.msra.gmra.mrb[0].mxu0 %vm728_vm3, %v11244_v41  ;;  %v2982_v41 = vsel %vm14196_vm6, %v11237_v37, %v2981_v22 }
 0x170   : > { %12550 = vmatpush3.bf16.msra.mxu0 %v14824_v61  ;;  %12521 = vmatprep.mubr.msk.bf16.mxu0 %vm728_vm3, %v11245_v29  ;;  %v15000_v61 = vld [vmem:[%s17879_s1 + $0x70] sm:$0xff]   ;;  %v11257_v29 = vcombine.low %v2982_v41, %v2985_v36  ;;  %v3734_v41 = vrot.slane %v3732_v54, 4 }
 0x171   : > { %12551 = vmatprep.subr.bf16.mxu0 %v13581_v10 }
 0x174   : > { %12552 = vmatpush3.bf16.msra.mxu0 %v13581_v10  ;;  %v13584_v10 = vld [vmem:[%s13852_s15 + $0x24] sm:$0xff]  }
 0x175   : > { %12585 = vmatprep.subr.bf16.mxu0 %v15000_v61 }
 0x177   : > { %12522 = vmatmul.mubr.msk.bf16.gmra.mrb[4].mxu0 %vm728_vm3, %v11246_v5  ;;  %v11438_v5 = vld [vmem:[%s13852_s15 + $0x54] sm:$0xe] }
 0x178   : > { %12525 = vmatprep.mubr.msk.bf16.mxu0 %vm728_vm3, %v11247_v23  ;;  %v11454_v25 = vrot.slane %v11438_v5, 9  ;;  %v15180_v5 = vld [vmem:[%s13852_s15 + $0x34] sm:$0xf] }
 0x17f   : > { %12526 = vmatmul.mubr.msk.bf16.gmra.mrb[8].mxu0 %vm728_vm3, %v18030_v35  ;;  %v4523_v35 = vrot.slane %v15111_v24, 5 }
 0x180   : > { %12529 = vmatprep.mubr.msk.bf16.mxu0 %vm728_vm3, %v11249_v53  ;;  %v15282_v53 = vld [vmem:[%s13852_s15 + $0xd4] sm:$0x1] }
 0x181   : > { %v4525_v52 = vrot.slane %v4523_v35, 4  ;;  %v15127_v49 = vsel %vm14196_vm6, %v11456_v57, %v4523_v35  ;;  %v11356_v57 = vld [vmem:[%s13852_s15 + $0x3c] sm:$0xf] }
 0x183   : > { %v15133_v59 = vsel %vm14196_vm6, %v4525_v52, %v4526_v28  ;;  %v3758_v28 = vrot.slane %v3756_v51, 4 }
 0x187   : > { %12530 = vmatmul.mubr.msk.bf16.gmra.mrb[12].mxu0 %vm728_vm3, %v18031_v31  ;;  %v11350_v31 = vld [vmem:[%s13852_s15 + $0x24] sm:$0xf] }
 0x188   : > { %12533 = vmatprep.mubr.msk.bf16.mxu0 %vm728_vm3, %v11251_v7  ;;  %v11347_v7 = vld [vmem:[%s13852_s15 + $0x18] sm:$0xf]  ;;  %v3743_v2 = vshrl.u32 %v11350_v31, 16  ;;  %v3746_v1 = vshll.u32 %v11350_v31, 16  ;;  %v15199_v31 = vld [vmem:[%s13852_s15 + $0x40] sm:$0xf] }
 0x189   : > { %v3719_v60 = vshrl.u32 %v11347_v7, 16  ;;  %v3722_v8 = vshll.u32 %v11347_v7, 16  ;;  %v3776_v7 = vshll.u32 %v15180_v5, 16  ;;  %v3804_v51 = vshrl.u32 %v15199_v31, 16 }
 0x18a   : > { %v3745_v36 = vrot.slane %v3743_v2, 4 }
 0x18b   : > { %v3724_v37 = vrot.slane %v3722_v8, 5  ;;  %v13595_v8 = vld [vmem:[%s13852_s15 + $0x9c] sm:$0xff]  }
 0x18f   : > { %12534 = vmatmul.mubr.msk.bf16.gmra.mrb[16].mxu0 %vm728_vm3, %v18033_v0  ;;  %v15144_v0 = vld [vmem:[%s13852_s15 + $0x8c] sm:$0x1] }
 0x190   : > { %12537 = vmatprep.mubr.msk.bf16.mxu0 %vm728_vm3, %v11253_v63  ;;  %v3728_v63 = vshll.u32 %v15123_v21, 16  ;;  %v4540_v22 = vrot.slane %v15144_v0, 5 }
 0x192   : > { %v15150_v3 = vrot.slane %v3728_v63, 5 }
 0x197   : > { %12538 = vmatmul.mubr.msk.bf16.gmra.mrb[20].mxu0 %vm728_vm3, %v18036_v55  ;;  %v15157_v55 = vld [vmem:[%s13852_s15 + $0x20] sm:$0x1] }
 0x198   : > { %12541 = vmatprep.mubr.msk.bf16.mxu0 %vm728_vm3, %v11255_v39  ;;  %v3721_v39 = vrot.slane %v3719_v60, 4 }
 0x19f   : > { %12542 = vmatmul.mubr.msk.bf16.gmra.mrb[24].mxu0 %vm728_vm3, %v18039_v50  ;;  %v15166_v50 = vsel %vm14196_vm6, %v4539_v34, %v4540_v22  ;;  %v3791_v34 = vshrl.u32 %v11356_v57, 16 }
 0x1a0   : > { %12545 = vmatprep.mubr.msk.bf16.mxu0 %vm728_vm3, %v11257_v29  ;;  %v3748_v29 = vrot.slane %v3746_v1, 5  ;;  %18043 = vst [vmem:[#allocation6_spill] sm:$0xff] %v15166_v50  ;;  %v15306_v50 = vld [vmem:[%s13852_s15 + $0x64] sm:$0xf] }
 0x1a7   : > { %12546 = vmatmul.mubr.msk.bf16.gmra.mrb[28].mxu0 %vm728_vm3, %v18042_v26  ;;  %v11362_v26 = vld [vmem:[%s13852_s15 + $0x54] sm:$0xf] }
 0x1a8   : > { %12553 = vmatprep.mubr.msk.bf16.mxu0 %vm728_vm3, %v13582_v11  ;;  %v3752_v11 = vshll.u32 %v15153_v4, 16 }
 0x1aa   : > { %v15192_v35 = vrot.slane %v3752_v11, 5 }
 0x1af   : > { %12554 = vmatmul.mubr.msk.bf16.vlgmr.msra.gmra.mrb[0].mxu0 %vm728_vm3, %v13584_v10  ;;  %v3738_v10 = vshll.u32 %v15157_v55, 16 }
 0x1b0   : > { %12586 = vmatpush3.bf16.msra.mxu0 %v15000_v61  ;;  %12557 = vmatprep.mubr.msk.bf16.mxu0 %vm728_vm3, %v13585_v38  ;;  %v15088_v61 = vld [vmem:[%s13852_s15 + $0x58] sm:$0xf]  ;;  %v15175_v38 = vld [vmem:[%s13852_s15 + $0x2c] sm:$0x1] }
 0x1b1   : > { %12587 = vmatprep.subr.bf16.mxu0 %v13592_v13  ;;  %v4509_v23 = vrot.slane %v15088_v61, 5  ;;  %v3740_v2 = vrot.slane %v3738_v10, 5  ;;  %v11359_v10 = vld [vmem:[%s13852_s15 + $0x48] sm:$0xf] }
 0x1b3   : > { %v4511_v40 = vrot.slane %v4509_v23, 4  ;;  %v15100_v32 = vsel %vm14196_vm6, %v11454_v25, %v4509_v23  ;;  %v15183_v23 = vld [vmem:[%s13852_s15 + $0xa0] sm:$0xf]  ;;  %v3767_v25 = vshrl.u32 %v11353_v20, 16 }
 0x1b4   : > { %12588 = vmatpush3.bf16.msra.mxu0 %v13592_v13  ;;  %v3725_v13 = vor.u32 %v3724_v37, %v3721_v39  ;;  %v15214_v37 = vld [vmem:[%s13852_s15 + $0x38] sm:$0x1] }
 0x1b5   : > { %12621 = vmatprep.subr.bf16.mxu0 %v15081_v14  ;;  %v15105_v17 = vsel %vm14196_vm6, %v4511_v40, %v4512_v45  ;;  %v15186_v45 = vld [vmem:[%s13852_s15 + $0xa4] sm:$0x1]  ;;  %v3770_v40 = vshll.u32 %v11353_v20, 16  ;;  %v3769_v22 = vrot.slane %v3767_v25, 4  ;;  %v3759_v20 = vor.u32 %v3758_v28, %v15192_v35 }
 0x1b6   : > { %v4554_v56 = vrot.slane %v15186_v45, 5  ;;  %v3726_v63 = vrot.slane %v3725_v13, 4  ;;  %v15228_v13 = vld [vmem:[%s13852_s15 + $0xb8] sm:$0xf]  ;;  %v3786_v25 = vshll.u32 %v15214_v37, 16  ;;  %v3793_v28 = vrot.slane %v3791_v34, 4 }
 0x1b7   : > { %12558 = vmatmul.mubr.msk.bf16.gmra.mrb[4].mxu0 %vm728_vm3, %v13586_v43  ;;  %v3735_v43 = vor.u32 %v3734_v41, %v15150_v3  ;;  %v3772_v48 = vrot.slane %v3770_v40, 5  ;;  %v3800_v41 = vshll.u32 %v15199_v31, 16  ;;  %v11446_v40 = vld [vmem:[%s13852_s15 + $0xb4] sm:$0xe] }
 0x1b8   : > { %12561 = vmatprep.mubr.msk.bf16.mxu0 %vm728_vm3, %v13587_v16  ;;  %v3749_v16 = vor.u32 %v3748_v29, %v3745_v36  ;;  %v15262_v36 = vrot.slane %v3786_v25, 5 }
 0x1b9   : > { %v3736_v54 = vrot.slane %v3735_v43, 4  ;;  %v15231_v43 = vld [vmem:[%s13852_s15 + $0xbc] sm:$0x1] }
 0x1ba   : > { %v15207_v12 = vrot.slane %v3749_v16, 4  ;;  %v3773_v16 = vor.u32 %v3772_v48, %v3769_v22  ;;  %v13597_v22 = vld [vmem:[%s13852_s15 + $0xb4] sm:$0xff]   ;;  %v3731_v48 = vsel %vm13885_vm2, %v3726_v63, %v15150_v3 }
 0x1bb   : > { %v3741_v34 = vsel %vm13885_vm2, %v3736_v54, %v3740_v2 }
 0x1bf   : > { %12562 = vmatmul.mubr.msk.bf16.gmra.mrb[8].mxu0 %vm728_vm3, %v13588_v62  ;;  %v11444_v62 = vld [vmem:[%s13852_s15 + $0x9c] sm:$0xe] }
 0x1c0   : > { %12565 = vmatprep.mubr.msk.bf16.mxu0 %vm728_vm3, %v13589_v30  ;;  %v4551_v30 = vrot.slane %v15183_v23, 5  ;;  %v11460_v52 = vrot.slane %v11444_v62, 9  ;;  %v4565_v62 = vrot.slane %v15228_v13, 5 }
 0x1c2   : > { %v4553_v60 = vrot.slane %v4551_v30, 4  ;;  %v15204_v1 = vsel %vm14196_vm6, %v11460_v52, %v4551_v30  ;;  %v4568_v30 = vrot.slane %v15231_v43, 5  ;;  %v15241_v52 = vrot.slane %v3800_v41, 5 }
 0x1c3   : > { %18044 = vst [vmem:[#allocation7_spill] sm:$0xff] %v15204_v1  ;;  %v3848_v1 = vshll.u32 %v15088_v61, 16 }
 0x1c4   : > { %v15211_v39 = vsel %vm14196_vm6, %v4553_v60, %v4554_v56  ;;  %v15239_v56 = vld [vmem:[%s13852_s15 + $0x44] sm:$0x1]  ;;  %v15245_v60 = vld [vmem:[%s13852_s15 + $0x4c] sm:$0xf] }
 0x1c5   : > { %18045 = vst [vmem:[#allocation8_spill] sm:$0xff] %v15211_v39  ;;  %v3810_v63 = vshll.u32 %v15239_v56, 16  ;;  %v3824_v54 = vshll.u32 %v15245_v60, 16  ;;  %v3828_v2 = vshrl.u32 %v15245_v60, 16  ;;  %v13599_v39 = vld [vmem:[%s13852_s15 + $0xcc] sm:$0xff]  }
 0x1c7   : > { %12566 = vmatmul.mubr.msk.bf16.gmra.mrb[12].mxu0 %vm728_vm3, %v13590_v46  ;;  %v3762_v46 = vshll.u32 %v15175_v38, 16 }
 0x1c8   : > { %12569 = vmatprep.mubr.msk.bf16.mxu0 %vm728_vm3, %v13591_v15  ;;  %v3780_v15 = vshrl.u32 %v15180_v5, 16 }
 0x1c9   : > { %v15219_v29 = vrot.slane %v3762_v46, 5  ;;  %v11462_v46 = vrot.slane %v11446_v40, 9  ;;  %v13598_v40 = vld [vmem:[%s13852_s15 + $0xc0] sm:$0xff]  }
 0x1ca   : > { %v3782_v11 = vrot.slane %v3780_v15, 4  ;;  %v3806_v15 = vrot.slane %v3804_v51, 4  ;;  %v15260_v51 = vrot.slane %v3773_v16, 4 }
 0x1cb   : > { %v15255_v41 = vsel %vm14196_vm6, %v11462_v46, %v4565_v62 }
 0x1cc   : > { %18046 = vst [vmem:[#allocation9_spill] sm:$0xff] %v15255_v41  ;;  %v3807_v25 = vor.u32 %v3806_v15, %v15241_v52  ;;  %v11448_v15 = vld [vmem:[%s13852_s15 + $0xcc] sm:$0xe] }
 0x1cf   : > { %12570 = vmatmul.mubr.msk.bf16.gmra.mrb[16].mxu0 %vm728_vm3, %v13593_v18  ;;  %v3794_v18 = vshll.u32 %v11356_v57, 16 }
 0x1d0   : > { %12573 = vmatprep.mubr.msk.bf16.mxu0 %vm728_vm3, %v13594_v9  ;;  %v15221_v9 = vrot.slane %v3776_v7, 5 }
 0x1d1   : > { %v3796_v57 = vrot.slane %v3794_v18, 5  ;;  %v3818_v18 = vshll.u32 %v11359_v10, 16 }
 0x1d2   : > { %v3783_v7 = vor.u32 %v3782_v11, %v15221_v9  ;;  %v15258_v11 = vrot.slane %v3759_v20, 4  ;;  %v11464_v20 = vrot.slane %v11448_v15, 9 }
 0x1d3   : > { %v3797_v16 = vor.u32 %v3796_v57, %v3793_v28  ;;  %v3820_v46 = vrot.slane %v3818_v18, 5  ;;  %v3755_v28 = vsel %vm13885_vm2, %v15207_v12, %v15192_v35  ;;  %v3842_v18 = vshll.u32 %v11362_v26, 16 }
 0x1d4   : > { %v3765_v57 = vsel %vm13885_vm2, %v15258_v11, %v15219_v29  ;;  %v3808_v12 = vrot.slane %v3807_v25, 4 }
 0x1d5   : > { %v3798_v35 = vrot.slane %v3797_v16, 4 }
 0x1d7   : > { %12574 = vmatmul.mubr.msk.bf16.gmra.mrb[20].mxu0 %vm728_vm3, %v13595_v8  ;;  %v3815_v8 = vshrl.u32 %v11359_v10, 16  ;;  %v15274_v10 = vrot.slane %v3783_v7, 4  ;;  %v15294_v7 = vld [vmem:[%s13852_s15 + $0x50] sm:$0x1] }
 0x1d8   : > { %12577 = vmatprep.mubr.msk.bf16.mxu0 %vm728_vm3, %v13596_v44  ;;  %v4567_v44 = vrot.slane %v4565_v62, 4  ;;  %v3834_v11 = vshll.u32 %v15294_v7, 16 }
 0x1d9   : > { %v3817_v62 = vrot.slane %v3815_v8, 4  ;;  %v4579_v8 = vrot.slane %v15279_v6, 5 }
 0x1da   : > { %v15267_v3 = vsel %vm14196_vm6, %v4567_v44, %v4568_v30  ;;  %v11399_v30 = vcombine.low %v3731_v48, %v3741_v34  ;;  %v3839_v44 = vshrl.u32 %v11362_v26, 16  ;;  %v15299_v48 = vrot.slane %v3824_v54, 5 }
 0x1db   : > { %18047 = vst [vmem:[#allocation10_spill] sm:$0xff] %v15267_v3  ;;  %v3830_v34 = vrot.slane %v3828_v2, 4  ;;  %v3812_v3 = vrot.slane %v3810_v63, 5  ;;  %v4581_v41 = vrot.slane %v4579_v8, 4  ;;  %v3821_v29 = vor.u32 %v3820_v46, %v3817_v62 }
 0x1dc   : > { %v15310_v54 = vsel %vm14196_vm6, %v11464_v20, %v4579_v8  ;;  %v3852_v26 = vshrl.u32 %v15088_v61, 16  ;;  %v3841_v62 = vrot.slane %v3839_v44, 4  ;;  %v3844_v46 = vrot.slane %v3842_v18, 5  ;;  %v11368_v44 = vld [vmem:[%s13852_s15 + $0x6c] sm:$0xf] }
 0x1dd   : > { %18048 = vst [vmem:[#allocation11_spill] sm:$0xff] %v15310_v54  ;;  %v3831_v25 = vor.u32 %v3830_v34, %v15299_v48  ;;  %v3779_v20 = vsel %vm13885_vm2, %v15260_v51, %v15221_v9  ;;  %v3789_v61 = vsel %vm13885_vm2, %v15274_v10, %v15262_v36  ;;  %v3876_v8 = vshrl.u32 %v15306_v50, 16  ;;  %v15342_v54 = vld [vmem:[%s13852_s15 + $0x68] sm:$0x1] }
 0x1de   : > { %v3813_v9 = vsel %vm13885_vm2, %v3808_v12, %v3812_v3  ;;  %v3822_v51 = vrot.slane %v3821_v29, 4  ;;  %v3836_v34 = vrot.slane %v3834_v11, 5  ;;  %v15338_v36 = vrot.slane %v3848_v1, 5 }
 0x1df   : > { %12578 = vmatmul.mubr.msk.bf16.gmra.mrb[24].mxu0 %vm728_vm3, %v13597_v22  ;;  %v4582_v22 = vrot.slane %v15282_v53, 5  ;;  %v3854_v10 = vrot.slane %v3852_v26, 4  ;;  %v3832_v15 = vrot.slane %v3831_v25, 4  ;;  %v3878_v12 = vrot.slane %v3876_v8, 4 }
 0x1e0   : > { %12581 = vmatprep.mubr.msk.bf16.mxu0 %vm728_vm3, %v13598_v40  ;;  %v11365_v40 = vld [vmem:[%s13852_s15 + $0x60] sm:$0xf]  ;;  %v3890_v29 = vshll.u32 %v11368_v44, 16  ;;  %v3896_v11 = vshll.u32 %v15111_v24, 16  ;;  %v3900_v26 = vshrl.u32 %v15111_v24, 16  ;;  %v13601_v24 = vld [vmem:[%s17879_s1 + $0x88] sm:$0xff]  }
 0x1e1   : > { %v3863_v2 = vshrl.u32 %v11365_v40, 16  ;;  %v3866_v16 = vshll.u32 %v11365_v40, 16  ;;  %v15315_v63 = vsel %vm14196_vm6, %v4581_v41, %v4582_v22  ;;  %v3872_v41 = vshll.u32 %v15306_v50, 16 }
 0x1e2   : > { %18049 = vst [vmem:[#allocation12_spill] sm:$0xff] %v15315_v63  ;;  %v3803_v22 = vsel %vm13885_vm2, %v3798_v35, %v15241_v52  ;;  %v3845_v63 = vor.u32 %v3844_v46, %v3841_v62  ;;  %v3887_v52 = vshrl.u32 %v11368_v44, 16  ;;  %v11400_v35 = vcombine.low %v3755_v28, %v3765_v57  ;;  %v15355_v57 = vld [vmem:[%s13852_s15 + $0x7c] sm:$0xf] }
 0x1e3   : > { %v3865_v18 = vrot.slane %v3863_v2, 4  ;;  %v3868_v40 = vrot.slane %v3866_v16, 5  ;;  %v15344_v3 = vrot.slane %v3872_v41, 5  ;;  %v11402_v1 = vcombine.low %v3803_v22, %v3813_v9  ;;  %v11371_v2 = vld [vmem:[%s13852_s15 + $0x78] sm:$0xf] }
 0x1e4   : > { %v3855_v16 = vor.u32 %v3854_v10, %v15338_v36  ;;  %v3882_v28 = vshll.u32 %v15342_v54, 16  ;;  %v3837_v62 = vsel %vm13885_vm2, %v3832_v15, %v3836_v34  ;;  %v3846_v46 = vrot.slane %v3845_v63, 4  ;;  %v11374_v22 = vld [vmem:[%s13852_s15 + $0x84] sm:$0xf] }
 0x1e5   : > { %v3869_v25 = vor.u32 %v3868_v40, %v3865_v18  ;;  %v3879_v41 = vor.u32 %v3878_v12, %v15344_v3  ;;  %v3911_v8 = vshrl.u32 %v11371_v2, 16  ;;  %v3914_v44 = vshll.u32 %v11371_v2, 16 }
 0x1e6   : > { %v15365_v9 = vrot.slane %v3896_v11, 5  ;;  %v3920_v15 = vshll.u32 %v15355_v57, 16  ;;  %v3924_v63 = vshrl.u32 %v15355_v57, 16  ;;  %v3856_v34 = vrot.slane %v3855_v16, 4  ;;  %v15376_v16 = vld [vmem:[%s13852_s15 + $0x80] sm:$0x1] }
 0x1e7   : > { %12582 = vmatmul.mubr.msk.bf16.gmra.mrb[28].mxu0 %vm728_vm3, %v13599_v39  ;;  %v3858_v39 = vshll.u32 %v15091_v58, 16  ;;  %v3827_v58 = vsel %vm13885_vm2, %v3822_v51, %v15299_v48  ;;  %v3892_v48 = vrot.slane %v3890_v29, 5  ;;  %v3902_v51 = vrot.slane %v3900_v26, 4 }
 0x1e8   : > { %12589 = vmatprep.mubr.msk.bf16.mxu0 %vm728_vm3, %v11399_v30  ;;  %v11401_v30 = vcombine.low %v3779_v20, %v3789_v61  ;;  %v3889_v61 = vrot.slane %v3887_v52, 4  ;;  %v3870_v10 = vrot.slane %v3869_v25, 4  ;;  %v3884_v18 = vrot.slane %v3882_v28, 5 }
 0x1e9   : > { %v3860_v20 = vrot.slane %v3858_v39, 5  ;;  %v3906_v40 = vshll.u32 %v15114_v19, 16  ;;  %v3935_v39 = vshrl.u32 %v11374_v22, 16  ;;  %v3938_v52 = vshll.u32 %v11374_v22, 16  ;;  %v15394_v22 = vld [vmem:[%s13852_s15 + $0x94] sm:$0xf] }
 0x1ea   : > { %v3948_v12 = vshrl.u32 %v15141_v33, 16  ;;  %v3880_v29 = vrot.slane %v3879_v41, 4  ;;  %v3893_v11 = vor.u32 %v3892_v48, %v3889_v61  ;;  %v3913_v26 = vrot.slane %v3911_v8, 4 }
 0x1eb   : > { %v3903_v2 = vor.u32 %v3902_v51, %v15365_v9  ;;  %v15378_v25 = vrot.slane %v3920_v15, 5  ;;  %v3926_v19 = vrot.slane %v3924_v63, 4  ;;  %v3851_v28 = vsel %vm13885_vm2, %v3846_v46, %v15338_v36 }
 0x1ec   : > { %v3875_v61 = vsel %vm13885_vm2, %v3870_v10, %v15344_v3  ;;  %v15388_v41 = vrot.slane %v3906_v40, 5  ;;  %v3940_v48 = vrot.slane %v3938_v52, 5  ;;  %v3885_v36 = vsel %vm13885_vm2, %v3880_v29, %v3884_v18 }
 0x1ed   : > { %v3894_v46 = vrot.slane %v3893_v11, 4  ;;  %v3930_v51 = vshll.u32 %v15376_v16, 16  ;;  %v3904_v3 = vrot.slane %v3903_v2, 4  ;;  %v3972_v10 = vshrl.u32 %v15394_v22, 16 }
 0x1ee   : > { %v3954_v52 = vshll.u32 %v15144_v0, 16 }
 0x1ef   : > { %12590 = vmatmul.mubr.msk.bf16.vlgmr.msra.gmra.mrb[0].mxu0 %vm728_vm3, %v11400_v35  ;;  %v3944_v35 = vshll.u32 %v15141_v33, 16  ;;  %v3861_v33 = vsel %vm13885_vm2, %v3856_v34, %v3860_v20  ;;  %v3968_v34 = vshll.u32 %v15394_v22, 16  ;;  %v3932_v11 = vrot.slane %v3930_v51, 5 }
 0x1f0   : > { %12622 = vmatpush3.bf16.msra.mxu0 %v15081_v14  ;;  %12593 = vmatprep.mubr.msk.bf16.mxu0 %vm728_vm3, %v11401_v30  ;;  %v3916_v14 = vrot.slane %v3914_v44, 5  ;;  %v11403_v30 = vcombine.low %v3827_v58, %v3837_v62  ;;  %v11377_v58 = vld [vmem:[%s13852_s15 + $0x90] sm:$0xf]  ;;  %v3937_v62 = vrot.slane %v3935_v39, 4  ;;  %v3950_v44 = vrot.slane %v3948_v12, 4 }
 0x1f1   : > { %12623 = vmatprep.subr.bf16.mxu0 %v13601_v24  ;;  %v15391_v8 = vrot.slane %v3944_v35, 5  ;;  %v3959_v15 = vshrl.u32 %v11377_v58, 16  ;;  %v3962_v63 = vshll.u32 %v11377_v58, 16  ;;  %v11404_v18 = vcombine.low %v3851_v28, %v3861_v33  ;;  %v11383_v28 = vld [vmem:[%s13852_s15 + $0xa8] sm:$0xf] }
 0x1f2   : > { %v3917_v20 = vor.u32 %v3916_v14, %v3913_v26  ;;  %v3941_v40 = vor.u32 %v3940_v48, %v3937_v62  ;;  %v11405_v35 = vcombine.low %v3875_v61, %v3885_v36  ;;  %v3899_v12 = vsel %vm13885_vm2, %v3894_v46, %v15365_v9  ;;  %v15411_v26 = vld [vmem:[%s13852_s15 + $0x98] sm:$0x1]  ;;  %v15420_v62 = vld [vmem:[%s13852_s15 + $0xac] sm:$0xf] }
 0x1f3   : > { %v3951_v39 = vor.u32 %v3950_v44, %v15391_v8  ;;  %v3909_v14 = vsel %vm13885_vm2, %v3904_v3, %v15388_v41  ;;  %v3961_v2 = vrot.slane %v3959_v15, 4  ;;  %v15417_v0 = vrot.slane %v3968_v34, 5 }
 0x1f4   : > { %12624 = vmatpush3.bf16.msra.mxu0 %v13601_v24  ;;  %v3927_v24 = vor.u32 %v3926_v19, %v15378_v25  ;;  %v3918_v29 = vrot.slane %v3917_v20, 4  ;;  %v3964_v19 = vrot.slane %v3962_v63, 5  ;;  %v3974_v33 = vrot.slane %v3972_v10, 4 }
 0x1f5   : > { %v3942_v9 = vrot.slane %v3941_v40, 4  ;;  %v3952_v48 = vrot.slane %v3951_v39, 4  ;;  %v3956_v44 = vrot.slane %v3954_v52, 5  ;;  %v3978_v36 = vshll.u32 %v15411_v26, 16 }
 0x1f6   : > { %v3992_v46 = vshll.u32 %v15183_v23, 16  ;;  %v3996_v41 = vshrl.u32 %v15183_v23, 16  ;;  %v4007_v20 = vshrl.u32 %v11383_v28, 16  ;;  %v4010_v51 = vshll.u32 %v11383_v28, 16 }
 0x1f7   : > { %12594 = vmatmul.mubr.msk.bf16.gmra.mrb[4].mxu0 %vm728_vm3, %v11402_v1  ;;  %v11380_v1 = vld [vmem:[%s13852_s15 + $0x9c] sm:$0xf]  ;;  %v3923_v3 = vsel %vm13885_vm2, %v3918_v29, %v15378_v25  ;;  %v4016_v15 = vshll.u32 %v15420_v62, 16  ;;  %v4020_v63 = vshrl.u32 %v15420_v62, 16  ;;  %v3965_v34 = vor.u32 %v3964_v19, %v3961_v2  ;;  %v15443_v2 = vld [vmem:[%s13852_s15 + $0xb0] sm:$0x1] }
 0x1f8   : > { %12597 = vmatprep.mubr.msk.bf16.mxu0 %vm728_vm3, %v11403_v30  ;;  %v3928_v30 = vrot.slane %v3927_v24, 4  ;;  %v3983_v61 = vshrl.u32 %v11380_v1, 16  ;;  %v3986_v58 = vshll.u32 %v11380_v1, 16  ;;  %v3975_v23 = vor.u32 %v3974_v33, %v15417_v0  ;;  %v11386_v33 = vld [vmem:[%s13852_s15 + $0xb4] sm:$0xf] }
 0x1f9   : > { %v3947_v25 = vsel %vm13885_vm2, %v3942_v9, %v15391_v8  ;;  %v3957_v40 = vsel %vm13885_vm2, %v3952_v48, %v3956_v44  ;;  %v3980_v39 = vrot.slane %v3978_v36, 5  ;;  %v15440_v52 = vrot.slane %v3992_v46, 5 }
 0x1fa   : > { %v3933_v24 = vsel %vm13885_vm2, %v3928_v30, %v3932_v11  ;;  %v3985_v10 = vrot.slane %v3983_v61, 4  ;;  %v3998_v1 = vrot.slane %v3996_v41, 4  ;;  %v4009_v29 = vrot.slane %v4007_v20, 4 }
 0x1fb   : > { %v4012_v11 = vrot.slane %v4010_v51, 5  ;;  %v11407_v30 = vcombine.low %v3923_v3, %v3933_v24  ;;  %v4018_v19 = vrot.slane %v4016_v15, 5  ;;  %v4022_v28 = vrot.slane %v4020_v63, 4 }
 0x1fc   : > { %v3966_v61 = vrot.slane %v3965_v34, 4  ;;  %v3976_v8 = vrot.slane %v3975_v23, 4  ;;  %v4002_v9 = vshll.u32 %v15186_v45, 16  ;;  %v11408_v48 = vcombine.low %v3947_v25, %v3957_v40 }
 0x1fd   : > { %v3999_v44 = vor.u32 %v3998_v1, %v15440_v52  ;;  %v4013_v36 = vor.u32 %v4012_v11, %v4009_v29  ;;  %v4026_v46 = vshll.u32 %v15443_v2, 16  ;;  %v4031_v41 = vshrl.u32 %v11386_v33, 16 }
 0x1fe   : > { %v4023_v20 = vor.u32 %v4022_v28, %v4018_v19  ;;  %v4034_v51 = vshll.u32 %v11386_v33, 16  ;;  %v4040_v3 = vshll.u32 %v15228_v13, 16  ;;  %v4044_v24 = vshrl.u32 %v15228_v13, 16 }
 0x1ff   : > { %12598 = vmatmul.mubr.msk.bf16.gmra.mrb[8].mxu0 %vm728_vm3, %v11404_v18  ;;  %v3988_v18 = vrot.slane %v3986_v58, 5  ;;  %v3971_v45 = vsel %vm13885_vm2, %v3966_v61, %v15417_v0  ;;  %v3981_v15 = vsel %vm13885_vm2, %v3976_v8, %v3980_v39  ;;  %v4004_v34 = vrot.slane %v4002_v9, 5 }
 0x200   : > { %12601 = vmatprep.mubr.msk.bf16.mxu0 %vm728_vm3, %v11405_v35  ;;  %v11406_v35 = vcombine.low %v3899_v12, %v3909_v14  ;;  %v11389_v12 = vld [vmem:[%s13852_s15 + $0xc0] sm:$0xf]  ;;  %v15451_v14 = vld [vmem:[%s13852_s15 + $0xc4] sm:$0xf]  ;;  %v4000_v40 = vrot.slane %v3999_v44, 4  ;;  %v4014_v13 = vrot.slane %v4013_v36, 4  ;;  %v11409_v28 = vcombine.low %v3971_v45, %v3981_v15 }
 0x201   : > { %v3989_v58 = vor.u32 %v3988_v18, %v3985_v10  ;;  %v4055_v23 = vshrl.u32 %v11389_v12, 16  ;;  %v4058_v10 = vshll.u32 %v11389_v12, 16  ;;  %v4064_v18 = vshll.u32 %v15451_v14, 16 }
 0x202   : > { %v4068_v25 = vshrl.u32 %v15451_v14, 16  ;;  %v4028_v1 = vrot.slane %v4026_v46, 5  ;;  %v4033_v29 = vrot.slane %v4031_v41, 4  ;;  %v4024_v11 = vrot.slane %v4023_v20, 4  ;;  %v15472_v46 = vld [vmem:[%s13852_s15 + $0xc8] sm:$0x1] }
 0x203   : > { %v3990_v63 = vrot.slane %v3989_v58, 4  ;;  %v4042_v0 = vrot.slane %v4040_v3, 5  ;;  %v4057_v39 = vrot.slane %v4055_v23, 4  ;;  %v4060_v33 = vrot.slane %v4058_v10, 5  ;;  %v11392_v58 = vld [vmem:[%s13852_s15 + $0xcc] sm:$0xf] }
 0x204   : > { %v4066_v61 = vrot.slane %v4064_v18, 5  ;;  %v4070_v8 = vrot.slane %v4068_v25, 4  ;;  %v4005_v44 = vsel %vm13885_vm2, %v4000_v40, %v4004_v34  ;;  %v4050_v36 = vshll.u32 %v15231_v43, 16 }
 0x205   : > { %v3995_v9 = vsel %vm13885_vm2, %v3990_v63, %v15440_v52  ;;  %v4019_v41 = vsel %vm13885_vm2, %v4014_v13, %v4018_v19  ;;  %v4029_v12 = vsel %vm13885_vm2, %v4024_v11, %v4028_v1  ;;  %v4079_v52 = vshrl.u32 %v11392_v58, 16 }
 0x206   : > { %v4082_v3 = vshll.u32 %v11392_v58, 16  ;;  %v4092_v43 = vshrl.u32 %v15279_v6, 16  ;;  %v4061_v45 = vor.u32 %v4060_v33, %v4057_v39  ;;  %v4071_v15 = vor.u32 %v4070_v8, %v4066_v61 }
 0x207   : > { %12602 = vmatmul.mubr.msk.bf16.gmra.mrb[12].mxu0 %vm728_vm3, %v11406_v35  ;;  %v4036_v35 = vrot.slane %v4034_v51, 5  ;;  %v11410_v63 = vcombine.low %v3995_v9, %v4005_v44  ;;  %v11411_v34 = vcombine.low %v4019_v41, %v4029_v12  ;;  %v4052_v10 = vrot.slane %v4050_v36, 5  ;;  %v11433_v9 = vld [vmem:[%s13852_s15 + $0x18] sm:$0xe] }
 0x208   : > { %12605 = vmatprep.mubr.msk.bf16.mxu0 %vm728_vm3, %v11407_v30  ;;  %v4046_v30 = vrot.slane %v4044_v24, 4  ;;  %v4088_v24 = vshll.u32 %v15279_v6, 16  ;;  %v4081_v18 = vrot.slane %v4079_v52, 4  ;;  %v4084_v25 = vrot.slane %v4082_v3, 5 }
 0x209   : > { %v4037_v20 = vor.u32 %v4036_v35, %v4033_v29  ;;  %v4094_v13 = vrot.slane %v4092_v43, 4  ;;  %v4062_v1 = vrot.slane %v4061_v45, 4  ;;  %v4072_v29 = vrot.slane %v4071_v15, 4  ;;  %v11434_v43 = vld [vmem:[%s13852_s15 + $0x24] sm:$0xe] }
 0x20a   : > { %v4047_v51 = vor.u32 %v4046_v30, %v4042_v0  ;;  %v4090_v40 = vrot.slane %v4088_v24, 5  ;;  %v4085_v30 = vor.u32 %v4084_v25, %v4081_v18  ;;  %v4098_v39 = vshll.u32 %v15282_v53, 16  ;;  %v11435_v45 = vld [vmem:[%s13852_s15 + $0x30] sm:$0xe] }
 0x20b   : > { %v4038_v19 = vrot.slane %v4037_v20, 4  ;;  %v4067_v33 = vsel %vm13885_vm2, %v4062_v1, %v4066_v61  ;;  %v4474_v58 = vrot.slane %v15123_v21, 5  ;;  %v11449_v20 = vrot.slane %v11433_v9, 9  ;;  %v11437_v1 = vld [vmem:[%s13852_s15 + $0x48] sm:$0xe] }
 0x20c   : > { %v4048_v23 = vrot.slane %v4047_v51, 4  ;;  %v4086_v36 = vrot.slane %v4085_v30, 4  ;;  %v4100_v12 = vrot.slane %v4098_v39, 5  ;;  %v4477_v53 = vrot.slane %v15157_v55, 5 }
 0x20d   : > { %v4043_v6 = vsel %vm13885_vm2, %v4038_v19, %v4042_v0  ;;  %v4476_v51 = vrot.slane %v4474_v58, 4  ;;  %v4481_v52 = vrot.slane %v15153_v4, 5  ;;  %v4475_v3 = vsel %vm14196_vm6, %v11449_v20, %v4474_v58 }
 0x20e   : > { %v4053_v35 = vsel %vm13885_vm2, %v4048_v23, %v4052_v10  ;;  %v4091_v61 = vsel %vm13885_vm2, %v4086_v36, %v4090_v40  ;;  %v4488_v55 = vrot.slane %v15180_v5, 5  ;;  %v4484_v19 = vrot.slane %v15175_v38, 5 }
 0x20f   : > { %12606 = vmatmul.mubr.msk.bf16.gmra.mrb[16].mxu0 %vm728_vm3, %v11408_v48  ;;  %v4074_v48 = vshll.u32 %v15472_v46, 16  ;;  %v11412_v0 = vcombine.low %v4043_v6, %v4053_v35  ;;  %v4478_v24 = vsel %vm14196_vm6, %v4476_v51, %v4477_v53  ;;  %v11451_v23 = vrot.slane %v11435_v45, 9  ;;  %v11441_v51 = vld [vmem:[%s13852_s15 + $0x78] sm:$0xe] }
 0x210   : > { %12609 = vmatprep.mubr.msk.bf16.mxu0 %vm728_vm3, %v11409_v28  ;;  %v4095_v28 = vor.u32 %v4094_v13, %v4090_v40  ;;  %v4490_v4 = vrot.slane %v4488_v55, 4  ;;  %v4491_v10 = vrot.slane %v15214_v37, 5  ;;  %v4495_v25 = vrot.slane %v15199_v31, 5  ;;  %v11436_v13 = vld [vmem:[%s13852_s15 + $0x3c] sm:$0xe] }
 0x211   : > { %v4076_v11 = vrot.slane %v4074_v48, 5  ;;  %v11469_v48 = vcombine.low %v4475_v3, %v4478_v24  ;;  %v4489_v40 = vsel %vm14196_vm6, %v11451_v23, %v4488_v55  ;;  %v4502_v37 = vrot.slane %v15245_v60, 5 }
 0x212   : > { %v4096_v41 = vrot.slane %v4095_v28, 4  ;;  %v4492_v38 = vsel %vm14196_vm6, %v4490_v4, %v4491_v10  ;;  %v11452_v6 = vrot.slane %v11436_v13, 9  ;;  %v4497_v35 = vrot.slane %v4495_v25, 4 }
 0x213   : > { %v4077_v8 = vsel %vm13885_vm2, %v4072_v29, %v4076_v11  ;;  %v11471_v11 = vcombine.low %v4489_v40, %v4492_v38  ;;  %v4498_v30 = vrot.slane %v15239_v56, 5  ;;  %v11453_v28 = vrot.slane %v11437_v1, 9  ;;  %v18054_v38 = vld [vmem:[#allocation7_spill] sm:$0xff] }
 0x214   : > { %v11413_v44 = vcombine.low %v4067_v33, %v4077_v8  ;;  %v4101_v21 = vsel %vm13885_vm2, %v4096_v41, %v4100_v12  ;;  %v4504_v39 = vrot.slane %v4502_v37, 4  ;;  %v4505_v31 = vrot.slane %v15294_v7, 5  ;;  %v11439_v7 = vld [vmem:[%s13852_s15 + $0x60] sm:$0xe] }
 0x215   : > { %v11414_v15 = vcombine.low %v4091_v61, %v4101_v21  ;;  %v4496_v33 = vsel %vm14196_vm6, %v11452_v6, %v4495_v25  ;;  %v4499_v60 = vsel %vm14196_vm6, %v4497_v35, %v4498_v30  ;;  %v4503_v8 = vsel %vm14196_vm6, %v11453_v28, %v4502_v37  ;;  %v18061_v35 = vld [vmem:[#allocation12_spill] sm:$0xff] }
 0x216   : > { %v4506_v56 = vsel %vm14196_vm6, %v4504_v39, %v4505_v31  ;;  %v4516_v58 = vrot.slane %v15306_v50, 5  ;;  %v11472_v9 = vcombine.low %v4496_v33, %v4499_v60  ;;  %v4519_v41 = vrot.slane %v15342_v54, 5  ;;  %v13602_v39 = vld [vmem:[%s17881_s3 + $0x10] sm:$0xff]  }
 0x217   : > { %12610 = vmatmul.mubr.msk.bf16.gmra.mrb[20].mxu0 %vm728_vm3, %v11410_v63  ;;  %v11450_v63 = vrot.slane %v11434_v43, 9  ;;  %v4530_v50 = vrot.slane %v15355_v57, 5  ;;  %v11457_v61 = vrot.slane %v11441_v51, 9  ;;  %v18050_v54 = vcombine.low %v15100_v32, %v15105_v17  ;;  %v11443_v43 = vld [vmem:[%s13852_s15 + $0x90] sm:$0xe]  ;;  %12657 = vmatprep.subr.bf16.mxu1 %v13602_v39 }
 0x218   : > { %12613 = vmatprep.mubr.msk.bf16.mxu0 %vm728_vm3, %v11411_v34  ;;  %v4483_v34 = vrot.slane %v4481_v52, 4  ;;  %v4518_v36 = vrot.slane %v4516_v58, 4  ;;  %v4544_v24 = vrot.slane %v15394_v22, 5  ;;  %v11459_v45 = vrot.slane %v11443_v43, 9  ;;  %12658 = vmatpush3.bf16.msra.mxu1 %v13602_v39 }
 0x219   : > { %v4482_v5 = vsel %vm14196_vm6, %v11450_v63, %v4481_v52  ;;  %v4532_v21 = vrot.slane %v4530_v50, 4  ;;  %v4533_v52 = vrot.slane %v15376_v16, 5  ;;  %v4531_v3 = vsel %vm14196_vm6, %v11457_v61, %v4530_v50  ;;  %v11445_v63 = vld [vmem:[%s13852_s15 + $0xa8] sm:$0xe] }
 0x21a   : > { %v4485_v18 = vsel %vm14196_vm6, %v4483_v34, %v4484_v19  ;;  %v4520_v20 = vsel %vm14196_vm6, %v4518_v36, %v4519_v41  ;;  %v4546_v16 = vrot.slane %v4544_v24, 4  ;;  %v18051_v32 = vcombine.low %v15127_v49, %v15133_v59  ;;  %v18052_v49 = vld [vmem:[#allocation6_spill] sm:$0xff] }
 0x21b   : > { %v11470_v29 = vcombine.low %v4482_v5, %v4485_v18  ;;  %v4534_v57 = vsel %vm14196_vm6, %v4532_v21, %v4533_v52  ;;  %v4545_v17 = vsel %vm14196_vm6, %v11459_v45, %v4544_v24  ;;  %v11461_v19 = vrot.slane %v11445_v63, 9  ;;  %v11447_v5 = vld [vmem:[%s13852_s15 + $0xc0] sm:$0xe] }
 0x21c   : > { %v11477_v55 = vcombine.low %v4531_v3, %v4534_v57  ;;  %v4561_v23 = vrot.slane %v15443_v2, 5  ;;  %v18053_v59 = vcombine.low %v15161_v42, %v18052_v49  ;;  %v11463_v25 = vrot.slane %v11447_v5, 9  ;;  %v18055_v42 = vld [vmem:[#allocation8_spill] sm:$0xff]  ;;  %v15673_v3 = vld [vmem:[%s17881_s3] sm:$0xff]  }
 0x21d   : > { %v4575_v2 = vrot.slane %v15472_v46, 5  ;;  %v18056_v13 = vcombine.low %v18054_v38, %v18055_v42  ;;  %v18060_v46 = vld [vmem:[#allocation11_spill] sm:$0xff]  ;;  %v13754_v28 = vmov 0   ;;  %v15679_v57 = vld [vmem:[%s17880_s2] ss:$0 sm:$0xff] }
 0x21e   : > { %v18062_v30 = vcombine.low %v18060_v46, %v18061_v35  ;;  %4969 = vst.msk [vmem:[#allocation2 + $0x18] sm:$0xf] %vm4961_vm7, %v13754_v28  ;;  %4962 = vst.msk [vmem:[#allocation2] sm:$0xf] %vm4961_vm7, %v13754_v28 }
 0x21f   : > { %12614 = vmatmul.mubr.msk.bf16.gmra.mrb[24].mxu0 %vm728_vm3, %v11412_v0  ;;  %v11473_v0 = vcombine.low %v4503_v8, %v4506_v56  ;;  %4963 = vst.msk [vmem:[#allocation2 + $0x4] sm:$0xf] %vm4961_vm7, %v13754_v28  ;;  %4966 = vst.msk [vmem:[#allocation2 + $0xc] sm:$0xf] %vm4961_vm7, %v13754_v28 }
 0x220   : > { %12617 = vmatprep.mubr.msk.bf16.mxu0 %vm728_vm3, %v11413_v44  ;;  %v11455_v44 = vrot.slane %v11439_v7, 9  ;;  %4967 = vst.msk [vmem:[#allocation2 + $0x10] sm:$0xf] %vm4961_vm7, %v13754_v28  ;;  %4970 = vst.msk [vmem:[#allocation2 + $0x1c] sm:$0xf] %vm4961_vm7, %v13754_v28  ;;  %v13603_v7 = vld [vmem:[%s17881_s3 + $0x18] sm:$0xff]  }
 0x221   : > { %4972 = vst.msk [vmem:[#allocation2 + $0x24] sm:$0xf] %vm4961_vm7, %v13754_v28  ;;  %4973 = vst.msk [vmem:[#allocation2 + $0x28] sm:$0xf] %vm4961_vm7, %v13754_v28  ;;  %12659 = vmatprep.subr.bf16.mxu1 %v13603_v7 }
 0x222   : > { %v4517_v12 = vsel %vm14196_vm6, %v11455_v44, %v4516_v58  ;;  %4975 = vst.msk [vmem:[#allocation2 + $0x30] sm:$0xf] %vm4961_vm7, %v13754_v28  ;;  %4976 = vst.msk [vmem:[#allocation2 + $0x34] sm:$0xf] %vm4961_vm7, %v13754_v28  ;;  %12660 = vmatpush3.bf16.msra.mxu1 %v13603_v7 }
 0x223   : > { %v11475_v53 = vcombine.low %v4517_v12, %v4520_v20  ;;  %4978 = vst.msk [vmem:[#allocation2 + $0x3c] sm:$0xf] %vm4961_vm7, %v13754_v28  ;;  %4979 = vst.msk [vmem:[#allocation2 + $0x40] sm:$0xf] %vm4961_vm7, %v13754_v28  ;;  %12693 = vmatprep.subr.bf16.mxu1 %v15673_v3 }
 0x224   : > { %4981 = vst.msk [vmem:[#allocation2 + $0x48] sm:$0xf] %vm4961_vm7, %v13754_v28  ;;  %4982 = vst.msk [vmem:[#allocation2 + $0x4c] sm:$0xf] %vm4961_vm7, %v13754_v28 }
 0x225   : > { %4984 = vst.msk [vmem:[#allocation2 + $0x54] sm:$0xf] %vm4961_vm7, %v13754_v28  ;;  %4985 = vst.msk [vmem:[#allocation2 + $0x58] sm:$0xf] %vm4961_vm7, %v13754_v28  ;;  %v5554_v31 = vld [vmem:[#allocation2] sm:$0xf] }
 0x226   : > { %4987 = vst.msk [vmem:[#allocation2 + $0x60] sm:$0xf] %vm4961_vm7, %v13754_v28  ;;  %4988 = vst.msk [vmem:[#allocation2 + $0x64] sm:$0xf] %vm4961_vm7, %v13754_v28  ;;  %v5555_v33 = vld [vmem:[#allocation2 + $0x4] sm:$0xf] }
 0x227   : > { %12618 = vmatmul.mubr.msk.bf16.gmra.mrb[28].mxu0 %vm728_vm3, %v11414_v15  ;;  %v4547_v15 = vrot.slane %v15411_v26, 5  ;;  %4990 = vst.msk [vmem:[#allocation2 + $0x6c] sm:$0xf] %vm4961_vm7, %v13754_v28  ;;  %4991 = vst.msk [vmem:[#allocation2 + $0x70] sm:$0xf] %vm4961_vm7, %v13754_v28  ;;  %v5607_v60 = vshrl.u32 %v5554_v31, 16 }
 0x228   : > { %12625 = vmatprep.mubr.msk.bf16.mxu0 %vm728_vm3, %v11469_v48  ;;  %v4558_v48 = vrot.slane %v15420_v62, 5  ;;  %v4572_v62 = vrot.slane %v15451_v14, 5  ;;  %4993 = vst.msk [vmem:[#allocation2 + $0x78] sm:$0xf] %vm4961_vm7, %v13754_v28  ;;  %4994 = vst.msk [vmem:[#allocation2 + $0x7c] sm:$0xf] %vm4961_vm7, %v13754_v28 }
 0x229   : > { %v4548_v22 = vsel %vm14196_vm6, %v4546_v16, %v4547_v15  ;;  %4996 = vst.msk [vmem:[#allocation2 + $0x84] sm:$0xf] %vm4961_vm7, %v13754_v28  ;;  %4997 = vst.msk [vmem:[#allocation2 + $0x88] sm:$0xf] %vm4961_vm7, %v13754_v28  ;;  %v5610_v8 = vshll.u32 %v5554_v31, 16  ;;  %v5616_v56 = vshll.u32 %v5555_v33, 16 }
 0x22a   : > { %v11479_v34 = vcombine.low %v4545_v17, %v4548_v22  ;;  %v4560_v26 = vrot.slane %v4558_v48, 4  ;;  %v4559_v4 = vsel %vm14196_vm6, %v11461_v19, %v4558_v48  ;;  %v4574_v40 = vrot.slane %v4572_v62, 4  ;;  %4999 = vst.msk [vmem:[#allocation2 + $0x90] sm:$0xf] %vm4961_vm7, %v13754_v28  ;;  %5000 = vst.msk [vmem:[#allocation2 + $0x94] sm:$0xf] %vm4961_vm7, %v13754_v28 }
 0x22b   : > { %v4573_v37 = vsel %vm14196_vm6, %v11463_v25, %v4572_v62  ;;  %5002 = vst.msk [vmem:[#allocation2 + $0x9c] sm:$0xf] %vm4961_vm7, %v13754_v28  ;;  %5003 = vst.msk [vmem:[#allocation2 + $0xa0] sm:$0xf] %vm4961_vm7, %v13754_v28  ;;  %v5620_v58 = vshrl.u32 %v5555_v33, 16  ;;  %v5618_v44 = vrot.slane %v5616_v56, 5 }
 0x22c   : > { %v4562_v10 = vsel %vm14196_vm6, %v4560_v26, %v4561_v23  ;;  %v4576_v1 = vsel %vm14196_vm6, %v4574_v40, %v4575_v2  ;;  %5005 = vst.msk [vmem:[#allocation2 + $0xa8] sm:$0xf] %vm4961_vm7, %v13754_v28  ;;  %5006 = vst.msk [vmem:[#allocation2 + $0xac] sm:$0xf] %vm4961_vm7, %v13754_v28  ;;  %v5440_v35 = vld [vmem:[#allocation2 + $0xc] sm:$0xf] }
 0x22d   : > { %v11481_v18 = vcombine.low %v4559_v4, %v4562_v10  ;;  %v11483_v14 = vcombine.low %v4573_v37, %v4576_v1  ;;  %5008 = vst.msk [vmem:[#allocation2 + $0xb4] sm:$0xf] %vm4961_vm7, %v13754_v28  ;;  %5009 = vst.msk [vmem:[#allocation2 + $0xb8] sm:$0xf] %vm4961_vm7, %v13754_v28  ;;  %v5622_v41 = vrot.slane %v5620_v58, 4 }
 0x22e   : > { %5011 = vst.msk [vmem:[#allocation2 + $0xc0] sm:$0xf] %vm4961_vm7, %v13754_v28  ;;  %5012 = vst.msk [vmem:[#allocation2 + $0xc4] sm:$0xf] %vm4961_vm7, %v13754_v28 }
 0x22f   : > { %12626 = vmatmul.mubr.msk.bf16.vlgmr.msra.gmra.mrb[0].mxu0 %vm728_vm3, %v11470_v29  ;;  %v18057_v29 = vld [vmem:[#allocation9_spill] sm:$0xff]  ;;  %5014 = vst.msk [vmem:[#allocation2 + $0xcc] sm:$0xf] %vm4961_vm7, %v13754_v28  ;;  %5015 = vst.msk [vmem:[#allocation2 + $0xd0] sm:$0xf] %vm4961_vm7, %v13754_v28  ;;  %v5623_v50 = vor.u32 %v5622_v41, %v5618_v44 }
 0x230   : > { %12629 = vmatprep.mubr.msk.bf16.mxu0 %vm728_vm3, %v11471_v11  ;;  %v18058_v11 = vld [vmem:[#allocation10_spill] sm:$0xff]  ;;  %4971 = vst.msk [vmem:[#allocation2 + $0x20] sm:$0x1] %vm4964_vm8, %v13754_v28  ;;  %4965 = vst.msk [vmem:[#allocation2 + $0x8] sm:$0x1] %vm4964_vm8, %v13754_v28 }
 0x231   : > { %v18059_v6 = vcombine.low %v18057_v29, %v18058_v11  ;;  %4968 = vst.msk [vmem:[#allocation2 + $0x14] sm:$0x1] %vm4964_vm8, %v13754_v28  ;;  %4974 = vst.msk [vmem:[#allocation2 + $0x2c] sm:$0x1] %vm4964_vm8, %v13754_v28  ;;  %v5624_v61 = vrot.slane %v5623_v50, 4 }
 0x232   : > { %4977 = vst.msk [vmem:[#allocation2 + $0x38] sm:$0x1] %vm4964_vm8, %v13754_v28  ;;  %4980 = vst.msk [vmem:[#allocation2 + $0x44] sm:$0x1] %vm4964_vm8, %v13754_v28 }
 0x233   : > { %4983 = vst.msk [vmem:[#allocation2 + $0x50] sm:$0x1] %vm4964_vm8, %v13754_v28  ;;  %4986 = vst.msk [vmem:[#allocation2 + $0x5c] sm:$0x1] %vm4964_vm8, %v13754_v28 }
 0x234   : > { %4989 = vst.msk [vmem:[#allocation2 + $0x68] sm:$0x1] %vm4964_vm8, %v13754_v28  ;;  %4992 = vst.msk [vmem:[#allocation2 + $0x74] sm:$0x1] %vm4964_vm8, %v13754_v28 }
 0x235   : > { %4995 = vst.msk [vmem:[#allocation2 + $0x80] sm:$0x1] %vm4964_vm8, %v13754_v28  ;;  %4998 = vst.msk [vmem:[#allocation2 + $0x8c] sm:$0x1] %vm4964_vm8, %v13754_v28 }
 0x236   : > { %5001 = vst.msk [vmem:[#allocation2 + $0x98] sm:$0x1] %vm4964_vm8, %v13754_v28  ;;  %5004 = vst.msk [vmem:[#allocation2 + $0xa4] sm:$0x1] %vm4964_vm8, %v13754_v28 }
 0x237   : > { %12630 = vmatmul.mubr.msk.bf16.gmra.mrb[4].mxu0 %vm728_vm3, %v11472_v9  ;;  %5007 = vst.msk [vmem:[#allocation2 + $0xb0] sm:$0x1] %vm4964_vm8, %v13754_v28  ;;  %5010 = vst.msk [vmem:[#allocation2 + $0xbc] sm:$0x1] %vm4964_vm8, %v13754_v28  ;;  %v5609_v9 = vrot.slane %v5607_v60, 4 }
 0x238   : > { %12633 = vmatprep.mubr.msk.bf16.mxu0 %vm728_vm3, %v11473_v0  ;;  %5013 = vst.msk [vmem:[#allocation2 + $0xc8] sm:$0x1] %vm4964_vm8, %v13754_v28  ;;  %5016 = vst.msk [vmem:[#allocation2 + $0xd4] sm:$0x1] %vm4964_vm8, %v13754_v28  ;;  %v5612_v0 = vrot.slane %v5610_v8, 5 }
 0x239   : > { %v5590_v36 = vld [vmem:[#allocation2 + $0x8] sm:$0x1]  ;;  %v5453_v56 = vld [vmem:[#allocation2 + $0x20] sm:$0x1] }
 0x23a   : > { %v5613_v12 = vor.u32 %v5612_v0, %v5609_v9  ;;  %v5626_v20 = vshll.u32 %v5590_v36, 16  ;;  %v5446_v36 = vld [vmem:[#allocation2 + $0x14] sm:$0x1] }
 0x23c   : > { %v5614_v51 = vrot.slane %v5613_v12, 4 }
 0x23e   : > { %v5619_v21 = vsel %vm13885_vm2, %v5614_v51, %v5618_v44 }
 0x23f   : > { %12634 = vmatmul.mubr.msk.bf16.gmra.mrb[8].mxu0 %vm728_vm3, %v18050_v54 }
 0x240   : > { %12637 = vmatprep.mubr.msk.bf16.mxu0 %vm728_vm3, %v11475_v53  ;;  %v5628_v53 = vrot.slane %v5626_v20, 5 }
 0x242   : > { %v5629_v52 = vsel %vm13885_vm2, %v5624_v61, %v5628_v53 }
 0x243   : > { %v11540_v54 = vcombine.low %v5619_v21, %v5629_v52 }
 0x245   : > { %12661 = vmatprep.mubr.msk.bf16.mxu1 %vm728_vm3, %v11540_v54 }
 0x247   : > { %12638 = vmatmul.mubr.msk.bf16.gmra.mrb[12].mxu0 %vm728_vm3, %v18051_v32 }
 0x248   : > { %12641 = vmatprep.mubr.msk.bf16.mxu0 %vm728_vm3, %v11477_v55 }
 0x24f   : > { %12642 = vmatmul.mubr.msk.bf16.gmra.mrb[16].mxu0 %vm728_vm3, %v18053_v59 }
 0x250   : > { %12645 = vmatprep.mubr.msk.bf16.mxu0 %vm728_vm3, %v11479_v34 }
 0x257   : > { %12646 = vmatmul.mubr.msk.bf16.gmra.mrb[20].mxu0 %vm728_vm3, %v18056_v13  ;;  %v5449_v13 = vld [vmem:[#allocation2 + $0x18] sm:$0xf] }
 0x258   : > { %12649 = vmatprep.mubr.msk.bf16.mxu0 %vm728_vm3, %v11481_v18 }
 0x25f   : > { %12650 = vmatmul.mubr.msk.bf16.gmra.mrb[24].mxu0 %vm728_vm3, %v18059_v6 }
 0x260   : > { %12653 = vmatprep.mubr.msk.bf16.mxu0 %vm728_vm3, %v11483_v14 }
 0x267   : > { %12654 = vmatmul.mubr.msk.bf16.gmra.mrb[28].mxu0 %vm728_vm3, %v18062_v30 }
 0x302   : > { %v12627_v24 = vpop.f32.mrb[0].mxu0 }
 0x303   : > { %v4899_v43 = vadd.f32 %v12627_v24, %v15679_v57  ;;  %v4731_v55 = vpop.f32.mrb[1].mxu0 }
 0x304   : > { %v4897_v45 = vadd.f32 %v15679_v57, %v4731_v55  ;;  %v12628_v16 = vpop.f32.mrb[2].mxu0 }
 0x305   : > { %v4931_v15 = vmax.f32 %v4899_v43, 0.0  ;;  %v4900_v32 = vadd.f32 %v12628_v16, %v15679_v57  ;;  %v4734_v17 = vpop.f32.mrb[3].mxu0 }
 0x306   : > { %v4929_v22 = vmax.f32 %v4897_v45, 0.0  ;;  %v4898_v48 = vadd.f32 %v15679_v57, %v4734_v17 }
 0x307   : > { %v11978_v63 = vpack.c.bf16 %v4931_v15, %v4931_v15  ;;  %v4932_v34 = vmax.f32 %v4900_v32, 0.0 }
 0x308   : > { %v11976_v19 = vpack.c.bf16 %v4929_v22, %v4929_v22  ;;  %v4930_v26 = vmax.f32 %v4898_v48, 0.0  ;;  %v5463_v22 = vld [vmem:[#allocation2 + $0x30] sm:$0xf] }
 0x309   : > { %v5134_v23 = vshrl.u32 %v11978_v63, 16  ;;  %v11979_v49 = vpack.c.bf16 %v4932_v34, %v4932_v34  ;;  %v5137_v59 = vshll.u32 %v11978_v63, 16 }
 0x30a   : > { %v5117_v4 = vshrl.u32 %v11976_v19, 16  ;;  %v5120_v10 = vshll.u32 %v11976_v19, 16  ;;  %v11977_v62 = vpack.c.bf16 %v4930_v26, %v4930_v26  ;;  %v12631_v5 = vpop.f32.mrb[4].mxu0 }
 0x30b   : > { %v5136_v18 = vrot.slane %v5134_v23, 7  ;;  %v5142_v25 = vshrl.u32 %v11979_v49, 16  ;;  %v5145_v40 = vshll.u32 %v11979_v49, 16  ;;  %v4903_v2 = vadd.f32 %v12631_v5, %v15679_v57  ;;  %v4747_v38 = vpop.f32.mrb[5].mxu0  ;;  %v5456_v49 = vld [vmem:[#allocation2 + $0x24] sm:$0xf] }
 0x30c   : > { %v5119_v37 = vrot.slane %v5117_v4, 7  ;;  %v5125_v1 = vshrl.u32 %v11977_v62, 16  ;;  %v5128_v14 = vshll.u32 %v11977_v62, 16  ;;  %v4901_v29 = vadd.f32 %v15679_v57, %v4747_v38  ;;  %v12632_v11 = vpop.f32.mrb[6].mxu0 }
 0x30d   : > { %v5139_v6 = vor.u32 %v5137_v59, %v5136_v18  ;;  %v5140_v46 = vrot.slane %v5136_v18, 4  ;;  %v5144_v28 = vrot.slane %v5142_v25, 7  ;;  %v4935_v39 = vmax.f32 %v4903_v2, 0.0  ;;  %v4750_v31 = vpop.f32.mrb[7].mxu0 }
 0x30e   : > { %v5122_v33 = vor.u32 %v5120_v10, %v5119_v37  ;;  %v5123_v60 = vrot.slane %v5119_v37, 4  ;;  %v5127_v58 = vrot.slane %v5125_v1, 7  ;;  %v4933_v7 = vmax.f32 %v4901_v29, 0.0 }
 0x30f   : > { %v5450_v9 = vsel %vm15688_vm12, %v5139_v6, %v5449_v13  ;;  %v5147_v0 = vor.u32 %v5145_v40, %v5144_v28  ;;  %v5149_v44 = vrot.slane %v5144_v28, 4  ;;  %v11982_v41 = vpack.c.bf16 %v4935_v39, %v4935_v39  ;;  %v5467_v28 = vld [vmem:[#allocation2 + $0x38] sm:$0x1]  ;;  %v5460_v39 = vld [vmem:[#allocation2 + $0x2c] sm:$0x1] }
 0x310   : > { %5451 = vst [vmem:[#allocation2 + $0x18] sm:$0xf] %v5450_v9  ;;  %v5441_v12 = vsel %vm15688_vm12, %v5122_v33, %v5440_v35  ;;  %v5130_v20 = vor.u32 %v5128_v14, %v5127_v58  ;;  %v5132_v50 = vrot.slane %v5127_v58, 4  ;;  %v11980_v51 = vpack.c.bf16 %v4933_v7, %v4933_v7 }
 0x311   : > { %5442 = vst [vmem:[#allocation2 + $0xc] sm:$0xf] %v5441_v12  ;;  %v5148_v53 = vsel %vm15695_vm13, %v5140_v46, %v5147_v0  ;;  %v5454_v61 = vsel %vm15701_vm14, %v5149_v44, %v5453_v56  ;;  %v5168_v21 = vshrl.u32 %v11982_v41, 16  ;;  %v5171_v24 = vshll.u32 %v11982_v41, 16  ;;  %v5477_v12 = vld [vmem:[#allocation2 + $0x48] sm:$0xf] }
 0x312   : > { %5452 = vst.msk [vmem:[#allocation2 + $0x1c] sm:$0xf] %vm4961_vm7, %v5148_v53  ;;  %5455 = vst [vmem:[#allocation2 + $0x20] sm:$0x1] %v5454_v61  ;;  %v5131_v52 = vsel %vm15695_vm13, %v5123_v60, %v5130_v20  ;;  %v5447_v54 = vsel %vm15701_vm14, %v5132_v50, %v5446_v36  ;;  %v5151_v43 = vshrl.u32 %v11980_v51, 16  ;;  %v12635_v55 = vpop.f32.mrb[8].mxu0  ;;  %v4904_v16 = vadd.f32 %v12632_v11, %v15679_v57 }
 0x313   : > { %5443 = vst.msk [vmem:[#allocation2 + $0x10] sm:$0xf] %vm4961_vm7, %v5131_v52  ;;  %5448 = vst [vmem:[#allocation2 + $0x14] sm:$0x1] %v5447_v54  ;;  %v15719_v45 = vrot.slane %v5168_v21, 7  ;;  %v4902_v15 = vadd.f32 %v15679_v57, %v4750_v31  ;;  %v4907_v32 = vadd.f32 %v12635_v55, %v15679_v57  ;;  %v4763_v17 = vpop.f32.mrb[9].mxu0 }
 0x314   : > { %v5153_v48 = vrot.slane %v5151_v43, 7  ;;  %v5154_v63 = vshll.u32 %v11980_v51, 16  ;;  %v4905_v34 = vadd.f32 %v15679_v57, %v4763_v17  ;;  %v12636_v19 = vpop.f32.mrb[10].mxu0  ;;  %v4936_v59 = vmax.f32 %v4904_v16, 0.0 }
 0x315   : > { %v5173_v26 = vor.u32 %v5171_v24, %v15719_v45  ;;  %v5174_v23 = vrot.slane %v15719_v45, 4  ;;  %v4934_v4 = vmax.f32 %v4902_v15, 0.0  ;;  %v4766_v10 = vpop.f32.mrb[11].mxu0  ;;  %v4939_v18 = vmax.f32 %v4907_v32, 0.0  ;;  %v5470_v24 = vld [vmem:[#allocation2 + $0x3c] sm:$0xf] }
 0x316   : > { %v5156_v62 = vor.u32 %v5154_v63, %v5153_v48  ;;  %v5157_v5 = vrot.slane %v5153_v48, 4  ;;  %v4937_v25 = vmax.f32 %v4905_v34, 0.0  ;;  %v11983_v2 = vpack.c.bf16 %v4936_v59, %v4936_v59 }
 0x317   : > { %v5464_v40 = vsel %vm15688_vm12, %v5173_v26, %v5463_v22  ;;  %v11981_v38 = vpack.c.bf16 %v4934_v4, %v4934_v4  ;;  %v4908_v13 = vadd.f32 %v12636_v19, %v15679_v57  ;;  %v11986_v1 = vpack.c.bf16 %v4939_v18, %v4939_v18 }
 0x318   : > { %5465 = vst [vmem:[#allocation2 + $0x30] sm:$0xf] %v5464_v40  ;;  %v5457_v37 = vsel %vm15688_vm12, %v5156_v62, %v5456_v49  ;;  %v11984_v14 = vpack.c.bf16 %v4937_v25, %v4937_v25  ;;  %v4906_v29 = vadd.f32 %v15679_v57, %v4766_v10  ;;  %v5176_v11 = vshrl.u32 %v11983_v2, 16  ;;  %v5481_v40 = vld [vmem:[#allocation2 + $0x50] sm:$0x1] }
 0x319   : > { %5458 = vst [vmem:[#allocation2 + $0x24] sm:$0xf] %v5457_v37  ;;  %v5179_v6 = vshll.u32 %v11983_v2, 16  ;;  %v5159_v46 = vshrl.u32 %v11981_v38, 16  ;;  %v5162_v35 = vshll.u32 %v11981_v38, 16  ;;  %v5202_v31 = vshrl.u32 %v11986_v1, 16 }
 0x31a   : > { %v5205_v33 = vshll.u32 %v11986_v1, 16  ;;  %v5185_v60 = vshrl.u32 %v11984_v14, 16  ;;  %v5188_v56 = vshll.u32 %v11984_v14, 16  ;;  %v12639_v58 = vpop.f32.mrb[12].mxu0  ;;  %v5178_v7 = vrot.slane %v5176_v11, 7 }
 0x31b   : > { %v5161_v9 = vrot.slane %v5159_v46, 7  ;;  %v4940_v0 = vmax.f32 %v4908_v13, 0.0  ;;  %v4938_v44 = vmax.f32 %v4906_v29, 0.0  ;;  %v4779_v36 = vpop.f32.mrb[13].mxu0  ;;  %v15733_v41 = vrot.slane %v5202_v31, 7 }
 0x31c   : > { %v15735_v20 = vrot.slane %v5185_v60, 7  ;;  %v4911_v50 = vadd.f32 %v12639_v58, %v15679_v57  ;;  %v4909_v51 = vadd.f32 %v15679_v57, %v4779_v36  ;;  %v12640_v53 = vpop.f32.mrb[14].mxu0  ;;  %v5181_v61 = vor.u32 %v5179_v6, %v5178_v7  ;;  %v5474_v11 = vld [vmem:[#allocation2 + $0x44] sm:$0x1] }
 0x31d   : > { %v5183_v21 = vrot.slane %v5178_v7, 4  ;;  %v5164_v52 = vor.u32 %v5162_v35, %v5161_v9  ;;  %v5166_v54 = vrot.slane %v5161_v9, 4  ;;  %v4782_v43 = vpop.f32.mrb[15].mxu0  ;;  %v5207_v55 = vor.u32 %v5205_v33, %v15733_v41 }
 0x31e   : > { %v5208_v45 = vrot.slane %v15733_v41, 4  ;;  %v5190_v16 = vor.u32 %v5188_v56, %v15735_v20  ;;  %v5191_v15 = vrot.slane %v15735_v20, 4  ;;  %v5182_v32 = vsel %vm15695_vm13, %v5174_v23, %v5181_v61  ;;  %v5484_v61 = vld [vmem:[#allocation2 + $0x54] sm:$0xf] }
 0x31f   : > { %v5468_v17 = vsel %vm15701_vm14, %v5183_v21, %v5467_v28  ;;  %v5165_v22 = vsel %vm15695_vm13, %v5157_v5, %v5164_v52  ;;  %v5461_v48 = vsel %vm15701_vm14, %v5166_v54, %v5460_v39  ;;  %5466 = vst.msk [vmem:[#allocation2 + $0x34] sm:$0xf] %vm4961_vm7, %v5182_v32  ;;  %v5478_v63 = vsel %vm15688_vm12, %v5207_v55, %v5477_v12 }
 0x320   : > { %5469 = vst [vmem:[#allocation2 + $0x38] sm:$0x1] %v5468_v17  ;;  %5459 = vst.msk [vmem:[#allocation2 + $0x28] sm:$0xf] %vm4961_vm7, %v5165_v22  ;;  %v5471_v34 = vsel %vm15688_vm12, %v5190_v16, %v5470_v24  ;;  %v11987_v19 = vpack.c.bf16 %v4940_v0, %v4940_v0  ;;  %v11985_v26 = vpack.c.bf16 %v4938_v44, %v4938_v44  ;;  %v4943_v23 = vmax.f32 %v4911_v50, 0.0 }
 0x321   : > { %5462 = vst [vmem:[#allocation2 + $0x2c] sm:$0x1] %v5461_v48  ;;  %5479 = vst [vmem:[#allocation2 + $0x48] sm:$0xf] %v5478_v63  ;;  %v4941_v49 = vmax.f32 %v4909_v51, 0.0  ;;  %v4912_v59 = vadd.f32 %v12640_v53, %v15679_v57  ;;  %v4910_v4 = vadd.f32 %v15679_v57, %v4782_v43 }
 0x322   : > { %5472 = vst [vmem:[#allocation2 + $0x3c] sm:$0xf] %v5471_v34  ;;  %v5210_v10 = vshrl.u32 %v11987_v19, 16  ;;  %v5213_v62 = vshll.u32 %v11987_v19, 16  ;;  %v5193_v5 = vshrl.u32 %v11985_v26, 16  ;;  %v5196_v18 = vshll.u32 %v11985_v26, 16 }
 0x323   : > { %v12643_v25 = vpop.f32.mrb[16].mxu0  ;;  %v11990_v2 = vpack.c.bf16 %v4943_v23, %v4943_v23  ;;  %v11988_v38 = vpack.c.bf16 %v4941_v49, %v4941_v49  ;;  %v4944_v13 = vmax.f32 %v4912_v59, 0.0  ;;  %v4942_v37 = vmax.f32 %v4910_v4, 0.0  ;;  %v5491_v53 = vld [vmem:[#allocation2 + $0x60] sm:$0xf] }
 0x324   : > { %v4795_v1 = vpop.f32.mrb[17].mxu0  ;;  %v5212_v14 = vrot.slane %v5210_v10, 7  ;;  %v5195_v29 = vrot.slane %v5193_v5, 7  ;;  %v4915_v6 = vadd.f32 %v12643_v25, %v15679_v57  ;;  %v5556_v43 = vld [vmem:[#allocation2 + $0xc] sm:$0xf] }
 0x325   : > { %v4913_v46 = vadd.f32 %v15679_v57, %v4795_v1  ;;  %v12644_v35 = vpop.f32.mrb[18].mxu0  ;;  %v5236_v28 = vshrl.u32 %v11990_v2, 16  ;;  %v5239_v39 = vshll.u32 %v11990_v2, 16  ;;  %v5219_v31 = vshrl.u32 %v11988_v38, 16  ;;  %v5495_v48 = vld [vmem:[#allocation2 + $0x68] sm:$0x1] }
 0x326   : > { %v5222_v33 = vshll.u32 %v11988_v38, 16  ;;  %v4798_v60 = vpop.f32.mrb[19].mxu0  ;;  %v5215_v56 = vor.u32 %v5213_v62, %v5212_v14  ;;  %v5217_v58 = vrot.slane %v5212_v14, 4  ;;  %v5198_v7 = vor.u32 %v5196_v18, %v5195_v29  ;;  %v5488_v63 = vld [vmem:[#allocation2 + $0x5c] sm:$0x1] }
 0x327   : > { %v5200_v9 = vrot.slane %v5195_v29, 4  ;;  %v5238_v0 = vrot.slane %v5236_v28, 7  ;;  %v5221_v44 = vrot.slane %v5219_v31, 7  ;;  %v11991_v36 = vpack.c.bf16 %v4944_v13, %v4944_v13  ;;  %v5557_v18 = vld [vmem:[#allocation2 + $0x10] sm:$0xf] }
 0x328   : > { %v11989_v41 = vpack.c.bf16 %v4942_v37, %v4942_v37  ;;  %v5216_v12 = vsel %vm15695_vm13, %v5208_v45, %v5215_v56  ;;  %v5482_v20 = vsel %vm15701_vm14, %v5217_v58, %v5481_v40  ;;  %v5199_v50 = vsel %vm15695_vm13, %v5191_v15, %v5198_v7  ;;  %v5505_v31 = vld [vmem:[#allocation2 + $0x78] sm:$0xf] }
 0x329   : > { %v5475_v51 = vsel %vm15701_vm14, %v5200_v9, %v5474_v11  ;;  %5480 = vst.msk [vmem:[#allocation2 + $0x4c] sm:$0xf] %vm4961_vm7, %v5216_v12  ;;  %5483 = vst [vmem:[#allocation2 + $0x50] sm:$0x1] %v5482_v20  ;;  %v5241_v21 = vor.u32 %v5239_v39, %v5238_v0  ;;  %v5242_v52 = vrot.slane %v5238_v0, 4  ;;  %v5224_v54 = vor.u32 %v5222_v33, %v5221_v44 }
 0x32a   : > { %5473 = vst.msk [vmem:[#allocation2 + $0x40] sm:$0xf] %vm4961_vm7, %v5199_v50  ;;  %5476 = vst [vmem:[#allocation2 + $0x44] sm:$0x1] %v5475_v51  ;;  %v5225_v24 = vrot.slane %v5221_v44, 4  ;;  %v5244_v55 = vshrl.u32 %v11991_v36, 16  ;;  %v4916_v59 = vadd.f32 %v12644_v35, %v15679_v57  ;;  %v4914_v4 = vadd.f32 %v15679_v57, %v4798_v60 }
 0x32b   : > { %v5247_v45 = vshll.u32 %v11991_v36, 16  ;;  %v5227_v16 = vshrl.u32 %v11989_v41, 16  ;;  %v5230_v15 = vshll.u32 %v11989_v41, 16  ;;  %v15771_v32 = vpop.f32.mrb[20].mxu0  ;;  %v5492_v17 = vsel %vm15688_vm12, %v5241_v21, %v5491_v53  ;;  %v5498_v33 = vld [vmem:[#allocation2 + $0x6c] sm:$0xf] }
 0x32c   : > { %v5485_v22 = vsel %vm15688_vm12, %v5224_v54, %v5484_v61  ;;  %v4947_v34 = vmax.f32 %v4915_v6, 0.0  ;;  %v4945_v19 = vmax.f32 %v4913_v46, 0.0  ;;  %v15777_v26 = vpop.f32.mrb[21].mxu0  ;;  %5493 = vst [vmem:[#allocation2 + $0x60] sm:$0xf] %v5492_v17  ;;  %v5246_v23 = vrot.slane %v5244_v55, 7 }
 0x32d   : > { %5486 = vst [vmem:[#allocation2 + $0x54] sm:$0xf] %v5485_v22  ;;  %v5229_v49 = vrot.slane %v5227_v16, 7  ;;  %v15781_v10 = vpop.f32.mrb[22].mxu0  ;;  %v5631_v25 = vshrl.u32 %v5556_v43, 16  ;;  %v5634_v40 = vshll.u32 %v5556_v43, 16 }
 0x32e   : > { %v11994_v62 = vpack.c.bf16 %v4947_v34, %v4947_v34  ;;  %v11992_v5 = vpack.c.bf16 %v4945_v19, %v4945_v19  ;;  %v15783_v2 = vpop.f32.mrb[23].mxu0  ;;  %v5249_v38 = vor.u32 %v5247_v45, %v5246_v23  ;;  %v5251_v13 = vrot.slane %v5246_v23, 4  ;;  %v5591_v9 = vld [vmem:[#allocation2 + $0x14] sm:$0x1]  ;;  %v5558_v54 = vld [vmem:[#allocation2 + $0x18] sm:$0xf] }
 0x32f   : > { %v5232_v37 = vor.u32 %v5230_v15, %v5229_v49  ;;  %v5234_v1 = vrot.slane %v5229_v49, 4  ;;  %v4948_v58 = vmax.f32 %v4916_v59, 0.0  ;;  %v4946_v7 = vmax.f32 %v4914_v4, 0.0  ;;  %v5559_v15 = vld [vmem:[#allocation2 + $0x1c] sm:$0xf] }
 0x330   : > { %v5270_v14 = vshrl.u32 %v11994_v62, 16  ;;  %v5273_v29 = vshll.u32 %v11994_v62, 16  ;;  %v5253_v11 = vshrl.u32 %v11992_v5, 16  ;;  %v5256_v6 = vshll.u32 %v11992_v5, 16  ;;  %v5509_v62 = vld [vmem:[#allocation2 + $0x80] sm:$0x1] }
 0x331   : > { %v5250_v46 = vsel %vm15695_vm13, %v5242_v52, %v5249_v38  ;;  %v5496_v35 = vsel %vm15701_vm14, %v5251_v13, %v5495_v48  ;;  %v5233_v28 = vsel %vm15695_vm13, %v5225_v24, %v5232_v37  ;;  %v5489_v39 = vsel %vm15701_vm14, %v5234_v1, %v5488_v63 }
 0x332   : > { %5494 = vst.msk [vmem:[#allocation2 + $0x64] sm:$0xf] %vm4961_vm7, %v5250_v46  ;;  %5497 = vst [vmem:[#allocation2 + $0x68] sm:$0x1] %v5496_v35  ;;  %v5272_v60 = vrot.slane %v5270_v14, 7  ;;  %v5255_v56 = vrot.slane %v5253_v11, 7  ;;  %v11995_v53 = vpack.c.bf16 %v4948_v58, %v4948_v58  ;;  %v11993_v61 = vpack.c.bf16 %v4946_v7, %v4946_v7 }
 0x333   : > { %5487 = vst.msk [vmem:[#allocation2 + $0x58] sm:$0xf] %vm4961_vm7, %v5233_v28  ;;  %5490 = vst [vmem:[#allocation2 + $0x5c] sm:$0x1] %v5489_v39  ;;  %v5633_v0 = vrot.slane %v5631_v25, 4  ;;  %v5636_v44 = vrot.slane %v5634_v40, 5 }
 0x334   : > { %v5640_v36 = vshll.u32 %v5557_v18, 16  ;;  %v5644_v41 = vshrl.u32 %v5557_v18, 16  ;;  %v15795_v12 = vpop.f32.mrb[24].mxu0  ;;  %v5275_v20 = vor.u32 %v5273_v29, %v5272_v60  ;;  %v5258_v50 = vor.u32 %v5256_v6, %v5255_v56  ;;  %v5502_v40 = vld [vmem:[#allocation2 + $0x74] sm:$0x1] }
 0x335   : > { %v15797_v51 = vpop.f32.mrb[25].mxu0  ;;  %v5637_v21 = vor.u32 %v5636_v44, %v5633_v0  ;;  %v5650_v16 = vshll.u32 %v5591_v9, 16  ;;  %v5276_v22 = vrot.slane %v5272_v60, 4  ;;  %v5259_v48 = vrot.slane %v5255_v56, 4  ;;  %v5592_v46 = vld [vmem:[#allocation2 + $0x20] sm:$0x1] }
 0x336   : > { %v5642_v52 = vrot.slane %v5640_v36, 5  ;;  %v15799_v24 = vpop.f32.mrb[26].mxu0  ;;  %v5506_v43 = vsel %vm15688_vm12, %v5275_v20, %v5505_v31  ;;  %v5499_v55 = vsel %vm15688_vm12, %v5258_v50, %v5498_v33  ;;  %v5646_v45 = vrot.slane %v5644_v41, 4  ;;  %v5560_v60 = vld [vmem:[#allocation2 + $0x24] sm:$0xf] }
 0x337   : > { %v15805_v17 = vpop.f32.mrb[27].mxu0  ;;  %5507 = vst [vmem:[#allocation2 + $0x78] sm:$0xf] %v5506_v43  ;;  %5500 = vst [vmem:[#allocation2 + $0x6c] sm:$0xf] %v5499_v55  ;;  %v5278_v63 = vshrl.u32 %v11995_v53, 16  ;;  %v4918_v43 = vadd.f32 %v15679_v57, %v15783_v2 }
 0x338   : > { %v5261_v34 = vshrl.u32 %v11993_v61, 16  ;;  %v5281_v19 = vshll.u32 %v11995_v53, 16  ;;  %v5264_v23 = vshll.u32 %v11993_v61, 16  ;;  %v5638_v49 = vrot.slane %v5637_v21, 4  ;;  %v13605_v61 = vld [vmem:[%s17881_s3 + $0x8] sm:$0xff]  }
 0x339   : > { %v5647_v59 = vor.u32 %v5646_v45, %v5642_v52  ;;  %v5280_v4 = vrot.slane %v5278_v63, 7  ;;  %v5652_v18 = vrot.slane %v5650_v16, 5  ;;  %v5655_v25 = vshrl.u32 %v5558_v54, 16  ;;  %v15840_v55 = vld [vmem:[#allocation2 + $0x28] sm:$0xf] }
 0x33a   : > { %v5263_v5 = vrot.slane %v5261_v34, 7  ;;  %v5643_v38 = vsel %vm13885_vm2, %v5638_v49, %v5642_v52  ;;  %v5658_v37 = vshll.u32 %v5558_v54, 16  ;;  %v5664_v1 = vshll.u32 %v5559_v15, 16  ;;  %v15809_v35 = vpop.f32.mrb[28].mxu0 }
 0x33b   : > { %v5648_v13 = vrot.slane %v5647_v59, 4  ;;  %v5283_v14 = vor.u32 %v5281_v19, %v5280_v4  ;;  %v5285_v29 = vrot.slane %v5280_v4, 4  ;;  %v5657_v39 = vrot.slane %v5655_v25, 4  ;;  %v15813_v56 = vpop.f32.mrb[29].mxu0 }
 0x33c   : > { %v5266_v11 = vor.u32 %v5264_v23, %v5263_v5  ;;  %v5268_v6 = vrot.slane %v5263_v5, 4  ;;  %v5660_v31 = vrot.slane %v5658_v37, 5  ;;  %v5666_v33 = vrot.slane %v5664_v1, 5  ;;  %v15823_v44 = vpop.f32.mrb[30].mxu0 }
 0x33d   : > { %v5653_v28 = vsel %vm13885_vm2, %v5648_v13, %v5652_v18  ;;  %v5284_v58 = vsel %vm15695_vm13, %v5276_v22, %v5283_v14  ;;  %v5510_v7 = vsel %vm15701_vm14, %v5285_v29, %v5509_v62  ;;  %v5668_v20 = vshrl.u32 %v5559_v15, 16  ;;  %v15827_v53 = vpop.f32.mrb[31].mxu0  ;;  %v5519_v14 = vld [vmem:[#allocation2 + $0x90] sm:$0xf]  ;;  %v5512_v29 = vld [vmem:[#allocation2 + $0x84] sm:$0xf] }
 0x33e   : > { %v5267_v9 = vsel %vm15695_vm13, %v5259_v48, %v5266_v11  ;;  %v5503_v0 = vsel %vm15701_vm14, %v5268_v6, %v5502_v40  ;;  %5508 = vst.msk [vmem:[#allocation2 + $0x7c] sm:$0xf] %vm4961_vm7, %v5284_v58  ;;  %5511 = vst [vmem:[#allocation2 + $0x80] sm:$0x1] %v5510_v7  ;;  %v11541_v36 = vcombine.low %v5643_v38, %v5653_v28  ;;  %v5674_v50 = vshll.u32 %v5592_v46, 16 }
 0x33f   : > { %5501 = vst.msk [vmem:[#allocation2 + $0x70] sm:$0xf] %vm4961_vm7, %v5267_v9  ;;  %5504 = vst [vmem:[#allocation2 + $0x74] sm:$0x1] %v5503_v0  ;;  %v5661_v41 = vor.u32 %v5660_v31, %v5657_v39  ;;  %v4919_v21 = vadd.f32 %v15771_v32, %v15679_v57  ;;  %v4917_v52 = vadd.f32 %v15679_v57, %v15777_v26  ;;  %v5670_v16 = vrot.slane %v5668_v20, 4  ;;  %v15846_v32 = vld [vmem:[%s17881_s3 + $0x20] sm:$0xff]  }
 0x340   : > { %v4920_v54 = vadd.f32 %v15781_v10, %v15679_v57  ;;  %12662 = vmatmul.mubr.msk.bf16.vlgmr.msra.gmra.mrb[0].mxu1 %vm728_vm3, %v11541_v36  ;;  %v5676_v15 = vrot.slane %v5674_v50, 5  ;;  %v5679_v22 = vshrl.u32 %v5560_v60, 16  ;;  %v4950_v63 = vmax.f32 %v4918_v43, 0.0  ;;  %v5516_v9 = vld [vmem:[#allocation2 + $0x8c] sm:$0x1] }
 0x341   : > { %v5662_v45 = vrot.slane %v5661_v41, 4  ;;  %12694 = vmatpush3.bf16.msra.mxu1 %v15673_v3  ;;  %v4951_v26 = vmax.f32 %v4919_v21, 0.0  ;;  %v4949_v10 = vmax.f32 %v4917_v52, 0.0  ;;  %v5671_v34 = vor.u32 %v5670_v16, %v5666_v33  ;;  %v15857_v16 = vld [vmem:[#allocation2 + $0x30] sm:$0xf] }
 0x342   : > { %v4952_v48 = vmax.f32 %v4920_v54, 0.0  ;;  %v5681_v19 = vrot.slane %v5679_v22, 4  ;;  %v5682_v23 = vshll.u32 %v5560_v60, 16  ;;  %12695 = vmatprep.subr.bf16.mxu1 %v13605_v61  ;;  %v11997_v62 = vpack.c.bf16 %v4950_v63, %v4950_v63  ;;  %v5594_v63 = vld [vmem:[#allocation2 + $0x38] sm:$0x1] }
 0x343   : > { %v5667_v2 = vsel %vm13885_vm2, %v5662_v45, %v5666_v33  ;;  %v11998_v49 = vpack.c.bf16 %v4951_v26, %v4951_v26  ;;  %v11996_v59 = vpack.c.bf16 %v4949_v10, %v4949_v10  ;;  %v5672_v5 = vrot.slane %v5671_v34, 4  ;;  %v5523_v33 = vld [vmem:[#allocation2 + $0x98] sm:$0x1]  ;;  %v5593_v45 = vld [vmem:[#allocation2 + $0x2c] sm:$0x1] }
 0x344   : > { %v11999_v4 = vpack.c.bf16 %v4952_v48, %v4952_v48  ;;  %v5684_v18 = vrot.slane %v5682_v23, 5  ;;  %v5688_v25 = vshll.u32 %v15840_v55, 16  ;;  %v5692_v3 = vshrl.u32 %v15840_v55, 16  ;;  %v15863_v48 = vld [vmem:[#allocation2 + $0x34] sm:$0xf] }
 0x345   : > { %v5304_v40 = vshrl.u32 %v11998_v49, 16  ;;  %v5307_v38 = vshll.u32 %v11998_v49, 16  ;;  %v5287_v13 = vshrl.u32 %v11996_v59, 16  ;;  %v5290_v37 = vshll.u32 %v11996_v59, 16  ;;  %12696 = vmatpush3.bf16.msra.mxu1 %v13605_v61  ;;  %v15978_v42 = vld [vmem:[#allocation2 + $0x6c] sm:$0xf] }
 0x346   : > { %v5677_v1 = vsel %vm13885_vm2, %v5672_v5, %v5676_v15  ;;  %v5312_v11 = vshrl.u32 %v11999_v4, 16  ;;  %v5315_v6 = vshll.u32 %v11999_v4, 16  ;;  %v5295_v46 = vshrl.u32 %v11997_v62, 16  ;;  %12729 = vmatprep.subr.bf16.mxu1 %v15846_v32 }
 0x347   : > { %v11542_v28 = vcombine.low %v5667_v2, %v5677_v1  ;;  %v5306_v39 = vrot.slane %v5304_v40, 7  ;;  %v5289_v31 = vrot.slane %v5287_v13, 7  ;;  %v5298_v60 = vshll.u32 %v11997_v62, 16 }
 0x348   : > { %v5314_v58 = vrot.slane %v5312_v11, 7  ;;  %v5297_v7 = vrot.slane %v5295_v46, 7  ;;  %v5685_v0 = vor.u32 %v5684_v18, %v5681_v19  ;;  %v5690_v36 = vrot.slane %v5688_v25, 5 }
 0x349   : > { %12665 = vmatprep.mubr.msk.bf16.mxu1 %vm728_vm3, %v11542_v28  ;;  %v5309_v41 = vor.u32 %v5307_v38, %v5306_v39  ;;  %v5310_v20 = vrot.slane %v5306_v39, 4  ;;  %v5292_v50 = vor.u32 %v5290_v37, %v5289_v31  ;;  %v5293_v61 = vrot.slane %v5289_v31, 4 }
 0x34a   : > { %v5317_v21 = vor.u32 %v5315_v6, %v5314_v58  ;;  %v5319_v52 = vrot.slane %v5314_v58, 4  ;;  %v5300_v54 = vor.u32 %v5298_v60, %v5297_v7  ;;  %v5302_v43 = vrot.slane %v5297_v7, 4  ;;  %v15883_v6 = vld [vmem:[#allocation2 + $0x3c] sm:$0xf] }
 0x34b   : > { %v5520_v15 = vsel %vm15688_vm12, %v5309_v41, %v5519_v14  ;;  %v5513_v22 = vsel %vm15688_vm12, %v5292_v50, %v5512_v29  ;;  %v5686_v26 = vrot.slane %v5685_v0, 4  ;;  %v5694_v10 = vrot.slane %v5692_v3, 4 }
 0x34c   : > { %5521 = vst [vmem:[#allocation2 + $0x90] sm:$0xf] %v5520_v15  ;;  %5514 = vst [vmem:[#allocation2 + $0x84] sm:$0xf] %v5513_v22  ;;  %v5318_v2 = vsel %vm15695_vm13, %v5310_v20, %v5317_v21  ;;  %v5524_v34 = vsel %vm15701_vm14, %v5319_v52, %v5523_v33  ;;  %v5301_v19 = vsel %vm15695_vm13, %v5293_v61, %v5300_v54  ;;  %v5698_v4 = vshll.u32 %v5593_v45, 16 }
 0x34d   : > { %v5517_v23 = vsel %vm15701_vm14, %v5302_v43, %v5516_v9  ;;  %5522 = vst.msk [vmem:[#allocation2 + $0x94] sm:$0xf] %vm4961_vm7, %v5318_v2  ;;  %5525 = vst [vmem:[#allocation2 + $0x98] sm:$0x1] %v5524_v34  ;;  %v5691_v49 = vsel %vm13885_vm2, %v5686_v26, %v5690_v36  ;;  %v5695_v59 = vor.u32 %v5694_v10, %v5690_v36  ;;  %v5703_v62 = vshrl.u32 %v15857_v16, 16 }
 0x34e   : > { %5515 = vst.msk [vmem:[#allocation2 + $0x88] sm:$0xf] %vm4961_vm7, %v5301_v19  ;;  %5518 = vst [vmem:[#allocation2 + $0x8c] sm:$0x1] %v5517_v23  ;;  %v5706_v5 = vshll.u32 %v15857_v16, 16  ;;  %v5712_v18 = vshll.u32 %v15863_v48, 16  ;;  %v4923_v37 = vadd.f32 %v15795_v12, %v15679_v57  ;;  %v4921_v39 = vadd.f32 %v15679_v57, %v15797_v51 }
 0x34f   : > { %v5716_v25 = vshrl.u32 %v15863_v48, 16  ;;  %v5722_v3 = vshll.u32 %v5594_v63, 16  ;;  %v5696_v40 = vrot.slane %v5695_v59, 4  ;;  %v5700_v38 = vrot.slane %v5698_v4, 5  ;;  %v15900_v63 = vld [vmem:[#allocation2 + $0x40] sm:$0xf] }
 0x350   : > { %v5705_v13 = vrot.slane %v5703_v62, 4  ;;  %v5708_v1 = vrot.slane %v5706_v5, 5  ;;  %v5714_v14 = vrot.slane %v5712_v18, 5  ;;  %v4955_v28 = vmax.f32 %v4923_v37, 0.0  ;;  %v5526_v2 = vld [vmem:[#allocation2 + $0x9c] sm:$0xf] }
 0x351   : > { %v5718_v29 = vrot.slane %v5716_v25, 4  ;;  %v5724_v11 = vrot.slane %v5722_v3, 5  ;;  %v5701_v46 = vsel %vm13885_vm2, %v5696_v40, %v5700_v38  ;;  %v4924_v31 = vadd.f32 %v15799_v24, %v15679_v57  ;;  %v5537_v5 = vld [vmem:[#allocation2 + $0xb0] sm:$0x1]  ;;  %v5530_v18 = vld [vmem:[#allocation2 + $0xa4] sm:$0x1] }
 0x352   : > { %v11543_v33 = vcombine.low %v5691_v49, %v5701_v46  ;;  %v5709_v60 = vor.u32 %v5708_v1, %v5705_v13  ;;  %v4922_v12 = vadd.f32 %v15679_v57, %v15805_v17  ;;  %v12002_v7 = vpack.c.bf16 %v4955_v28, %v4955_v28  ;;  %v5533_v17 = vld [vmem:[#allocation2 + $0xa8] sm:$0xf] }
 0x353   : > { %v5719_v58 = vor.u32 %v5718_v29, %v5714_v14  ;;  %v4953_v9 = vmax.f32 %v4921_v39, 0.0  ;;  %v4956_v0 = vmax.f32 %v4924_v31, 0.0  ;;  %v5727_v36 = vshrl.u32 %v15883_v6, 16  ;;  %v15905_v37 = vld [vmem:[#allocation2 + $0x48] sm:$0xf] }
 0x354   : > { %12666 = vmatmul.mubr.msk.bf16.gmra.mrb[4].mxu1 %vm728_vm3, %v11543_v33  ;;  %v5710_v41 = vrot.slane %v5709_v60, 4  ;;  %v4954_v50 = vmax.f32 %v4922_v12, 0.0  ;;  %v5730_v51 = vshll.u32 %v15883_v6, 16  ;;  %v5338_v61 = vshrl.u32 %v12002_v7, 16  ;;  %v15911_v60 = vld [vmem:[#allocation2 + $0x4c] sm:$0xf] }
 0x355   : > { %v5720_v20 = vrot.slane %v5719_v58, 4  ;;  %v5341_v24 = vshll.u32 %v12002_v7, 16  ;;  %v12000_v21 = vpack.c.bf16 %v4953_v9, %v4953_v9  ;;  %v12003_v52 = vpack.c.bf16 %v4956_v0, %v4956_v0  ;;  %v15915_v0 = vld [vmem:[#allocation2 + $0x50] sm:$0x1] }
 0x356   : > { %v5715_v54 = vsel %vm13885_vm2, %v5710_v41, %v5714_v14  ;;  %v12001_v43 = vpack.c.bf16 %v4954_v50, %v4954_v50  ;;  %v5729_v45 = vrot.slane %v5727_v36, 4  ;;  %v5340_v22 = vrot.slane %v5338_v61, 7 }
 0x357   : > { %v5725_v57 = vsel %vm13885_vm2, %v5720_v20, %v5724_v11  ;;  %v5321_v26 = vshrl.u32 %v12000_v21, 16  ;;  %v5324_v10 = vshll.u32 %v12000_v21, 16  ;;  %v5346_v34 = vshrl.u32 %v12003_v52, 16  ;;  %v15909_v11 = vld [vmem:[#allocation2 + $0x44] sm:$0x1] }
 0x358   : > { %v11544_v15 = vcombine.low %v5715_v54, %v5725_v57  ;;  %v5349_v19 = vshll.u32 %v12003_v52, 16  ;;  %v5329_v23 = vshrl.u32 %v12001_v43, 16  ;;  %v5332_v49 = vshll.u32 %v12001_v43, 16 }
 0x359   : > { %v5343_v59 = vor.u32 %v5341_v24, %v5340_v22  ;;  %v5344_v4 = vrot.slane %v5340_v22, 4  ;;  %v5323_v62 = vrot.slane %v5321_v26, 7  ;;  %v5732_v25 = vrot.slane %v5730_v51, 5  ;;  %v13667_v22 = vld [vmem:[%s17880_s2] ss:$0 sm:$0xff] }
 0x35a   : > { %12669 = vmatprep.mubr.msk.bf16.mxu1 %vm728_vm3, %v11544_v15  ;;  %v5348_v3 = vrot.slane %v5346_v34, 7  ;;  %v5331_v40 = vrot.slane %v5329_v23, 7  ;;  %v5736_v38 = vshll.u32 %v15900_v63, 16  ;;  %v5740_v13 = vshrl.u32 %v15900_v63, 16  ;;  %v15939_v23 = vld [vmem:[#allocation2 + $0x54] sm:$0xf] }
 0x35b   : > { %v5534_v1 = vsel %vm15688_vm12, %v5343_v59, %v5533_v17  ;;  %v5326_v14 = vor.u32 %v5324_v10, %v5323_v62  ;;  %v5327_v29 = vrot.slane %v5323_v62, 4  ;;  %v5733_v46 = vor.u32 %v5732_v25, %v5729_v45 }
 0x35c   : > { %5535 = vst [vmem:[#allocation2 + $0xa8] sm:$0xf] %v5534_v1  ;;  %v5351_v28 = vor.u32 %v5349_v19, %v5348_v3  ;;  %v5353_v39 = vrot.slane %v5348_v3, 4  ;;  %v5334_v31 = vor.u32 %v5332_v49, %v5331_v40  ;;  %v5336_v33 = vrot.slane %v5331_v40, 4 }
 0x35d   : > { %v5527_v58 = vsel %vm15688_vm12, %v5326_v14, %v5526_v2  ;;  %v5734_v12 = vrot.slane %v5733_v46, 4  ;;  %v5738_v7 = vrot.slane %v5736_v38, 5  ;;  %v5742_v9 = vrot.slane %v5740_v13, 4 }
 0x35e   : > { %5528 = vst [vmem:[#allocation2 + $0x9c] sm:$0xf] %v5527_v58  ;;  %v5352_v36 = vsel %vm15695_vm13, %v5344_v4, %v5351_v28  ;;  %v5538_v41 = vsel %vm15701_vm14, %v5353_v39, %v5537_v5  ;;  %v5335_v20 = vsel %vm15695_vm13, %v5327_v29, %v5334_v31  ;;  %v5531_v50 = vsel %vm15701_vm14, %v5336_v33, %v5530_v18  ;;  %v5547_v33 = vld [vmem:[#allocation2 + $0xc0] sm:$0xf] }
 0x35f   : > { %5536 = vst.msk [vmem:[#allocation2 + $0xac] sm:$0xf] %vm4961_vm7, %v5352_v36  ;;  %5539 = vst [vmem:[#allocation2 + $0xb0] sm:$0x1] %v5538_v41  ;;  %v5739_v51 = vsel %vm13885_vm2, %v5734_v12, %v5738_v7  ;;  %v5743_v61 = vor.u32 %v5742_v9, %v5738_v7  ;;  %v5746_v24 = vshll.u32 %v15909_v11, 16  ;;  %v5751_v21 = vshrl.u32 %v15905_v37, 16 }
 0x360   : > { %5529 = vst.msk [vmem:[#allocation2 + $0xa0] sm:$0xf] %vm4961_vm7, %v5335_v20  ;;  %5532 = vst [vmem:[#allocation2 + $0xa4] sm:$0x1] %v5531_v50  ;;  %v5754_v52 = vshll.u32 %v15905_v37, 16  ;;  %v5760_v54 = vshll.u32 %v15911_v60, 16  ;;  %v4927_v26 = vadd.f32 %v13667_v22, %v15809_v35  ;;  %v4925_v4 = vadd.f32 %v13667_v22, %v15813_v56 }
 0x361   : > { %v5764_v57 = vshrl.u32 %v15911_v60, 16  ;;  %v5770_v17 = vshll.u32 %v15915_v0, 16  ;;  %v5744_v43 = vrot.slane %v5743_v61, 4  ;;  %v5748_v45 = vrot.slane %v5746_v24, 5  ;;  %v15953_v12 = vld [vmem:[#allocation2 + $0x58] sm:$0xf] }
 0x362   : > { %v5753_v15 = vrot.slane %v5751_v21, 4  ;;  %v5756_v10 = vrot.slane %v5754_v52, 5  ;;  %v5762_v2 = vrot.slane %v5760_v54, 5  ;;  %v4959_v59 = vmax.f32 %v4927_v26, 0.0  ;;  %v5540_v50 = vld [vmem:[#allocation2 + $0xb4] sm:$0xf] }
 0x363   : > { %v5766_v34 = vrot.slane %v5764_v57, 4  ;;  %v5772_v19 = vrot.slane %v5770_v17, 5  ;;  %v5749_v49 = vsel %vm13885_vm2, %v5744_v43, %v5748_v45  ;;  %v4928_v62 = vadd.f32 %v13667_v22, %v15823_v44  ;;  %v5551_v45 = vld [vmem:[#allocation2 + $0xc8] sm:$0x1] }
 0x364   : > { %v11545_v5 = vcombine.low %v5739_v51, %v5749_v49  ;;  %v5757_v18 = vor.u32 %v5756_v10, %v5753_v15  ;;  %v4926_v3 = vadd.f32 %v13667_v22, %v15827_v53  ;;  %v12006_v35 = vpack.c.bf16 %v4959_v59, %v4959_v59  ;;  %v15960_v59 = vld [vmem:[#allocation2 + $0x60] sm:$0xf] }
 0x365   : > { %v5767_v25 = vor.u32 %v5766_v34, %v5762_v2  ;;  %v4957_v40 = vmax.f32 %v4925_v4, 0.0  ;;  %v4960_v38 = vmax.f32 %v4928_v62, 0.0  ;;  %v5775_v13 = vshrl.u32 %v15939_v23, 16 }
 0x366   : > { %12670 = vmatmul.mubr.msk.bf16.gmra.mrb[8].mxu1 %vm728_vm3, %v11545_v5  ;;  %v5758_v1 = vrot.slane %v5757_v18, 4  ;;  %v4958_v29 = vmax.f32 %v4926_v3, 0.0  ;;  %v5778_v46 = vshll.u32 %v15939_v23, 16  ;;  %v5372_v56 = vshrl.u32 %v12006_v35, 16  ;;  %v15964_v3 = vld [vmem:[#allocation2 + $0x64] sm:$0xf] }
 0x367   : > { %v5768_v14 = vrot.slane %v5767_v25, 4  ;;  %v5375_v28 = vshll.u32 %v12006_v35, 16  ;;  %v12004_v44 = vpack.c.bf16 %v4957_v40, %v4957_v40  ;;  %v12007_v39 = vpack.c.bf16 %v4960_v38, %v4960_v38  ;;  %v15962_v25 = vld [vmem:[#allocation2 + $0x5c] sm:$0x1] }
 0x368   : > { %v5763_v31 = vsel %vm13885_vm2, %v5758_v1, %v5762_v2  ;;  %v12005_v58 = vpack.c.bf16 %v4958_v29, %v4958_v29  ;;  %v5777_v7 = vrot.slane %v5775_v13, 4  ;;  %v5374_v36 = vrot.slane %v5372_v56, 7  ;;  %v15968_v1 = vld [vmem:[#allocation2 + $0x68] sm:$0x1] }
 0x369   : > { %v5773_v53 = vsel %vm13885_vm2, %v5768_v14, %v5772_v19  ;;  %v5355_v41 = vshrl.u32 %v12004_v44, 16  ;;  %v5358_v20 = vshll.u32 %v12004_v44, 16  ;;  %v5380_v51 = vshrl.u32 %v12007_v39, 16  ;;  %v5544_v19 = vld [vmem:[#allocation2 + $0xbc] sm:$0x1] }
 0x36a   : > { %v11546_v9 = vcombine.low %v5763_v31, %v5773_v53  ;;  %v5383_v61 = vshll.u32 %v12007_v39, 16  ;;  %v5363_v24 = vshrl.u32 %v12005_v58, 16  ;;  %v5366_v21 = vshll.u32 %v12005_v58, 16 }
 0x36b   : > { %v5377_v52 = vor.u32 %v5375_v28, %v5374_v36  ;;  %v5378_v54 = vrot.slane %v5374_v36, 4  ;;  %v5357_v57 = vrot.slane %v5355_v41, 7  ;;  %v5780_v17 = vrot.slane %v5778_v46, 5  ;;  %v15980_v28 = vld [vmem:[#allocation2 + $0x70] sm:$0xf] }
 0x36c   : > { %12673 = vmatprep.mubr.msk.bf16.mxu1 %vm728_vm3, %v11546_v9  ;;  %v5382_v43 = vrot.slane %v5380_v51, 7  ;;  %v5365_v15 = vrot.slane %v5363_v24, 7  ;;  %v5784_v22 = vshll.u32 %v15953_v12, 16  ;;  %v5788_v26 = vshrl.u32 %v15953_v12, 16 }
 0x36d   : > { %v5548_v10 = vsel %vm15688_vm12, %v5377_v52, %v5547_v33  ;;  %v5360_v2 = vor.u32 %v5358_v20, %v5357_v57  ;;  %v5361_v34 = vrot.slane %v5357_v57, 4  ;;  %v5781_v49 = vor.u32 %v5780_v17, %v5777_v7  ;;  %v15992_v7 = vld [vmem:[#allocation2 + $0x78] sm:$0xf]  ;;  %v15994_v20 = vld [vmem:[#allocation2 + $0x74] sm:$0x1] }
 0x36e   : > { %5549 = vst [vmem:[#allocation2 + $0xc0] sm:$0xf] %v5548_v10  ;;  %v5385_v4 = vor.u32 %v5383_v61, %v5382_v43  ;;  %v5387_v62 = vrot.slane %v5382_v43, 4  ;;  %v5368_v5 = vor.u32 %v5366_v21, %v5365_v15  ;;  %v5370_v18 = vrot.slane %v5365_v15, 4 }
 0x36f   : > { %v5541_v35 = vsel %vm15688_vm12, %v5360_v2, %v5540_v50  ;;  %v5782_v40 = vrot.slane %v5781_v49, 4  ;;  %v5786_v38 = vrot.slane %v5784_v22, 5  ;;  %v5790_v13 = vrot.slane %v5788_v26, 4  ;;  %v16002_v26 = vld [vmem:[#allocation2 + $0x7c] sm:$0xf] }
 0x370   : > { %5542 = vst [vmem:[#allocation2 + $0xb4] sm:$0xf] %v5541_v35  ;;  %v5386_v14 = vsel %vm15695_vm13, %v5378_v54, %v5385_v4  ;;  %v5552_v29 = vsel %vm15701_vm14, %v5387_v62, %v5551_v45  ;;  %v5369_v46 = vsel %vm15695_vm13, %v5361_v34, %v5368_v5  ;;  %v5545_v56 = vsel %vm15701_vm14, %v5370_v18, %v5544_v19  ;;  %v16007_v5 = vld [vmem:[#allocation2 + $0x80] sm:$0x1] }
 0x371   : > { %5550 = vst.msk [vmem:[#allocation2 + $0xc4] sm:$0xf] %vm4961_vm7, %v5386_v14  ;;  %5553 = vst [vmem:[#allocation2 + $0xc8] sm:$0x1] %v5552_v29  ;;  %v5787_v44 = vsel %vm13885_vm2, %v5782_v40, %v5786_v38  ;;  %v5791_v39 = vor.u32 %v5790_v13, %v5786_v38  ;;  %v5794_v30 = vshll.u32 %v15962_v25, 16  ;;  %v5799_v31 = vshrl.u32 %v15960_v59, 16 }
 0x372   : > { %5543 = vst.msk [vmem:[#allocation2 + $0xb8] sm:$0xf] %vm4961_vm7, %v5369_v46  ;;  %5546 = vst [vmem:[#allocation2 + $0xbc] sm:$0x1] %v5545_v56  ;;  %v5802_v8 = vshll.u32 %v15960_v59, 16  ;;  %v5808_v53 = vshll.u32 %v15964_v3, 16 }
 0x373   : > { %v5812_v33 = vshrl.u32 %v15964_v3, 16  ;;  %v5818_v58 = vshll.u32 %v15968_v1, 16  ;;  %v5792_v9 = vrot.slane %v5791_v39, 4  ;;  %v5796_v36 = vrot.slane %v5794_v30, 5  ;;  %v16011_v14 = vld [vmem:[#allocation2 + $0x84] sm:$0xf] }
 0x374   : > { %v5801_v41 = vrot.slane %v5799_v31, 4  ;;  %v5823_v50 = vshrl.u32 %v15978_v42, 16  ;;  %v5804_v51 = vrot.slane %v5802_v8, 5  ;;  %v5810_v61 = vrot.slane %v5808_v53, 5  ;;  %v16017_v39 = vld [vmem:[#allocation2 + $0x88] sm:$0xf] }
 0x375   : > { %v5814_v24 = vrot.slane %v5812_v33, 4  ;;  %v5820_v21 = vrot.slane %v5818_v58, 5  ;;  %v5797_v52 = vsel %vm13885_vm2, %v5792_v9, %v5796_v36  ;;  %v5826_v57 = vshll.u32 %v15978_v42, 16  ;;  %v16020_v33 = vld [vmem:[#allocation2 + $0x8c] sm:$0x1] }
 0x376   : > { %v5825_v54 = vrot.slane %v5823_v50, 4  ;;  %v5832_v17 = vshll.u32 %v15980_v28, 16  ;;  %v11547_v43 = vcombine.low %v5787_v44, %v5797_v52  ;;  %v5805_v45 = vor.u32 %v5804_v51, %v5801_v41 }
 0x377   : > { %v5815_v15 = vor.u32 %v5814_v24, %v5810_v61  ;;  %v5836_v22 = vshrl.u32 %v15980_v28, 16  ;;  %v5828_v10 = vrot.slane %v5826_v57, 5  ;;  %v5842_v34 = vshll.u32 %v15994_v20, 16 }
 0x378   : > { %v5834_v2 = vrot.slane %v5832_v17, 5  ;;  %v5847_v19 = vshrl.u32 %v15992_v7, 16  ;;  %12674 = vmatmul.mubr.msk.bf16.gmra.mrb[12].mxu1 %vm728_vm3, %v11547_v43  ;;  %v5806_v49 = vrot.slane %v5805_v45, 4  ;;  %v5850_v18 = vshll.u32 %v15992_v7, 16  ;;  %v16033_v43 = vld [vmem:[#allocation2 + $0x94] sm:$0xf] }
 0x379   : > { %v5816_v4 = vrot.slane %v5815_v15, 4  ;;  %v5838_v62 = vrot.slane %v5836_v22, 4  ;;  %v5829_v35 = vor.u32 %v5828_v10, %v5825_v54  ;;  %v5844_v40 = vrot.slane %v5842_v34, 5 }
 0x37a   : > { %v5849_v38 = vrot.slane %v5847_v19, 4  ;;  %v5856_v13 = vshll.u32 %v16002_v26, 16  ;;  %v5811_v29 = vsel %vm13885_vm2, %v5806_v49, %v5810_v61  ;;  %v5852_v44 = vrot.slane %v5850_v18, 5  ;;  %v16039_v49 = vld [vmem:[#allocation2 + $0x98] sm:$0x1] }
 0x37b   : > { %v5821_v46 = vsel %vm13885_vm2, %v5816_v4, %v5820_v21  ;;  %v5839_v56 = vor.u32 %v5838_v62, %v5834_v2  ;;  %v5830_v31 = vrot.slane %v5829_v35, 4  ;;  %v5860_v53 = vshrl.u32 %v16002_v26, 16  ;;  %v16029_v21 = vld [vmem:[#allocation2 + $0x90] sm:$0xf] }
 0x37c   : > { %v11548_v30 = vcombine.low %v5811_v29, %v5821_v46  ;;  %v5858_v8 = vrot.slane %v5856_v13, 5  ;;  %v5853_v9 = vor.u32 %v5852_v44, %v5849_v38  ;;  %v5866_v36 = vshll.u32 %v16007_v5, 16  ;;  %v16045_v38 = vld [vmem:[#allocation2 + $0x9c] sm:$0xf]  ;;  %v16048_v44 = vld [vmem:[#allocation2 + $0xa0] sm:$0xf] }
 0x37d   : > { %v5840_v58 = vrot.slane %v5839_v56, 4  ;;  %v5871_v41 = vshrl.u32 %v16011_v14, 16  ;;  %v5835_v50 = vsel %vm13885_vm2, %v5830_v31, %v5834_v2  ;;  %v5862_v51 = vrot.slane %v5860_v53, 4 }
 0x37e   : > { %12677 = vmatprep.mubr.msk.bf16.mxu1 %vm728_vm3, %v11548_v30  ;;  %v5874_v61 = vshll.u32 %v16011_v14, 16  ;;  %v5880_v24 = vshll.u32 %v16017_v39, 16  ;;  %v5854_v54 = vrot.slane %v5853_v9, 4  ;;  %v5868_v57 = vrot.slane %v5866_v36, 5 }
 0x37f   : > { %v5845_v52 = vsel %vm13885_vm2, %v5840_v58, %v5844_v40  ;;  %v5873_v17 = vrot.slane %v5871_v41, 4  ;;  %v5863_v15 = vor.u32 %v5862_v51, %v5858_v8  ;;  %v5884_v34 = vshrl.u32 %v16017_v39, 16 }
 0x380   : > { %v11549_v45 = vcombine.low %v5835_v50, %v5845_v52  ;;  %v5876_v22 = vrot.slane %v5874_v61, 5  ;;  %v5882_v10 = vrot.slane %v5880_v24, 5  ;;  %v5859_v2 = vsel %vm13885_vm2, %v5854_v54, %v5858_v8  ;;  %v16055_v61 = vld [vmem:[#allocation2 + $0xa4] sm:$0x1] }
 0x381   : > { %v5890_v19 = vshll.u32 %v16020_v33, 16  ;;  %v5895_v4 = vshrl.u32 %v16029_v21, 16  ;;  %v5864_v62 = vrot.slane %v5863_v15, 4  ;;  %v5898_v35 = vshll.u32 %v16029_v21, 16  ;;  %v16061_v15 = vld [vmem:[#allocation2 + $0xa8] sm:$0xf] }
 0x382   : > { %12678 = vmatmul.mubr.msk.bf16.gmra.mrb[16].mxu1 %vm728_vm3, %v11549_v45  ;;  %v5877_v18 = vor.u32 %v5876_v22, %v5873_v17  ;;  %v5904_v40 = vshll.u32 %v16033_v43, 16  ;;  %v5886_v13 = vrot.slane %v5884_v34, 4  ;;  %v5908_v56 = vshrl.u32 %v16033_v43, 16 }
 0x383   : > { %v5892_v29 = vrot.slane %v5890_v19, 5  ;;  %v5897_v46 = vrot.slane %v5895_v4, 4  ;;  %v5869_v30 = vsel %vm13885_vm2, %v5864_v62, %v5868_v57  ;;  %v5900_v8 = vrot.slane %v5898_v35, 5  ;;  %v16064_v19 = vld [vmem:[#allocation2 + $0xac] sm:$0xf] }
 0x384   : > { %v5878_v31 = vrot.slane %v5877_v18, 4  ;;  %v5906_v53 = vrot.slane %v5904_v40, 5  ;;  %v11550_v58 = vcombine.low %v5859_v2, %v5869_v30  ;;  %v5887_v9 = vor.u32 %v5886_v13, %v5882_v10  ;;  %v16069_v40 = vld [vmem:[#allocation2 + $0xb0] sm:$0x1]  ;;  %v16071_v13 = vld [vmem:[#allocation2 + $0xb4] sm:$0xf] }
 0x385   : > { %v5910_v36 = vrot.slane %v5908_v56, 4  ;;  %v5914_v41 = vshll.u32 %v16039_v49, 16  ;;  %v5901_v51 = vor.u32 %v5900_v8, %v5897_v46  ;;  %v5919_v24 = vshrl.u32 %v16045_v38, 16 }
 0x386   : > { %v5883_v50 = vsel %vm13885_vm2, %v5878_v31, %v5882_v10  ;;  %v5922_v52 = vshll.u32 %v16045_v38, 16  ;;  %12681 = vmatprep.mubr.msk.bf16.mxu1 %vm728_vm3, %v11550_v58  ;;  %v5888_v54 = vrot.slane %v5887_v9, 4  ;;  %v5928_v45 = vshll.u32 %v16048_v44, 16  ;;  %v16079_v9 = vld [vmem:[#allocation2 + $0xb8] sm:$0xf] }
 0x387   : > { %v5911_v57 = vor.u32 %v5910_v36, %v5906_v53  ;;  %v5916_v17 = vrot.slane %v5914_v41, 5  ;;  %v5902_v22 = vrot.slane %v5901_v51, 4  ;;  %v5921_v2 = vrot.slane %v5919_v24, 4 }
 0x388   : > { %v5924_v34 = vrot.slane %v5922_v52, 5  ;;  %v5932_v10 = vshrl.u32 %v16048_v44, 16  ;;  %v5893_v4 = vsel %vm13885_vm2, %v5888_v54, %v5892_v29  ;;  %v5930_v18 = vrot.slane %v5928_v45, 5 }
 0x389   : > { %v5912_v62 = vrot.slane %v5911_v57, 4  ;;  %v5938_v35 = vshll.u32 %v16055_v61, 16  ;;  %v11551_v46 = vcombine.low %v5883_v50, %v5893_v4  ;;  %v5907_v31 = vsel %vm13885_vm2, %v5902_v22, %v5906_v53  ;;  %v16089_v4 = vld [vmem:[#allocation2 + $0xbc] sm:$0x1] }
 0x38a   : > { %v5925_v56 = vor.u32 %v5924_v34, %v5921_v2  ;;  %v5934_v30 = vrot.slane %v5932_v10, 4  ;;  %v5943_v58 = vshrl.u32 %v16061_v15, 16  ;;  %v5946_v29 = vshll.u32 %v16061_v15, 16 }
 0x38b   : > { %v5917_v8 = vsel %vm13885_vm2, %v5912_v62, %v5916_v17  ;;  %12682 = vmatmul.mubr.msk.bf16.gmra.mrb[20].mxu1 %vm728_vm3, %v11551_v46  ;;  %v5952_v50 = vshll.u32 %v16064_v19, 16  ;;  %v5940_v24 = vrot.slane %v5938_v35, 5  ;;  %v5956_v53 = vshrl.u32 %v16064_v19, 16 }
 0x38c   : > { %v11552_v36 = vcombine.low %v5907_v31, %v5917_v8  ;;  %v5926_v41 = vrot.slane %v5925_v56, 4  ;;  %v5935_v51 = vor.u32 %v5934_v30, %v5930_v18  ;;  %v5945_v52 = vrot.slane %v5943_v58, 4 }
 0x38d   : > { %v5948_v54 = vrot.slane %v5946_v29, 5  ;;  %v5954_v17 = vrot.slane %v5952_v50, 5  ;;  %v5962_v45 = vshll.u32 %v16069_v40, 16  ;;  %v5967_v22 = vshrl.u32 %v16071_v13, 16 }
 0x38e   : > { %12685 = vmatprep.mubr.msk.bf16.mxu1 %vm728_vm3, %v11552_v36  ;;  %v5936_v57 = vrot.slane %v5935_v51, 4  ;;  %v5931_v2 = vsel %vm13885_vm2, %v5926_v41, %v5930_v18  ;;  %v5958_v10 = vrot.slane %v5956_v53, 4  ;;  %v5970_v62 = vshll.u32 %v16071_v13, 16 }
 0x38f   : > { %v5949_v34 = vor.u32 %v5948_v54, %v5945_v52  ;;  %v5969_v46 = vrot.slane %v5967_v22, 4  ;;  %v5976_v56 = vshll.u32 %v16079_v9, 16  ;;  %v5980_v30 = vshrl.u32 %v16079_v9, 16 }
 0x390   : > { %v5941_v35 = vsel %vm13885_vm2, %v5936_v57, %v5940_v24  ;;  %v5959_v58 = vor.u32 %v5958_v10, %v5954_v17  ;;  %v5972_v29 = vrot.slane %v5970_v62, 5  ;;  %v5986_v41 = vshll.u32 %v16089_v4, 16 }
 0x391   : > { %v11553_v31 = vcombine.low %v5931_v2, %v5941_v35  ;;  %v5950_v8 = vrot.slane %v5949_v34, 4  ;;  %v5978_v36 = vrot.slane %v5976_v56, 5  ;;  %v5982_v18 = vrot.slane %v5980_v30, 4  ;;  %v6577_v30 = vld [vmem:[#allocation2 + $0x90] sm:$0xe] }
 0x392   : > { %v5960_v51 = vrot.slane %v5959_v58, 4  ;;  %v5964_v50 = vrot.slane %v5962_v45, 5  ;;  %v5973_v52 = vor.u32 %v5972_v29, %v5969_v46  ;;  %v5988_v34 = vrot.slane %v5986_v41, 5  ;;  %v13668_v58 = vld [vmem:[#allocation2] sm:$0xf] }
 0x393   : > { %12686 = vmatmul.mubr.msk.bf16.gmra.mrb[24].mxu1 %vm728_vm3, %v11553_v31  ;;  %v5983_v54 = vor.u32 %v5982_v18, %v5978_v36  ;;  %v5955_v24 = vsel %vm13885_vm2, %v5950_v8, %v5954_v17  ;;  %v11581_v10 = vcombine.low %v15939_v23, %v15953_v12  ;;  %v11582_v62 = vcombine.low %v15960_v59, %v15964_v3  ;;  %v16121_v29 = vld [vmem:[#allocation2 + $0x4] sm:$0xf]  ;;  %v6578_v56 = vld [vmem:[#allocation2 + $0x9c] sm:$0xe] }
 0x394   : > { %v5965_v53 = vsel %vm13885_vm2, %v5960_v51, %v5964_v50  ;;  %v5974_v57 = vrot.slane %v5973_v52, 4  ;;  %v13670_v51 = vld [vmem:[#allocation2 + $0xc] sm:$0xf]  ;;  %v16130_v50 = vld [vmem:[#allocation2 + $0x10] sm:$0xf]  ;;  %v11579_v41 = vcombine.low %v15883_v6, %v15900_v63  ;;  %v6674_v31 = vrot.slane %v15968_v1, 5 }
 0x395   : > { %v11554_v22 = vcombine.low %v5955_v24, %v5965_v53  ;;  %v5984_v2 = vrot.slane %v5983_v54, 4  ;;  %v11575_v52 = vcombine.low %v13670_v51, %v16130_v50  ;;  %v13609_v54 = vld [vmem:[%s17881_s3 + $0x28] sm:$0xff]   ;;  %v6572_v24 = vld [vmem:[#allocation2 + $0x54] sm:$0xe]  ;;  %v6667_v51 = vrot.slane %v15962_v25, 5 }
 0x396   : > { %v5979_v45 = vsel %vm13885_vm2, %v5974_v57, %v5978_v36  ;;  %v11574_v36 = vcombine.low %v13668_v58, %v16121_v29  ;;  %v13672_v53 = vld [vmem:[#allocation2 + $0x18] sm:$0xf]  ;;  %v16136_v57 = vld [vmem:[#allocation2 + $0x1c] sm:$0xf]  ;;  %v11615_v58 = vrot.slane %v6572_v24, 9  ;;  %v6688_v1 = vrot.slane %v16007_v5, 5 }
 0x397   : > { %12689 = vmatprep.mubr.msk.bf16.mxu1 %vm728_vm3, %v11554_v22  ;;  %v5989_v46 = vsel %vm13885_vm2, %v5984_v2, %v5988_v34  ;;  %v11576_v22 = vcombine.low %v13672_v53, %v16136_v57  ;;  %v6664_v2 = vrot.slane %v15953_v12, 5  ;;  %v6573_v34 = vld [vmem:[#allocation2 + $0x60] sm:$0xe]  ;;  %v11578_v53 = vcombine.low %v15857_v16, %v15863_v48  ;;  %v6575_v24 = vld [vmem:[#allocation2 + $0x78] sm:$0xe] }
 0x398   : > { %v11555_v8 = vcombine.low %v5979_v45, %v5989_v46  ;;  %v6574_v45 = vld [vmem:[#allocation2 + $0x6c] sm:$0xe]  ;;  %v13674_v46 = vld [vmem:[#allocation2 + $0x24] sm:$0xf]  ;;  %v6678_v48 = vrot.slane %v15980_v28, 5  ;;  %v6716_v17 = vrot.slane %v16069_v40, 5  ;;  %v18071_v23 = vcombine.low %v16011_v14, %v16017_v39 }
 0x399   : > { %v11617_v16 = vrot.slane %v6574_v45, 9  ;;  %v18072_v12 = vcombine.low %v16029_v21, %v16033_v43  ;;  %v6615_v59 = vrot.slane %v16121_v29, 5  ;;  %v6622_v21 = vrot.slane %v16130_v50, 5 }
 0x39a   : > { %v6680_v45 = vrot.slane %v6678_v48, 4 }
 0x39b   : > { %12690 = vmatmul.mubr.msk.bf16.gmra.mrb[28].mxu1 %vm728_vm3, %v11555_v8  ;;  %v11577_v8 = vcombine.low %v13674_v46, %v15840_v55  ;;  %v16157_v55 = vsel %vm14196_vm6, %v11615_v58, %v6664_v2  ;;  %v16173_v58 = vsel %vm14196_vm6, %v11617_v16, %v6678_v48  ;;  %v6709_v16 = vrot.slane %v16055_v61, 5 }
 0x39c   : > { %12697 = vmatprep.mubr.msk.bf16.mxu1 %vm728_vm3, %v11574_v36  ;;  %v6666_v36 = vrot.slane %v6664_v2, 4  ;;  %v6576_v2 = vld [vmem:[#allocation2 + $0x84] sm:$0xe] }
 0x39d   : > { %v11619_v46 = vrot.slane %v6576_v2, 9 }
 0x39e   : > { %v16161_v25 = vsel %vm14196_vm6, %v6666_v36, %v6667_v51  ;;  %v6681_v36 = vrot.slane %v15994_v20, 5  ;;  %v6685_v51 = vrot.slane %v16002_v26, 5 }
 0x3a0   : > { %v16188_v48 = vsel %vm14196_vm6, %v6680_v45, %v6681_v36  ;;  %v6687_v20 = vrot.slane %v6685_v51, 4  ;;  %v11620_v36 = vrot.slane %v6577_v30, 9  ;;  %v6580_v30 = vld [vmem:[#allocation2 + $0xb4] sm:$0xe] }
 0x3a2   : > { %v16203_v2 = vsel %vm14196_vm6, %v6687_v20, %v6688_v1 }
 0x3a3   : > { %12698 = vmatmul.mubr.msk.bf16.vlgmr.msra.gmra.mrb[0].mxu1 %vm728_vm3, %v11575_v52  ;;  %v11616_v52 = vrot.slane %v6573_v34, 9 }
 0x3a4   : > { %12730 = vmatpush3.bf16.msra.mxu1 %v15846_v32  ;;  %12701 = vmatprep.mubr.msk.bf16.mxu1 %vm728_vm3, %v11576_v22  ;;  %v16152_v32 = vld [vmem:[%s17881_s3 + $0x30] sm:$0xff]   ;;  %v6671_v22 = vrot.slane %v15964_v3, 5 }
 0x3a5   : > { %12731 = vmatprep.subr.bf16.mxu1 %v13609_v54  ;;  %v6565_v3 = vld [vmem:[#allocation2] sm:$0xe] }
 0x3a6   : > { %v16168_v34 = vsel %vm14196_vm6, %v11616_v52, %v6671_v22  ;;  %v6673_v18 = vrot.slane %v6671_v22, 4  ;;  %v11618_v22 = vrot.slane %v6575_v24, 9  ;;  %v6695_v24 = vrot.slane %v16020_v33, 5 }
 0x3a8   : > { %12732 = vmatpush3.bf16.msra.mxu1 %v13609_v54  ;;  %v16180_v52 = vsel %vm14196_vm6, %v6673_v18, %v6674_v31  ;;  %v6692_v54 = vrot.slane %v16017_v39, 5  ;;  %v11580_v31 = vcombine.low %v15905_v37, %v15911_v60  ;;  %v16199_v45 = vsel %vm14196_vm6, %v11618_v22, %v6685_v51  ;;  %v6579_v22 = vld [vmem:[#allocation2 + $0xa8] sm:$0xe] }
 0x3a9   : > { %12765 = vmatprep.subr.bf16.mxu1 %v16152_v32  ;;  %v6706_v51 = vrot.slane %v16048_v44, 5 }
 0x3aa   : > { %v6694_v18 = vrot.slane %v6692_v54, 4  ;;  %v16207_v37 = vsel %vm14196_vm6, %v11619_v46, %v6692_v54  ;;  %v6702_v46 = vrot.slane %v16039_v49, 5  ;;  %v11621_v54 = vrot.slane %v6578_v56, 9 }
 0x3ab   : > { %12702 = vmatmul.mubr.msk.bf16.gmra.mrb[4].mxu1 %vm728_vm3, %v11577_v8  ;;  %v6699_v8 = vrot.slane %v16033_v43, 5  ;;  %v6708_v33 = vrot.slane %v6706_v51, 4  ;;  %v11622_v49 = vrot.slane %v6579_v22, 9  ;;  %v6720_v56 = vrot.slane %v16079_v9, 5 }
 0x3ac   : > { %12705 = vmatprep.mubr.msk.bf16.mxu1 %vm728_vm3, %v11578_v53  ;;  %v16214_v53 = vsel %vm14196_vm6, %v6694_v18, %v6695_v24  ;;  %v6713_v18 = vrot.slane %v16064_v19, 5  ;;  %v16232_v1 = vsel %vm14196_vm6, %v11621_v54, %v6706_v51  ;;  %v6723_v51 = vrot.slane %v16089_v4, 5  ;;  %v6567_v54 = vld [vmem:[#allocation2 + $0x18] sm:$0xe] }
 0x3ad   : > { %v6701_v20 = vrot.slane %v6699_v8, 4  ;;  %v16222_v5 = vsel %vm14196_vm6, %v11620_v36, %v6699_v8  ;;  %v16239_v61 = vsel %vm14196_vm6, %v6708_v33, %v6709_v16  ;;  %v6722_v35 = vrot.slane %v6720_v56, 4 }
 0x3ae   : > { %v6715_v36 = vrot.slane %v6713_v18, 4  ;;  %v16251_v22 = vsel %vm14196_vm6, %v11622_v49, %v6713_v18  ;;  %v6629_v43 = vrot.slane %v16136_v57, 5  ;;  %v13677_v18 = vld [vmem:[#allocation2 + $0x20] sm:$0x1]  ;;  %v13678_v57 = vld [vmem:[#allocation2 + $0x28] sm:$0xf] }
 0x3af   : > { %v16228_v24 = vsel %vm14196_vm6, %v6701_v20, %v6702_v46  ;;  %v11623_v46 = vrot.slane %v6580_v30, 9  ;;  %v16266_v6 = vsel %vm14196_vm6, %v6722_v35, %v6723_v51  ;;  %v18070_v35 = vcombine.low %v15992_v7, %v16002_v26  ;;  %v16509_v20 = vld [vmem:[#allocation2 + $0xac] sm:$0xf] }
 0x3b0   : > { %v16255_v16 = vsel %vm14196_vm6, %v6715_v36, %v6716_v17  ;;  %v18069_v17 = vcombine.low %v15978_v42, %v15980_v28  ;;  %v13675_v42 = vld [vmem:[#allocation2 + $0x8] sm:$0x1]  ;;  %v18073_v7 = vcombine.low %v16045_v38, %v16048_v44  ;;  %v18074_v26 = vcombine.low %v16061_v15, %v16064_v19  ;;  %v6566_v44 = vld [vmem:[#allocation2 + $0xc] sm:$0xe]  ;;  %v13676_v19 = vld [vmem:[#allocation2 + $0x14] sm:$0x1] }
 0x3b1   : > { %v16262_v4 = vsel %vm14196_vm6, %v11623_v46, %v6720_v56  ;;  %v6618_v28 = vrot.slane %v13675_v42, 5  ;;  %v18075_v38 = vcombine.low %v16071_v13, %v16079_v9  ;;  %v6631_v15 = vrot.slane %v6629_v43, 4  ;;  %v13679_v9 = vld [vmem:[#allocation2 + $0x34] sm:$0xf] }
 0x3b2   : > { %v6625_v33 = vrot.slane %v13676_v19, 5  ;;  %v6632_v30 = vrot.slane %v13677_v18, 5  ;;  %v11609_v49 = vrot.slane %v6566_v44, 9  ;;  %v6636_v56 = vrot.slane %v13678_v57, 5  ;;  %v6571_v18 = vld [vmem:[#allocation2 + $0x48] sm:$0xe] }
 0x3b3   : > { %12706 = vmatmul.mubr.msk.bf16.gmra.mrb[8].mxu1 %vm728_vm3, %v11579_v41  ;;  %v11610_v36 = vrot.slane %v6567_v54, 9  ;;  %v6643_v46 = vrot.slane %v13679_v9, 5  ;;  %v11614_v57 = vrot.slane %v6571_v18, 9 }
 0x3b4   : > { %12709 = vmatprep.mubr.msk.bf16.mxu1 %vm728_vm3, %v11580_v31  ;;  %v6624_v31 = vrot.slane %v6622_v21, 4  ;;  %v6633_v13 = vsel %vm14196_vm6, %v6631_v15, %v6632_v30  ;;  %v6623_v51 = vsel %vm14196_vm6, %v11609_v49, %v6622_v21  ;;  %v6660_v30 = vrot.slane %v15915_v0, 5  ;;  %v16360_v0 = vld [vmem:[#allocation2 + $0x34] sm:$0xf] }
 0x3b5   : > { %v6645_v42 = vrot.slane %v6643_v46, 4 }
 0x3b6   : > { %v6626_v50 = vsel %vm14196_vm6, %v6624_v31, %v6625_v33  ;;  %v6657_v31 = vrot.slane %v15911_v60, 5  ;;  %v6653_v60 = vrot.slane %v15909_v11, 5  ;;  %v16358_v11 = vld [vmem:[#allocation2 + $0x28] sm:$0xf] }
 0x3b8   : > { %v6659_v54 = vrot.slane %v6657_v31, 4  ;;  %v6658_v9 = vsel %vm14196_vm6, %v11614_v57, %v6657_v31 }
 0x3bb   : > { %12710 = vmatmul.mubr.msk.bf16.gmra.mrb[12].mxu1 %vm728_vm3, %v11581_v10  ;;  %v11608_v10 = vrot.slane %v6565_v3, 9  ;;  %v6568_v3 = vld [vmem:[#allocation2 + $0x24] sm:$0xe] }
 0x3bc   : > { %12713 = vmatprep.mubr.msk.bf16.mxu1 %vm728_vm3, %v11582_v62  ;;  %v6617_v62 = vrot.slane %v6615_v59, 4 }
 0x3bd   : > { %v6616_v14 = vsel %vm14196_vm6, %v11608_v10, %v6615_v59  ;;  %v6638_v59 = vrot.slane %v6636_v56, 4 }
 0x3be   : > { %v6619_v39 = vsel %vm14196_vm6, %v6617_v62, %v6618_v28  ;;  %v13680_v28 = vld [vmem:[#allocation2 + $0x2c] sm:$0x1]  ;;  %v6569_v62 = vld [vmem:[#allocation2 + $0x30] sm:$0xe] }
 0x3bf   : > { %v11628_v29 = vcombine.low %v6616_v14, %v6619_v39  ;;  %v6639_v10 = vrot.slane %v13680_v28, 5  ;;  %v16331_v14 = vld [vmem:[%s17881_s3 + $0x40] sm:$0xff]   ;;  %v11611_v39 = vrot.slane %v6568_v3, 9  ;;  %v18076_v3 = vcombine.low %v16157_v55, %v16161_v25 }
 0x3c0   : > { %v16383_v55 = vld [vmem:[#allocation2 + $0x50] sm:$0x1] }
 0x3c1   : > { %v6640_v21 = vsel %vm14196_vm6, %v6638_v59, %v6639_v10  ;;  %v8219_v59 = vrot.slane %v16358_v11, 5  ;;  %v8226_v10 = vrot.slane %v16360_v0, 5 }
 0x3c3   : > { %12714 = vmatmul.mubr.msk.bf16.gmra.mrb[16].mxu1 %vm728_vm3, %v18069_v17  ;;  %v11629_v17 = vcombine.low %v6623_v51, %v6626_v50  ;;  %v8141_v51 = vld [vmem:[#allocation2 + $0x24] sm:$0xe] }
 0x3c4   : > { %12717 = vmatprep.mubr.msk.bf16.mxu1 %vm728_vm3, %v18070_v35  ;;  %v6630_v35 = vsel %vm14196_vm6, %v11610_v36, %v6629_v43  ;;  %v6650_v43 = vrot.slane %v15900_v63, 5  ;;  %v6570_v63 = vld [vmem:[#allocation2 + $0x3c] sm:$0xe]  ;;  %v11740_v28 = vrot.slane %v8141_v51, 9 }
 0x3c5   : > { %v11613_v49 = vrot.slane %v6570_v63, 9 }
 0x3c6   : > { %v6652_v33 = vrot.slane %v6650_v43, 4  ;;  %v16387_v25 = vsel %vm14196_vm6, %v11740_v28, %v8219_v59 }
 0x3c7   : > { %v6651_v36 = vsel %vm14196_vm6, %v11613_v49, %v6650_v43  ;;  %v8144_v43 = vld [vmem:[#allocation2 + $0x48] sm:$0xe]  ;;  %18078 = vst [vmem:[#allocation6_spill] sm:$0xff] %v16387_v25  ;;  %v16412_v49 = vld [vmem:[#allocation2 + $0x68] sm:$0x1]  ;;  %v13636_v25 = vld [vmem:[#allocation2 + $0xc0] sm:$0xff]  }
 0x3c8   : > { %v6654_v50 = vsel %vm14196_vm6, %v6652_v33, %v6653_v60  ;;  %v16403_v33 = vld [vmem:[#allocation2 + $0x5c] sm:$0x1]  ;;  %v11743_v60 = vrot.slane %v8144_v43, 9 }
 0x3cb   : > { %12718 = vmatmul.mubr.msk.bf16.gmra.mrb[20].mxu1 %vm728_vm3, %v18071_v23  ;;  %v13618_v23 = vld [vmem:[%s17881_s3 + $0x38] sm:$0xff]  }
 0x3cc   : > { %12721 = vmatprep.mubr.msk.bf16.mxu1 %vm728_vm3, %v18072_v12  ;;  %v11630_v12 = vcombine.low %v6630_v35, %v6633_v13  ;;  %v11633_v13 = vcombine.low %v6651_v36, %v6654_v50  ;;  %v8142_v35 = vld [vmem:[#allocation2 + $0x30] sm:$0xe]  ;;  %v16493_v50 = vld [vmem:[#allocation2 + $0xa0] sm:$0xf] }
 0x3d3   : > { %12722 = vmatmul.mubr.msk.bf16.gmra.mrb[24].mxu1 %vm728_vm3, %v18073_v7  ;;  %v13681_v7 = vld [vmem:[#allocation2 + $0x38] sm:$0x1] }
 0x3d4   : > { %12725 = vmatprep.mubr.msk.bf16.mxu1 %vm728_vm3, %v18074_v26  ;;  %v6646_v26 = vrot.slane %v13681_v7, 5  ;;  %v18077_v7 = vcombine.low %v16168_v34, %v16180_v52  ;;  %v16392_v34 = vld [vmem:[#allocation2 + $0x64] sm:$0xf] }
 0x3db   : > { %12726 = vmatmul.mubr.msk.bf16.gmra.mrb[28].mxu1 %vm728_vm3, %v18075_v38  ;;  %v6637_v38 = vsel %vm14196_vm6, %v11611_v39, %v6636_v56  ;;  %v6661_v56 = vsel %vm14196_vm6, %v6659_v54, %v6660_v30  ;;  %v8145_v30 = vld [vmem:[#allocation2 + $0x54] sm:$0xe] }
 0x3dc   : > { %12733 = vmatprep.mubr.msk.bf16.mxu1 %vm728_vm3, %v11628_v29  ;;  %v6647_v29 = vsel %vm14196_vm6, %v6645_v42, %v6646_v26  ;;  %v11631_v44 = vcombine.low %v6637_v38, %v6640_v21  ;;  %v16373_v42 = vld [vmem:[#allocation2 + $0x4c] sm:$0xf]  ;;  %v8221_v26 = vrot.slane %v8219_v59, 4  ;;  %v11741_v21 = vrot.slane %v8142_v35, 9  ;;  %v16390_v38 = vld [vmem:[#allocation2 + $0x58] sm:$0xf] }
 0x3dd   : > { %v8240_v18 = vrot.slane %v16373_v42, 5  ;;  %v8243_v35 = vrot.slane %v16383_v55, 5  ;;  %v8247_v59 = vrot.slane %v16390_v38, 5  ;;  %v11744_v28 = vrot.slane %v8145_v30, 9 }
 0x3df   : > { %v8242_v51 = vrot.slane %v8240_v18, 4 }
 0x3e1   : > { %v16445_v43 = vsel %vm14196_vm6, %v8242_v51, %v8243_v35 }
 0x3e2   : > { %18086 = vst [vmem:[#allocation13_spill] sm:$0xff] %v16445_v43  ;;  %v13628_v43 = vld [vmem:[#allocation2 + $0x6c] sm:$0xff]  }
 0x3e3   : > { %12734 = vmatmul.mubr.msk.bf16.vlgmr.msra.gmra.mrb[0].mxu1 %vm728_vm3, %v11629_v17  ;;  %v16362_v17 = vld [vmem:[#allocation2 + $0x2c] sm:$0x1] }
 0x3e4   : > { %12766 = vmatpush3.bf16.msra.mxu1 %v16152_v32  ;;  %12737 = vmatprep.mubr.msk.bf16.mxu1 %vm728_vm3, %v11630_v12  ;;  %v11612_v32 = vrot.slane %v6569_v62, 9  ;;  %v16366_v12 = vld [vmem:[#allocation2 + $0x40] sm:$0xf]  ;;  %v8143_v62 = vld [vmem:[#allocation2 + $0x3c] sm:$0xe]  ;;  %v8222_v39 = vrot.slane %v16362_v17, 5 }
 0x3e5   : > { %12767 = vmatprep.subr.bf16.mxu1 %v13618_v23 }
 0x3e6   : > { %v6644_v15 = vsel %vm14196_vm6, %v11612_v32, %v6643_v46  ;;  %v11634_v46 = vcombine.low %v6658_v9, %v6661_v56  ;;  %v16381_v32 = vld [vmem:[#allocation2 + $0x44] sm:$0x1]  ;;  %v16396_v52 = vsel %vm14196_vm6, %v8221_v26, %v8222_v39  ;;  %v16421_v9 = vld [vmem:[#allocation2 + $0x70] sm:$0xf]  ;;  %v18085_v26 = vcombine.low %v16173_v58, %v16188_v48  ;;  %v16439_v39 = vld [vmem:[#allocation2 + $0x7c] sm:$0xf] }
 0x3e7   : > { %v11632_v19 = vcombine.low %v6644_v15, %v6647_v29  ;;  %v8228_v29 = vrot.slane %v8226_v10, 4  ;;  %18079 = vst [vmem:[#allocation7_spill] sm:$0xff] %v16396_v52  ;;  %v11742_v15 = vrot.slane %v8143_v62, 9  ;;  %v8236_v36 = vrot.slane %v16381_v32, 5  ;;  %v16451_v58 = vld [vmem:[#allocation2 + $0x74] sm:$0x1] }
 0x3e8   : > { %12768 = vmatpush3.bf16.msra.mxu1 %v13618_v23  ;;  %v16364_v23 = vld [vmem:[#allocation2 + $0x38] sm:$0x1]  ;;  %v8254_v62 = vrot.slane %v16392_v34, 5  ;;  %v16453_v48 = vld [vmem:[#allocation2 + $0x80] sm:$0x1]  ;;  %v8261_v35 = vrot.slane %v16421_v9, 5 }
 0x3e9   : > { %12801 = vmatprep.subr.bf16.mxu1 %v16331_v14  ;;  %v8229_v31 = vrot.slane %v16364_v23, 5 }
 0x3ea   : > { %v8256_v30 = vrot.slane %v8254_v62, 4 }
 0x3eb   : > { %12738 = vmatmul.mubr.msk.bf16.gmra.mrb[4].mxu1 %vm728_vm3, %v11631_v44  ;;  %v16400_v44 = vsel %vm14196_vm6, %v11741_v21, %v8226_v10  ;;  %v16409_v54 = vsel %vm14196_vm6, %v8228_v29, %v8229_v31  ;;  %v8250_v10 = vrot.slane %v16403_v33, 5  ;;  %v8249_v29 = vrot.slane %v8247_v59, 4  ;;  %v8150_v21 = vld [vmem:[#allocation2 + $0x90] sm:$0xe] }
 0x3ec   : > { %12741 = vmatprep.mubr.msk.bf16.mxu1 %vm728_vm3, %v11632_v19  ;;  %18080 = vst [vmem:[#allocation8_spill] sm:$0xff] %v16400_v44  ;;  %v8233_v19 = vrot.slane %v16366_v12, 5  ;;  %18081 = vst [vmem:[#allocation9_spill] sm:$0xff] %v16409_v54 }
 0x3ee   : > { %v16418_v57 = vsel %vm14196_vm6, %v11742_v15, %v8233_v19  ;;  %v8235_v56 = vrot.slane %v8233_v19, 4  ;;  %v8148_v15 = vld [vmem:[#allocation2 + $0x78] sm:$0xe]  ;;  %v18087_v19 = vcombine.low %v16199_v45, %v16203_v2  ;;  %v16468_v45 = vsel %vm14196_vm6, %v8249_v29, %v8250_v10  ;;  %v8149_v29 = vld [vmem:[#allocation2 + $0x84] sm:$0xe] }
 0x3ef   : > { %18082 = vst [vmem:[#allocation10_spill] sm:$0xff] %v16418_v57  ;;  %18089 = vst [vmem:[#allocation15_spill] sm:$0xff] %v16468_v45  ;;  %v8268_v10 = vrot.slane %v16439_v39, 5 }
 0x3f3   : > { %12742 = vmatmul.mubr.msk.bf16.gmra.mrb[8].mxu1 %vm728_vm3, %v11633_v13  ;;  %v8146_v13 = vld [vmem:[#allocation2 + $0x60] sm:$0xe] }
 0x3f4   : > { %12745 = vmatprep.mubr.msk.bf16.mxu1 %vm728_vm3, %v11634_v46  ;;  %v16425_v46 = vsel %vm14196_vm6, %v11743_v60, %v8240_v18  ;;  %v11745_v31 = vrot.slane %v8146_v13, 9  ;;  %v16459_v18 = vsel %vm14196_vm6, %v11744_v28, %v8247_v59  ;;  %v16464_v13 = vld [vmem:[#allocation2 + $0x94] sm:$0xf]  ;;  %v16475_v59 = vld [vmem:[#allocation2 + $0x8c] sm:$0x1]  ;;  %v8264_v28 = vrot.slane %v16451_v58, 5 }
 0x3f5   : > { %18083 = vst [vmem:[#allocation11_spill] sm:$0xff] %v16425_v46  ;;  %18088 = vst [vmem:[#allocation14_spill] sm:$0xff] %v16459_v18  ;;  %v16484_v60 = vld [vmem:[#allocation2 + $0x98] sm:$0x1]  ;;  %v8278_v41 = vrot.slane %v16475_v59, 5  ;;  %v8282_v40 = vrot.slane %v16464_v13, 5 }
 0x3f6   : > { %v16472_v2 = vsel %vm14196_vm6, %v11745_v31, %v8254_v62  ;;  %v8263_v31 = vrot.slane %v8261_v35, 4  ;;  %v16501_v62 = vld [vmem:[#allocation2 + $0xa4] sm:$0x1]  ;;  %v8285_v18 = vrot.slane %v16484_v60, 5  ;;  %v7535_v46 = vshrl.u32 %v16360_v0, 16 }
 0x3f7   : > { %18090 = vst [vmem:[#allocation16_spill] sm:$0xff] %v16472_v2  ;;  %v8151_v2 = vld [vmem:[#allocation2 + $0x9c] sm:$0xe]  ;;  %v8284_v45 = vrot.slane %v8282_v40, 4 }
 0x3fb   : > { %12746 = vmatmul.mubr.msk.bf16.gmra.mrb[12].mxu1 %vm728_vm3, %v18076_v3  ;;  %v16431_v3 = vsel %vm14196_vm6, %v8235_v56, %v8236_v36  ;;  %v8257_v56 = vrot.slane %v16412_v49, 5  ;;  %v16462_v36 = vld [vmem:[#allocation2 + $0x88] sm:$0xf] }
 0x3fc   : > { %12749 = vmatprep.mubr.msk.bf16.mxu1 %vm728_vm3, %v18077_v7  ;;  %18084 = vst [vmem:[#allocation12_spill] sm:$0xff] %v16431_v3  ;;  %v8147_v7 = vld [vmem:[#allocation2 + $0x6c] sm:$0xe]  ;;  %v8275_v63 = vrot.slane %v16462_v36, 5 }
 0x3fd   : > { %v11746_v51 = vrot.slane %v8147_v7, 9 }
 0x3fe   : > { %v8277_v8 = vrot.slane %v8275_v63, 4 }
 0x3ff   : > { %v16490_v7 = vsel %vm14196_vm6, %v11746_v51, %v8261_v35  ;;  %v16505_v51 = vsel %vm14196_vm6, %v8263_v31, %v8264_v28  ;;  %v11748_v35 = vrot.slane %v8149_v29, 9  ;;  %v18096_v28 = vcombine.low %v16207_v37, %v16214_v53  ;;  %v7442_v29 = vld [vmem:[#allocation2 + $0xb0] sm:$0x1] }
 0x400   : > { %18092 = vst [vmem:[#allocation18_spill] sm:$0xff] %v16490_v7  ;;  %18094 = vst [vmem:[#allocation20_spill] sm:$0xff] %v16505_v51  ;;  %v16536_v53 = vsel %vm14196_vm6, %v8277_v8, %v8278_v41  ;;  %v8289_v31 = vrot.slane %v16493_v50, 5  ;;  %v8153_v8 = vld [vmem:[#allocation2 + $0xb4] sm:$0xe] }
 0x401   : > { %v16532_v37 = vsel %vm14196_vm6, %v11748_v35, %v8275_v63  ;;  %18099 = vst [vmem:[#allocation23_spill] sm:$0xff] %v16536_v53  ;;  %v11750_v63 = vrot.slane %v8151_v2, 9  ;;  %v8296_v35 = vrot.slane %v16509_v20, 5  ;;  %v7448_v41 = vld [vmem:[#allocation2 + $0xc8] sm:$0x1]  ;;  %v8299_v53 = vrot.slane %v7442_v29, 5 }
 0x402   : > { %18098 = vst [vmem:[#allocation22_spill] sm:$0xff] %v16532_v37  ;;  %v8313_v7 = vrot.slane %v7448_v41, 5  ;;  %v13622_v41 = vld [vmem:[#allocation2 + $0x24] sm:$0xff]  }
 0x403   : > { %12750 = vmatmul.mubr.msk.bf16.gmra.mrb[16].mxu1 %vm728_vm3, %v18085_v26  ;;  %v16481_v26 = vsel %vm14196_vm6, %v8256_v30, %v8257_v56  ;;  %v8270_v30 = vrot.slane %v8268_v10, 4  ;;  %v8271_v56 = vrot.slane %v16453_v48, 5  ;;  %v16557_v51 = vsel %vm14196_vm6, %v11750_v63, %v8289_v31 }
 0x404   : > { %12753 = vmatprep.mubr.msk.bf16.mxu1 %vm728_vm3, %v18087_v19  ;;  %18091 = vst [vmem:[#allocation17_spill] sm:$0xff] %v16481_v26  ;;  %v11747_v19 = vrot.slane %v8148_v15, 9  ;;  %v11749_v26 = vrot.slane %v8150_v21, 9  ;;  %v16528_v21 = vld [vmem:[#allocation2 + $0xb8] sm:$0xf]  ;;  %18102 = vst [vmem:[#allocation26_spill] sm:$0xff] %v16557_v51 }
 0x405   : > { %v7410_v51 = vld [vmem:[#allocation2 + $0x30] sm:$0xf] }
 0x406   : > { %v16497_v15 = vsel %vm14196_vm6, %v11747_v19, %v8268_v10  ;;  %v16515_v10 = vsel %vm14196_vm6, %v8270_v30, %v8271_v56  ;;  %v8152_v19 = vld [vmem:[#allocation2 + $0xa8] sm:$0xe]  ;;  %v18097_v30 = vcombine.low %v16222_v5, %v16228_v24  ;;  %v7445_v56 = vld [vmem:[#allocation2 + $0xbc] sm:$0x1]  ;;  %v16543_v5 = vld [vmem:[#allocation2 + $0xc4] sm:$0xf] }
 0x407   : > { %18093 = vst [vmem:[#allocation19_spill] sm:$0xff] %v16497_v15  ;;  %18095 = vst [vmem:[#allocation21_spill] sm:$0xff] %v16515_v10  ;;  %v8292_v10 = vrot.slane %v16501_v62, 5  ;;  %v11751_v15 = vrot.slane %v8152_v19, 9  ;;  %v8298_v24 = vrot.slane %v8296_v35, 4  ;;  %v8310_v19 = vrot.slane %v16543_v5, 5 }
 0x409   : > { %v16573_v29 = vsel %vm14196_vm6, %v8298_v24, %v8299_v53  ;;  %v8312_v37 = vrot.slane %v8310_v19, 4  ;;  %v7407_v24 = vld [vmem:[#allocation2 + $0x24] sm:$0xf] }
 0x40a   : > { %18105 = vst [vmem:[#allocation29_spill] sm:$0xff] %v16573_v29 }
 0x40b   : > { %12754 = vmatmul.mubr.msk.bf16.gmra.mrb[20].mxu1 %vm728_vm3, %v18096_v28  ;;  %v16540_v28 = vsel %vm14196_vm6, %v11749_v26, %v8282_v40  ;;  %v8291_v26 = vrot.slane %v8289_v31, 4  ;;  %v16566_v40 = vsel %vm14196_vm6, %v11751_v15, %v8296_v35  ;;  %v18106_v15 = vcombine.low %v16232_v1, %v16239_v61 }
 0x40c   : > { %12757 = vmatprep.mubr.msk.bf16.mxu1 %vm728_vm3, %v18097_v30  ;;  %18100 = vst [vmem:[#allocation24_spill] sm:$0xff] %v16540_v28  ;;  %v16549_v30 = vsel %vm14196_vm6, %v8284_v45, %v8285_v18  ;;  %v8303_v18 = vrot.slane %v16528_v21, 5  ;;  %v8154_v45 = vld [vmem:[#allocation2 + $0xc0] sm:$0xe]  ;;  %18104 = vst [vmem:[#allocation28_spill] sm:$0xff] %v16566_v40  ;;  %v8306_v28 = vrot.slane %v7445_v56, 5  ;;  %v18109_v56 = vcombine.low %v16251_v22, %v16255_v16 }
 0x40d   : > { %18101 = vst [vmem:[#allocation25_spill] sm:$0xff] %v16549_v30  ;;  %v16562_v2 = vsel %vm14196_vm6, %v8291_v26, %v8292_v10  ;;  %v11752_v30 = vrot.slane %v8153_v8, 9  ;;  %v11753_v26 = vrot.slane %v8154_v45, 9  ;;  %v16601_v61 = vsel %vm14196_vm6, %v8312_v37, %v8313_v7  ;;  %v13621_v16 = vld [vmem:[#allocation2 + $0x18] sm:$0xff]   ;;  %v7401_v7 = vld [vmem:[#allocation2 + $0xc] sm:$0xf] }
 0x40e   : > { %18103 = vst [vmem:[#allocation27_spill] sm:$0xff] %v16562_v2  ;;  %v8305_v63 = vrot.slane %v8303_v18, 4  ;;  %18111 = vst [vmem:[#allocation33_spill] sm:$0xff] %v16601_v61  ;;  %v18112_v22 = vcombine.low %v16262_v4, %v16266_v6  ;;  %v13629_v8 = vld [vmem:[%s17881_s3 + $0x48] sm:$0xff]   ;;  %v16616_v37 = vld [vmem:[#allocation2 + $0x10] sm:$0xf] }
 0x40f   : > { %v16583_v35 = vsel %vm14196_vm6, %v11752_v30, %v8303_v18  ;;  %v16597_v1 = vsel %vm14196_vm6, %v11753_v26, %v8310_v19  ;;  %v13619_v30 = vld [vmem:[#allocation2 + $0xc] sm:$0xff]   ;;  %v16621_v4 = vld [vmem:[%s17881_s3 + $0x50] sm:$0xff]   ;;  %v7450_v6 = vshrl.u32 %v7401_v7, 16  ;;  %v7453_v18 = vshll.u32 %v7401_v7, 16  ;;  %v16626_v26 = vld [vmem:[#allocation2 + $0x1c] sm:$0xf] }
 0x410   : > { %18107 = vst [vmem:[#allocation30_spill] sm:$0xff] %v16583_v35  ;;  %v16587_v53 = vsel %vm14196_vm6, %v8305_v63, %v8306_v28  ;;  %18110 = vst [vmem:[#allocation32_spill] sm:$0xff] %v16597_v1  ;;  %v7459_v45 = vshll.u32 %v16616_v37, 16  ;;  %v7463_v19 = vshrl.u32 %v16616_v37, 16  ;;  %v7404_v63 = vld [vmem:[#allocation2 + $0x18] sm:$0xf] }
 0x411   : > { %18108 = vst [vmem:[#allocation31_spill] sm:$0xff] %v16587_v53  ;;  %v7483_v7 = vshll.u32 %v16626_v26, 16  ;;  %v7487_v28 = vshrl.u32 %v16626_v26, 16  ;;  %v16632_v10 = vld [vmem:[#allocation2 + $0x14] sm:$0x1] }
 0x412   : > { %v7469_v35 = vshll.u32 %v16632_v10, 16 }
 0x413   : > { %12758 = vmatmul.mubr.msk.bf16.gmra.mrb[24].mxu1 %vm728_vm3, %v18106_v15  ;;  %v13624_v15 = vld [vmem:[#allocation2 + $0x3c] sm:$0xff]  }
 0x414   : > { %12761 = vmatprep.mubr.msk.bf16.mxu1 %vm728_vm3, %v18109_v56  ;;  %v7452_v56 = vrot.slane %v7450_v6, 4  ;;  %v7489_v6 = vrot.slane %v7487_v28, 4  ;;  %v7471_v40 = vrot.slane %v7469_v35, 5  ;;  %v7525_v35 = vshll.u32 %v7410_v51, 16 }
 0x41b   : > { %12762 = vmatmul.mubr.msk.bf16.gmra.mrb[28].mxu1 %vm728_vm3, %v18112_v22  ;;  %v7474_v22 = vshrl.u32 %v7404_v63, 16 }
 0x41c   : > { %12769 = vmatprep.mubr.msk.bf16.mxu1 %vm728_vm3, %v13619_v30  ;;  %v7455_v30 = vrot.slane %v7453_v18, 5  ;;  %v13625_v18 = vld [vmem:[#allocation2 + $0x48] sm:$0xff]  }
 0x41d   : > { %v7476_v31 = vrot.slane %v7474_v22, 4 }
 0x41e   : > { %v7456_v1 = vor.u32 %v7455_v30, %v7452_v56 }
 0x420   : > { %v7457_v22 = vrot.slane %v7456_v1, 4  ;;  %v13627_v1 = vld [vmem:[#allocation2 + $0x60] sm:$0xff]  }
 0x423   : > { %12770 = vmatmul.mubr.msk.bf16.vlgmr.msra.gmra.mrb[0].mxu1 %vm728_vm3, %v13621_v16  ;;  %v7477_v16 = vshll.u32 %v7404_v63, 16  ;;  %v16636_v63 = vld [vmem:[#allocation2 + $0x20] sm:$0x1] }
 0x424   : > { %12802 = vmatpush3.bf16.msra.mxu1 %v16331_v14  ;;  %12773 = vmatprep.mubr.msk.bf16.mxu1 %vm728_vm3, %v13622_v41  ;;  %v13623_v14 = vld [vmem:[#allocation2 + $0x30] sm:$0xff]   ;;  %v7465_v41 = vrot.slane %v7463_v19, 4  ;;  %18113 = vst [vmem:[#allocation34_spill] sm:$0xff] %v16636_v63  ;;  %v7493_v30 = vshll.u32 %v16636_v63, 16  ;;  %v9739_v63 = vld [vmem:[#allocation2 + $0x84] sm:$0xe] }
 0x425   : > { %12803 = vmatprep.subr.bf16.mxu1 %v13629_v8  ;;  %v7479_v61 = vrot.slane %v7477_v16, 5  ;;  %v13626_v19 = vld [vmem:[#allocation2 + $0x54] sm:$0xff]  }
 0x427   : > { %v7480_v29 = vor.u32 %v7479_v61, %v7476_v31 }
 0x428   : > { %12804 = vmatpush3.bf16.msra.mxu1 %v13629_v8  ;;  %v7461_v8 = vrot.slane %v7459_v45, 5  ;;  %v7501_v45 = vshll.u32 %v7407_v24, 16 }
 0x429   : > { %12837 = vmatprep.subr.bf16.mxu1 %v16621_v4  ;;  %v7481_v2 = vrot.slane %v7480_v29, 4  ;;  %v7531_v29 = vshll.u32 %v16360_v0, 16  ;;  %v7559_v0 = vshrl.u32 %v16366_v12, 16 }
 0x42a   : > { %v7466_v53 = vor.u32 %v7465_v41, %v7461_v8  ;;  %v7503_v41 = vrot.slane %v7501_v45, 5 }
 0x42b   : > { %12774 = vmatmul.mubr.msk.bf16.gmra.mrb[4].mxu1 %vm728_vm3, %v13623_v14  ;;  %v16634_v14 = vrot.slane %v7483_v7, 5  ;;  %v7507_v7 = vshll.u32 %v16358_v11, 16 }
 0x42c   : > { %12777 = vmatprep.mubr.msk.bf16.mxu1 %vm728_vm3, %v13624_v15  ;;  %v7498_v15 = vshrl.u32 %v7407_v24, 16  ;;  %v7467_v16 = vrot.slane %v7466_v53, 4  ;;  %v7511_v24 = vshrl.u32 %v16358_v11, 16  ;;  %v7517_v53 = vshll.u32 %v16362_v17, 16 }
 0x42d   : > { %v7490_v56 = vor.u32 %v7489_v6, %v16634_v14  ;;  %v7462_v6 = vsel %vm13885_vm2, %v7457_v22, %v7461_v8  ;;  %v16650_v45 = vrot.slane %v7507_v7, 5  ;;  %v7522_v11 = vshrl.u32 %v7410_v51, 16  ;;  %v7413_v8 = vld [vmem:[#allocation2 + $0x3c] sm:$0xf] }
 0x42e   : > { %v7500_v28 = vrot.slane %v7498_v15, 4  ;;  %v7472_v31 = vsel %vm13885_vm2, %v7467_v16, %v7471_v40  ;;  %v7486_v17 = vsel %vm13885_vm2, %v7481_v2, %v16634_v14  ;;  %v16663_v16 = vrot.slane %v7517_v53, 5  ;;  %v7419_v14 = vld [vmem:[#allocation2 + $0x54] sm:$0xf] }
 0x42f   : > { %v7491_v61 = vrot.slane %v7490_v56, 4  ;;  %v16655_v40 = vcombine.low %v7462_v6, %v7472_v31  ;;  %v7555_v51 = vshll.u32 %v16366_v12, 16  ;;  %v7416_v56 = vld [vmem:[#allocation2 + $0x48] sm:$0xf]  ;;  %v7583_v2 = vshrl.u32 %v16373_v42, 16 }
 0x430   : > { %v7504_v15 = vor.u32 %v7503_v41, %v7500_v28  ;;  %v7579_v41 = vshll.u32 %v16373_v42, 16  ;;  %v7524_v7 = vrot.slane %v7522_v11, 4  ;;  %v7537_v31 = vrot.slane %v7535_v46, 4 }
 0x431   : > { %v7570_v53 = vshrl.u32 %v7416_v56, 16  ;;  %v16672_v6 = vrot.slane %v7555_v51, 5  ;;  %v7561_v12 = vrot.slane %v7559_v0, 4  ;;  %v7597_v3 = vshll.u32 %v7419_v14, 16 }
 0x432   : > { %v16674_v57 = vrot.slane %v7579_v41, 5  ;;  %v7585_v54 = vrot.slane %v7583_v2, 4  ;;  %v7603_v42 = vshll.u32 %v16390_v38, 16  ;;  %v7607_v11 = vshrl.u32 %v16390_v38, 16 }
 0x433   : > { %12778 = vmatmul.mubr.msk.bf16.gmra.mrb[8].mxu1 %vm728_vm3, %v13625_v18  ;;  %v7495_v18 = vrot.slane %v7493_v30, 5  ;;  %v7505_v30 = vrot.slane %v7504_v15, 4  ;;  %v7594_v15 = vshrl.u32 %v7419_v14, 16  ;;  %v7572_v14 = vrot.slane %v7570_v53, 4 }
 0x434   : > { %12781 = vmatprep.mubr.msk.bf16.mxu1 %vm728_vm3, %v13626_v19  ;;  %v7513_v19 = vrot.slane %v7511_v24, 4  ;;  %v16670_v24 = vrot.slane %v7531_v29, 5  ;;  %v7562_v2 = vor.u32 %v7561_v12, %v16672_v6  ;;  %v7599_v52 = vrot.slane %v7597_v3, 5 }
 0x435   : > { %v7496_v22 = vsel %vm13885_vm2, %v7491_v61, %v7495_v18  ;;  %v7546_v61 = vshrl.u32 %v7413_v8, 16  ;;  %v7549_v18 = vshll.u32 %v7413_v8, 16  ;;  %v7596_v38 = vrot.slane %v7594_v15, 4 }
 0x436   : > { %v7514_v28 = vor.u32 %v7513_v19, %v16650_v45  ;;  %v13630_v19 = vld [vmem:[#allocation2 + $0x78] sm:$0xff]   ;;  %v7538_v8 = vor.u32 %v7537_v31, %v16670_v24  ;;  %v16682_v41 = vcombine.low %v7486_v17, %v7496_v22  ;;  %v7422_v31 = vld [vmem:[#allocation2 + $0x60] sm:$0xf]  ;;  %v7589_v12 = vshll.u32 %v16383_v55, 16 }
 0x437   : > { %v7548_v51 = vrot.slane %v7546_v61, 4  ;;  %v7551_v0 = vrot.slane %v7549_v18, 5  ;;  %v7565_v18 = vshll.u32 %v16381_v32, 16  ;;  %v7621_v15 = vshll.u32 %v7422_v31, 16 }
 0x438   : > { %v7515_v29 = vrot.slane %v7514_v28, 4  ;;  %v7510_v28 = vsel %vm13885_vm2, %v7505_v30, %v16650_v45  ;;  %v7539_v22 = vrot.slane %v7538_v8, 4  ;;  %v7563_v45 = vrot.slane %v7562_v2, 4 }
 0x439   : > { %v7552_v3 = vor.u32 %v7551_v0, %v7548_v51  ;;  %v7600_v30 = vor.u32 %v7599_v52, %v7596_v38  ;;  %v7567_v52 = vrot.slane %v7565_v18, 5  ;;  %v7613_v51 = vshll.u32 %v16403_v33, 16  ;;  %v7425_v0 = vld [vmem:[#allocation2 + $0x6c] sm:$0xf] }
 0x43a   : > { %v7520_v61 = vsel %vm13885_vm2, %v7515_v29, %v16663_v16  ;;  %v7631_v16 = vshrl.u32 %v16392_v34, 16  ;;  %v13633_v29 = vld [vmem:[#allocation2 + $0x9c] sm:$0xff]   ;;  %v16715_v2 = vrot.slane %v7621_v15, 5  ;;  %v13634_v18 = vld [vmem:[#allocation2 + $0xa8] sm:$0xff]  }
 0x43b   : > { %12782 = vmatmul.mubr.msk.bf16.gmra.mrb[12].mxu1 %vm728_vm3, %v13627_v1  ;;  %v7573_v1 = vshll.u32 %v7416_v56, 16  ;;  %v7541_v56 = vshll.u32 %v16364_v23, 16  ;;  %v7586_v23 = vor.u32 %v7585_v54, %v16674_v57  ;;  %v7618_v54 = vshrl.u32 %v7422_v31, 16  ;;  %v16786_v15 = vld [vmem:[#allocation2 + $0x4c] sm:$0xf] }
 0x43c   : > { %12785 = vmatprep.mubr.msk.bf16.mxu1 %vm728_vm3, %v13628_v43  ;;  %v7527_v43 = vrot.slane %v7525_v35, 5  ;;  %v13631_v35 = vld [vmem:[#allocation2 + $0x84] sm:$0xff]   ;;  %v16723_v33 = vrot.slane %v7631_v16, 4  ;;  %v7645_v31 = vshll.u32 %v7425_v0, 16  ;;  %18121 = vst [vmem:[#allocation42_spill] sm:$0xff] %v16786_v15 }
 0x43d   : > { %v7575_v44 = vrot.slane %v7573_v1, 5  ;;  %v7543_v53 = vrot.slane %v7541_v56, 5  ;;  %v7591_v56 = vrot.slane %v7589_v12, 5  ;;  %v16737_v12 = vrot.slane %v7613_v51, 5  ;;  %v16773_v51 = vld [vmem:[#allocation2 + $0x2c] sm:$0x1] }
 0x43e   : > { %v7528_v46 = vor.u32 %v7527_v43, %v7524_v7  ;;  %v16689_v7 = vrot.slane %v7603_v42, 5  ;;  %v7609_v43 = vrot.slane %v7607_v11, 4  ;;  %v7587_v42 = vrot.slane %v7586_v23, 4  ;;  %18118 = vst [vmem:[#allocation39_spill] sm:$0xff] %v16773_v51 }
 0x43f   : > { %v7576_v1 = vor.u32 %v7575_v44, %v7572_v14  ;;  %v7544_v55 = vsel %vm13885_vm2, %v7539_v22, %v7543_v53  ;;  %v7553_v44 = vrot.slane %v7552_v3, 4  ;;  %v16711_v14 = vrot.slane %v7600_v30, 4  ;;  %v16727_v22 = vld [vmem:[#allocation2 + $0x1c] sm:$0xf]  ;;  %v13635_v30 = vld [vmem:[#allocation2 + $0xb4] sm:$0xff]  }
 0x440   : > { %v7529_v17 = vrot.slane %v7528_v46, 4  ;;  %v7610_v11 = vor.u32 %v7609_v43, %v16689_v7  ;;  %v16699_v46 = vcombine.low %v7510_v28, %v7520_v61  ;;  %v7592_v38 = vsel %vm13885_vm2, %v7587_v42, %v7591_v56  ;;  %18114 = vst [vmem:[#allocation35_spill] sm:$0xff] %v16727_v22  ;;  %v9730_v42 = vld [vmem:[#allocation2 + $0x18] sm:$0xe] }
 0x441   : > { %v7577_v8 = vrot.slane %v7576_v1, 4  ;;  %v7642_v43 = vshrl.u32 %v7425_v0, 16  ;;  %v7651_v61 = vshll.u32 %v16421_v9, 16  ;;  %v7558_v3 = vsel %vm13885_vm2, %v7553_v44, %v16672_v6  ;;  %v16776_v0 = vld [vmem:[#allocation2 + $0x38] sm:$0x1] }
 0x442   : > { %v7534_v32 = vsel %vm13885_vm2, %v7529_v17, %v16670_v24  ;;  %v16713_v24 = vrot.slane %v7618_v54, 4  ;;  %v16719_v28 = vrot.slane %v7610_v11, 4  ;;  %v7655_v17 = vshrl.u32 %v16421_v9, 16  ;;  %18119 = vst [vmem:[#allocation40_spill] sm:$0xff] %v16776_v0  ;;  %v16801_v6 = vld [vmem:[#allocation2 + $0x44] sm:$0x1] }
 0x443   : > { %12786 = vmatmul.mubr.msk.bf16.gmra.mrb[16].mxu1 %vm728_vm3, %v13630_v19  ;;  %v13632_v19 = vld [vmem:[#allocation2 + $0x90] sm:$0xff]   ;;  %v16729_v53 = vcombine.low %v7534_v32, %v7544_v55  ;;  %v7582_v1 = vsel %vm13885_vm2, %v7577_v8, %v16674_v57  ;;  %v16753_v57 = vld [vmem:[#allocation2 + $0x28] sm:$0xf]  ;;  %v9796_v32 = vrot.slane %v16727_v22, 5  ;;  %v9731_v55 = vld [vmem:[#allocation2 + $0x24] sm:$0xe] }
 0x444   : > { %12789 = vmatprep.mubr.msk.bf16.mxu1 %vm728_vm3, %v13631_v35  ;;  %v7627_v35 = vshll.u32 %v16392_v34, 16  ;;  %v7568_v34 = vsel %vm13885_vm2, %v7563_v45, %v7567_v52  ;;  %v16739_v45 = vld [vmem:[#allocation2 + $0x78] sm:$0xf]  ;;  %v16743_v9 = vcombine.low %v7582_v1, %v7592_v38  ;;  %18116 = vst [vmem:[#allocation37_spill] sm:$0xff] %v16753_v57  ;;  %v16765_v52 = vrot.slane %v7642_v43, 4  ;;  %18124 = vst [vmem:[#allocation45_spill] sm:$0xff] %v16801_v6 }
 0x445   : > { %v16741_v54 = vcombine.low %v7558_v3, %v7568_v34  ;;  %v16767_v44 = vrot.slane %v7645_v31, 5  ;;  %v16769_v8 = vrot.slane %v7651_v61, 5  ;;  %v16771_v56 = vrot.slane %v7655_v17, 4  ;;  %v16778_v34 = vld [vmem:[#allocation2 + $0x40] sm:$0xf] }
 0x446   : > { %v16721_v23 = vrot.slane %v7627_v35, 5  ;;  %18120 = vst [vmem:[#allocation41_spill] sm:$0xff] %v16778_v34  ;;  %v11868_v38 = vrot.slane %v9730_v42, 9  ;;  %v9798_v3 = vrot.slane %v9796_v32, 4  ;;  %v9803_v43 = vrot.slane %v16753_v57, 5 }
 0x447   : > { %v7675_v17 = vshll.u32 %v16439_v39, 16  ;;  %v11869_v16 = vrot.slane %v9731_v55, 9  ;;  %v9733_v31 = vld [vmem:[#allocation2 + $0x3c] sm:$0xe]  ;;  %v9734_v57 = vld [vmem:[#allocation2 + $0x48] sm:$0xe] }
 0x448   : > { %v16790_v42 = vsel %vm14196_vm6, %v11868_v38, %v9796_v32  ;;  %v9805_v35 = vrot.slane %v9803_v43, 4  ;;  %v16819_v22 = vld [vmem:[#allocation2 + $0x5c] sm:$0x1] }
 0x449   : > { %18122 = vst [vmem:[#allocation43_spill] sm:$0xff] %v16790_v42  ;;  %18129 = vst [vmem:[#allocation50_spill] sm:$0xff] %v16819_v22  ;;  %v9813_v42 = vrot.slane %v16776_v0, 5 }
 0x44b   : > { %12790 = vmatmul.mubr.msk.bf16.gmra.mrb[20].mxu1 %vm728_vm3, %v13632_v19  ;;  %v16751_v19 = vld [vmem:[#allocation2 + $0x20] sm:$0x1] }
 0x44c   : > { %12793 = vmatprep.mubr.msk.bf16.mxu1 %vm728_vm3, %v13633_v29  ;;  %18115 = vst [vmem:[#allocation36_spill] sm:$0xff] %v16751_v19  ;;  %v16762_v29 = vld [vmem:[#allocation2 + $0x34] sm:$0xf]  ;;  %v9799_v1 = vrot.slane %v16751_v19, 5  ;;  %v16803_v19 = vld [vmem:[#allocation2 + $0x50] sm:$0x1] }
 0x44d   : > { %18117 = vst [vmem:[#allocation38_spill] sm:$0xff] %v16762_v29  ;;  %18125 = vst [vmem:[#allocation46_spill] sm:$0xff] %v16803_v19  ;;  %v9810_v38 = vrot.slane %v16762_v29, 5  ;;  %v11871_v29 = vrot.slane %v9733_v31, 9 }
 0x44e   : > { %v16794_v11 = vsel %vm14196_vm6, %v9798_v3, %v9799_v1  ;;  %v16808_v3 = vld [vmem:[#allocation2 + $0x58] sm:$0xf]  ;;  %v16812_v1 = vsel %vm14196_vm6, %v11869_v16, %v9803_v43  ;;  %v16824_v16 = vrot.slane %v7675_v17, 5  ;;  %v11872_v17 = vrot.slane %v9734_v57, 9 }
 0x44f   : > { %18123 = vst [vmem:[#allocation44_spill] sm:$0xff] %v16794_v11  ;;  %18126 = vst [vmem:[#allocation47_spill] sm:$0xff] %v16808_v3  ;;  %v9812_v11 = vrot.slane %v9810_v38, 4  ;;  %v9831_v57 = vrot.slane %v16808_v3, 5  ;;  %v16869_v3 = vld [vmem:[#allocation2 + $0x80] sm:$0x1] }
 0x450   : > { %18127 = vst [vmem:[#allocation48_spill] sm:$0xff] %v16812_v1  ;;  %v9736_v1 = vld [vmem:[#allocation2 + $0x60] sm:$0xe]  ;;  %18139 = vst [vmem:[#allocation60_spill] sm:$0xff] %v16869_v3 }
 0x451   : > { %v16835_v32 = vsel %vm14196_vm6, %v9812_v11, %v9813_v42 }
 0x452   : > { %18132 = vst [vmem:[#allocation53_spill] sm:$0xff] %v16835_v32  ;;  %v9737_v32 = vld [vmem:[#allocation2 + $0x6c] sm:$0xe] }
 0x453   : > { %12794 = vmatmul.mubr.msk.bf16.gmra.mrb[24].mxu1 %vm728_vm3, %v13634_v18  ;;  %v9732_v18 = vld [vmem:[#allocation2 + $0x30] sm:$0xe] }
 0x454   : > { %12797 = vmatprep.mubr.msk.bf16.mxu1 %vm728_vm3, %v13635_v30  ;;  %v9806_v30 = vrot.slane %v16773_v51, 5  ;;  %v11870_v55 = vrot.slane %v9732_v18, 9  ;;  %v9817_v51 = vrot.slane %v16778_v34, 5  ;;  %v9820_v18 = vrot.slane %v16801_v6, 5  ;;  %v16831_v34 = vld [vmem:[#allocation2 + $0x64] sm:$0xf] }
 0x455   : > { %18131 = vst [vmem:[#allocation52_spill] sm:$0xff] %v16831_v34  ;;  %v9834_v6 = vrot.slane %v16819_v22, 5  ;;  %v13638_v22 = vld [vmem:[%s17881_s3 + $0x58] sm:$0xff]  }
 0x456   : > { %v16816_v61 = vsel %vm14196_vm6, %v9805_v35, %v9806_v30  ;;  %v16828_v35 = vsel %vm14196_vm6, %v11870_v55, %v9810_v38  ;;  %v9819_v43 = vrot.slane %v9817_v51, 4  ;;  %v9735_v30 = vld [vmem:[#allocation2 + $0x54] sm:$0xe]  ;;  %v16839_v31 = vsel %vm14196_vm6, %v11871_v29, %v9817_v51  ;;  %v16843_v55 = vld [vmem:[#allocation2 + $0x68] sm:$0x1] }
 0x457   : > { %18128 = vst [vmem:[#allocation49_spill] sm:$0xff] %v16816_v61  ;;  %18130 = vst [vmem:[#allocation51_spill] sm:$0xff] %v16828_v35  ;;  %v9824_v61 = vrot.slane %v16786_v15, 5  ;;  %v16845_v38 = vld [vmem:[#allocation2 + $0x70] sm:$0xf]  ;;  %v9827_v29 = vrot.slane %v16803_v19, 5 }
 0x458   : > { %18133 = vst [vmem:[#allocation54_spill] sm:$0xff] %v16839_v31  ;;  %18134 = vst [vmem:[#allocation55_spill] sm:$0xff] %v16843_v55  ;;  %v16851_v11 = vsel %vm14196_vm6, %v9819_v43, %v9820_v18  ;;  %v16857_v51 = vld [vmem:[#allocation2 + $0x7c] sm:$0xf]  ;;  %v11873_v15 = vrot.slane %v9735_v30, 9  ;;  %v9833_v18 = vrot.slane %v9831_v57, 4 }
 0x459   : > { %18135 = vst [vmem:[#allocation56_spill] sm:$0xff] %v16845_v38  ;;  %18136 = vst [vmem:[#allocation57_spill] sm:$0xff] %v16851_v11  ;;  %v9826_v42 = vrot.slane %v9824_v61, 4  ;;  %v16862_v35 = vld [vmem:[#allocation2 + $0x74] sm:$0x1]  ;;  %v16866_v43 = vsel %vm14196_vm6, %v11872_v17, %v9824_v61  ;;  %v11874_v19 = vrot.slane %v9736_v1, 9 }
 0x45a   : > { %18137 = vst [vmem:[#allocation58_spill] sm:$0xff] %v16862_v35  ;;  %18138 = vst [vmem:[#allocation59_spill] sm:$0xff] %v16866_v43  ;;  %v16877_v30 = vsel %vm14196_vm6, %v11873_v15, %v9831_v57  ;;  %v9841_v11 = vrot.slane %v16843_v55, 5  ;;  %v9845_v31 = vrot.slane %v16845_v38, 5  ;;  %v9738_v61 = vld [vmem:[#allocation2 + $0x78] sm:$0xe] }
 0x45b   : > { %12798 = vmatmul.mubr.msk.bf16.gmra.mrb[28].mxu1 %vm728_vm3, %v13636_v25  ;;  %v16873_v25 = vsel %vm14196_vm6, %v9826_v42, %v9827_v29  ;;  %18141 = vst [vmem:[#allocation62_spill] sm:$0xff] %v16877_v30  ;;  %v16881_v17 = vld [vmem:[#allocation2 + $0x88] sm:$0xf]  ;;  %v16883_v1 = vld [vmem:[#allocation2 + $0x94] sm:$0xf]  ;;  %v16889_v29 = vsel %vm14196_vm6, %v9833_v18, %v9834_v6  ;;  %v9848_v0 = vrot.slane %v16862_v35, 5 }
 0x45c   : > { %12805 = vmatprep.mubr.msk.bf16.mxu1 %vm728_vm3, %v16655_v40  ;;  %v9838_v40 = vrot.slane %v16831_v34, 5  ;;  %18140 = vst [vmem:[#allocation61_spill] sm:$0xff] %v16873_v25  ;;  %18142 = vst [vmem:[#allocation63_spill] sm:$0xff] %v16881_v17  ;;  %v11875_v34 = vrot.slane %v9737_v32, 9  ;;  %v9021_v15 = vld [vmem:[#allocation2 + $0x8c] sm:$0x1] }
 0x45d   : > { %18143 = vst [vmem:[#allocation64_spill] sm:$0xff] %v16883_v1  ;;  %18144 = vst [vmem:[#allocation65_spill] sm:$0xff] %v16889_v29  ;;  %v9847_v38 = vrot.slane %v9845_v31, 4  ;;  %v11876_v18 = vrot.slane %v9738_v61, 9  ;;  %v16910_v57 = vld [vmem:[#allocation2 + $0x98] sm:$0x1] }
 0x45e   : > { %v9840_v42 = vrot.slane %v9838_v40, 4  ;;  %v16895_v55 = vsel %vm14196_vm6, %v11874_v19, %v9838_v40  ;;  %v16907_v32 = vsel %vm14196_vm6, %v11875_v34, %v9845_v31  ;;  %v9852_v19 = vrot.slane %v16857_v51, 5  ;;  %v9740_v40 = vld [vmem:[#allocation2 + $0x90] sm:$0xe]  ;;  %18148 = vst [vmem:[#allocation69_spill] sm:$0xff] %v16910_v57 }
 0x45f   : > { %18145 = vst [vmem:[#allocation66_spill] sm:$0xff] %v16895_v55  ;;  %18147 = vst [vmem:[#allocation68_spill] sm:$0xff] %v16907_v32  ;;  %v16912_v29 = vld [vmem:[#allocation2 + $0xa0] sm:$0xf]  ;;  %v16918_v25 = vsel %vm14196_vm6, %v9847_v38, %v9848_v0  ;;  %v9859_v34 = vrot.slane %v16881_v17, 5  ;;  %v11877_v43 = vrot.slane %v9739_v63, 9 }
 0x460   : > { %v16903_v6 = vsel %vm14196_vm6, %v9840_v42, %v9841_v11  ;;  %18149 = vst [vmem:[#allocation70_spill] sm:$0xff] %v16912_v29  ;;  %18150 = vst [vmem:[#allocation71_spill] sm:$0xff] %v16918_v25  ;;  %v9855_v11 = vrot.slane %v16869_v3, 5  ;;  %v16924_v31 = vld [vmem:[#allocation2 + $0xac] sm:$0xf]  ;;  %v9854_v42 = vrot.slane %v9852_v19, 4  ;;  %v16933_v38 = vsel %vm14196_vm6, %v11876_v18, %v9852_v19 }
 0x461   : > { %18146 = vst [vmem:[#allocation67_spill] sm:$0xff] %v16903_v6  ;;  %v9862_v35 = vrot.slane %v9021_v15, 5  ;;  %v9741_v30 = vld [vmem:[#allocation2 + $0x9c] sm:$0xe]  ;;  %v9027_v0 = vld [vmem:[#allocation2 + $0xa4] sm:$0x1] }
 0x462   : > { %v11878_v6 = vrot.slane %v9740_v40, 9  ;;  %v9866_v55 = vrot.slane %v16883_v1, 5  ;;  %v16939_v63 = vld [vmem:[%s17881_s3 + $0x60] sm:$0xff]   ;;  %v9869_v18 = vrot.slane %v16910_v57, 5  ;;  %v9873_v19 = vrot.slane %v16912_v29, 5 }
 0x463   : > { %12806 = vmatmul.mubr.msk.bf16.vlgmr.msra.gmra.mrb[0].mxu1 %vm728_vm3, %v16682_v41  ;;  %v9861_v41 = vrot.slane %v9859_v34, 4  ;;  %v9030_v15 = vld [vmem:[#allocation2 + $0xb0] sm:$0x1]  ;;  %v16951_v40 = vld [vmem:[#allocation2 + $0xb8] sm:$0xf]  ;;  %v7679_v3 = vshrl.u32 %v16439_v39, 16 }
 0x464   : > { %12838 = vmatpush3.bf16.msra.mxu1 %v16621_v4  ;;  %12809 = vmatprep.mubr.msk.bf16.mxu1 %vm728_vm3, %v16699_v46  ;;  %v16943_v4 = vsel %vm14196_vm6, %v9854_v42, %v9855_v11  ;;  %v16947_v46 = vsel %vm14196_vm6, %v11877_v43, %v9859_v34  ;;  %v9868_v32 = vrot.slane %v9866_v55, 4  ;;  %v11879_v11 = vrot.slane %v9741_v30, 9  ;;  %v9742_v42 = vld [vmem:[#allocation2 + $0xa8] sm:$0xe]  ;;  %v9743_v29 = vld [vmem:[#allocation2 + $0xb4] sm:$0xe] }
 0x465   : > { %12839 = vmatprep.subr.bf16.mxu1 %v13638_v22  ;;  %v16957_v25 = vsel %vm14196_vm6, %v9861_v41, %v9862_v35  ;;  %v9875_v34 = vrot.slane %v9873_v19, 4  ;;  %v9876_v57 = vrot.slane %v9027_v0, 5  ;;  %v9033_v1 = vld [vmem:[#allocation2 + $0xbc] sm:$0x1]  ;;  %v16962_v17 = vld [vmem:[#allocation2 + $0xc4] sm:$0xf]  ;;  %v16966_v61 = vsel %vm14196_vm6, %v11878_v6, %v9866_v55 }
 0x466   : > { %18151 = vst [vmem:[#allocation72_spill] sm:$0xff] %v16957_v25  ;;  %v16970_v35 = vsel %vm14196_vm6, %v9868_v32, %v9869_v18  ;;  %v16974_v39 = vsel %vm14196_vm6, %v11879_v11, %v9873_v19  ;;  %v9880_v30 = vrot.slane %v16924_v31, 5  ;;  %v11880_v55 = vrot.slane %v9742_v42, 9  ;;  %v9744_v32 = vld [vmem:[#allocation2 + $0xc0] sm:$0xe] }
 0x467   : > { %18152 = vst [vmem:[#allocation73_spill] sm:$0xff] %v16970_v35  ;;  %v16982_v0 = vsel %vm14196_vm6, %v9875_v34, %v9876_v57  ;;  %v9887_v6 = vrot.slane %v16951_v40, 5  ;;  %v9036_v41 = vld [vmem:[#allocation2 + $0xc8] sm:$0x1]  ;;  %v9883_v11 = vrot.slane %v9030_v15, 5  ;;  %v11881_v43 = vrot.slane %v9743_v29, 9 }
 0x468   : > { %12840 = vmatpush3.bf16.msra.mxu1 %v13638_v22  ;;  %v9882_v19 = vrot.slane %v9880_v30, 4  ;;  %v7681_v25 = vrot.slane %v7679_v3, 4  ;;  %v9890_v35 = vrot.slane %v9033_v1, 5  ;;  %v9894_v57 = vrot.slane %v16962_v17, 5  ;;  %v7431_v3 = vld [vmem:[#allocation2 + $0x84] sm:$0xf] }
 0x469   : > { %12873 = vmatprep.subr.bf16.mxu1 %v16939_v63  ;;  %v9889_v22 = vrot.slane %v9887_v6, 4  ;;  %v16994_v42 = vsel %vm14196_vm6, %v11880_v55, %v9880_v30  ;;  %v17002_v29 = vsel %vm14196_vm6, %v11881_v43, %v9887_v6  ;;  %v9897_v30 = vrot.slane %v9036_v41, 5 }
 0x46a   : > { %v16998_v34 = vsel %vm14196_vm6, %v9882_v19, %v9883_v11  ;;  %v9896_v15 = vrot.slane %v9894_v57, 4  ;;  %v18153_v55 = vor.u32 %v16715_v2, %v16713_v24  ;;  %v7661_v11 = vshll.u32 %v16451_v58, 16 }
 0x46b   : > { %12810 = vmatmul.mubr.msk.bf16.gmra.mrb[4].mxu1 %vm728_vm3, %v16729_v53  ;;  %v11882_v53 = vrot.slane %v9744_v32, 9  ;;  %v18154_v43 = vshrl.u32 %v16739_v45, 16  ;;  %v7699_v1 = vshll.u32 %v16462_v36, 16  ;;  %v7703_v18 = vshrl.u32 %v16462_v36, 16 }
 0x46c   : > { %12813 = vmatprep.mubr.msk.bf16.mxu1 %vm728_vm3, %v16741_v54  ;;  %v17008_v54 = vsel %vm14196_vm6, %v9889_v22, %v9890_v35  ;;  %v7625_v19 = vrot.slane %v18153_v55, 4  ;;  %v17026_v24 = vsel %vm14196_vm6, %v9896_v15, %v9897_v30  ;;  %v18155_v58 = vshll.u32 %v16739_v45, 16 }
 0x46d   : > { %v7668_v6 = vrot.slane %v18154_v43, 4  ;;  %v11901_v32 = vcombine.low %v17002_v29, %v17008_v54  ;;  %v17022_v35 = vsel %vm14196_vm6, %v11882_v53, %v9894_v57  ;;  %v7690_v22 = vshrl.u32 %v7431_v3, 16 }
 0x46e   : > { %v7671_v2 = vrot.slane %v18155_v58, 5  ;;  %v7693_v41 = vshll.u32 %v7431_v3, 16  ;;  %v11902_v55 = vcombine.low %v17022_v35, %v17026_v24  ;;  %v18156_v43 = vor.u32 %v16723_v33, %v16721_v23 }
 0x46f   : > { %v18157_v57 = vor.u32 %v16767_v44, %v16765_v52  ;;  %v18158_v15 = vor.u32 %v16771_v56, %v16769_v8  ;;  %v7682_v45 = vor.u32 %v7681_v25, %v16824_v16  ;;  %v18159_v3 = vsel %vm13885_vm2, %v16719_v28, %v16737_v12 }
 0x470   : > { %v7635_v36 = vrot.slane %v18156_v43, 4  ;;  %v18160_v33 = vsel %vm13885_vm2, %v16711_v14, %v16689_v7  ;;  %v18161_v52 = vshll.u32 %v16412_v49, 16  ;;  %v7663_v56 = vrot.slane %v7661_v11, 5 }
 0x471   : > { %v7649_v53 = vrot.slane %v18157_v57, 4  ;;  %v7659_v30 = vrot.slane %v18158_v15, 4  ;;  %v11710_v58 = vcombine.low %v18160_v33, %v18159_v3  ;;  %v7685_v25 = vshll.u32 %v16453_v48, 16  ;;  %v7434_v15 = vld [vmem:[#allocation2 + $0x90] sm:$0xf] }
 0x472   : > { %v7639_v44 = vrot.slane %v18161_v52, 5  ;;  %v17057_v43 = vrot.slane %v7699_v1, 5  ;;  %v7705_v57 = vrot.slane %v7703_v18, 4  ;;  %v7630_v7 = vsel %vm13885_vm2, %v7625_v19, %v16721_v23  ;;  %v7437_v19 = vld [vmem:[#allocation2 + $0x9c] sm:$0xf] }
 0x473   : > { %12814 = vmatmul.mubr.msk.bf16.gmra.mrb[8].mxu1 %vm728_vm3, %v16743_v9  ;;  %v7672_v14 = vor.u32 %v7671_v2, %v7668_v6  ;;  %v7692_v28 = vrot.slane %v7690_v22, 4  ;;  %v7695_v49 = vrot.slane %v7693_v41, 5  ;;  %v7654_v48 = vsel %vm13885_vm2, %v7649_v53, %v16769_v8 }
 0x474   : > { %12817 = vmatprep.mubr.msk.bf16.mxu1 %vm728_vm3, %v11710_v58  ;;  %v7640_v12 = vsel %vm13885_vm2, %v7635_v36, %v7639_v44  ;;  %v7664_v9 = vsel %vm13885_vm2, %v7659_v30, %v7663_v56  ;;  %v7683_v18 = vrot.slane %v7682_v45, 4  ;;  %v7714_v1 = vshrl.u32 %v7434_v15, 16 }
 0x475   : > { %v7717_v11 = vshll.u32 %v7434_v15, 16  ;;  %v7723_v3 = vshll.u32 %v16464_v13, 16  ;;  %v7727_v23 = vshrl.u32 %v16464_v13, 16  ;;  %v7687_v6 = vrot.slane %v7685_v25, 5 }
 0x476   : > { %v7706_v2 = vor.u32 %v7705_v57, %v17057_v43  ;;  %v7747_v22 = vshll.u32 %v16493_v50, 16  ;;  %v7751_v41 = vshrl.u32 %v16493_v50, 16  ;;  %v11711_v36 = vcombine.low %v7630_v7, %v7640_v12 }
 0x477   : > { %v11712_v8 = vcombine.low %v7654_v48, %v7664_v9  ;;  %v7673_v53 = vrot.slane %v7672_v14, 4  ;;  %v7696_v33 = vor.u32 %v7695_v49, %v7692_v28  ;;  %v7688_v30 = vsel %vm13885_vm2, %v7683_v18, %v7687_v6  ;;  %v7440_v48 = vld [vmem:[#allocation2 + $0xa8] sm:$0xf] }
 0x478   : > { %v7709_v45 = vshll.u32 %v16475_v59, 16  ;;  %v7738_v58 = vshrl.u32 %v7437_v19, 16  ;;  %v7741_v52 = vshll.u32 %v7437_v19, 16  ;;  %v7716_v13 = vrot.slane %v7714_v1, 4 }
 0x479   : > { %v7719_v44 = vrot.slane %v7717_v11, 5  ;;  %v7725_v56 = vrot.slane %v7723_v3, 5  ;;  %v7729_v25 = vrot.slane %v7727_v23, 4  ;;  %v7707_v57 = vrot.slane %v7706_v2, 4  ;;  %v7443_v3 = vld [vmem:[#allocation2 + $0xb4] sm:$0xf] }
 0x47a   : > { %v17079_v15 = vrot.slane %v7747_v22, 5  ;;  %v7753_v50 = vrot.slane %v7751_v41, 4  ;;  %v7678_v7 = vsel %vm13885_vm2, %v7673_v53, %v16824_v16  ;;  %v7697_v14 = vrot.slane %v7696_v33, 4 }
 0x47b   : > { %12818 = vmatmul.mubr.msk.bf16.gmra.mrb[12].mxu1 %vm728_vm3, %v11711_v36  ;;  %v11713_v59 = vcombine.low %v7678_v7, %v7688_v30  ;;  %v7711_v28 = vrot.slane %v7709_v45, 5  ;;  %v7740_v49 = vrot.slane %v7738_v58, 4  ;;  %v7743_v12 = vrot.slane %v7741_v52, 5 }
 0x47c   : > { %12821 = vmatprep.mubr.msk.bf16.mxu1 %vm728_vm3, %v11712_v8  ;;  %v7720_v9 = vor.u32 %v7719_v44, %v7716_v13  ;;  %v7730_v18 = vor.u32 %v7729_v25, %v7725_v56  ;;  %v7771_v1 = vshll.u32 %v16509_v20, 16  ;;  %v7775_v11 = vshrl.u32 %v16509_v20, 16 }
 0x47d   : > { %v7712_v23 = vsel %vm13885_vm2, %v7707_v57, %v7711_v28  ;;  %v7754_v19 = vor.u32 %v7753_v50, %v17079_v15  ;;  %v7795_v16 = vshll.u32 %v16528_v21, 16  ;;  %v7799_v6 = vshrl.u32 %v16528_v21, 16  ;;  %v7446_v28 = vld [vmem:[#allocation2 + $0xc0] sm:$0xf] }
 0x47e   : > { %v7702_v2 = vsel %vm13885_vm2, %v7697_v14, %v17057_v43  ;;  %v7733_v22 = vshll.u32 %v16484_v60, 16  ;;  %v7762_v41 = vshrl.u32 %v7440_v48, 16  ;;  %v7765_v36 = vshll.u32 %v7440_v48, 16 }
 0x47f   : > { %v7744_v8 = vor.u32 %v7743_v12, %v7740_v49  ;;  %v7757_v20 = vshll.u32 %v16501_v62, 16  ;;  %v7786_v53 = vshrl.u32 %v7443_v3, 16  ;;  %v7789_v33 = vshll.u32 %v7443_v3, 16  ;;  %v13682_v3 = vld [vmem:[#allocation2 + $0xb0] sm:$0x1] }
 0x480   : > { %v11714_v30 = vcombine.low %v7702_v2, %v7712_v23  ;;  %v7731_v45 = vrot.slane %v7730_v18, 4  ;;  %v7773_v58 = vrot.slane %v7771_v1, 5  ;;  %v7777_v52 = vrot.slane %v7775_v11, 4 }
 0x481   : > { %v7721_v21 = vrot.slane %v7720_v9, 4  ;;  %v7755_v13 = vrot.slane %v7754_v19, 4  ;;  %v7797_v44 = vrot.slane %v7795_v16, 5  ;;  %v7801_v25 = vrot.slane %v7799_v6, 4 }
 0x482   : > { %v7735_v60 = vrot.slane %v7733_v22, 5  ;;  %v7764_v43 = vrot.slane %v7762_v41, 4  ;;  %v7767_v57 = vrot.slane %v7765_v36, 5  ;;  %v7745_v50 = vrot.slane %v7744_v8, 4  ;;  %v13683_v41 = vld [vmem:[#allocation2 + $0xbc] sm:$0x1] }
 0x483   : > { %12822 = vmatmul.mubr.msk.bf16.gmra.mrb[16].mxu1 %vm728_vm3, %v11713_v59  ;;  %v7759_v7 = vrot.slane %v7757_v20, 5  ;;  %v7788_v62 = vrot.slane %v7786_v53, 4  ;;  %v7791_v14 = vrot.slane %v7789_v33, 5  ;;  %v7778_v12 = vor.u32 %v7777_v52, %v7773_v58 }
 0x484   : > { %12825 = vmatprep.mubr.msk.bf16.mxu1 %vm728_vm3, %v11714_v30  ;;  %v7736_v49 = vsel %vm13885_vm2, %v7731_v45, %v7735_v60  ;;  %v7819_v59 = vshll.u32 %v16543_v5, 16  ;;  %v7823_v48 = vshrl.u32 %v16543_v5, 16  ;;  %v7726_v9 = vsel %vm13885_vm2, %v7721_v21, %v7725_v56 }
 0x485   : > { %v7760_v18 = vsel %vm13885_vm2, %v7755_v13, %v7759_v7  ;;  %v7802_v1 = vor.u32 %v7801_v25, %v7797_v44  ;;  %v7768_v11 = vor.u32 %v7767_v57, %v7764_v43  ;;  %v7781_v23 = vshll.u32 %v13682_v3, 16  ;;  %v13684_v7 = vld [vmem:[#allocation2 + $0xc8] sm:$0x1] }
 0x486   : > { %v7810_v19 = vshrl.u32 %v7446_v28, 16  ;;  %v7813_v16 = vshll.u32 %v7446_v28, 16  ;;  %v11715_v6 = vcombine.low %v7726_v9, %v7736_v49  ;;  %v7750_v2 = vsel %vm13885_vm2, %v7745_v50, %v17079_v15 }
 0x487   : > { %v7792_v22 = vor.u32 %v7791_v14, %v7788_v62  ;;  %v7805_v5 = vshll.u32 %v13683_v41, 16  ;;  %v11716_v36 = vcombine.low %v7750_v2, %v7760_v18  ;;  %v7779_v8 = vrot.slane %v7778_v12, 4  ;;  %v18162_v2 = vld [vmem:[#allocation34_spill] sm:$0xff] }
 0x488   : > { %v7821_v56 = vrot.slane %v7819_v59, 5  ;;  %v7825_v20 = vrot.slane %v7823_v48, 4  ;;  %v7803_v53 = vrot.slane %v7802_v1, 4  ;;  %v7769_v33 = vrot.slane %v7768_v11, 4 }
 0x489   : > { %v7783_v30 = vrot.slane %v7781_v23, 5  ;;  %v7812_v45 = vrot.slane %v7810_v19, 4  ;;  %v7815_v52 = vrot.slane %v7813_v16, 5  ;;  %v7793_v21 = vrot.slane %v7792_v22, 4 }
 0x48a   : > { %v7807_v13 = vrot.slane %v7805_v5, 5  ;;  %v7826_v25 = vor.u32 %v7825_v20, %v7821_v56  ;;  %v8205_v43 = vrot.slane %v16616_v37, 5  ;;  %v7774_v57 = vsel %vm13885_vm2, %v7769_v33, %v7773_v58  ;;  %v8139_v37 = vld [vmem:[#allocation2 + $0xc] sm:$0xe]  ;;  %v18164_v20 = vld [vmem:[#allocation7_spill] sm:$0xff] }
 0x48b   : > { %12826 = vmatmul.mubr.msk.bf16.gmra.mrb[20].mxu1 %vm728_vm3, %v11715_v6  ;;  %v7784_v15 = vsel %vm13885_vm2, %v7779_v8, %v7783_v30  ;;  %v7816_v50 = vor.u32 %v7815_v52, %v7812_v45  ;;  %v7829_v62 = vshll.u32 %v13684_v7, 16  ;;  %v7798_v28 = vsel %vm13885_vm2, %v7793_v21, %v7797_v44  ;;  %v13640_v8 = vld [vmem:[%s17881_s3 + $0x68] sm:$0xff]   ;;  %v13642_v33 = vld [vmem:[%s17881_s3 + $0x70] sm:$0xff]   ;;  %v18166_v30 = vld [vmem:[#allocation8_spill] sm:$0xff] }
 0x48c   : > { %12829 = vmatprep.mubr.msk.bf16.mxu1 %vm728_vm3, %v11716_v36  ;;  %v7808_v60 = vsel %vm13885_vm2, %v7803_v53, %v7807_v13  ;;  %v11717_v14 = vcombine.low %v7774_v57, %v7784_v15  ;;  %v7827_v12 = vrot.slane %v7826_v25, 4  ;;  %v8207_v59 = vrot.slane %v8205_v43, 4  ;;  %v18167_v45 = vld [vmem:[#allocation9_spill] sm:$0xff]  ;;  %v18169_v21 = vld [vmem:[#allocation10_spill] sm:$0xff]  ;;  %v18170_v13 = vld [vmem:[#allocation12_spill] sm:$0xff] }
 0x48d   : > { %v11718_v49 = vcombine.low %v7798_v28, %v7808_v60  ;;  %v7817_v48 = vrot.slane %v7816_v50, 4  ;;  %v7831_v9 = vrot.slane %v7829_v62, 5  ;;  %v8208_v18 = vrot.slane %v16632_v10, 5  ;;  %v8140_v10 = vld [vmem:[#allocation2 + $0x18] sm:$0xe]  ;;  %v18172_v15 = vld [vmem:[#allocation11_spill] sm:$0xff] }
 0x48e   : > { %v8212_v1 = vrot.slane %v16626_v26, 5  ;;  %v11738_v11 = vrot.slane %v8139_v37, 9  ;;  %v8215_v26 = vrot.slane %v18162_v2, 5  ;;  %v11739_v22 = vrot.slane %v8140_v10, 9  ;;  %v18173_v25 = vld [vmem:[#allocation13_spill] sm:$0xff]  ;;  %v18176_v57 = vld [vmem:[#allocation15_spill] sm:$0xff] }
 0x48f   : > { %v7832_v58 = vsel %vm13885_vm2, %v7827_v12, %v7831_v9  ;;  %v8209_v44 = vsel %vm14196_vm6, %v8207_v59, %v8208_v18  ;;  %v7822_v3 = vsel %vm13885_vm2, %v7817_v48, %v7821_v56  ;;  %v18163_v56 = vld [vmem:[#allocation6_spill] sm:$0xff]  ;;  %v18168_v52 = vcombine.low %v18166_v30, %v18167_v45  ;;  %v18178_v7 = vld [vmem:[#allocation16_spill] sm:$0xff]  ;;  %v18179_v62 = vld [vmem:[#allocation17_spill] sm:$0xff] }
 0x490   : > { %v11719_v23 = vcombine.low %v7822_v3, %v7832_v58  ;;  %v8206_v19 = vsel %vm14196_vm6, %v11738_v11, %v8205_v43  ;;  %v8214_v6 = vrot.slane %v8212_v1, 4  ;;  %v8213_v5 = vsel %vm14196_vm6, %v11739_v22, %v8212_v1  ;;  %v18175_v43 = vld [vmem:[#allocation14_spill] sm:$0xff]  ;;  %v18184_v59 = vld [vmem:[#allocation19_spill] sm:$0xff]  ;;  %v18185_v48 = vld [vmem:[#allocation21_spill] sm:$0xff] }
 0x491   : > { %v11758_v16 = vcombine.low %v8206_v19, %v8209_v44  ;;  %v18165_v53 = vcombine.low %v18163_v56, %v18164_v20  ;;  %v18174_v60 = vcombine.low %v18172_v15, %v18173_v25  ;;  %v18177_v50 = vcombine.low %v18175_v43, %v18176_v57  ;;  %v18181_v28 = vld [vmem:[#allocation18_spill] sm:$0xff]  ;;  %v18188_v18 = vld [vmem:[#allocation23_spill] sm:$0xff]  ;;  %v18190_v1 = vld [vmem:[#allocation24_spill] sm:$0xff] }
 0x492   : > { %v8216_v41 = vsel %vm14196_vm6, %v8214_v6, %v8215_v26  ;;  %v18186_v9 = vcombine.low %v18184_v59, %v18185_v48  ;;  %v18187_v37 = vld [vmem:[#allocation22_spill] sm:$0xff]  ;;  %v18191_v11 = vld [vmem:[#allocation25_spill] sm:$0xff]  ;;  %v18200_v26 = vld [vmem:[#allocation31_spill] sm:$0xff] }
 0x493   : > { %12830 = vmatmul.mubr.msk.bf16.gmra.mrb[24].mxu1 %vm728_vm3, %v11717_v14  ;;  %v11759_v36 = vcombine.low %v8213_v5, %v8216_v41  ;;  %v18180_v14 = vcombine.low %v18178_v7, %v18179_v62  ;;  %v18189_v58 = vcombine.low %v18187_v37, %v18188_v18  ;;  %v18192_v44 = vcombine.low %v18190_v1, %v18191_v11  ;;  %v18193_v3 = vld [vmem:[#allocation26_spill] sm:$0xff]  ;;  %v18197_v6 = vld [vmem:[#allocation29_spill] sm:$0xff]  ;;  %v18202_v5 = vld [vmem:[#allocation32_spill] sm:$0xff] }
 0x494   : > { %12833 = vmatprep.mubr.msk.bf16.mxu1 %vm728_vm3, %v11718_v49  ;;  %v18182_v49 = vld [vmem:[#allocation20_spill] sm:$0xff]  ;;  %v18199_v2 = vld [vmem:[#allocation30_spill] sm:$0xff]  ;;  %v17213_v30 = vld [vmem:[%s17881_s3 + $0x80] sm:$0xff]  }
 0x495   : > { %v18183_v12 = vcombine.low %v18181_v28, %v18182_v49  ;;  %v18201_v22 = vcombine.low %v18199_v2, %v18200_v26  ;;  %v13641_v41 = vld [vmem:[#allocation2 + $0x18] sm:$0xff]   ;;  %v13643_v56 = vld [vmem:[#allocation2 + $0x24] sm:$0xff]   ;;  %v18206_v37 = vld [vmem:[#allocation37_spill] sm:$0xff] }
 0x496   : > { %v13651_v20 = vld [vmem:[%s17881_s3 + $0x78] sm:$0xff]   ;;  %v13645_v45 = vld [vmem:[#allocation2 + $0x3c] sm:$0xff]   ;;  %v8992_v15 = vld [vmem:[#allocation2 + $0x18] sm:$0xf]  ;;  %v9074_v18 = vshll.u32 %v18206_v37, 16 }
 0x497   : > { %v18205_v25 = vld [vmem:[#allocation35_spill] sm:$0xff]  ;;  %v9041_v7 = vshrl.u32 %v8992_v15, 16  ;;  %v9044_v62 = vshll.u32 %v8992_v15, 16 }
 0x498   : > { %v9054_v43 = vshrl.u32 %v18205_v25, 16  ;;  %v8995_v57 = vld [vmem:[#allocation2 + $0x24] sm:$0xf]  ;;  %v17229_v2 = vrot.slane %v9074_v18, 5 }
 0x499   : > { %v9068_v59 = vshll.u32 %v8995_v57, 16  ;;  %v9043_v48 = vrot.slane %v9041_v7, 4 }
 0x49a   : > { %v9056_v49 = vrot.slane %v9054_v43, 4 }
 0x49b   : > { %12834 = vmatmul.mubr.msk.bf16.gmra.mrb[28].mxu1 %vm728_vm3, %v11719_v23  ;;  %v18194_v23 = vld [vmem:[#allocation27_spill] sm:$0xff]  ;;  %v9070_v11 = vrot.slane %v9068_v59, 5 }
 0x49c   : > { %12841 = vmatprep.mubr.msk.bf16.mxu1 %vm728_vm3, %v11758_v16  ;;  %v18195_v19 = vcombine.low %v18193_v3, %v18194_v23  ;;  %v18196_v16 = vld [vmem:[#allocation28_spill] sm:$0xff]  ;;  %v8998_v3 = vld [vmem:[#allocation2 + $0x30] sm:$0xf]  ;;  %v13654_v23 = vld [vmem:[#allocation2 + $0x9c] sm:$0xff]  }
 0x49d   : > { %v18198_v10 = vcombine.low %v18196_v16, %v18197_v6  ;;  %v18207_v16 = vld [vmem:[#allocation36_spill] sm:$0xff]  ;;  %v9089_v26 = vshrl.u32 %v8998_v3, 16  ;;  %v13657_v59 = vld [vmem:[#allocation2 + $0xc0] sm:$0xff]  }
 0x49e   : > { %v9060_v6 = vshll.u32 %v18207_v16, 16  ;;  %v17258_v16 = vld [vmem:[#allocation2 + $0xd4] sm:$0x1] }
 0x4a3   : > { %12842 = vmatmul.mubr.msk.bf16.vlgmr.msra.gmra.mrb[0].mxu1 %vm728_vm3, %v11759_v36  ;;  %v18203_v36 = vld [vmem:[#allocation33_spill] sm:$0xff] }
 0x4a4   : > { %12874 = vmatpush3.bf16.msra.mxu1 %v16939_v63  ;;  %12845 = vmatprep.mubr.msk.bf16.mxu1 %vm728_vm3, %v18165_v53  ;;  %v18171_v63 = vcombine.low %v18169_v21, %v18170_v13  ;;  %v13644_v53 = vld [vmem:[#allocation2 + $0x30] sm:$0xff]   ;;  %v13648_v13 = vld [vmem:[#allocation2 + $0x60] sm:$0xff]  }
 0x4a5   : > { %12875 = vmatprep.subr.bf16.mxu1 %v13640_v8  ;;  %v13647_v21 = vld [vmem:[#allocation2 + $0x54] sm:$0xff]  }
 0x4a8   : > { %12876 = vmatpush3.bf16.msra.mxu1 %v13640_v8  ;;  %v18204_v8 = vcombine.low %v18202_v5, %v18203_v36  ;;  %v9092_v36 = vshll.u32 %v8998_v3, 16  ;;  %v18212_v3 = vld [vmem:[#allocation42_spill] sm:$0xff] }
 0x4a9   : > { %12909 = vmatprep.subr.bf16.mxu1 %v13642_v33 }
 0x4ab   : > { %12846 = vmatmul.mubr.msk.bf16.gmra.mrb[4].mxu1 %vm728_vm3, %v18168_v52  ;;  %v13646_v52 = vld [vmem:[#allocation2 + $0x48] sm:$0xff]  }
 0x4ac   : > { %12849 = vmatprep.mubr.msk.bf16.mxu1 %vm728_vm3, %v18171_v63  ;;  %v13650_v63 = vld [vmem:[#allocation2 + $0x78] sm:$0xff]  }
 0x4b3   : > { %12850 = vmatmul.mubr.msk.bf16.gmra.mrb[8].mxu1 %vm728_vm3, %v18174_v60  ;;  %v9050_v60 = vshll.u32 %v18205_v25, 16 }
 0x4b4   : > { %12853 = vmatprep.mubr.msk.bf16.mxu1 %vm728_vm3, %v18177_v50  ;;  %v13652_v50 = vld [vmem:[#allocation2 + $0x84] sm:$0xff]  }
 0x4b5   : > { %v9052_v28 = vrot.slane %v9050_v60, 5  ;;  %v9094_v60 = vrot.slane %v9092_v36, 5  ;;  %v18213_v36 = vld [vmem:[#allocation47_spill] sm:$0xff] }
 0x4bb   : > { %12854 = vmatmul.mubr.msk.bf16.gmra.mrb[12].mxu1 %vm728_vm3, %v18180_v14  ;;  %v13653_v14 = vld [vmem:[#allocation2 + $0x90] sm:$0xff]  }
 0x4bc   : > { %12857 = vmatprep.mubr.msk.bf16.mxu1 %vm728_vm3, %v18183_v12  ;;  %v9065_v12 = vshrl.u32 %v8995_v57, 16 }
 0x4be   : > { %v9067_v1 = vrot.slane %v9065_v12, 4 }
 0x4c3   : > { %12858 = vmatmul.mubr.msk.bf16.gmra.mrb[16].mxu1 %vm728_vm3, %v18186_v9  ;;  %v9046_v9 = vrot.slane %v9044_v62, 5 }
 0x4c4   : > { %12861 = vmatprep.mubr.msk.bf16.mxu1 %vm728_vm3, %v18189_v58  ;;  %v9057_v58 = vor.u32 %v9056_v49, %v9052_v28 }
 0x4cb   : > { %12862 = vmatmul.mubr.msk.bf16.gmra.mrb[20].mxu1 %vm728_vm3, %v18192_v44  ;;  %v9078_v44 = vshrl.u32 %v18206_v37, 16  ;;  %v18211_v37 = vld [vmem:[#allocation41_spill] sm:$0xff] }
 0x4cc   : > { %12865 = vmatprep.mubr.msk.bf16.mxu1 %vm728_vm3, %v18195_v19  ;;  %v9047_v19 = vor.u32 %v9046_v9, %v9043_v48  ;;  %v9122_v18 = vshll.u32 %v18211_v37, 16 }
 0x4cd   : > { %v9080_v5 = vrot.slane %v9078_v44, 4 }
 0x4cf   : > { %v9081_v25 = vor.u32 %v9080_v5, %v17229_v2  ;;  %v9007_v5 = vld [vmem:[#allocation2 + $0x54] sm:$0xf] }
 0x4d3   : > { %12866 = vmatmul.mubr.msk.bf16.gmra.mrb[24].mxu1 %vm728_vm3, %v18198_v10  ;;  %v13655_v10 = vld [vmem:[#allocation2 + $0xa8] sm:$0xff]  }
 0x4d4   : > { %12869 = vmatprep.mubr.msk.bf16.mxu1 %vm728_vm3, %v18201_v22  ;;  %v9058_v22 = vrot.slane %v9057_v58, 4  ;;  %v9126_v58 = vshrl.u32 %v18211_v37, 16 }
 0x4db   : > { %12870 = vmatmul.mubr.msk.bf16.gmra.mrb[28].mxu1 %vm728_vm3, %v18204_v8  ;;  %v18208_v8 = vld [vmem:[#allocation38_spill] sm:$0xff] }
 0x4dc   : > { %12877 = vmatprep.mubr.msk.bf16.mxu1 %vm728_vm3, %v13641_v41  ;;  %v9071_v41 = vor.u32 %v9070_v11, %v9067_v1  ;;  %v9004_v1 = vld [vmem:[#allocation2 + $0x48] sm:$0xf]  ;;  %v9082_v11 = vrot.slane %v9081_v25, 4 }
 0x4de   : > { %v17238_v15 = vrot.slane %v9071_v41, 4  ;;  %v9904_v41 = vrot.slane %v17258_v16, 5 }
 0x4e3   : > { %12878 = vmatmul.mubr.msk.bf16.vlgmr.msra.gmra.mrb[0].mxu1 %vm728_vm3, %v13643_v56  ;;  %v9098_v56 = vshll.u32 %v18208_v8, 16 }
 0x4e4   : > { %12910 = vmatpush3.bf16.msra.mxu1 %v13642_v33  ;;  %12881 = vmatprep.mubr.msk.bf16.mxu1 %vm728_vm3, %v13644_v53  ;;  %v13649_v33 = vld [vmem:[#allocation2 + $0x6c] sm:$0xff]   ;;  %v9048_v53 = vrot.slane %v9047_v19, 4 }
 0x4e5   : > { %12911 = vmatprep.subr.bf16.mxu1 %v13651_v20  ;;  %v17241_v43 = vrot.slane %v9098_v56, 5  ;;  %v17256_v19 = vld [vmem:[#allocation2 + $0xd0] sm:$0xf]  ;;  %v9174_v56 = vshrl.u32 %v18213_v36, 16 }
 0x4e6   : > { %v9053_v7 = vsel %vm13885_vm2, %v9048_v53, %v9052_v28  ;;  %v9077_v28 = vsel %vm13885_vm2, %v17238_v15, %v17229_v2 }
 0x4e8   : > { %12912 = vmatpush3.bf16.msra.mxu1 %v13651_v20  ;;  %v9102_v20 = vshrl.u32 %v18208_v8, 16  ;;  %v9170_v8 = vshll.u32 %v18213_v36, 16 }
 0x4e9   : > { %12945 = vmatprep.subr.bf16.mxu1 %v17213_v30 }
 0x4ea   : > { %v9104_v57 = vrot.slane %v9102_v20, 4 }
 0x4eb   : > { %12882 = vmatmul.mubr.msk.bf16.gmra.mrb[4].mxu1 %vm728_vm3, %v13645_v45  ;;  %v9062_v45 = vrot.slane %v9060_v6, 5 }
 0x4ec   : > { %12885 = vmatprep.mubr.msk.bf16.mxu1 %vm728_vm3, %v13646_v52  ;;  %v18209_v52 = vld [vmem:[#allocation39_spill] sm:$0xff]  ;;  %v9105_v6 = vor.u32 %v9104_v57, %v17241_v43  ;;  %v9161_v57 = vshrl.u32 %v9007_v5, 16 }
 0x4f3   : > { %12886 = vmatmul.mubr.msk.bf16.gmra.mrb[8].mxu1 %vm728_vm3, %v13647_v21  ;;  %v9084_v21 = vshll.u32 %v18209_v52, 16  ;;  %v9128_v52 = vrot.slane %v9126_v58, 4 }
 0x4f4   : > { %12889 = vmatprep.mubr.msk.bf16.mxu1 %vm728_vm3, %v13648_v13  ;;  %v9091_v13 = vrot.slane %v9089_v26, 4  ;;  %v9745_v26 = vld [vmem:[#allocation2 + $0xcc] sm:$0xe] }
 0x4f5   : > { %v17245_v62 = vrot.slane %v9084_v21, 5  ;;  %v11883_v20 = vrot.slane %v9745_v26, 9 }
 0x4f6   : > { %v9095_v44 = vor.u32 %v9094_v60, %v9091_v13  ;;  %v13658_v13 = vld [vmem:[#allocation2 + $0xcc] sm:$0xff]  }
 0x4f8   : > { %v9096_v58 = vrot.slane %v9095_v44, 4  ;;  %v18215_v44 = vld [vmem:[#allocation52_spill] sm:$0xff] }
 0x4fb   : > { %12890 = vmatmul.mubr.msk.bf16.gmra.mrb[12].mxu1 %vm728_vm3, %v13649_v33  ;;  %v9001_v33 = vld [vmem:[#allocation2 + $0x3c] sm:$0xf] }
 0x4fc   : > { %12893 = vmatprep.mubr.msk.bf16.mxu1 %vm728_vm3, %v13650_v63  ;;  %v9063_v63 = vsel %vm13885_vm2, %v9058_v22, %v9062_v45  ;;  %v9113_v12 = vshrl.u32 %v9001_v33, 16  ;;  %v9116_v9 = vshll.u32 %v9001_v33, 16  ;;  %v9901_v22 = vrot.slane %v17256_v19, 5 }
 0x4fd   : > { %v11834_v48 = vcombine.low %v9053_v7, %v9063_v63  ;;  %v17267_v45 = vrot.slane %v9122_v18, 5  ;;  %v9137_v33 = vshrl.u32 %v9004_v1, 16  ;;  %v9140_v63 = vshll.u32 %v9004_v1, 16 }
 0x4fe   : > { %v9115_v2 = vrot.slane %v9113_v12, 4  ;;  %v9118_v53 = vrot.slane %v9116_v9, 5  ;;  %v9903_v21 = vrot.slane %v9901_v22, 4  ;;  %v17273_v25 = vsel %vm14196_vm6, %v11883_v20, %v9901_v22  ;;  %v9010_v9 = vld [vmem:[#allocation2 + $0x60] sm:$0xf]  ;;  %v18216_v20 = vld [vmem:[#allocation46_spill] sm:$0xff] }
 0x4ff   : > { %v17279_v12 = vrot.slane %v9170_v8, 5  ;;  %v9087_v18 = vsel %vm13885_vm2, %v9082_v11, %v17245_v62  ;;  %v9106_v1 = vrot.slane %v9105_v6, 4  ;;  %v9142_v26 = vrot.slane %v9140_v63, 5 }
 0x500   : > { %v17277_v7 = vsel %vm14196_vm6, %v9903_v21, %v9904_v41  ;;  %v9119_v47 = vor.u32 %v9118_v53, %v9115_v2  ;;  %v9163_v41 = vrot.slane %v9161_v57, 4  ;;  %v9185_v36 = vshrl.u32 %v9010_v9, 16 }
 0x501   : > { %v11903_v37 = vcombine.low %v17273_v25, %v17277_v7  ;;  %v9188_v11 = vshll.u32 %v9010_v9, 16  ;;  %v9194_v6 = vshll.u32 %v18215_v44, 16  ;;  %v9198_v8 = vshrl.u32 %v18215_v44, 16  ;;  %v9013_v9 = vld [vmem:[#allocation2 + $0x6c] sm:$0xf] }
 0x502   : > { %v9101_v2 = vsel %vm13885_vm2, %v9096_v58, %v17241_v43  ;;  %v9156_v53 = vshll.u32 %v18216_v20, 16 }
 0x503   : > { %12894 = vmatmul.mubr.msk.bf16.gmra.mrb[16].mxu1 %vm728_vm3, %v13652_v50  ;;  %v13656_v50 = vld [vmem:[#allocation2 + $0xb4] sm:$0xff]   ;;  %v9200_v43 = vrot.slane %v9198_v8, 4 }
 0x504   : > { %12897 = vmatprep.mubr.msk.bf16.mxu1 %vm728_vm3, %v13653_v14  ;;  %v18210_v14 = vld [vmem:[#allocation40_spill] sm:$0xff] }
 0x505   : > { %v9108_v49 = vshll.u32 %v18210_v14, 16 }
 0x507   : > { %v9110_v14 = vrot.slane %v9108_v49, 5  ;;  %v9129_v49 = vor.u32 %v9128_v52, %v17267_v45  ;;  %v9120_v52 = vrot.slane %v9119_v47, 4  ;;  %v18218_v47 = vld [vmem:[#allocation56_spill] sm:$0xff] }
 0x509   : > { %v9130_v21 = vrot.slane %v9129_v49, 4  ;;  %v9222_v49 = vshrl.u32 %v18218_v47, 16 }
 0x50b   : > { %12898 = vmatmul.mubr.msk.bf16.gmra.mrb[20].mxu1 %vm728_vm3, %v13654_v23  ;;  %v9146_v23 = vshll.u32 %v18212_v3, 16 }
 0x50c   : > { %12901 = vmatprep.mubr.msk.bf16.mxu1 %vm728_vm3, %v13655_v10  ;;  %v9150_v10 = vshrl.u32 %v18212_v3, 16  ;;  %v18214_v3 = vld [vmem:[#allocation45_spill] sm:$0xff] }
 0x50d   : > { %v17269_v15 = vrot.slane %v9146_v23, 5  ;;  %v9132_v23 = vshll.u32 %v18214_v3, 16  ;;  %v17301_v3 = vrot.slane %v9194_v6, 5 }
 0x50e   : > { %v9152_v60 = vrot.slane %v9150_v10, 4  ;;  %v9139_v10 = vrot.slane %v9137_v33, 4  ;;  %v18217_v33 = vld [vmem:[#allocation50_spill] sm:$0xff] }
 0x50f   : > { %v9180_v63 = vshll.u32 %v18217_v33, 16  ;;  %v9201_v8 = vor.u32 %v9200_v43, %v17301_v3  ;;  %v9246_v33 = vshrl.u32 %v16857_v51, 16 }
 0x510   : > { %v9153_v22 = vor.u32 %v9152_v60, %v17269_v15  ;;  %v9143_v60 = vor.u32 %v9142_v26, %v9139_v10  ;;  %v9125_v10 = vsel %vm13885_vm2, %v9120_v52, %v17267_v45 }
 0x511   : > { %v9182_v26 = vrot.slane %v9180_v63, 5  ;;  %v9202_v43 = vrot.slane %v9201_v8, 4 }
 0x512   : > { %v9154_v57 = vrot.slane %v9153_v22, 4  ;;  %v9209_v22 = vshrl.u32 %v9013_v9, 16 }
 0x513   : > { %12902 = vmatmul.mubr.msk.bf16.gmra.mrb[24].mxu1 %vm728_vm3, %v13656_v50  ;;  %v9164_v50 = vshll.u32 %v9007_v5, 16 }
 0x514   : > { %12905 = vmatprep.mubr.msk.bf16.mxu1 %vm728_vm3, %v13657_v59  ;;  %v9176_v59 = vrot.slane %v9174_v56, 4  ;;  %v11835_v56 = vcombine.low %v9077_v28, %v9087_v18  ;;  %v9190_v18 = vrot.slane %v9188_v11, 5  ;;  %v9211_v52 = vrot.slane %v9209_v22, 4  ;;  %v18221_v22 = vld [vmem:[#allocation63_spill] sm:$0xff] }
 0x515   : > { %v9166_v5 = vrot.slane %v9164_v50, 5 }
 0x516   : > { %v9177_v62 = vor.u32 %v9176_v59, %v17279_v12  ;;  %v9187_v59 = vrot.slane %v9185_v36, 4 }
 0x517   : > { %v9167_v50 = vor.u32 %v9166_v5, %v9163_v41  ;;  %v9212_v41 = vshll.u32 %v9013_v9, 16  ;;  %v9016_v5 = vld [vmem:[#allocation2 + $0x78] sm:$0xf] }
 0x518   : > { %v9178_v28 = vrot.slane %v9177_v62, 4  ;;  %v9144_v62 = vrot.slane %v9143_v60, 4  ;;  %v9191_v45 = vor.u32 %v9190_v18, %v9187_v59  ;;  %v9233_v20 = vshrl.u32 %v9016_v5, 16  ;;  %v9019_v18 = vld [vmem:[#allocation2 + $0x84] sm:$0xf] }
 0x519   : > { %v9168_v44 = vrot.slane %v9167_v50, 4 }
 0x51a   : > { %v9183_v6 = vsel %vm13885_vm2, %v9178_v28, %v9182_v26  ;;  %v9149_v60 = vsel %vm13885_vm2, %v9144_v62, %v17269_v15  ;;  %v9192_v9 = vrot.slane %v9191_v45, 4  ;;  %v18220_v15 = vld [vmem:[#allocation58_spill] sm:$0xff]  ;;  %v9248_v26 = vrot.slane %v9246_v33, 4 }
 0x51b   : > { %12906 = vmatmul.mubr.msk.bf16.gmra.mrb[28].mxu1 %vm728_vm3, %v13658_v13  ;;  %v9134_v13 = vrot.slane %v9132_v23, 5  ;;  %v9218_v23 = vshll.u32 %v18218_v47, 16  ;;  %v9022_v47 = vld [vmem:[#allocation2 + $0x90] sm:$0xf] }
 0x51c   : > { %12913 = vmatprep.mubr.msk.bf16.mxu1 %vm728_vm3, %v11834_v48  ;;  %v9111_v48 = vsel %vm13885_vm2, %v9106_v1, %v9110_v14  ;;  %v13660_v14 = vld [vmem:[%s17881_s3 + $0x88] sm:$0xff]   ;;  %v9158_v1 = vrot.slane %v9156_v53, 5  ;;  %v9236_v53 = vshll.u32 %v9016_v5, 16  ;;  %v9270_v5 = vshrl.u32 %v18221_v22, 16 }
 0x51d   : > { %v11836_v58 = vcombine.low %v9101_v2, %v9111_v48  ;;  %v9135_v36 = vsel %vm13885_vm2, %v9130_v21, %v9134_v13  ;;  %v9224_v48 = vrot.slane %v9222_v49, 4  ;;  %v9214_v21 = vrot.slane %v9212_v41, 5 }
 0x51e   : > { %v9159_v11 = vsel %vm13885_vm2, %v9154_v57, %v9158_v1  ;;  %v9242_v13 = vshll.u32 %v16857_v51, 16  ;;  %v11837_v63 = vcombine.low %v9125_v10, %v9135_v36  ;;  %v9173_v57 = vsel %vm13885_vm2, %v9168_v44, %v17279_v12 }
 0x51f   : > { %v11838_v50 = vcombine.low %v9149_v60, %v9159_v11  ;;  %v11839_v59 = vcombine.low %v9173_v57, %v9183_v6  ;;  %v9235_v1 = vrot.slane %v9233_v20, 4  ;;  %v9238_v51 = vrot.slane %v9236_v53, 5  ;;  %v18222_v11 = vld [vmem:[#allocation64_spill] sm:$0xff] }
 0x520   : > { %v9228_v49 = vshll.u32 %v18220_v15, 16  ;;  %v9244_v10 = vrot.slane %v9242_v13, 5  ;;  %v9257_v12 = vshrl.u32 %v9019_v18, 16  ;;  %v9266_v41 = vshll.u32 %v18221_v22, 16 }
 0x521   : > { %v9281_v36 = vshrl.u32 %v9022_v47, 16  ;;  %v9284_v62 = vshll.u32 %v9022_v47, 16  ;;  %v9290_v44 = vshll.u32 %v18222_v11, 16  ;;  %v9294_v6 = vshrl.u32 %v18222_v11, 16  ;;  %v9028_v11 = vld [vmem:[#allocation2 + $0xa8] sm:$0xf] }
 0x522   : > { %v9197_v45 = vsel %vm13885_vm2, %v9192_v9, %v17301_v3  ;;  %v9230_v20 = vrot.slane %v9228_v49, 5  ;;  %v9249_v53 = vor.u32 %v9248_v26, %v9244_v10  ;;  %v9259_v13 = vrot.slane %v9257_v12, 4  ;;  %v9025_v9 = vld [vmem:[#allocation2 + $0x9c] sm:$0xf] }
 0x523   : > { %12914 = vmatmul.mubr.msk.bf16.vlgmr.msra.gmra.mrb[0].mxu1 %vm728_vm3, %v11835_v56  ;;  %v18219_v56 = vld [vmem:[#allocation55_spill] sm:$0xff]  ;;  %v9272_v60 = vrot.slane %v9270_v5, 4  ;;  %v9283_v57 = vrot.slane %v9281_v36, 4  ;;  %v9296_v3 = vrot.slane %v9294_v6, 4  ;;  %v9305_v15 = vshrl.u32 %v9025_v9, 16  ;;  %v18224_v36 = vld [vmem:[#allocation70_spill] sm:$0xff] }
 0x524   : > { %12946 = vmatpush3.bf16.msra.mxu1 %v17213_v30  ;;  %12917 = vmatprep.mubr.msk.bf16.mxu1 %vm728_vm3, %v11836_v58  ;;  %v9204_v2 = vshll.u32 %v18219_v56, 16  ;;  %v17322_v30 = vrot.slane %v9218_v23, 5  ;;  %v9215_v23 = vor.u32 %v9214_v21, %v9211_v52  ;;  %v18223_v52 = vld [vmem:[#allocation60_spill] sm:$0xff]  ;;  %v9308_v49 = vshll.u32 %v9025_v9, 16  ;;  %v18225_v6 = vld [vmem:[#allocation69_spill] sm:$0xff] }
 0x525   : > { %12947 = vmatprep.subr.bf16.mxu1 %v13660_v14  ;;  %v9252_v21 = vshll.u32 %v18223_v52, 16 }
 0x526   : > { %v9206_v28 = vrot.slane %v9204_v2, 5  ;;  %v9225_v58 = vor.u32 %v9224_v48, %v17322_v30  ;;  %v9239_v2 = vor.u32 %v9238_v51, %v9235_v1  ;;  %v9216_v48 = vrot.slane %v9215_v23, 4 }
 0x527   : > { %v9250_v1 = vrot.slane %v9249_v53, 4  ;;  %v9254_v12 = vrot.slane %v9252_v21, 5  ;;  %v9329_v21 = vshrl.u32 %v9028_v11, 16 }
 0x528   : > { %12948 = vmatpush3.bf16.msra.mxu1 %v13660_v14  ;;  %v9260_v14 = vshll.u32 %v9019_v18, 16  ;;  %v9207_v8 = vsel %vm13885_vm2, %v9202_v43, %v9206_v28  ;;  %v9226_v56 = vrot.slane %v9225_v58, 4  ;;  %v17348_v18 = vrot.slane %v9290_v44, 5 }
 0x529   : > { %v11840_v47 = vcombine.low %v9197_v45, %v9207_v8  ;;  %v9240_v43 = vrot.slane %v9239_v2, 4  ;;  %v9221_v58 = vsel %vm13885_vm2, %v9216_v48, %v17322_v30  ;;  %v9314_v30 = vshll.u32 %v18224_v36, 16 }
 0x52a   : > { %v9262_v33 = vrot.slane %v9260_v14, 5  ;;  %v9231_v28 = vsel %vm13885_vm2, %v9226_v56, %v9230_v20  ;;  %v9297_v22 = vor.u32 %v9296_v3, %v17348_v18  ;;  %v9255_v44 = vsel %vm13885_vm2, %v9250_v1, %v9254_v12  ;;  %v13686_v1 = vld [vmem:[#allocation2 + $0xa4] sm:$0x1] }
 0x52b   : > { %12918 = vmatmul.mubr.msk.bf16.gmra.mrb[4].mxu1 %vm728_vm3, %v11837_v63  ;;  %v17346_v63 = vrot.slane %v9266_v41, 5  ;;  %v11841_v26 = vcombine.low %v9221_v58, %v9231_v28  ;;  %v13685_v41 = vld [vmem:[#allocation2 + $0x8c] sm:$0x1]  ;;  %v9300_v45 = vshll.u32 %v18225_v6, 16  ;;  %v9338_v8 = vshll.u32 %v16924_v31, 16 }
 0x52c   : > { %12921 = vmatprep.mubr.msk.bf16.mxu1 %vm728_vm3, %v11838_v50  ;;  %v9286_v50 = vrot.slane %v9284_v62, 5  ;;  %v9263_v51 = vor.u32 %v9262_v33, %v9259_v13  ;;  %v9276_v5 = vshll.u32 %v13685_v41, 16  ;;  %v9318_v62 = vshrl.u32 %v18224_v36, 16 }
 0x52d   : > { %v9273_v23 = vor.u32 %v9272_v60, %v17346_v63  ;;  %v9342_v56 = vshrl.u32 %v16924_v31, 16  ;;  %v9307_v20 = vrot.slane %v9305_v15, 4  ;;  %v9298_v52 = vrot.slane %v9297_v22, 4  ;;  %v9031_v31 = vld [vmem:[#allocation2 + $0xb4] sm:$0xf] }
 0x52e   : > { %v9287_v14 = vor.u32 %v9286_v50, %v9283_v57  ;;  %v9264_v2 = vrot.slane %v9263_v51, 4  ;;  %v9332_v13 = vshll.u32 %v9028_v11, 16  ;;  %v9278_v60 = vrot.slane %v9276_v5, 5 }
 0x52f   : > { %v9274_v48 = vrot.slane %v9273_v23, 4  ;;  %v17368_v57 = vrot.slane %v9314_v30, 5  ;;  %v9320_v50 = vrot.slane %v9318_v62, 4  ;;  %v9302_v3 = vrot.slane %v9300_v45, 5  ;;  %v13687_v45 = vld [vmem:[#allocation2 + $0xb0] sm:$0x1] }
 0x530   : > { %v9288_v53 = vrot.slane %v9287_v14, 4  ;;  %v17371_v9 = vrot.slane %v9338_v8, 5  ;;  %v9269_v28 = vsel %vm13885_vm2, %v9264_v2, %v17346_v63  ;;  %v9324_v51 = vshll.u32 %v13686_v1, 16 }
 0x531   : > { %v9303_v15 = vsel %vm13885_vm2, %v9298_v52, %v9302_v3  ;;  %v9321_v12 = vor.u32 %v9320_v50, %v17368_v57  ;;  %v9353_v14 = vshrl.u32 %v9031_v31, 16  ;;  %v9362_v63 = vshll.u32 %v16951_v40, 16 }
 0x532   : > { %v9293_v23 = vsel %vm13885_vm2, %v9288_v53, %v17348_v18  ;;  %v9366_v22 = vshrl.u32 %v16951_v40, 16  ;;  %v9356_v5 = vshll.u32 %v9031_v31, 16  ;;  %v9386_v36 = vshll.u32 %v16962_v17, 16 }
 0x533   : > { %12922 = vmatmul.mubr.msk.bf16.gmra.mrb[8].mxu1 %vm728_vm3, %v11839_v59  ;;  %v9245_v59 = vsel %vm13885_vm2, %v9240_v43, %v9244_v10  ;;  %v9310_v10 = vrot.slane %v9308_v49, 5  ;;  %v9279_v43 = vsel %vm13885_vm2, %v9274_v48, %v9278_v60  ;;  %v9331_v49 = vrot.slane %v9329_v21, 4  ;;  %v9037_v48 = vld [vmem:[#allocation2 + $0xcc] sm:$0xf] }
 0x534   : > { %12925 = vmatprep.mubr.msk.bf16.mxu1 %vm728_vm3, %v11840_v47  ;;  %v11842_v33 = vcombine.low %v9245_v59, %v9255_v44  ;;  %v9344_v47 = vrot.slane %v9342_v56, 4  ;;  %v9034_v59 = vld [vmem:[#allocation2 + $0xc0] sm:$0xf]  ;;  %v9390_v18 = vshrl.u32 %v16962_v17, 16  ;;  %v11843_v30 = vcombine.low %v9269_v28, %v9279_v43 }
 0x535   : > { %v9311_v58 = vor.u32 %v9310_v10, %v9307_v20  ;;  %v11844_v62 = vcombine.low %v9293_v23, %v9303_v15  ;;  %v9326_v44 = vrot.slane %v9324_v51, 5  ;;  %v9348_v8 = vshll.u32 %v13687_v45, 16 }
 0x536   : > { %v9345_v41 = vor.u32 %v9344_v47, %v17371_v9  ;;  %v9377_v56 = vshrl.u32 %v9034_v59, 16  ;;  %v9380_v2 = vshll.u32 %v9034_v59, 16  ;;  %v9322_v20 = vrot.slane %v9321_v12, 4 }
 0x537   : > { %v9312_v11 = vrot.slane %v9311_v58, 4  ;;  %v9355_v40 = vrot.slane %v9353_v14, 4  ;;  %v9364_v10 = vrot.slane %v9362_v63, 5  ;;  %v9368_v53 = vrot.slane %v9366_v22, 4 }
 0x538   : > { %v9346_v52 = vrot.slane %v9345_v41, 4  ;;  %v9358_v21 = vrot.slane %v9356_v5, 5  ;;  %v9392_v17 = vrot.slane %v9390_v18, 4  ;;  %v9404_v60 = vshll.u32 %v9037_v48, 16  ;;  %v13689_v5 = vld [vmem:[#allocation2 + $0xc8] sm:$0x1] }
 0x539   : > { %v9410_v50 = vshll.u32 %v17256_v19, 16  ;;  %v9414_v3 = vshrl.u32 %v17256_v19, 16  ;;  %v9350_v31 = vrot.slane %v9348_v8, 5  ;;  %v9379_v28 = vrot.slane %v9377_v56, 4 }
 0x53a   : > { %v9382_v43 = vrot.slane %v9380_v2, 5  ;;  %v9317_v58 = vsel %vm13885_vm2, %v9312_v11, %v17368_v57  ;;  %v9327_v1 = vsel %vm13885_vm2, %v9322_v20, %v9326_v44  ;;  %v9369_v51 = vor.u32 %v9368_v53, %v9364_v10 }
 0x53b   : > { %12926 = vmatmul.mubr.msk.bf16.gmra.mrb[12].mxu1 %vm728_vm3, %v11841_v26  ;;  %v9334_v26 = vrot.slane %v9332_v13, 5  ;;  %v9388_v13 = vrot.slane %v9386_v36, 5  ;;  %v9351_v23 = vsel %vm13885_vm2, %v9346_v52, %v9350_v31  ;;  %v9359_v15 = vor.u32 %v9358_v21, %v9355_v40  ;;  %v18230_v31 = vld [vmem:[#allocation49_spill] sm:$0xff] }
 0x53c   : > { %12929 = vmatprep.mubr.msk.bf16.mxu1 %vm728_vm3, %v11842_v33  ;;  %v9401_v33 = vshrl.u32 %v9037_v48, 16  ;;  %v9406_v14 = vrot.slane %v9404_v60, 5  ;;  %v9412_v63 = vrot.slane %v9410_v50, 5  ;;  %v9416_v22 = vrot.slane %v9414_v3, 4  ;;  %v18227_v3 = vld [vmem:[#allocation44_spill] sm:$0xff] }
 0x53d   : > { %v9335_v6 = vor.u32 %v9334_v26, %v9331_v49  ;;  %v13688_v49 = vld [vmem:[#allocation2 + $0xbc] sm:$0x1]  ;;  %v9393_v12 = vor.u32 %v9392_v17, %v9388_v13  ;;  %v11845_v59 = vcombine.low %v9317_v58, %v9327_v1  ;;  %v9383_v41 = vor.u32 %v9382_v43, %v9379_v28  ;;  %v18232_v43 = vld [vmem:[#allocation51_spill] sm:$0xff]  ;;  %v18233_v58 = vld [vmem:[#allocation53_spill] sm:$0xff] }
 0x53e   : > { %v9372_v26 = vshll.u32 %v13688_v49, 16  ;;  %v9403_v19 = vrot.slane %v9401_v33, 4  ;;  %v9396_v36 = vshll.u32 %v13689_v5, 16  ;;  %v9360_v44 = vrot.slane %v9359_v15, 4  ;;  %v18238_v49 = vld [vmem:[#allocation59_spill] sm:$0xff] }
 0x53f   : > { %v9336_v47 = vrot.slane %v9335_v6, 4  ;;  %v9394_v11 = vrot.slane %v9393_v12, 4  ;;  %v9417_v45 = vor.u32 %v9416_v22, %v9412_v63  ;;  %v9420_v8 = vshll.u32 %v17258_v16, 16  ;;  %v18244_v22 = vld [vmem:[#allocation66_spill] sm:$0xff]  ;;  %v18248_v5 = vld [vmem:[#allocation71_spill] sm:$0xff] }
 0x540   : > { %v9407_v6 = vor.u32 %v9406_v14, %v9403_v19  ;;  %v9384_v56 = vrot.slane %v9383_v41, 4  ;;  %v9398_v2 = vrot.slane %v9396_v36, 5  ;;  %v9365_v20 = vsel %vm13885_vm2, %v9360_v44, %v9364_v10  ;;  %v18226_v10 = vld [vmem:[#allocation43_spill] sm:$0xff]  ;;  %v18241_v19 = vld [vmem:[#allocation62_spill] sm:$0xff]  ;;  %v18242_v14 = vld [vmem:[#allocation65_spill] sm:$0xff] }
 0x541   : > { %v9341_v57 = vsel %vm13885_vm2, %v9336_v47, %v17371_v9  ;;  %v9418_v53 = vrot.slane %v9417_v45, 4  ;;  %v9422_v52 = vrot.slane %v9420_v8, 5  ;;  %v18228_v47 = vcombine.low %v18226_v10, %v18227_v3  ;;  %v18247_v41 = vld [vmem:[#allocation68_spill] sm:$0xff] }
 0x542   : > { %v11846_v18 = vcombine.low %v9341_v57, %v9351_v23  ;;  %v9399_v48 = vsel %vm13885_vm2, %v9394_v11, %v9398_v2  ;;  %v9408_v40 = vrot.slane %v9407_v6, 4  ;;  %v9389_v17 = vsel %vm13885_vm2, %v9384_v56, %v9388_v13  ;;  %v18229_v13 = vld [vmem:[#allocation48_spill] sm:$0xff]  ;;  %v18236_v23 = vld [vmem:[#allocation57_spill] sm:$0xff]  ;;  %v11932_v2 = vld [vmem:[%s13852_s15 + $0x30] sm:$0xf] }
 0x543   : > { %12930 = vmatmul.mubr.msk.bf16.gmra.mrb[16].mxu1 %vm728_vm3, %v11843_v30  ;;  %v9370_v30 = vrot.slane %v9369_v51, 4  ;;  %v11848_v33 = vcombine.low %v9389_v17, %v9399_v48  ;;  %v9423_v60 = vsel %vm13885_vm2, %v9418_v53, %v9422_v52  ;;  %v18231_v28 = vcombine.low %v18229_v13, %v18230_v31  ;;  %v18235_v51 = vld [vmem:[#allocation54_spill] sm:$0xff]  ;;  %v18253_v11 = vld [vmem:[#allocation73_spill] sm:$0xff]  ;;  %v11925_v52 = vld [vmem:[%s13852_s15 + $0x14] sm:$0x1] }
 0x544   : > { %12933 = vmatprep.mubr.msk.bf16.mxu1 %vm728_vm3, %v11844_v62  ;;  %v9374_v62 = vrot.slane %v9372_v26, 5  ;;  %v9413_v16 = vsel %vm13885_vm2, %v9408_v40, %v9412_v63  ;;  %v18234_v1 = vcombine.low %v18232_v43, %v18233_v58  ;;  %v18237_v15 = vcombine.low %v18235_v51, %v18236_v23  ;;  %v18239_v26 = vld [vmem:[#allocation61_spill] sm:$0xff]  ;;  %v11933_v17 = vld [vmem:[%s13852_s15 + $0x34] sm:$0xf]  ;;  %v11930_v13 = vld [vmem:[%s13852_s15 + $0x28] sm:$0xf] }
 0x545   : > { %v11849_v50 = vcombine.low %v9413_v16, %v9423_v60  ;;  %v18240_v12 = vcombine.low %v18238_v49, %v18239_v26  ;;  %v18243_v63 = vcombine.low %v18241_v19, %v18242_v14  ;;  %v18249_v36 = vcombine.low %v18247_v41, %v18248_v5  ;;  %v11928_v56 = vld [vmem:[%s13852_s15 + $0x20] sm:$0x1]  ;;  %v11929_v60 = vld [vmem:[%s13852_s15 + $0x24] sm:$0xf]  ;;  %v11934_v14 = vld [vmem:[%s13852_s15 + $0x38] sm:$0x1] }
 0x546   : > { %v9375_v9 = vsel %vm13885_vm2, %v9370_v30, %v9374_v62  ;;  %v18251_v30 = vld [vmem:[#allocation72_spill] sm:$0xff]  ;;  %v18254_v44 = vcombine.low %v16966_v61, %v18253_v11  ;;  %v18255_v6 = vcombine.low %v16974_v39, %v16982_v0  ;;  %v10375_v16 = vshll.u32 %v11932_v2, 16 }
 0x547   : > { %v11847_v21 = vcombine.low %v9365_v20, %v9375_v9  ;;  %v18252_v62 = vcombine.low %v16947_v46, %v18251_v30  ;;  %v11926_v61 = vld [vmem:[%s13852_s15 + $0x18] sm:$0xf]  ;;  %v11923_v46 = vld [vmem:[%s13852_s15 + $0xc] sm:$0xf]  ;;  %v10343_v20 = vshll.u32 %v11928_v56, 16  ;;  %v10381_v43 = vshll.u32 %v11933_v17, 16 }
 0x548   : > { %v10324_v39 = vshrl.u32 %v11926_v61, 16  ;;  %v10327_v0 = vshll.u32 %v11926_v61, 16  ;;  %v10300_v29 = vshrl.u32 %v11923_v46, 16  ;;  %v10303_v54 = vshll.u32 %v11923_v46, 16 }
 0x549   : > { %v10345_v3 = vrot.slane %v10343_v20, 5  ;;  %v10385_v58 = vshrl.u32 %v11933_v17, 16  ;;  %v10377_v51 = vrot.slane %v10375_v16, 5  ;;  %v10348_v23 = vshrl.u32 %v11929_v60, 16 }
 0x54a   : > { %v10326_v35 = vrot.slane %v10324_v39, 4  ;;  %v10329_v24 = vrot.slane %v10327_v0, 5  ;;  %v10302_v7 = vrot.slane %v10300_v29, 4  ;;  %v10357_v49 = vshll.u32 %v11930_v13, 16  ;;  %v11939_v0 = vld [vmem:[%s13852_s15 + $0x4c] sm:$0xf] }
 0x54b   : > { %12934 = vmatmul.mubr.msk.bf16.gmra.mrb[20].mxu1 %vm728_vm3, %v11845_v59  ;;  %v18245_v59 = vld [vmem:[#allocation67_spill] sm:$0xff]  ;;  %v10361_v26 = vshrl.u32 %v11930_v13, 16  ;;  %v17504_v41 = vrot.slane %v10381_v43, 5  ;;  %v10387_v30 = vrot.slane %v10385_v58, 4  ;;  %v10391_v11 = vshll.u32 %v11934_v14, 16 }
 0x54c   : > { %12937 = vmatprep.mubr.msk.bf16.mxu1 %vm728_vm3, %v11846_v18  ;;  %v18246_v57 = vcombine.low %v18244_v22, %v18245_v59  ;;  %v18250_v18 = vcombine.low %v16933_v38, %v16943_v4  ;;  %v18256_v38 = vcombine.low %v16994_v42, %v16998_v34  ;;  %v11927_v4 = vld [vmem:[%s13852_s15 + $0x1c] sm:$0xf]  ;;  %v10330_v9 = vor.u32 %v10329_v24, %v10326_v35  ;;  %v11944_v24 = vld [vmem:[%s13852_s15 + $0x60] sm:$0xf]  ;;  %v11942_v58 = vld [vmem:[%s13852_s15 + $0x58] sm:$0xf] }
 0x54d   : > { %v10333_v42 = vshll.u32 %v11927_v4, 16  ;;  %v10337_v34 = vshrl.u32 %v11927_v4, 16 }
 0x54f   : > { %v10339_v25 = vrot.slane %v10337_v34, 4  ;;  %v11936_v34 = vld [vmem:[%s13852_s15 + $0x40] sm:$0xf] }
 0x550   : > { %v10409_v20 = vshrl.u32 %v11936_v34, 16 }
 0x553   : > { %12938 = vmatmul.mubr.msk.bf16.gmra.mrb[24].mxu1 %vm728_vm3, %v11847_v21 }
 0x554   : > { %12941 = vmatprep.mubr.msk.bf16.mxu1 %vm728_vm3, %v11848_v33  ;;  %v10372_v33 = vshrl.u32 %v11932_v2, 16 }
 0x55b   : > { %12942 = vmatmul.mubr.msk.bf16.gmra.mrb[28].mxu1 %vm728_vm3, %v11849_v50  ;;  %v10331_v50 = vrot.slane %v10330_v9, 4  ;;  %v10405_v9 = vshll.u32 %v11936_v34, 16 }
 0x55c   : > { %12949 = vmatprep.mubr.msk.bf16.mxu1 %vm728_vm3, %v18228_v47  ;;  %v10319_v47 = vshll.u32 %v11925_v52, 16 }
 0x55d   : > { %v17537_v43 = vrot.slane %v10405_v9, 5 }
 0x55e   : > { %v10321_v19 = vrot.slane %v10319_v47, 5  ;;  %v11945_v47 = vld [vmem:[%s13852_s15 + $0x64] sm:$0xf] }
 0x563   : > { %12950 = vmatmul.mubr.msk.bf16.vlgmr.msra.gmra.mrb[0].mxu1 %vm728_vm3, %v18231_v28 }
 0x564   : > { %12953 = vmatprep.mubr.msk.bf16.mxu1 %vm728_vm3, %v18234_v1  ;;  %v10374_v1 = vrot.slane %v10372_v33, 4 }
 0x566   : > { %v10378_v5 = vor.u32 %v10377_v51, %v10374_v1  ;;  %v11937_v51 = vld [vmem:[%s13852_s15 + $0x44] sm:$0x1] }
 0x568   : > { %v10379_v29 = vrot.slane %v10378_v5, 4 }
 0x56b   : > { %12954 = vmatmul.mubr.msk.bf16.gmra.mrb[4].mxu1 %vm728_vm3, %v18237_v15  ;;  %v10351_v15 = vshll.u32 %v11929_v60, 16  ;;  %v10384_v60 = vsel %vm13885_vm2, %v10379_v29, %v17504_v41 }
 0x56c   : > { %12957 = vmatprep.mubr.msk.bf16.mxu1 %vm728_vm3, %v18240_v12 }
 0x573   : > { %12958 = vmatmul.mubr.msk.bf16.gmra.mrb[8].mxu1 %vm728_vm3, %v18243_v63  ;;  %v11931_v63 = vld [vmem:[%s13852_s15 + $0x2c] sm:$0x1] }
 0x574   : > { %12961 = vmatprep.mubr.msk.bf16.mxu1 %vm728_vm3, %v18246_v57 }
 0x57b   : > { %12962 = vmatmul.mubr.msk.bf16.gmra.mrb[12].mxu1 %vm728_vm3, %v18249_v36  ;;  %v10350_v36 = vrot.slane %v10348_v23, 4  ;;  %v10411_v23 = vrot.slane %v10409_v20, 4 }
 0x57c   : > { %12965 = vmatprep.mubr.msk.bf16.mxu1 %vm728_vm3, %v18250_v18  ;;  %v10353_v18 = vrot.slane %v10351_v15, 5 }
 0x583   : > { %12966 = vmatmul.mubr.msk.bf16.gmra.mrb[16].mxu1 %vm728_vm3, %v18252_v62  ;;  %v17506_v62 = vrot.slane %v10357_v49, 5 }
 0x584   : > { %12969 = vmatprep.mubr.msk.bf16.mxu1 %vm728_vm3, %v18254_v44  ;;  %v10363_v44 = vrot.slane %v10361_v26, 4 }
 0x58b   : > { %12970 = vmatmul.mubr.msk.bf16.gmra.mrb[20].mxu1 %vm728_vm3, %v18255_v6  ;;  %v10367_v6 = vshll.u32 %v11931_v63, 16  ;;  %v10477_v63 = vshll.u32 %v11945_v47, 16 }
 0x58c   : > { %12973 = vmatprep.mubr.msk.bf16.mxu1 %vm728_vm3, %v18256_v38  ;;  %v11938_v38 = vld [vmem:[%s13852_s15 + $0x48] sm:$0xf] }
 0x58d   : > { %v10420_v35 = vshrl.u32 %v11938_v38, 16  ;;  %v10479_v34 = vrot.slane %v10477_v63, 5 }
 0x593   : > { %12974 = vmatmul.mubr.msk.bf16.gmra.mrb[24].mxu1 %vm728_vm3, %v11901_v32  ;;  %v11924_v32 = vld [vmem:[%s13852_s15 + $0x10] sm:$0xf] }
 0x594   : > { %12977 = vmatprep.mubr.msk.bf16.mxu1 %vm728_vm3, %v11902_v55  ;;  %v10335_v55 = vrot.slane %v10333_v42, 5  ;;  %v10309_v45 = vshll.u32 %v11924_v32, 16  ;;  %v10313_v8 = vshrl.u32 %v11924_v32, 16  ;;  %v11935_v42 = vld [vmem:[%s13852_s15 + $0x3c] sm:$0xf]  ;;  %v10388_v32 = vor.u32 %v10387_v30, %v17504_v41 }
 0x595   : > { %v10396_v56 = vshrl.u32 %v11935_v42, 16  ;;  %v10399_v2 = vshll.u32 %v11935_v42, 16  ;;  %v17544_v30 = vunpack.c.l.bf16 %v10384_v60  ;;  %v11946_v42 = vld [vmem:[%s13852_s15 + $0x68] sm:$0x1] }
 0x596   : > { %v10340_v48 = vor.u32 %v10339_v25, %v10335_v55  ;;  %v10311_v53 = vrot.slane %v10309_v45, 5  ;;  %v10315_v21 = vrot.slane %v10313_v8, 4  ;;  %v10336_v12 = vsel %vm13885_vm2, %v10331_v50, %v10335_v55  ;;  %v11941_v45 = vld [vmem:[%s13852_s15 + $0x54] sm:$0xf] }
 0x597   : > { %v17509_v61 = vunpack.c.l.bf16 %v10336_v12  ;;  %v17522_v55 = vrot.slane %v10391_v11, 5  ;;  %v10364_v25 = vor.u32 %v10363_v44, %v17506_v62  ;;  %v10429_v8 = vshll.u32 %v11939_v0, 16 }
 0x598   : > { %v10341_v10 = vrot.slane %v10340_v48, 4  ;;  %v10316_v28 = vor.u32 %v10315_v21, %v10311_v53  ;;  %v10433_v48 = vshrl.u32 %v11939_v0, 16  ;;  %v10422_v21 = vrot.slane %v10420_v35, 4 }
 0x599   : > { %v10444_v17 = vshrl.u32 %v11941_v45, 16  ;;  %v10447_v33 = vshll.u32 %v11941_v45, 16  ;;  %v10389_v50 = vrot.slane %v10388_v32, 4  ;;  %v17535_v13 = vrot.slane %v10429_v8, 5  ;;  %v11943_v32 = vld [vmem:[%s13852_s15 + $0x5c] sm:$0x1] }
 0x59a   : > { %v10346_v59 = vsel %vm13885_vm2, %v10341_v10, %v10345_v3  ;;  %v10317_v57 = vrot.slane %v10316_v28, 4  ;;  %v11940_v3 = vld [vmem:[%s13852_s15 + $0x50] sm:$0x1]  ;;  %v10401_v28 = vrot.slane %v10399_v2, 5  ;;  %v10435_v1 = vrot.slane %v10433_v48, 4 }
 0x59b   : > { %12978 = vmatmul.mubr.msk.bf16.gmra.mrb[28].mxu1 %vm728_vm3, %v11903_v37  ;;  %v10305_v37 = vrot.slane %v10303_v54, 5  ;;  %v17513_v46 = vunpack.c.l.bf16 %v10346_v59  ;;  %v10354_v54 = vor.u32 %v10353_v18, %v10350_v36  ;;  %v10365_v12 = vrot.slane %v10364_v25, 4  ;;  %v11950_v8 = vld [vmem:[%s13852_s15 + $0x78] sm:$0xf]  ;;  %v11947_v48 = vld [vmem:[%s13852_s15 + $0x6c] sm:$0xf] }
 0x59c   : > { %v10322_v39 = vsel %vm13885_vm2, %v10317_v57, %v10321_v19  ;;  %v10446_v19 = vrot.slane %v10444_v17, 4  ;;  %v10449_v14 = vrot.slane %v10447_v33, 5  ;;  %v10453_v59 = vshll.u32 %v11942_v58, 16  ;;  %v11951_v17 = vld [vmem:[%s13852_s15 + $0x7c] sm:$0xf] }
 0x59d   : > { %v10306_v40 = vor.u32 %v10305_v37, %v10302_v7  ;;  %v17525_v7 = vrot.slane %v10367_v6, 5  ;;  %v10423_v37 = vshll.u32 %v11938_v38, 16  ;;  %v10355_v52 = vrot.slane %v10354_v54, 4 }
 0x59e   : > { %v17528_v16 = vunpack.c.l.bf16 %v10322_v39  ;;  %v10457_v57 = vshrl.u32 %v11942_v58, 16  ;;  %v10439_v36 = vshll.u32 %v11940_v3, 16  ;;  %v10415_v18 = vshll.u32 %v11937_v51, 16  ;;  %v11948_v51 = vld [vmem:[%s13852_s15 + $0x70] sm:$0xf] }
 0x59f   : > { %v10307_v31 = vrot.slane %v10306_v40, 4  ;;  %v10468_v40 = vshrl.u32 %v11944_v24, 16  ;;  %v10425_v10 = vrot.slane %v10423_v37, 5  ;;  %v10360_v26 = vsel %vm13885_vm2, %v10355_v52, %v17506_v62 }
 0x5a0   : > { %v10436_v11 = vor.u32 %v10435_v1, %v17535_v13  ;;  %v10412_v44 = vor.u32 %v10411_v23, %v17537_v43  ;;  %v17548_v6 = vunpack.c.l.bf16 %v10360_v26  ;;  %v10394_v38 = vsel %vm13885_vm2, %v10389_v50, %v17522_v55 }
 0x5a1   : > { %v10312_v22 = vsel %vm13885_vm2, %v10307_v31, %v10311_v53  ;;  %v10471_v53 = vshll.u32 %v11944_v24, 16  ;;  %v10398_v31 = vrot.slane %v10396_v56, 4  ;;  %v10470_v15 = vrot.slane %v10468_v40, 4 }
 0x5a2   : > { %v17511_v4 = vunpack.c.l.bf16 %v10312_v22  ;;  %v10481_v22 = vshrl.u32 %v11945_v47, 16  ;;  %v10426_v41 = vor.u32 %v10425_v10, %v10422_v21  ;;  %v10370_v39 = vsel %vm13885_vm2, %v10365_v12, %v17525_v7 }
 0x5a3   : > { %v10473_v49 = vrot.slane %v10471_v53, 5  ;;  %v10402_v5 = vor.u32 %v10401_v28, %v10398_v31  ;;  %v10450_v0 = vor.u32 %v10449_v14, %v10446_v19  ;;  %v10455_v29 = vrot.slane %v10453_v59, 5  ;;  %v17584_v14 = vld [vmem:[%s17882_s4] ss:$0 sm:$0xff] }
 0x5a4   : > { %v10483_v54 = vrot.slane %v10481_v22, 4  ;;  %v10459_v35 = vrot.slane %v10457_v57, 4  ;;  %v10427_v24 = vrot.slane %v10426_v41, 4  ;;  %v10441_v37 = vrot.slane %v10439_v36, 5 }
 0x5a5   : > { %v10474_v62 = vor.u32 %v10473_v49, %v10470_v15  ;;  %v10403_v25 = vrot.slane %v10402_v5, 4  ;;  %v10417_v45 = vrot.slane %v10415_v18, 5  ;;  %v10437_v56 = vrot.slane %v10436_v11, 4  ;;  %v11952_v11 = vld [vmem:[%s13852_s15 + $0x80] sm:$0x1] }
 0x5a6   : > { %v10413_v55 = vrot.slane %v10412_v44, 4  ;;  %v10487_v9 = vshll.u32 %v11946_v42, 16  ;;  %v17560_v7 = vunpack.c.l.bf16 %v10394_v38  ;;  %v17562_v20 = vunpack.c.l.bf16 %v10370_v39  ;;  %v11956_v42 = vld [vmem:[%s13852_s15 + $0x90] sm:$0xf] }
 0x5a7   : > { %v10475_v2 = vrot.slane %v10474_v62, 4  ;;  %v10451_v40 = vrot.slane %v10450_v0, 4  ;;  %v10463_v53 = vshll.u32 %v11943_v32, 16  ;;  %v10484_v52 = vor.u32 %v10483_v54, %v10479_v34 }
 0x5a8   : > { %v10460_v21 = vor.u32 %v10459_v35, %v10455_v29  ;;  %v10516_v33 = vshrl.u32 %v11950_v8, 16  ;;  %v10519_v60 = vshll.u32 %v11950_v8, 16  ;;  %v10432_v50 = vsel %vm13885_vm2, %v10427_v24, %v17535_v13 }
 0x5a9   : > { %v10408_v10 = vsel %vm13885_vm2, %v10403_v25, %v17537_v43  ;;  %v10492_v3 = vshrl.u32 %v11947_v48, 16  ;;  %v10495_v47 = vshll.u32 %v11947_v48, 16  ;;  %v10442_v31 = vsel %vm13885_vm2, %v10437_v56, %v10441_v37  ;;  %v11949_v56 = vld [vmem:[%s13852_s15 + $0x74] sm:$0x1] }
 0x5aa   : > { %v10418_v28 = vsel %vm13885_vm2, %v10413_v55, %v10417_v45  ;;  %v10480_v58 = vsel %vm13885_vm2, %v10475_v2, %v10479_v34  ;;  %v10489_v1 = vrot.slane %v10487_v9, 5  ;;  %v10456_v13 = vsel %vm13885_vm2, %v10451_v40, %v10455_v29 }
 0x5ab   : > { %v10465_v23 = vrot.slane %v10463_v53, 5  ;;  %v10525_v15 = vshll.u32 %v11951_v17, 16  ;;  %v10529_v43 = vshrl.u32 %v11951_v17, 16  ;;  %v10485_v49 = vrot.slane %v10484_v52, 4 }
 0x5ac   : > { %v10461_v26 = vrot.slane %v10460_v21, 4  ;;  %v10518_v12 = vrot.slane %v10516_v33, 4  ;;  %v10521_v19 = vrot.slane %v10519_v60, 5  ;;  %v17586_v63 = vunpack.c.l.bf16 %v10432_v50 }
 0x5ad   : > { %v10494_v22 = vrot.slane %v10492_v3, 4  ;;  %v10497_v59 = vrot.slane %v10495_v47, 5  ;;  %v10501_v57 = vshll.u32 %v11948_v51, 16  ;;  %v17588_v41 = vunpack.c.l.bf16 %v10408_v10 }
 0x5ae   : > { %v17590_v5 = vunpack.c.l.bf16 %v10442_v31  ;;  %v17592_v36 = vunpack.c.l.bf16 %v10418_v28  ;;  %v10505_v18 = vshrl.u32 %v11948_v51, 16  ;;  %v17595_v62 = vunpack.c.l.bf16 %v10480_v58  ;;  %v11953_v28 = vld [vmem:[%s13852_s15 + $0x84] sm:$0xf]  ;;  %v11957_v51 = vld [vmem:[%s13852_s15 + $0x94] sm:$0xf] }
 0x5af   : > { %v17597_v38 = vunpack.c.l.bf16 %v10456_v13  ;;  %v17599_v39 = vrot.slane %v10525_v15, 5  ;;  %v10531_v0 = vrot.slane %v10529_v43, 4  ;;  %v10490_v54 = vsel %vm13885_vm2, %v10485_v49, %v10489_v1 }
 0x5b0   : > { %v10466_v32 = vsel %vm13885_vm2, %v10461_v26, %v10465_v23  ;;  %v10522_v35 = vor.u32 %v10521_v19, %v10518_v12  ;;  %v10498_v37 = vor.u32 %v10497_v59, %v10494_v22  ;;  %v17612_v45 = vrot.slane %v10501_v57, 5 }
 0x5b1   : > { %v10535_v8 = vshll.u32 %v11952_v11, 16  ;;  %v10507_v48 = vrot.slane %v10505_v18, 4  ;;  %v10564_v40 = vshrl.u32 %v11956_v42, 16  ;;  %v10532_v21 = vor.u32 %v10531_v0, %v17599_v39 }
 0x5b2   : > { %v10567_v17 = vshll.u32 %v11956_v42, 16  ;;  %v10523_v50 = vrot.slane %v10522_v35, 4  ;;  %v17622_v47 = vunpack.c.l.bf16 %v10490_v54  ;;  %v10499_v31 = vrot.slane %v10498_v37, 4 }
 0x5b3   : > { %v17630_v58 = vunpack.c.l.bf16 %v10466_v32  ;;  %v10508_v1 = vor.u32 %v10507_v48, %v17612_v45  ;;  %v10533_v23 = vrot.slane %v10532_v21, 4  ;;  %v10566_v15 = vrot.slane %v10564_v40, 4 }
 0x5b4   : > { %v10569_v43 = vrot.slane %v10567_v17, 5  ;;  %v10528_v12 = vsel %vm13885_vm2, %v10523_v50, %v17599_v39  ;;  %v10540_v22 = vshrl.u32 %v11953_v28, 16  ;;  %v10504_v18 = vsel %vm13885_vm2, %v10499_v31, %v17612_v45 }
 0x5b5   : > { %v10573_v11 = vshll.u32 %v11957_v51, 16  ;;  %v10543_v0 = vshll.u32 %v11953_v28, 16  ;;  %v10577_v54 = vshrl.u32 %v11957_v51, 16  ;;  %v17662_v40 = vunpack.c.l.bf16 %v10528_v12 }
 0x5b6   : > { %v17666_v17 = vunpack.c.l.bf16 %v10504_v18 }
 0x636   : > { %v12951_v44 = vpop.f32.mrb[0].mxu1 }
 0x637   : > { %v10221_v34 = vadd.f32 %v12951_v44, %v17584_v14  ;;  %v10053_v29 = vpop.f32.mrb[1].mxu1  ;;  %v11954_v44 = vld [vmem:[%s13852_s15 + $0x88] sm:$0xf] }
 0x638   : > { %v10219_v24 = vadd.f32 %v17584_v14, %v10053_v29  ;;  %v12952_v25 = vpop.f32.mrb[2].mxu1  ;;  %v10509_v29 = vrot.slane %v10508_v1, 4 }
 0x639   : > { %v10749_v55 = vadd.f32 %v17509_v61, %v10221_v34  ;;  %v10222_v2 = vadd.f32 %v12952_v25, %v17584_v14  ;;  %v10056_v9 = vpop.f32.mrb[3].mxu1  ;;  %v10511_v61 = vshll.u32 %v11949_v56, 16  ;;  %v10570_v25 = vor.u32 %v10569_v43, %v10566_v15 }
 0x63a   : > { %v10747_v53 = vadd.f32 %v17511_v4, %v10219_v24  ;;  %v10220_v52 = vadd.f32 %v17584_v14, %v10056_v9  ;;  %v10553_v9 = vshrl.u32 %v11954_v44, 16 }
 0x63b   : > { %v10781_v33 = vmax.f32 %v10749_v55, 0.0  ;;  %v10750_v60 = vadd.f32 %v17513_v46, %v10222_v2  ;;  %v10537_v46 = vrot.slane %v10535_v8, 5  ;;  %v17642_v19 = vrot.slane %v10511_v61, 5 }
 0x63c   : > { %v10779_v10 = vmax.f32 %v10747_v53, 0.0  ;;  %v10748_v3 = vadd.f32 %v17528_v16, %v10220_v52  ;;  %v10549_v8 = vshll.u32 %v11954_v44, 16  ;;  %v10545_v2 = vrot.slane %v10543_v0, 5 }
 0x63d   : > { %10813 = vst.msk [vmem:[%s17626_s14 + $0x10] sm:$0xff] %vm728_vm3, %v10781_v33  ;;  %v10782_v4 = vmax.f32 %v10750_v60, 0.0  ;;  %v10538_v24 = vsel %vm13885_vm2, %v10533_v23, %v10537_v46  ;;  %v10575_v53 = vrot.slane %v10573_v11, 5  ;;  %v10579_v52 = vrot.slane %v10577_v54, 4  ;;  %v11958_v60 = vld [vmem:[%s13852_s15 + $0x98] sm:$0x1] }
 0x63e   : > { %10811 = vst.msk [vmem:[%s17626_s14] sm:$0xff] %vm728_vm3, %v10779_v10  ;;  %v10780_v16 = vmax.f32 %v10748_v3, 0.0  ;;  %v12955_v13 = vpop.f32.mrb[4].mxu1  ;;  %v10571_v33 = vrot.slane %v10570_v25, 4  ;;  %v10514_v10 = vsel %vm13885_vm2, %v10509_v29, %v17642_v19  ;;  %v11955_v3 = vld [vmem:[%s13852_s15 + $0x8c] sm:$0x1] }
 0x63f   : > { %10814 = vst.msk [vmem:[%s17626_s14 + $0x18] sm:$0xff] %vm728_vm3, %v10782_v4  ;;  %v10225_v49 = vadd.f32 %v12955_v13, %v17584_v14  ;;  %v10069_v26 = vpop.f32.mrb[5].mxu1  ;;  %v17681_v51 = vrot.slane %v10549_v8, 5  ;;  %v10580_v43 = vor.u32 %v10579_v52, %v10575_v53  ;;  %v11959_v11 = vld [vmem:[%s13852_s15 + $0x9c] sm:$0xf]  ;;  %v17696_v29 = vunpack.c.l.bf16 %v10514_v10 }
 0x640   : > { %10812 = vst.msk [vmem:[%s17626_s14 + $0x8] sm:$0xff] %vm728_vm3, %v10780_v16  ;;  %v10223_v59 = vadd.f32 %v17584_v14, %v10069_v26  ;;  %v12956_v57 = vpop.f32.mrb[6].mxu1  ;;  %v10555_v16 = vrot.slane %v10553_v9, 4  ;;  %v10576_v19 = vsel %vm13885_vm2, %v10571_v33, %v10575_v53  ;;  %v11960_v25 = vld [vmem:[%s13852_s15 + $0xa0] sm:$0xf] }
 0x641   : > { %v10753_v42 = vadd.f32 %v17544_v30, %v10225_v49  ;;  %v10226_v34 = vadd.f32 %v12956_v57, %v17584_v14  ;;  %v10072_v39 = vpop.f32.mrb[7].mxu1  ;;  %v10542_v30 = vrot.slane %v10540_v22, 4  ;;  %v10583_v49 = vshll.u32 %v11958_v60, 16 }
 0x642   : > { %v10751_v32 = vadd.f32 %v17548_v6, %v10223_v59  ;;  %v10224_v35 = vadd.f32 %v17584_v14, %v10072_v39  ;;  %v11962_v6 = vld [vmem:[%s13852_s15 + $0xa8] sm:$0xf]  ;;  %v10559_v22 = vshll.u32 %v11955_v3, 16  ;;  %v10581_v54 = vrot.slane %v10580_v43, 4 }
 0x643   : > { %v10785_v37 = vmax.f32 %v10753_v42, 0.0  ;;  %v10754_v45 = vadd.f32 %v17560_v7, %v10226_v34  ;;  %v10612_v31 = vshrl.u32 %v11962_v6, 16  ;;  %v10615_v28 = vshll.u32 %v11962_v6, 16  ;;  %v11963_v34 = vld [vmem:[%s13852_s15 + $0xac] sm:$0xf] }
 0x644   : > { %v10783_v56 = vmax.f32 %v10751_v32, 0.0  ;;  %v10752_v55 = vadd.f32 %v17562_v20, %v10224_v35  ;;  %v17668_v20 = vunpack.c.l.bf16 %v10538_v24  ;;  %v10546_v1 = vor.u32 %v10545_v2, %v10542_v30 }
 0x645   : > { %10817 = vst.msk [vmem:[%s17626_s14 + $0x30] sm:$0xff] %vm728_vm3, %v10785_v37  ;;  %v10786_v48 = vmax.f32 %v10754_v45, 0.0  ;;  %v10617_v18 = vrot.slane %v10615_v28, 5  ;;  %v17700_v24 = vunpack.c.l.bf16 %v10576_v19  ;;  %v10588_v37 = vshrl.u32 %v11959_v11, 16 }
 0x646   : > { %10815 = vst.msk [vmem:[%s17626_s14 + $0x20] sm:$0xff] %vm728_vm3, %v10783_v56  ;;  %v10784_v7 = vmax.f32 %v10752_v55, 0.0  ;;  %v12959_v21 = vpop.f32.mrb[8].mxu1  ;;  %v10547_v42 = vrot.slane %v10546_v1, 4  ;;  %v10621_v56 = vshll.u32 %v11963_v34, 16  ;;  %v10591_v55 = vshll.u32 %v11959_v11, 16 }
 0x647   : > { %10818 = vst.msk [vmem:[%s17626_s14 + $0x38] sm:$0xff] %vm728_vm3, %v10786_v48  ;;  %v10229_v50 = vadd.f32 %v12959_v21, %v17584_v14  ;;  %v10085_v61 = vpop.f32.mrb[9].mxu1  ;;  %v10625_v53 = vshrl.u32 %v11963_v34, 16  ;;  %v10597_v60 = vshll.u32 %v11960_v25, 16  ;;  %v10590_v10 = vrot.slane %v10588_v37, 4 }
 0x648   : > { %10816 = vst.msk [vmem:[%s17626_s14 + $0x28] sm:$0xff] %vm728_vm3, %v10784_v7  ;;  %v10227_v4 = vadd.f32 %v17584_v14, %v10085_v61  ;;  %v12960_v46 = vpop.f32.mrb[10].mxu1  ;;  %v10552_v6 = vsel %vm13885_vm2, %v10547_v42, %v17681_v51  ;;  %v10601_v3 = vshrl.u32 %v11960_v25, 16  ;;  %v11969_v25 = vld [vmem:[%s13852_s15 + $0xc4] sm:$0xf] }
 0x649   : > { %v10757_v13 = vadd.f32 %v17586_v63, %v10229_v50  ;;  %v10230_v23 = vadd.f32 %v12960_v46, %v17584_v14  ;;  %v10088_v15 = vpop.f32.mrb[11].mxu1  ;;  %v10614_v63 = vrot.slane %v10612_v31, 4  ;;  %v11964_v31 = vld [vmem:[%s13852_s15 + $0xb0] sm:$0x1]  ;;  %v10593_v46 = vrot.slane %v10591_v55, 5 }
 0x64a   : > { %v10755_v26 = vadd.f32 %v17588_v41, %v10227_v4  ;;  %v10228_v12 = vadd.f32 %v17584_v14, %v10088_v15  ;;  %v10556_v41 = vor.u32 %v10555_v16, %v17681_v51  ;;  %v17726_v15 = vunpack.c.l.bf16 %v10552_v6 }
 0x64b   : > { %v10789_v59 = vmax.f32 %v10757_v13, 0.0  ;;  %v10758_v57 = vadd.f32 %v17590_v5, %v10230_v23  ;;  %v10585_v5 = vrot.slane %v10583_v49, 5  ;;  %v10618_v8 = vor.u32 %v10617_v18, %v10614_v63  ;;  %v11961_v13 = vld [vmem:[%s13852_s15 + $0xa4] sm:$0x1] }
 0x64c   : > { %v10787_v44 = vmax.f32 %v10755_v26, 0.0  ;;  %v10756_v0 = vadd.f32 %v17592_v36, %v10228_v12  ;;  %v10561_v36 = vrot.slane %v10559_v22, 5  ;;  %v10557_v48 = vrot.slane %v10556_v41, 4 }
 0x64d   : > { %10821 = vst.msk [vmem:[%s17626_s14 + $0x50] sm:$0xff] %vm728_vm3, %v10789_v59  ;;  %v10790_v39 = vmax.f32 %v10758_v57, 0.0  ;;  %v10586_v33 = vsel %vm13885_vm2, %v10581_v54, %v10585_v5  ;;  %v10619_v4 = vrot.slane %v10618_v8, 4  ;;  %v10627_v43 = vrot.slane %v10625_v53, 4 }
 0x64e   : > { %10819 = vst.msk [vmem:[%s17626_s14 + $0x40] sm:$0xff] %vm728_vm3, %v10787_v44  ;;  %v10788_v32 = vmax.f32 %v10756_v0, 0.0  ;;  %v12963_v35 = vpop.f32.mrb[12].mxu1  ;;  %v10562_v16 = vsel %vm13885_vm2, %v10557_v48, %v10561_v36  ;;  %v10631_v49 = vshll.u32 %v11964_v31, 16  ;;  %v17733_v19 = vrot.slane %v10597_v60, 5 }
 0x64f   : > { %10822 = vst.msk [vmem:[%s17626_s14 + $0x58] sm:$0xff] %vm728_vm3, %v10790_v39  ;;  %v10233_v45 = vadd.f32 %v12963_v35, %v17584_v14  ;;  %v10101_v30 = vpop.f32.mrb[13].mxu1  ;;  %v10603_v22 = vrot.slane %v10601_v3, 4  ;;  %v17738_v63 = vunpack.c.l.bf16 %v10562_v16  ;;  %v10594_v11 = vor.u32 %v10593_v46, %v10590_v10  ;;  %v11965_v39 = vld [vmem:[%s13852_s15 + $0xb4] sm:$0xf] }
 0x650   : > { %10820 = vst.msk [vmem:[%s17626_s14 + $0x48] sm:$0xff] %vm728_vm3, %v10788_v32  ;;  %v10231_v2 = vadd.f32 %v17584_v14, %v10101_v30  ;;  %v12964_v9 = vpop.f32.mrb[14].mxu1  ;;  %v10607_v42 = vshll.u32 %v11961_v13, 16  ;;  %v17748_v36 = vrot.slane %v10631_v49, 5  ;;  %v10669_v53 = vshll.u32 %v11969_v25, 16 }
 0x651   : > { %v10761_v52 = vadd.f32 %v17595_v62, %v10233_v45  ;;  %v10234_v7 = vadd.f32 %v12964_v9, %v17584_v14  ;;  %v10104_v21 = vpop.f32.mrb[15].mxu1  ;;  %v10604_v8 = vor.u32 %v10603_v22, %v17733_v19  ;;  %v10639_v9 = vshll.u32 %v11965_v39, 16  ;;  %v11970_v49 = vld [vmem:[%s13852_s15 + $0xc8] sm:$0x1] }
 0x652   : > { %v10759_v50 = vadd.f32 %v17597_v38, %v10231_v2  ;;  %v10232_v61 = vadd.f32 %v17584_v14, %v10104_v21  ;;  %v10623_v38 = vrot.slane %v10621_v56, 5  ;;  %v11966_v56 = vld [vmem:[%s13852_s15 + $0xb8] sm:$0xf]  ;;  %v10636_v2 = vshrl.u32 %v11965_v39, 16 }
 0x653   : > { %v10793_v28 = vmax.f32 %v10761_v52, 0.0  ;;  %v10762_v62 = vadd.f32 %v17622_v47, %v10234_v7  ;;  %v11968_v47 = vld [vmem:[%s13852_s15 + $0xc0] sm:$0xf]  ;;  %v10673_v52 = vshrl.u32 %v11969_v25, 16  ;;  %v10595_v7 = vrot.slane %v10594_v11, 4 }
 0x654   : > { %v10791_v1 = vmax.f32 %v10759_v50, 0.0  ;;  %v10760_v51 = vadd.f32 %v17630_v58, %v10232_v61  ;;  %v17731_v58 = vunpack.c.l.bf16 %v10586_v33  ;;  %v10624_v18 = vsel %vm13885_vm2, %v10619_v4, %v10623_v38 }
 0x655   : > { %10825 = vst.msk [vmem:[%s17626_s14 + $0x70] sm:$0xff] %vm728_vm3, %v10793_v28  ;;  %v10794_v23 = vmax.f32 %v10762_v62, 0.0  ;;  %v10660_v41 = vshrl.u32 %v11968_v47, 16  ;;  %v10663_v34 = vshll.u32 %v11968_v47, 16  ;;  %v10628_v35 = vor.u32 %v10627_v43, %v10623_v38 }
 0x656   : > { %10823 = vst.msk [vmem:[%s17626_s14 + $0x60] sm:$0xff] %vm728_vm3, %v10791_v1  ;;  %v10792_v26 = vmax.f32 %v10760_v51, 0.0  ;;  %v12967_v12 = vpop.f32.mrb[16].mxu1  ;;  %v17753_v30 = vunpack.c.l.bf16 %v10624_v18  ;;  %v10645_v21 = vshll.u32 %v11966_v56, 16  ;;  %v10649_v33 = vshrl.u32 %v11966_v56, 16 }
 0x657   : > { %10826 = vst.msk [vmem:[%s17626_s14 + $0x78] sm:$0xff] %vm728_vm3, %v10794_v23  ;;  %v10237_v59 = vadd.f32 %v12967_v12, %v17584_v14  ;;  %v10117_v57 = vpop.f32.mrb[17].mxu1  ;;  %v10662_v61 = vrot.slane %v10660_v41, 4  ;;  %v10665_v10 = vrot.slane %v10663_v34, 5  ;;  %v10629_v31 = vrot.slane %v10628_v35, 4 }
 0x658   : > { %10824 = vst.msk [vmem:[%s17626_s14 + $0x68] sm:$0xff] %vm728_vm3, %v10792_v26  ;;  %v10235_v44 = vadd.f32 %v17584_v14, %v10117_v57  ;;  %v12968_v0 = vpop.f32.mrb[18].mxu1  ;;  %v10638_v28 = vrot.slane %v10636_v2, 4  ;;  %v10641_v62 = vrot.slane %v10639_v9, 5  ;;  %v10605_v1 = vrot.slane %v10604_v8, 4 }
 0x659   : > { %v10765_v54 = vadd.f32 %v17662_v40, %v10237_v59  ;;  %v10238_v5 = vadd.f32 %v12968_v0, %v17584_v14  ;;  %v10120_v32 = vpop.f32.mrb[19].mxu1  ;;  %v10671_v51 = vrot.slane %v10669_v53, 5  ;;  %v10675_v16 = vrot.slane %v10673_v52, 4  ;;  %v11967_v57 = vld [vmem:[%s13852_s15 + $0xbc] sm:$0x1]  ;;  %s12008_s15 = sshll.u32 %s13809_s22, 12 }
 0x65a   : > { %v10763_v37 = vadd.f32 %v17666_v17, %v10235_v44  ;;  %v10236_v45 = vadd.f32 %v17584_v14, %v10120_v32  ;;  %v10647_v43 = vrot.slane %v10645_v21, 5  ;;  %v10651_v47 = vrot.slane %v10649_v33, 4  ;;  %s17825_s25 = scalar_lea.hbm %s17883_s5, %s12008_s15  ;;  %s17837_s22 = scalar_lea.sflag [#allocation4], %s215_s10 }
 0x65b   : > { %v10797_v55 = vmax.f32 %v10765_v54, 0.0  ;;  %v10766_v40 = vadd.f32 %v17668_v20, %v10238_v5  ;;  %v10609_v20 = vrot.slane %v10607_v42, 5  ;;  %v10600_v22 = vsel %vm13885_vm2, %v10595_v7, %v17733_v19 }
 0x65c   : > { %v10795_v6 = vmax.f32 %v10763_v37, 0.0  ;;  %v10764_v48 = vadd.f32 %v17696_v29, %v10236_v45  ;;  %v10666_v59 = vor.u32 %v10665_v10, %v10662_v61  ;;  %v10634_v11 = vsel %vm13885_vm2, %v10629_v31, %v17748_v36 }
 0x65d   : > { %10829 = vst.msk [vmem:[%s17626_s14 + $0x90] sm:$0xff] %vm728_vm3, %v10797_v55  ;;  %v10798_v17 = vmax.f32 %v10766_v40, 0.0  ;;  %v10642_v44 = vor.u32 %v10641_v62, %v10638_v28  ;;  %v10676_v42 = vor.u32 %v10675_v16, %v10671_v51  ;;  %v10679_v41 = vshll.u32 %v11970_v49, 16 }
 0x65e   : > { %10827 = vst.msk [vmem:[%s17626_s14 + $0x80] sm:$0xff] %vm728_vm3, %v10795_v6  ;;  %v10796_v60 = vmax.f32 %v10764_v48, 0.0  ;;  %v12971_v50 = vpop.f32.mrb[20].mxu1  ;;  %v10610_v34 = vsel %vm13885_vm2, %v10605_v1, %v10609_v20  ;;  %v10652_v39 = vor.u32 %v10651_v47, %v10647_v43  ;;  %v10739_v32 = vunpack.c.l.bf16 %v10600_v22 }
 0x65f   : > { %10830 = vst.msk [vmem:[%s17626_s14 + $0x98] sm:$0xff] %vm728_vm3, %v10798_v17  ;;  %v10241_v29 = vadd.f32 %v12971_v50, %v17584_v14  ;;  %v10133_v3 = vpop.f32.mrb[21].mxu1  ;;  %v10667_v35 = vrot.slane %v10666_v59, 4  ;;  %v10742_v25 = vunpack.c.l.bf16 %v10634_v11  ;;  %v10643_v37 = vrot.slane %v10642_v44, 4 }
 0x660   : > { %10828 = vst.msk [vmem:[%s17626_s14 + $0x88] sm:$0xff] %vm728_vm3, %v10796_v60  ;;  %v10239_v4 = vadd.f32 %v17584_v14, %v10133_v3  ;;  %v12972_v46 = vpop.f32.mrb[22].mxu1  ;;  %v10740_v56 = vunpack.c.l.bf16 %v10610_v34  ;;  %v10677_v55 = vrot.slane %v10676_v42, 4  ;;  %v10681_v40 = vrot.slane %v10679_v41, 5 }
 0x661   : > { %v10769_v38 = vadd.f32 %v17700_v24, %v10241_v29  ;;  %v10242_v13 = vadd.f32 %v12972_v46, %v17584_v14  ;;  %v10136_v23 = vpop.f32.mrb[23].mxu1  ;;  %v10653_v48 = vrot.slane %v10652_v39, 4  ;;  %v10672_v7 = vsel %vm13885_vm2, %v10667_v35, %v10671_v51 }
 0x662   : > { %v10767_v26 = vadd.f32 %v17726_v15, %v10239_v4  ;;  %v10240_v12 = vadd.f32 %v17584_v14, %v10136_v23  ;;  %v10648_v60 = vsel %vm13885_vm2, %v10643_v37, %v10647_v43  ;;  %v10682_v20 = vsel %vm13885_vm2, %v10677_v55, %v10681_v40 }
 0x663   : > { %v10801_v18 = vmax.f32 %v10769_v38, 0.0  ;;  %v10770_v24 = vadd.f32 %v17731_v58, %v10242_v13  ;;  %v10655_v58 = vshll.u32 %v11967_v57, 16  ;;  %v10745_v10 = vunpack.c.l.bf16 %v10672_v7 }
 0x664   : > { %v10799_v0 = vmax.f32 %v10767_v26, 0.0  ;;  %v10768_v15 = vadd.f32 %v17738_v63, %v10240_v12  ;;  %v10743_v28 = vunpack.c.l.bf16 %v10648_v60  ;;  %v10746_v46 = vunpack.c.l.bf16 %v10682_v20 }
 0x665   : > { %10833 = vst.msk [vmem:[%s17626_s14 + $0xb0] sm:$0xff] %vm728_vm3, %v10801_v18  ;;  %v10802_v19 = vmax.f32 %v10770_v24, 0.0  ;;  %v10657_v53 = vrot.slane %v10655_v58, 5 }
 0x666   : > { %10831 = vst.msk [vmem:[%s17626_s14 + $0xa0] sm:$0xff] %vm728_vm3, %v10799_v0  ;;  %v10800_v54 = vmax.f32 %v10768_v15, 0.0  ;;  %v12975_v5 = vpop.f32.mrb[24].mxu1 }
 0x667   : > { %10834 = vst.msk [vmem:[%s17626_s14 + $0xb8] sm:$0xff] %vm728_vm3, %v10802_v19  ;;  %v10245_v63 = vadd.f32 %v12975_v5, %v17584_v14  ;;  %v10149_v36 = vpop.f32.mrb[25].mxu1  ;;  %v10658_v29 = vsel %vm13885_vm2, %v10653_v48, %v10657_v53 }
 0x668   : > { %10832 = vst.msk [vmem:[%s17626_s14 + $0xa8] sm:$0xff] %vm728_vm3, %v10800_v54  ;;  %v10243_v45 = vadd.f32 %v17584_v14, %v10149_v36  ;;  %v12976_v8 = vpop.f32.mrb[26].mxu1  ;;  %v10744_v51 = vunpack.c.l.bf16 %v10658_v29 }
 0x669   : > { %v10773_v2 = vadd.f32 %v17753_v30, %v10245_v63  ;;  %v10246_v9 = vadd.f32 %v12976_v8, %v17584_v14  ;;  %v10152_v6 = vpop.f32.mrb[27].mxu1 }
 0x66a   : > { %v10771_v52 = vadd.f32 %v10739_v32, %v10243_v45  ;;  %v10244_v17 = vadd.f32 %v17584_v14, %v10152_v6 }
 0x66b   : > { %v10805_v21 = vmax.f32 %v10773_v2, 0.0  ;;  %v10774_v33 = vadd.f32 %v10742_v25, %v10246_v9 }
 0x66c   : > { %v10803_v30 = vmax.f32 %v10771_v52, 0.0  ;;  %v10772_v50 = vadd.f32 %v10740_v56, %v10244_v17 }
 0x66d   : > { %10837 = vst.msk [vmem:[%s17626_s14 + $0xd0] sm:$0xff] %vm728_vm3, %v10805_v21  ;;  %v10806_v61 = vmax.f32 %v10774_v33, 0.0 }
 0x66e   : > { %10835 = vst.msk [vmem:[%s17626_s14 + $0xc0] sm:$0xff] %vm728_vm3, %v10803_v30  ;;  %v10804_v3 = vmax.f32 %v10772_v50, 0.0  ;;  %v12979_v31 = vpop.f32.mrb[28].mxu1 }
 0x66f   : > { %10838 = vst.msk [vmem:[%s17626_s14 + $0xd8] sm:$0xff] %vm728_vm3, %v10806_v61  ;;  %v10249_v62 = vadd.f32 %v12979_v31, %v17584_v14  ;;  %v10165_v4 = vpop.f32.mrb[29].mxu1 }
 0x670   : > { %10836 = vst.msk [vmem:[%s17626_s14 + $0xc8] sm:$0xff] %vm728_vm3, %v10804_v3  ;;  %v10247_v1 = vadd.f32 %v17584_v14, %v10165_v4  ;;  %v12980_v27 = vpop.f32.mrb[30].mxu1 }
 0x671   : > { %v10777_v16 = vadd.f32 %v10745_v10, %v10249_v62  ;;  %v10250_v38 = vadd.f32 %v12980_v27, %v17584_v14  ;;  %v10168_v13 = vpop.f32.mrb[31].mxu1 }
 0x672   : > { %v10775_v23 = vadd.f32 %v10743_v28, %v10247_v1  ;;  %v10248_v43 = vadd.f32 %v17584_v14, %v10168_v13 }
 0x673   : > { %v10809_v49 = vmax.f32 %v10777_v16, 0.0  ;;  %v10778_v47 = vadd.f32 %v10746_v46, %v10250_v38 }
 0x674   : > { %v10807_v26 = vmax.f32 %v10775_v23, 0.0  ;;  %v10776_v12 = vadd.f32 %v10744_v51, %v10248_v43 }
 0x675   : > { %10841 = vst.msk [vmem:[%s17626_s14 + $0xf0] sm:$0xff] %vm728_vm3, %v10809_v49  ;;  %v10810_v22 = vmax.f32 %v10778_v47, 0.0 }
 0x676   : > { %10839 = vst.msk [vmem:[%s17626_s14 + $0xe0] sm:$0xff] %vm728_vm3, %v10807_v26  ;;  %v10808_v14 = vmax.f32 %v10776_v12, 0.0 }
 0x677   : > { %10842 = vst.msk [vmem:[%s17626_s14 + $0xf8] sm:$0xff] %vm728_vm3, %v10810_v22 }
 0x678   : > { %10840 = vst.msk [vmem:[%s17626_s14 + $0xe8] sm:$0xff] %vm728_vm3, %v10808_v14 }
 0x679   : > { %13703 = shalt.err (!%p13700_p3)
}
 0x67a   : > { %s13704_s8 = scalar_lea.hbm %s17825_s25, 4096  ;;  %s13708_s11 = scalar_lea.hbm %s17883_s5, 8192 }
 0x67b   : > { %p13705_p4 = scmp.ne.s32.totalorder %s17825_s25, %s13704_s8  ;;  %p13709_p9 = scmp.lt.u32.totalorder %s17825_s25, %s17883_s5 }
 0x67c   : > { %p13710_p10 = scmp.lt.u32.totalorder %s13708_s11, %s13704_s8  ;;  %p13712_p12 = scmp.lt.u32.totalorder %s13704_s8, %s17825_s25 }
 0x67d   : > { %p13706_p7 = pnand %p13705_p4, %p13826_p5 }
 0x67e   : > { %p13711_p11 = por %p13710_p10, %p13709_p9 }
 0x67f   : > { %p13707_p8 = pneg %p13706_p7 }
 0x680   : > { %p13713_p13 = por %p13712_p12, %p13711_p11 }
 0x682   : > { %p13714_p0 = pnand %p13713_p13, %p13707_p8 }
 0x684   : > { %13717 = shalt.err (!%p13714_p0)
}
 0x685   : > { %s13756_s14 = smov 128   ;;  %s13757_s15 = smov 8  }
 0x686   : > { %13494 = dma.vmem_to_hbm [thread:$0]  (%p13826_p5), %s17827_s16, 4096, %s17825_s25, %s17837_s22, %s13756_s14, %s13756_s14, %s13757_s15  }
 0x687 PF: > { %p13500_p1 = scmp.ge.s32.totalorder %s13752_s21, 2  ;;  %s10872_s17 = sand.u32 1, %s13740_s18  }
 0x688   : > { %s10873_s23 = scalar_lea.sflag [#allocation4], %s10872_s17 }
 0x689   : > { %p13497_p2 = pnand %p13500_p1, %p13830_p6 }
 0x68b   : > { %13735 = dma.done.wait (!%p13497_p2), %s10873_s23, 4096  }
 0x68c   : > { %13737 = vsyncadd (!%p13497_p2), %s10873_s23, 4294963200  ;;  %p15_p3 = scmp.ge.s32.totalorder %s13813_s24, 4   ;;  %s18257_s18 = smov %s13744_s19 }
 0x68d   : > { %s18258_s19 = smov %s13748_s20  ;;  %s18259_s20 = smov %s13824_s27 }
 0x68e   : > { %s18260_s21 = smov %s13813_s24  ;;  %17 = sbr.rel (!%p15_p3) target bundleno = 3 (0x3), region = 95 }
 0x695   :  { %10878 = vsyncpa [#allocation4], 1 }
 0x696   :  { %10880 = vsyncpa [#allocation4 + $0x1], 1 }

</bundles_post_ra>
